<compile_context>
chip_gen: v7x
topology: tpu7x:2x2x1
jax: 0.10.0
libtpu: 0.0.40
codegen_flags: <defaults>
</compile_context>

<pallas_src>
import functools

import jax
import jax.numpy as jnp
from jax.experimental import pallas as pl
from jax.experimental.pallas import tpu as pltpu

C = 64                     # channel count fixed by DecodeNet
KK = 4                     # 2x2 transposed-conv taps per input pixel
NEG_SLOPE = 0.01           # F.leaky_relu default
MXU_DTYPE = jnp.bfloat16   # MXU operand dtype (accumulation stays f32)
MAX_BLOCK_PIXELS = 4096    # input pixels per grid step (VMEM budget)
VMEM_LIMIT_BYTES = 40 * 1024 * 1024


# ---------------------------------------------------------------------------
# Tiling helper
# ---------------------------------------------------------------------------
def _pick_rows(nh, width, max_pix=MAX_BLOCK_PIXELS):
    """Rows-per-block R: divides nh, R*width <= max_pix, R*width % 8 == 0,
    preferring >= 2 grid steps (megacore)."""
    divs = [r for r in range(1, nh + 1) if nh % r == 0]
    cand = [r for r in divs if r * width <= max_pix and (r * width) % 8 == 0]
    if not cand:
        return nh  # single full block; full-dim exemption covers the (8,) rule
    best = max(cand)
    if best == nh and nh > 1:
        smaller = [r for r in cand if r < nh]
        if smaller:
            best = max(smaller)
    return best


# ---------------------------------------------------------------------------
# Pallas kernels
# ---------------------------------------------------------------------------
def _stage_kernel(x_ref, gT_ref, beta_ref, w_ref, b_ref, o_ref, *, in_scale):
    """IGDN + (eval) Dropout2d + 2x2/s2 ConvTranspose + LeakyReLU.

    x_ref : (R*W, C) f32 input pixels.
    o_ref : (R, 2, W, 2C) f32 -- free view of NHWC (.., 2H, 2W, C); the
            pixel-shuffle happens via the two kh-slab stores below.
    """
    rows, _, width, _ = o_ref.shape
    x = x_ref[...]                                           # (RW, C) f32
    if in_scale != 1.0:
        x = x * in_scale
    # inverse GDN: y_i = x_i * sqrt(beta_i + sum_j gamma[i, j] * x_j^2)
    norm = beta_ref[...] + jnp.dot((x * x).astype(MXU_DTYPE), gT_ref[...],
                                   preferred_element_type=jnp.float32)
    y = (x * jnp.sqrt(norm)).astype(MXU_DTYPE)
    # TODO(synk): Dropout2d(0.5) is identity in eval mode; training-mode
    # channel dropout (random channel zeroing + 2x scaling) not implemented.
    t = jnp.dot(y, w_ref[...], preferred_element_type=jnp.float32) + b_ref[...]
    t = jnp.where(t >= 0, t, NEG_SLOPE * t)                  # (RW, 4C)
    half = 2 * C                                             # columns: (kh, kw, co)
    o_ref[:, 0:1, :, :] = t[:, :half].reshape(rows, 1, width, half)
    o_ref[:, 1:2, :, :] = t[:, half:].reshape(rows, 1, width, half)


def _last_kernel(x_ref, gT_ref, beta_ref, w_ref, b_ref, wf_ref, bf_ref, o_ref,
                 *, in_scale):
    """Stage-4 kernel with the final 1x1 conv (+LeakyReLU, *255) fused in.

    Output is (R*W, 4) per-input-pixel taps ordered (kh, kw); the (cheap,
    1-channel) pixel-shuffle is done on the host.
    """
    x = x_ref[...]
    if in_scale != 1.0:
        x = x * in_scale
    norm = beta_ref[...] + jnp.dot((x * x).astype(MXU_DTYPE), gT_ref[...],
                                   preferred_element_type=jnp.float32)
    y = (x * jnp.sqrt(norm)).astype(MXU_DTYPE)
    t = jnp.dot(y, w_ref[...], preferred_element_type=jnp.float32) + b_ref[...]
    t = jnp.where(t >= 0, t, NEG_SLOPE * t)                  # (RW, 4C)
    # 1x1 conv over channels per (kh, kw) group via block-diagonal (4C, 4) weight.
    z = jnp.dot(t.astype(MXU_DTYPE), wf_ref[...],
                preferred_element_type=jnp.float32) + bf_ref[...]
    o_ref[...] = jnp.where(z >= 0, z, NEG_SLOPE * z) * 255.0  # (RW, 4)


# ---------------------------------------------------------------------------
# pallas_call wrappers
# ---------------------------------------------------------------------------
def _compiler_params():
    return pltpu.CompilerParams(dimension_semantics=("parallel",),
                                vmem_limit_bytes=VMEM_LIMIT_BYTES)


def _run_stage(x2, gT, beta, w_r, b_r, nh, width, *, in_scale):
    assert x2.shape == (nh * width, C)
    R = _pick_rows(nh, width)
    assert nh % R == 0
    kern = functools.partial(_stage_kernel, in_scale=in_scale)
    return pl.pallas_call(
        kern,
        out_shape=jax.ShapeDtypeStruct((nh, 2, width, 2 * C), jnp.float32),
        grid_spec=pltpu.PrefetchScalarGridSpec(
            num_scalar_prefetch=0,
            grid=(nh // R,),
            in_specs=[
                pl.BlockSpec((R * width, C), lambda i: (i, 0)),
                pl.BlockSpec((C, C), lambda i: (0, 0)),
                pl.BlockSpec((1, C), lambda i: (0, 0)),
                pl.BlockSpec((C, KK * C), lambda i: (0, 0)),
                pl.BlockSpec((1, KK * C), lambda i: (0, 0)),
            ],
            out_specs=pl.BlockSpec((R, 2, width, 2 * C),
                                   lambda i: (i, 0, 0, 0)),
        ),
        compiler_params=_compiler_params(),
    )(x2, gT, beta, w_r, b_r)


def _run_last_stage(x2, gT, beta, w_r, b_r, wf_big, bf, nh, width, *, in_scale):
    assert x2.shape == (nh * width, C)
    R = _pick_rows(nh, width)
    assert nh % R == 0
    kern = functools.partial(_last_kernel, in_scale=in_scale)
    return pl.pallas_call(
        kern,
        out_shape=jax.ShapeDtypeStruct((nh * width, KK), jnp.float32),
        grid_spec=pltpu.PrefetchScalarGridSpec(
            num_scalar_prefetch=0,
            grid=(nh // R,),
            in_specs=[
                pl.BlockSpec((R * width, C), lambda i: (i, 0)),
                pl.BlockSpec((C, C), lambda i: (0, 0)),
                pl.BlockSpec((1, C), lambda i: (0, 0)),
                pl.BlockSpec((C, KK * C), lambda i: (0, 0)),
                pl.BlockSpec((1, KK * C), lambda i: (0, 0)),
                pl.BlockSpec((KK * C, KK), lambda i: (0, 0)),
                pl.BlockSpec((1, 1), lambda i: (0, 0)),
            ],
            out_specs=pl.BlockSpec((R * width, KK), lambda i: (i, 0)),
        ),
        compiler_params=_compiler_params(),
    )(x2, gT, beta, w_r, b_r, wf_big, bf)


# ---------------------------------------------------------------------------
# Forward pass (glue in plain JAX)
# ---------------------------------------------------------------------------
def decode_net_forward(x_nchw, params):
    N, _, H, W = x_nchw.shape
    # NCHW -> NHWC -> (P, C); the /255 is folded into the first stage kernel.
    x2 = jnp.transpose(x_nchw, (0, 2, 3, 1)).astype(jnp.float32).reshape(N * H * W, C)

    stages = params["stages"]
    n_stage = len(stages)
    scale = 1.0 / 255.0
    for si, st in enumerate(stages):
        nh = N * H
        gT = st["gammaT"].astype(MXU_DTYPE)
        wr = st["w_r"].astype(MXU_DTYPE)
        if si < n_stage - 1:
            y = _run_stage(x2, gT, st["beta"], wr, st["b_r"], nh, W,
                           in_scale=scale)              # (NH, 2, W, 2C)
            # Free view: (NH, 2, W, 2C) == NHWC (N, 2H, 2W, C) flattened.
            H, W = 2 * H, 2 * W
            x2 = y.reshape(N * H * W, C)
            scale = 1.0
        else:
            # Fused final 1x1 conv: block-diagonal (4C, 4) weight.
            wf = params["w_final"].reshape(C)
            wf_big = jnp.kron(jnp.eye(KK, dtype=jnp.float32),
                              wf[:, None]).astype(MXU_DTYPE)
            z = _run_last_stage(x2, gT, st["beta"], wr, st["b_r"],
                                wf_big, params["b_final"], nh, W,
                                in_scale=scale)         # (N*H*W, 4) taps (kh, kw)
            # Pixel-shuffle of the 1-channel output on host (tiny tensor).
            img = (z.reshape(N, H, W, 2, 2)
                     .transpose(0, 1, 3, 2, 4)
                     .reshape(N, 2 * H, 2 * W))
            return img[:, None, :, :]                   # NCHW (N, 1, 16H0, 16W0)


# Pure-JAX reference (same math, incl. the bf16 MXU-operand casts, no Pallas).
def reference_forward(x_nchw, params):
    x = jnp.transpose(x_nchw, (0, 2, 3, 1)).astype(jnp.float32) / 255.0
    for st in params["stages"]:
        N, H, W, _ = x.shape
        gT = st["gammaT"].astype(MXU_DTYPE)
        wr = st["w_r"].astype(MXU_DTYPE)
        norm = st["beta"].reshape(C) + jnp.einsum(
            "nhwj,ji->nhwi", (x * x).astype(MXU_DTYPE), gT,
            preferred_element_type=jnp.float32)
        y = (x * jnp.sqrt(norm)).astype(MXU_DTYPE)
        t = jnp.einsum("nhwc,ck->nhwk", y, wr,
                       preferred_element_type=jnp.float32) + st["b_r"].reshape(KK * C)
        t = jnp.where(t >= 0, t, NEG_SLOPE * t)
        x = (t.reshape(N, H, W, 2, 2, C)
              .transpose(0, 1, 3, 2, 4, 5)
              .reshape(N, 2 * H, 2 * W, C))
    wf = params["w_final"].reshape(C).astype(MXU_DTYPE)
    t = jnp.einsum("nhwc,c->nhw", x.astype(MXU_DTYPE), wf,
                   preferred_element_type=jnp.float32) + params["b_final"].reshape(())
    t = jnp.where(t >= 0, t, NEG_SLOPE * t) * 255.0
    return t[:, None, :, :]


# ---------------------------------------------------------------------------
# Deterministic parameter init (shapes from DecodeNet.__init__)
# ---------------------------------------------------------------------------
def init_params(key):
    stages = []
    for _ in range(4):
        key, kg, kb, kw, kbias = jax.random.split(key, 5)
        # GDN(64, inverse=True): beta (64,), gamma (64, 64)
        gamma = 0.1 * jnp.eye(C, dtype=jnp.float32) \
            + 0.01 * jax.random.uniform(kg, (C, C), jnp.float32)
        beta = 1.0 + 0.1 * jax.random.uniform(kb, (1, C), jnp.float32)
        # ConvTranspose2d(64, 64, 2, 2): weight (Cin, Cout, 2, 2), bias (Cout,)
        w = 0.05 * jax.random.normal(kw, (C, C, 2, 2), jnp.float32)
        b = 0.01 * jax.random.normal(kbias, (C,), jnp.float32)
        stages.append({
            "gammaT": jnp.transpose(gamma),                              # (j, i)
            "beta": beta,                                                # (1, C)
            "w_r": jnp.transpose(w, (0, 2, 3, 1)).reshape(C, KK * C),    # ci -> (kh,kw,co)
            "b_r": jnp.tile(b, KK).reshape(1, KK * C),
        })
    # ConvTranspose2d(64, 1, 1): weight (64, 1, 1, 1), bias (1,)
    key, kw1, kb1 = jax.random.split(key, 3)
    w1 = 0.05 * jax.random.normal(kw1, (C, 1, 1, 1), jnp.float32)
    b1 = 0.01 * jax.random.normal(kb1, (1,), jnp.float32)
    return {
        "stages": stages,
        "w_final": w1.reshape(1, C),
        "b_final": b1.reshape(1, 1),
    }


if __name__ == "__main__":
    key = jax.random.PRNGKey(0)
    key, kx = jax.random.split(key)
    params = init_params(key)

    # Small input consistent with the module: N=2, C=64 (fixed), 4x4 spatial
    # (the real net uses 16x16 -> 256x256; here 4x4 -> 64x64).
    x5 = 255.0 * jax.random.uniform(kx, (2, C, 4, 4), jnp.float32)

    out = jax.block_until_ready(jax.jit(decode_net_forward)(x5, params))
    assert out.shape == (2, 1, 64, 64), out.shape

    ref = jax.block_until_ready(jax.jit(reference_forward)(x5, params))
    assert jnp.allclose(out, ref, rtol=2e-2, atol=2e-2), \
        float(jnp.max(jnp.abs(out - ref)))

    print("KERNEL_OK")
</pallas_src>

<mosaic_0001>
module attributes {stable_mosaic.version = 11 : i64} {
  func.func @_stage_kernel(%arg0: i32, %arg1: memref<64x64xf32, #tpu.memory_space<vmem>>, %arg2: memref<64x64xbf16, #tpu.memory_space<vmem>>, %arg3: memref<1x64xf32, #tpu.memory_space<vmem>>, %arg4: memref<64x256xbf16, #tpu.memory_space<vmem>>, %arg5: memref<1x256xf32, #tpu.memory_space<vmem>>, %arg6: memref<8x2x8x128xf32, #tpu.memory_space<vmem>>) attributes {dimension_semantics = [#tpu.dimension_semantics<parallel>], iteration_bounds = array<i64: 2>, scalar_prefetch = 0 : i64, scratch_operands = 0 : i64, tpu.core_type = #tpu.core_type<tc>, window_params = [{transform_indices = @transform_0, window_bounds = array<i64: 64, 64>}, {pipeline_mode = #tpu.pipeline_mode<synchronous>, transform_indices = @transform_1, window_bounds = array<i64: 64, 64>}, {pipeline_mode = #tpu.pipeline_mode<synchronous>, transform_indices = @transform_2, window_bounds = array<i64: 1, 64>}, {pipeline_mode = #tpu.pipeline_mode<synchronous>, transform_indices = @transform_3, window_bounds = array<i64: 64, 256>}, {pipeline_mode = #tpu.pipeline_mode<synchronous>, transform_indices = @transform_4, window_bounds = array<i64: 1, 256>}, {transform_indices = @transform_5, window_bounds = array<i64: 8, 2, 8, 128>}]} {
    %c0 = arith.constant 0 : index
    %c0_0 = arith.constant 0 : index
    %0 = vector.load %arg1[%c0, %c0_0] : memref<64x64xf32, #tpu.memory_space<vmem>>, vector<64x64xf32>
    %c0_1 = arith.constant 0 : index
    %c0_2 = arith.constant 0 : index
    %1 = vector.load %arg3[%c0_1, %c0_2] : memref<1x64xf32, #tpu.memory_space<vmem>>, vector<1x64xf32>
    %2 = arith.mulf %0, %0 : vector<64x64xf32>
    %3 = arith.truncf %2 : vector<64x64xf32> to vector<64x64xbf16>
    %c0_3 = arith.constant 0 : index
    %c0_4 = arith.constant 0 : index
    %4 = vector.load %arg2[%c0_3, %c0_4] : memref<64x64xbf16, #tpu.memory_space<vmem>>, vector<64x64xbf16>
    %cst = arith.constant dense<0.000000e+00> : vector<64x64xf32>
    %5 = tpu.matmul %3, %4, %cst {dimension_numbers = #tpu.dot_dimension_numbers<[1], [0], [0], [1], [0, 0, 1, 1], [], []>} : vector<64x64xbf16>, vector<64x64xbf16>, vector<64x64xf32> -> vector<64x64xf32>
    %6 = vector.broadcast %1 : vector<1x64xf32> to vector<64x64xf32>
    %7 = arith.addf %6, %5 : vector<64x64xf32>
    %8 = math.sqrt %7 : vector<64x64xf32>
    %9 = arith.mulf %0, %8 : vector<64x64xf32>
    %10 = arith.truncf %9 : vector<64x64xf32> to vector<64x64xbf16>
    %c0_5 = arith.constant 0 : index
    %c0_6 = arith.constant 0 : index
    %11 = vector.load %arg4[%c0_5, %c0_6] : memref<64x256xbf16, #tpu.memory_space<vmem>>, vector<64x256xbf16>
    %cst_7 = arith.constant dense<0.000000e+00> : vector<64x256xf32>
    %12 = tpu.matmul %10, %11, %cst_7 {dimension_numbers = #tpu.dot_dimension_numbers<[1], [0], [0], [1], [0, 0, 1, 1], [], []>} : vector<64x64xbf16>, vector<64x256xbf16>, vector<64x256xf32> -> vector<64x256xf32>
    %c0_8 = arith.constant 0 : index
    %c0_9 = arith.constant 0 : index
    %13 = vector.load %arg5[%c0_8, %c0_9] : memref<1x256xf32, #tpu.memory_space<vmem>>, vector<1x256xf32>
    %14 = vector.broadcast %13 : vector<1x256xf32> to vector<64x256xf32>
    %15 = arith.addf %12, %14 : vector<64x256xf32>
    %cst_10 = arith.constant 0.000000e+00 : f32
    %16 = vector.broadcast %cst_10 : f32 to vector<64x256xf32>
    %17 = arith.cmpf oge, %15, %16 : vector<64x256xf32>
    %cst_11 = arith.constant 0.00999999977 : f32
    %18 = vector.broadcast %cst_11 : f32 to vector<64x256xf32>
    %19 = arith.mulf %18, %15 : vector<64x256xf32>
    %20 = arith.select %17, %15, %19 : vector<64x256xi1>, vector<64x256xf32>
    %21 = vector.extract_strided_slice %20 {offsets = [0, 0], sizes = [64, 128], strides = [1, 1]} : vector<64x256xf32> to vector<64x128xf32>
    %22 = vector.shape_cast %21 : vector<64x128xf32> to vector<8x1x8x128xf32>
    %c0_12 = arith.constant 0 : index
    %c0_13 = arith.constant 0 : index
    %c0_14 = arith.constant 0 : index
    %c0_15 = arith.constant 0 : index
    %23 = vector.load %arg6[%c0_12, %c0_13, %c0_14, %c0_15] : memref<8x2x8x128xf32, #tpu.memory_space<vmem>>, vector<8x1x8x128xf32>
    tpu.vector_store %arg6[%c0_12, %c0_13, %c0_14, %c0_15], %22 {strides = array<i32>} : memref<8x2x8x128xf32, #tpu.memory_space<vmem>>, vector<8x1x8x128xf32>,
    %24 = vector.extract_strided_slice %20 {offsets = [0, 128], sizes = [64, 128], strides = [1, 1]} : vector<64x256xf32> to vector<64x128xf32>
    %25 = vector.shape_cast %24 : vector<64x128xf32> to vector<8x1x8x128xf32>
    %c0_16 = arith.constant 0 : index
    %c1 = arith.constant 1 : index
    %c0_17 = arith.constant 0 : index
    %c0_18 = arith.constant 0 : index
    %26 = vector.load %arg6[%c0_16, %c1, %c0_17, %c0_18] : memref<8x2x8x128xf32, #tpu.memory_space<vmem>>, vector<8x1x8x128xf32>
    tpu.vector_store %arg6[%c0_16, %c1, %c0_17, %c0_18], %25 {strides = array<i32>} : memref<8x2x8x128xf32, #tpu.memory_space<vmem>>, vector<8x1x8x128xf32>,
    return
  }
  func.func @transform_0(%arg0: i32) -> (i32, i32) {
    %c0_i32 = arith.constant 0 : i32
    %c0_i32_0 = arith.constant 0 : i32
    return %arg0, %c0_i32 : i32, i32
  }
  func.func @transform_1(%arg0: i32) -> (i32, i32) {
    %c0_i32 = arith.constant 0 : i32
    %c0_i32_0 = arith.constant 0 : i32
    %c0_i32_1 = arith.constant 0 : i32
    return %c0_i32, %c0_i32_0 : i32, i32
  }
  func.func @transform_2(%arg0: i32) -> (i32, i32) {
    %c0_i32 = arith.constant 0 : i32
    %c0_i32_0 = arith.constant 0 : i32
    %c0_i32_1 = arith.constant 0 : i32
    return %c0_i32, %c0_i32_0 : i32, i32
  }
  func.func @transform_3(%arg0: i32) -> (i32, i32) {
    %c0_i32 = arith.constant 0 : i32
    %c0_i32_0 = arith.constant 0 : i32
    %c0_i32_1 = arith.constant 0 : i32
    return %c0_i32, %c0_i32_0 : i32, i32
  }
  func.func @transform_4(%arg0: i32) -> (i32, i32) {
    %c0_i32 = arith.constant 0 : i32
    %c0_i32_0 = arith.constant 0 : i32
    %c0_i32_1 = arith.constant 0 : i32
    return %c0_i32, %c0_i32_0 : i32, i32
  }
  func.func @transform_5(%arg0: i32) -> (i32, i32, i32, i32) {
    %c0_i32 = arith.constant 0 : i32
    %c0_i32_0 = arith.constant 0 : i32
    %c0_i32_1 = arith.constant 0 : i32
    %c0_i32_2 = arith.constant 0 : i32
    return %arg0, %c0_i32, %c0_i32_0, %c0_i32_1 : i32, i32, i32, i32
  }
}

module attributes {stable_mosaic.version = 11 : i64} {
  func.func @_stage_kernel(%arg0: i32, %arg1: memref<16x64xf32, #tpu.memory_space<vmem>>, %arg2: memref<64x64xbf16, #tpu.memory_space<vmem>>, %arg3: memref<1x64xf32, #tpu.memory_space<vmem>>, %arg4: memref<64x256xbf16, #tpu.memory_space<vmem>>, %arg5: memref<1x256xf32, #tpu.memory_space<vmem>>, %arg6: memref<4x2x4x128xf32, #tpu.memory_space<vmem>>) attributes {dimension_semantics = [#tpu.dimension_semantics<parallel>], iteration_bounds = array<i64: 2>, scalar_prefetch = 0 : i64, scratch_operands = 0 : i64, tpu.core_type = #tpu.core_type<tc>, window_params = [{transform_indices = @transform_0, window_bounds = array<i64: 16, 64>}, {pipeline_mode = #tpu.pipeline_mode<synchronous>, transform_indices = @transform_1, window_bounds = array<i64: 64, 64>}, {pipeline_mode = #tpu.pipeline_mode<synchronous>, transform_indices = @transform_2, window_bounds = array<i64: 1, 64>}, {pipeline_mode = #tpu.pipeline_mode<synchronous>, transform_indices = @transform_3, window_bounds = array<i64: 64, 256>}, {pipeline_mode = #tpu.pipeline_mode<synchronous>, transform_indices = @transform_4, window_bounds = array<i64: 1, 256>}, {transform_indices = @transform_5, window_bounds = array<i64: 4, 2, 4, 128>}]} {
    %c0 = arith.constant 0 : index
    %c0_0 = arith.constant 0 : index
    %0 = vector.load %arg1[%c0, %c0_0] : memref<16x64xf32, #tpu.memory_space<vmem>>, vector<16x64xf32>
    %cst = arith.constant 0.00392156886 : f32
    %1 = vector.broadcast %cst : f32 to vector<16x64xf32>
    %2 = arith.mulf %0, %1 : vector<16x64xf32>
    %c0_1 = arith.constant 0 : index
    %c0_2 = arith.constant 0 : index
    %3 = vector.load %arg3[%c0_1, %c0_2] : memref<1x64xf32, #tpu.memory_space<vmem>>, vector<1x64xf32>
    %4 = arith.mulf %2, %2 : vector<16x64xf32>
    %5 = arith.truncf %4 : vector<16x64xf32> to vector<16x64xbf16>
    %c0_3 = arith.constant 0 : index
    %c0_4 = arith.constant 0 : index
    %6 = vector.load %arg2[%c0_3, %c0_4] : memref<64x64xbf16, #tpu.memory_space<vmem>>, vector<64x64xbf16>
    %cst_5 = arith.constant dense<0.000000e+00> : vector<16x64xf32>
    %7 = tpu.matmul %5, %6, %cst_5 {dimension_numbers = #tpu.dot_dimension_numbers<[1], [0], [0], [1], [0, 0, 1, 1], [], []>} : vector<16x64xbf16>, vector<64x64xbf16>, vector<16x64xf32> -> vector<16x64xf32>
    %8 = vector.broadcast %3 : vector<1x64xf32> to vector<16x64xf32>
    %9 = arith.addf %8, %7 : vector<16x64xf32>
    %10 = math.sqrt %9 : vector<16x64xf32>
    %11 = arith.mulf %2, %10 : vector<16x64xf32>
    %12 = arith.truncf %11 : vector<16x64xf32> to vector<16x64xbf16>
    %c0_6 = arith.constant 0 : index
    %c0_7 = arith.constant 0 : index
    %13 = vector.load %arg4[%c0_6, %c0_7] : memref<64x256xbf16, #tpu.memory_space<vmem>>, vector<64x256xbf16>
    %cst_8 = arith.constant dense<0.000000e+00> : vector<16x256xf32>
    %14 = tpu.matmul %12, %13, %cst_8 {dimension_numbers = #tpu.dot_dimension_numbers<[1], [0], [0], [1], [0, 0, 1, 1], [], []>} : vector<16x64xbf16>, vector<64x256xbf16>, vector<16x256xf32> -> vector<16x256xf32>
    %c0_9 = arith.constant 0 : index
    %c0_10 = arith.constant 0 : index
    %15 = vector.load %arg5[%c0_9, %c0_10] : memref<1x256xf32, #tpu.memory_space<vmem>>, vector<1x256xf32>
    %16 = vector.broadcast %15 : vector<1x256xf32> to vector<16x256xf32>
    %17 = arith.addf %14, %16 : vector<16x256xf32>
    %cst_11 = arith.constant 0.000000e+00 : f32
    %18 = vector.broadcast %cst_11 : f32 to vector<16x256xf32>
    %19 = arith.cmpf oge, %17, %18 : vector<16x256xf32>
    %cst_12 = arith.constant 0.00999999977 : f32
    %20 = vector.broadcast %cst_12 : f32 to vector<16x256xf32>
    %21 = arith.mulf %20, %17 : vector<16x256xf32>
    %22 = arith.select %19, %17, %21 : vector<16x256xi1>, vector<16x256xf32>
    %23 = vector.extract_strided_slice %22 {offsets = [0, 0], sizes = [16, 128], strides = [1, 1]} : vector<16x256xf32> to vector<16x128xf32>
    %24 = vector.shape_cast %23 : vector<16x128xf32> to vector<4x1x4x128xf32>
    %c0_13 = arith.constant 0 : index
    %c0_14 = arith.constant 0 : index
    %c0_15 = arith.constant 0 : index
    %c0_16 = arith.constant 0 : index
    %25 = vector.load %arg6[%c0_13, %c0_14, %c0_15, %c0_16] : memref<4x2x4x128xf32, #tpu.memory_space<vmem>>, vector<4x1x4x128xf32>
    tpu.vector_store %arg6[%c0_13, %c0_14, %c0_15, %c0_16], %24 {strides = array<i32>} : memref<4x2x4x128xf32, #tpu.memory_space<vmem>>, vector<4x1x4x128xf32>,
    %26 = vector.extract_strided_slice %22 {offsets = [0, 128], sizes = [16, 128], strides = [1, 1]} : vector<16x256xf32> to vector<16x128xf32>
    %27 = vector.shape_cast %26 : vector<16x128xf32> to vector<4x1x4x128xf32>
    %c0_17 = arith.constant 0 : index
    %c1 = arith.constant 1 : index
    %c0_18 = arith.constant 0 : index
    %c0_19 = arith.constant 0 : index
    %28 = vector.load %arg6[%c0_17, %c1, %c0_18, %c0_19] : memref<4x2x4x128xf32, #tpu.memory_space<vmem>>, vector<4x1x4x128xf32>
    tpu.vector_store %arg6[%c0_17, %c1, %c0_18, %c0_19], %27 {strides = array<i32>} : memref<4x2x4x128xf32, #tpu.memory_space<vmem>>, vector<4x1x4x128xf32>,
    return
  }
  func.func @transform_0(%arg0: i32) -> (i32, i32) {
    %c0_i32 = arith.constant 0 : i32
    %c0_i32_0 = arith.constant 0 : i32
    return %arg0, %c0_i32 : i32, i32
  }
  func.func @transform_1(%arg0: i32) -> (i32, i32) {
    %c0_i32 = arith.constant 0 : i32
    %c0_i32_0 = arith.constant 0 : i32
    %c0_i32_1 = arith.constant 0 : i32
    return %c0_i32, %c0_i32_0 : i32, i32
  }
  func.func @transform_2(%arg0: i32) -> (i32, i32) {
    %c0_i32 = arith.constant 0 : i32
    %c0_i32_0 = arith.constant 0 : i32
    %c0_i32_1 = arith.constant 0 : i32
    return %c0_i32, %c0_i32_0 : i32, i32
  }
  func.func @transform_3(%arg0: i32) -> (i32, i32) {
    %c0_i32 = arith.constant 0 : i32
    %c0_i32_0 = arith.constant 0 : i32
    %c0_i32_1 = arith.constant 0 : i32
    return %c0_i32, %c0_i32_0 : i32, i32
  }
  func.func @transform_4(%arg0: i32) -> (i32, i32) {
    %c0_i32 = arith.constant 0 : i32
    %c0_i32_0 = arith.constant 0 : i32
    %c0_i32_1 = arith.constant 0 : i32
    return %c0_i32, %c0_i32_0 : i32, i32
  }
  func.func @transform_5(%arg0: i32) -> (i32, i32, i32, i32) {
    %c0_i32 = arith.constant 0 : i32
    %c0_i32_0 = arith.constant 0 : i32
    %c0_i32_1 = arith.constant 0 : i32
    %c0_i32_2 = arith.constant 0 : i32
    return %arg0, %c0_i32, %c0_i32_0, %c0_i32_1 : i32, i32, i32, i32
  }
}

module attributes {stable_mosaic.version = 11 : i64} {
  func.func @_stage_kernel(%arg0: i32, %arg1: memref<256x64xf32, #tpu.memory_space<vmem>>, %arg2: memref<64x64xbf16, #tpu.memory_space<vmem>>, %arg3: memref<1x64xf32, #tpu.memory_space<vmem>>, %arg4: memref<64x256xbf16, #tpu.memory_space<vmem>>, %arg5: memref<1x256xf32, #tpu.memory_space<vmem>>, %arg6: memref<16x2x16x128xf32, #tpu.memory_space<vmem>>) attributes {dimension_semantics = [#tpu.dimension_semantics<parallel>], iteration_bounds = array<i64: 2>, scalar_prefetch = 0 : i64, scratch_operands = 0 : i64, tpu.core_type = #tpu.core_type<tc>, window_params = [{transform_indices = @transform_0, window_bounds = array<i64: 256, 64>}, {pipeline_mode = #tpu.pipeline_mode<synchronous>, transform_indices = @transform_1, window_bounds = array<i64: 64, 64>}, {pipeline_mode = #tpu.pipeline_mode<synchronous>, transform_indices = @transform_2, window_bounds = array<i64: 1, 64>}, {pipeline_mode = #tpu.pipeline_mode<synchronous>, transform_indices = @transform_3, window_bounds = array<i64: 64, 256>}, {pipeline_mode = #tpu.pipeline_mode<synchronous>, transform_indices = @transform_4, window_bounds = array<i64: 1, 256>}, {transform_indices = @transform_5, window_bounds = array<i64: 16, 2, 16, 128>}]} {
    %c0 = arith.constant 0 : index
    %c0_0 = arith.constant 0 : index
    %0 = vector.load %arg1[%c0, %c0_0] : memref<256x64xf32, #tpu.memory_space<vmem>>, vector<256x64xf32>
    %c0_1 = arith.constant 0 : index
    %c0_2 = arith.constant 0 : index
    %1 = vector.load %arg3[%c0_1, %c0_2] : memref<1x64xf32, #tpu.memory_space<vmem>>, vector<1x64xf32>
    %2 = arith.mulf %0, %0 : vector<256x64xf32>
    %3 = arith.truncf %2 : vector<256x64xf32> to vector<256x64xbf16>
    %c0_3 = arith.constant 0 : index
    %c0_4 = arith.constant 0 : index
    %4 = vector.load %arg2[%c0_3, %c0_4] : memref<64x64xbf16, #tpu.memory_space<vmem>>, vector<64x64xbf16>
    %cst = arith.constant dense<0.000000e+00> : vector<256x64xf32>
    %5 = tpu.matmul %3, %4, %cst {dimension_numbers = #tpu.dot_dimension_numbers<[1], [0], [0], [1], [0, 0, 1, 1], [], []>} : vector<256x64xbf16>, vector<64x64xbf16>, vector<256x64xf32> -> vector<256x64xf32>
    %6 = vector.broadcast %1 : vector<1x64xf32> to vector<256x64xf32>
    %7 = arith.addf %6, %5 : vector<256x64xf32>
    %8 = math.sqrt %7 : vector<256x64xf32>
    %9 = arith.mulf %0, %8 : vector<256x64xf32>
    %10 = arith.truncf %9 : vector<256x64xf32> to vector<256x64xbf16>
    %c0_5 = arith.constant 0 : index
    %c0_6 = arith.constant 0 : index
    %11 = vector.load %arg4[%c0_5, %c0_6] : memref<64x256xbf16, #tpu.memory_space<vmem>>, vector<64x256xbf16>
    %cst_7 = arith.constant dense<0.000000e+00> : vector<256x256xf32>
    %12 = tpu.matmul %10, %11, %cst_7 {dimension_numbers = #tpu.dot_dimension_numbers<[1], [0], [0], [1], [0, 0, 1, 1], [], []>} : vector<256x64xbf16>, vector<64x256xbf16>, vector<256x256xf32> -> vector<256x256xf32>
    %c0_8 = arith.constant 0 : index
    %c0_9 = arith.constant 0 : index
    %13 = vector.load %arg5[%c0_8, %c0_9] : memref<1x256xf32, #tpu.memory_space<vmem>>, vector<1x256xf32>
    %14 = vector.broadcast %13 : vector<1x256xf32> to vector<256x256xf32>
    %15 = arith.addf %12, %14 : vector<256x256xf32>
    %cst_10 = arith.constant 0.000000e+00 : f32
    %16 = vector.broadcast %cst_10 : f32 to vector<256x256xf32>
    %17 = arith.cmpf oge, %15, %16 : vector<256x256xf32>
    %cst_11 = arith.constant 0.00999999977 : f32
    %18 = vector.broadcast %cst_11 : f32 to vector<256x256xf32>
    %19 = arith.mulf %18, %15 : vector<256x256xf32>
    %20 = arith.select %17, %15, %19 : vector<256x256xi1>, vector<256x256xf32>
    %21 = vector.extract_strided_slice %20 {offsets = [0, 0], sizes = [256, 128], strides = [1, 1]} : vector<256x256xf32> to vector<256x128xf32>
    %22 = vector.shape_cast %21 : vector<256x128xf32> to vector<16x1x16x128xf32>
    %c0_12 = arith.constant 0 : index
    %c0_13 = arith.constant 0 : index
    %c0_14 = arith.constant 0 : index
    %c0_15 = arith.constant 0 : index
    %23 = vector.load %arg6[%c0_12, %c0_13, %c0_14, %c0_15] : memref<16x2x16x128xf32, #tpu.memory_space<vmem>>, vector<16x1x16x128xf32>
    tpu.vector_store %arg6[%c0_12, %c0_13, %c0_14, %c0_15], %22 {strides = array<i32>} : memref<16x2x16x128xf32, #tpu.memory_space<vmem>>, vector<16x1x16x128xf32>,
    %24 = vector.extract_strided_slice %20 {offsets = [0, 128], sizes = [256, 128], strides = [1, 1]} : vector<256x256xf32> to vector<256x128xf32>
    %25 = vector.shape_cast %24 : vector<256x128xf32> to vector<16x1x16x128xf32>
    %c0_16 = arith.constant 0 : index
    %c1 = arith.constant 1 : index
    %c0_17 = arith.constant 0 : index
    %c0_18 = arith.constant 0 : index
    %26 = vector.load %arg6[%c0_16, %c1, %c0_17, %c0_18] : memref<16x2x16x128xf32, #tpu.memory_space<vmem>>, vector<16x1x16x128xf32>
    tpu.vector_store %arg6[%c0_16, %c1, %c0_17, %c0_18], %25 {strides = array<i32>} : memref<16x2x16x128xf32, #tpu.memory_space<vmem>>, vector<16x1x16x128xf32>,
    return
  }
  func.func @transform_0(%arg0: i32) -> (i32, i32) {
    %c0_i32 = arith.constant 0 : i32
    %c0_i32_0 = arith.constant 0 : i32
    return %arg0, %c0_i32 : i32, i32
  }
  func.func @transform_1(%arg0: i32) -> (i32, i32) {
    %c0_i32 = arith.constant 0 : i32
    %c0_i32_0 = arith.constant 0 : i32
    %c0_i32_1 = arith.constant 0 : i32
    return %c0_i32, %c0_i32_0 : i32, i32
  }
  func.func @transform_2(%arg0: i32) -> (i32, i32) {
    %c0_i32 = arith.constant 0 : i32
    %c0_i32_0 = arith.constant 0 : i32
    %c0_i32_1 = arith.constant 0 : i32
    return %c0_i32, %c0_i32_0 : i32, i32
  }
  func.func @transform_3(%arg0: i32) -> (i32, i32) {
    %c0_i32 = arith.constant 0 : i32
    %c0_i32_0 = arith.constant 0 : i32
    %c0_i32_1 = arith.constant 0 : i32
    return %c0_i32, %c0_i32_0 : i32, i32
  }
  func.func @transform_4(%arg0: i32) -> (i32, i32) {
    %c0_i32 = arith.constant 0 : i32
    %c0_i32_0 = arith.constant 0 : i32
    %c0_i32_1 = arith.constant 0 : i32
    return %c0_i32, %c0_i32_0 : i32, i32
  }
  func.func @transform_5(%arg0: i32) -> (i32, i32, i32, i32) {
    %c0_i32 = arith.constant 0 : i32
    %c0_i32_0 = arith.constant 0 : i32
    %c0_i32_1 = arith.constant 0 : i32
    %c0_i32_2 = arith.constant 0 : i32
    return %arg0, %c0_i32, %c0_i32_0, %c0_i32_1 : i32, i32, i32, i32
  }
}

module attributes {stable_mosaic.version = 11 : i64} {
  func.func @_last_kernel(%arg0: i32, %arg1: memref<1024x64xf32, #tpu.memory_space<vmem>>, %arg2: memref<64x64xbf16, #tpu.memory_space<vmem>>, %arg3: memref<1x64xf32, #tpu.memory_space<vmem>>, %arg4: memref<64x256xbf16, #tpu.memory_space<vmem>>, %arg5: memref<1x256xf32, #tpu.memory_space<vmem>>, %arg6: memref<256x4xbf16, #tpu.memory_space<vmem>>, %arg7: memref<1x1xf32, #tpu.memory_space<vmem>>, %arg8: memref<1024x4xf32, #tpu.memory_space<vmem>>) attributes {dimension_semantics = [#tpu.dimension_semantics<parallel>], iteration_bounds = array<i64: 2>, scalar_prefetch = 0 : i64, scratch_operands = 0 : i64, tpu.core_type = #tpu.core_type<tc>, window_params = [{transform_indices = @transform_0, window_bounds = array<i64: 1024, 64>}, {pipeline_mode = #tpu.pipeline_mode<synchronous>, transform_indices = @transform_1, window_bounds = array<i64: 64, 64>}, {pipeline_mode = #tpu.pipeline_mode<synchronous>, transform_indices = @transform_2, window_bounds = array<i64: 1, 64>}, {pipeline_mode = #tpu.pipeline_mode<synchronous>, transform_indices = @transform_3, window_bounds = array<i64: 64, 256>}, {pipeline_mode = #tpu.pipeline_mode<synchronous>, transform_indices = @transform_4, window_bounds = array<i64: 1, 256>}, {pipeline_mode = #tpu.pipeline_mode<synchronous>, transform_indices = @transform_5, window_bounds = array<i64: 256, 4>}, {pipeline_mode = #tpu.pipeline_mode<synchronous>, transform_indices = @transform_6, window_bounds = array<i64: 1, 1>}, {transform_indices = @transform_7, window_bounds = array<i64: 1024, 4>}]} {
    %c0 = arith.constant 0 : index
    %c0_0 = arith.constant 0 : index
    %0 = vector.load %arg1[%c0, %c0_0] : memref<1024x64xf32, #tpu.memory_space<vmem>>, vector<1024x64xf32>
    %c0_1 = arith.constant 0 : index
    %c0_2 = arith.constant 0 : index
    %1 = vector.load %arg3[%c0_1, %c0_2] : memref<1x64xf32, #tpu.memory_space<vmem>>, vector<1x64xf32>
    %2 = arith.mulf %0, %0 : vector<1024x64xf32>
    %3 = arith.truncf %2 : vector<1024x64xf32> to vector<1024x64xbf16>
    %c0_3 = arith.constant 0 : index
    %c0_4 = arith.constant 0 : index
    %4 = vector.load %arg2[%c0_3, %c0_4] : memref<64x64xbf16, #tpu.memory_space<vmem>>, vector<64x64xbf16>
    %cst = arith.constant dense<0.000000e+00> : vector<1024x64xf32>
    %5 = tpu.matmul %3, %4, %cst {dimension_numbers = #tpu.dot_dimension_numbers<[1], [0], [0], [1], [0, 0, 1, 1], [], []>} : vector<1024x64xbf16>, vector<64x64xbf16>, vector<1024x64xf32> -> vector<1024x64xf32>
    %6 = vector.broadcast %1 : vector<1x64xf32> to vector<1024x64xf32>
    %7 = arith.addf %6, %5 : vector<1024x64xf32>
    %8 = math.sqrt %7 : vector<1024x64xf32>
    %9 = arith.mulf %0, %8 : vector<1024x64xf32>
    %10 = arith.truncf %9 : vector<1024x64xf32> to vector<1024x64xbf16>
    %c0_5 = arith.constant 0 : index
    %c0_6 = arith.constant 0 : index
    %11 = vector.load %arg4[%c0_5, %c0_6] : memref<64x256xbf16, #tpu.memory_space<vmem>>, vector<64x256xbf16>
    %cst_7 = arith.constant dense<0.000000e+00> : vector<1024x256xf32>
    %12 = tpu.matmul %10, %11, %cst_7 {dimension_numbers = #tpu.dot_dimension_numbers<[1], [0], [0], [1], [0, 0, 1, 1], [], []>} : vector<1024x64xbf16>, vector<64x256xbf16>, vector<1024x256xf32> -> vector<1024x256xf32>
    %c0_8 = arith.constant 0 : index
    %c0_9 = arith.constant 0 : index
    %13 = vector.load %arg5[%c0_8, %c0_9] : memref<1x256xf32, #tpu.memory_space<vmem>>, vector<1x256xf32>
    %14 = vector.broadcast %13 : vector<1x256xf32> to vector<1024x256xf32>
    %15 = arith.addf %12, %14 : vector<1024x256xf32>
    %cst_10 = arith.constant 0.000000e+00 : f32
    %16 = vector.broadcast %cst_10 : f32 to vector<1024x256xf32>
    %17 = arith.cmpf oge, %15, %16 : vector<1024x256xf32>
    %cst_11 = arith.constant 0.00999999977 : f32
    %18 = vector.broadcast %cst_11 : f32 to vector<1024x256xf32>
    %19 = arith.mulf %18, %15 : vector<1024x256xf32>
    %20 = arith.select %17, %15, %19 : vector<1024x256xi1>, vector<1024x256xf32>
    %21 = arith.truncf %20 : vector<1024x256xf32> to vector<1024x256xbf16>
    %c0_12 = arith.constant 0 : index
    %c0_13 = arith.constant 0 : index
    %22 = vector.load %arg6[%c0_12, %c0_13] : memref<256x4xbf16, #tpu.memory_space<vmem>>, vector<256x4xbf16>
    %cst_14 = arith.constant dense<0.000000e+00> : vector<1024x4xf32>
    %23 = tpu.matmul %21, %22, %cst_14 {dimension_numbers = #tpu.dot_dimension_numbers<[1], [0], [0], [1], [0, 0, 1, 1], [], []>} : vector<1024x256xbf16>, vector<256x4xbf16>, vector<1024x4xf32> -> vector<1024x4xf32>
    %c0_15 = arith.constant 0 : index
    %c0_16 = arith.constant 0 : index
    %24 = vector.load %arg7[%c0_15, %c0_16] : memref<1x1xf32, #tpu.memory_space<vmem>>, vector<1x1xf32>
    %25 = vector.broadcast %24 : vector<1x1xf32> to vector<1024x4xf32>
    %26 = arith.addf %23, %25 : vector<1024x4xf32>
    %cst_17 = arith.constant 0.000000e+00 : f32
    %27 = vector.broadcast %cst_17 : f32 to vector<1024x4xf32>
    %28 = arith.cmpf oge, %26, %27 : vector<1024x4xf32>
    %cst_18 = arith.constant 0.00999999977 : f32
    %29 = vector.broadcast %cst_18 : f32 to vector<1024x4xf32>
    %30 = arith.mulf %29, %26 : vector<1024x4xf32>
    %31 = arith.select %28, %26, %30 : vector<1024x4xi1>, vector<1024x4xf32>
    %cst_19 = arith.constant 2.550000e+02 : f32
    %32 = vector.broadcast %cst_19 : f32 to vector<1024x4xf32>
    %33 = arith.mulf %31, %32 : vector<1024x4xf32>
    %c0_20 = arith.constant 0 : index
    %c0_21 = arith.constant 0 : index
    %34 = vector.load %arg8[%c0_20, %c0_21] : memref<1024x4xf32, #tpu.memory_space<vmem>>, vector<1024x4xf32>
    tpu.vector_store %arg8[%c0_20, %c0_21], %33 {strides = array<i32>} : memref<1024x4xf32, #tpu.memory_space<vmem>>, vector<1024x4xf32>,
    return
  }
  func.func @transform_0(%arg0: i32) -> (i32, i32) {
    %c0_i32 = arith.constant 0 : i32
    %c0_i32_0 = arith.constant 0 : i32
    return %arg0, %c0_i32 : i32, i32
  }
  func.func @transform_1(%arg0: i32) -> (i32, i32) {
    %c0_i32 = arith.constant 0 : i32
    %c0_i32_0 = arith.constant 0 : i32
    %c0_i32_1 = arith.constant 0 : i32
    return %c0_i32, %c0_i32_0 : i32, i32
  }
  func.func @transform_2(%arg0: i32) -> (i32, i32) {
    %c0_i32 = arith.constant 0 : i32
    %c0_i32_0 = arith.constant 0 : i32
    %c0_i32_1 = arith.constant 0 : i32
    return %c0_i32, %c0_i32_0 : i32, i32
  }
  func.func @transform_3(%arg0: i32) -> (i32, i32) {
    %c0_i32 = arith.constant 0 : i32
    %c0_i32_0 = arith.constant 0 : i32
    %c0_i32_1 = arith.constant 0 : i32
    return %c0_i32, %c0_i32_0 : i32, i32
  }
  func.func @transform_4(%arg0: i32) -> (i32, i32) {
    %c0_i32 = arith.constant 0 : i32
    %c0_i32_0 = arith.constant 0 : i32
    %c0_i32_1 = arith.constant 0 : i32
    return %c0_i32, %c0_i32_0 : i32, i32
  }
  func.func @transform_5(%arg0: i32) -> (i32, i32) {
    %c0_i32 = arith.constant 0 : i32
    %c0_i32_0 = arith.constant 0 : i32
    %c0_i32_1 = arith.constant 0 : i32
    return %c0_i32, %c0_i32_0 : i32, i32
  }
  func.func @transform_6(%arg0: i32) -> (i32, i32) {
    %c0_i32 = arith.constant 0 : i32
    %c0_i32_0 = arith.constant 0 : i32
    %c0_i32_1 = arith.constant 0 : i32
    return %c0_i32, %c0_i32_0 : i32, i32
  }
  func.func @transform_7(%arg0: i32) -> (i32, i32) {
    %c0_i32 = arith.constant 0 : i32
    %c0_i32_0 = arith.constant 0 : i32
    return %arg0, %c0_i32 : i32, i32
  }
}

</mosaic_0001>

<bundles_post_ra>
// kernel: decode_net_forward.5
= control target key start
LH: loop header
LB: loop body
LE: loop exit
PB: predicated region body
PF: predicated region fallthrough
CT: control target
= control target key end

     0   :  { %10 = vsyncpa [#allocation3], 0  ;;  %s1272_s0 = inlined_call_operand.vmem [shape: f32[128,64], index: 0, kind: input, shape index: {}]   ;;  %s1273_s1 = inlined_call_operand.vmem [shape: bf16[64,64], index: 1, kind: input, shape index: {}]   ;;  %s1274_s2 = inlined_call_operand.hbm [shape: f32[1,64], index: 2, kind: input, shape index: {}]   ;;  %s1275_s3 = inlined_call_operand.vmem [shape: bf16[64,256], index: 3, kind: input, shape index: {}]   ;;  %s1276_s4 = inlined_call_operand.hbm [shape: f32[1,256], index: 4, kind: input, shape index: {}]   ;;  %s1277_s5 = inlined_call_operand.vmem [shape: f32[16,2,8,128], index: 5, kind: output, shape index: {}]  }
   0x1   :  { %11 = vsyncpa [#allocation5], 0  ;;  %s1005_s18 = smov 0  }
   0x2 LB: > { %s760_s19 = sadd.s32 4294967295, %s970_s18   ;;  %p762_p0 = scmp.ge.s32.totalorder %s970_s18, 1  ;;  %s970_s18 = sphi %s1005_s18, %s17_s18  }
   0x3   : > { %p158_p1 = scmp.lt.s32.totalorder %s970_s18, 3  ;;  %p1015_p2 = scmp.eq.s32.totalorder %s760_s19, 0 }
   0x4   : > { %s972_s22 = smov [#allocation2]   ;;  %s973_s24 = smov [#allocation4]  }
   0x5   : > { %s1281_s20 = scalar_select %p1015_p2, 1, 0 }
   0x6   : > { %p1019_p3 = pnand %p762_p0, %p158_p1  ;;  %s174_s23 = sshll.u32 %s972_s22, 4  ;;  %s175_s23 = int_to_ptr.vmem [resolvable:$true] %s174_s23 }
   0x7   : > { %s188_s25 = sshll.u32 %s973_s24, 4  ;;  %s900_s29 = scalar_lea.hbm %s1274_s2, 16  ;;  %s1031_s25 = int_to_ptr.vmem [resolvable:$true] %s188_s25 }
   0x8   : > { %s1282_s21 = scalar_select %p1019_p3, 1, 0 }
   0x9   : > { %p846_p4 = pneg %p1019_p3  ;;  %p901_p6 = scmp.ne.s32.totalorder %s1274_s2, %s900_s29 }
   0xa   : > { %p907_p10 = scmp.lt.u32.totalorder %s900_s29, %s1274_s2 }
   0xb   : > { %p1027_p5 = pnand %p1015_p2, %p846_p4 }
   0xd   : > { %p902_p7 = pneg %p1027_p5 }
   0xf   : > { %p903_p8 = pnand %p902_p7, %p901_p6 }
  0x11   : > { %p904_p9 = pneg %p903_p8 }
  0x13   : > { %p909_p11 = pnand %p907_p10, %p904_p9 }
  0x15   : > { %912 = shalt.err (!%p909_p11)
}
  0x16   : > { %s913_s9 = scalar_lea.vmem %s175_s23, 16  ;;  %s920_s10 = scalar_lea.vmem %s175_s23, 32 }
  0x17   : > { %p914_p12 = scmp.ne.s32.totalorder %s175_s23, %s913_s9  ;;  %p921_p1 = scmp.lt.s32.totalorder %s175_s23, %s175_s23 }
  0x18   : > { %p922_p4 = scmp.lt.s32.totalorder %s920_s10, %s913_s9 }
  0x19   : > { %p916_p13 = pnand %p914_p12, %p902_p7 }
  0x1a   : > { %p923_p2 = por %p922_p4, %p921_p1 }
  0x1b   : > { %p917_p0 = pneg %p916_p13 }
  0x1d   : > { %p924_p3 = pnand %p923_p2, %p917_p0 }
  0x1f   : > { %927 = shalt.err (!%p924_p3)
}
  0x20   : > { %849 = dma.hbm_to_vmem [thread:$0]  (!%p1027_p5), %s1274_s2, 16, %s175_s23, [#allocation3]  }
  0x21   : > { %s928_s15 = scalar_lea.hbm %s1276_s4, 32 }
  0x22   : > { %p929_p6 = scmp.ne.s32.totalorder %s1276_s4, %s928_s15  ;;  %p935_p3 = scmp.lt.u32.totalorder %s928_s15, %s1276_s4 }
  0x24   : > { %p931_p8 = pnand %p929_p6, %p902_p7 }
  0x26   : > { %p932_p2 = pneg %p931_p8 }
  0x28   : > { %p937_p9 = pnand %p935_p3, %p932_p2 }
  0x2a   : > { %940 = shalt.err (!%p937_p9)
}
  0x2b   : > { %s941_s23 = scalar_lea.vmem %s1031_s25, 32  ;;  %p949_p13 = scmp.lt.s32.totalorder %s1031_s25, %s1031_s25 }
  0x2c   : > { %p942_p10 = scmp.ne.s32.totalorder %s1031_s25, %s941_s23  ;;  %p950_p0 = scmp.lt.s32.totalorder %s941_s23, %s941_s23 }
  0x2e   : > { %p944_p11 = pnand %p942_p10, %p902_p7  ;;  %p951_p1 = por %p950_p0, %p949_p13 }
  0x30   : > { %p945_p12 = pneg %p944_p11 }
  0x32   : > { %p952_p4 = pnand %p951_p1, %p945_p12 }
  0x34   : > { %955 = shalt.err (!%p952_p4)
}
  0x35   : > { %852 = dma.hbm_to_vmem [thread:$0]  (!%p1027_p5), %s1276_s4, 32, %s1031_s25, [#allocation5]  }
  0x36   : > { %p1284_p6 = scmp.ne.s32.totalorder %s1282_s21, 0 }
  0x37   : > { %p1285_p8 = scmp.ne.s32.totalorder (!%p1284_p6), %s1281_s20, 0 }
  0x38   : > { %210 = sbr.rel (%p1284_p6) target bundleno = 556 (0x22c), region = 40 }
  0x3f   : > { %961 = dma.done.wait (%p1285_p8), [#allocation3], 16  }
  0x40   : > { %963 = vsyncadd (%p1285_p8), [#allocation3], 4294967280 }
  0x41   : > { %965 = dma.done.wait (%p1285_p8), [#allocation5], 32  }
  0x42   : > { %967 = vsyncadd (%p1285_p8), [#allocation5], 4294967264  ;;  %s769_s26 = sshll.u32 %s760_s19, 3  ;;  %v868_v0 = vld [vmem:[%s1273_s1] sm:$0xff]   ;;  %v869_v1 = vld [vmem:[%s1273_s1 + $0x8] sm:$0xff]   ;;  %vm310_vm0 = vcmask 523264  }
  0x43   : > { %p244_p7 = scmp.lt.s32.totalorder %s769_s26, 15  ;;  %814 = vmatprep.subr.bf16.mxu0 %v868_v0  ;;  %v870_v2 = vld [vmem:[%s1273_s1 + $0x10] sm:$0xff]   ;;  %v871_v8 = vld [vmem:[%s1273_s1 + $0x18] sm:$0xff]   ;;  %v872_v24 = vld [vmem:[%s1275_s3 + $0x4] ss:$8 sps:$4 sm:$0xff]   ;;  %v974_v32 = vmov 0  }
  0x44   : > { %815 = vmatpush3.bf16.msra.mxu0 %v868_v0  ;;  %v874_v25 = vld [vmem:[%s1275_s3] ss:$8 sps:$4 sm:$0xff]   ;;  %830 = vmatprep.subr.bf16.mxu1 %v872_v24  ;;  %v875_v26 = vld [vmem:[%s1275_s3 + $0x14] ss:$8 sps:$4 sm:$0xff]   ;;  %v877_v27 = vld [vmem:[%s1275_s3 + $0x10] ss:$8 sps:$4 sm:$0xff]  }
  0x45   : > { %s1287_s26 = smov (!%p244_p7, %s769_s26), 15  ;;  %816 = vmatprep.subr.bf16.mxu0 %v869_v1  ;;  %834 = vmatpush1.bf16.msra.mxu1 %v874_v25  ;;  %v878_v28 = vld [vmem:[%s1275_s3 + $0x24] ss:$8 sps:$4 sm:$0xff]   ;;  %v880_v29 = vld [vmem:[%s1275_s3 + $0x20] ss:$8 sps:$4 sm:$0xff]  }
  0x46   : > { %s770_s21 = sshll.u32 %s1287_s26, 3  ;;  %831 = vmatprep.subr.bf16.mxu1 %v875_v26  ;;  %v881_v30 = vld [vmem:[%s1275_s3 + $0x34] ss:$8 sps:$4 sm:$0xff]   ;;  %v883_v31 = vld [vmem:[%s1275_s3 + $0x30] ss:$8 sps:$4 sm:$0xff]   ;;  %584 = vmatprep.mubr.bf16.mxu1 %v974_v32  ;;  %s805_s7 = sshll.u32 %s1287_s26, 4 }
  0x47   : > { %s247_s20 = scalar_lea.vmem %s1272_s0, %s770_s21  ;;  %v782_v33 = vld [vmem:[#allocation2] ss:$0 sm:$0xff]  ;;  %s1237_s19 = scalar_lea.vmem %s1277_s5, %s805_s7 }
  0x48   : > { %v1107_v3 = vld [vmem:[%s247_s20] sm:$0xff]  ;;  %v1109_v4 = vld [vmem:[%s247_s20 + $0x8] sm:$0xff]  ;;  %v1115_v7 = vld [vmem:[%s247_s20 + $0x10] sm:$0xff]  ;;  %817 = vmatpush3.bf16.msra.mxu0 %v869_v1 }
  0x49   : > { %v266_v5 = vmul.f32 %v1107_v3, %v1107_v3  ;;  %v267_v6 = vmul.f32 %v1109_v4, %v1109_v4  ;;  %v1120_v9 = vld [vmem:[%s247_s20 + $0x18] sm:$0xff]  ;;  %v1122_v10 = vld [vmem:[%s247_s20 + $0x20] sm:$0xff]  ;;  %v1124_v11 = vld [vmem:[%s247_s20 + $0x28] sm:$0xff]  ;;  %818 = vmatprep.subr.bf16.mxu0 %v870_v2  ;;  %v268_v13 = vmul.f32 %v1115_v7, %v1115_v7  ;;  %835 = vmatpush1.bf16.msra.mxu1 %v877_v27 }
  0x4a   : > { %v269_v14 = vmul.f32 %v1120_v9, %v1120_v9  ;;  %v270_v15 = vmul.f32 %v1122_v10, %v1122_v10  ;;  %v271_v16 = vmul.f32 %v1124_v11, %v1124_v11  ;;  %v1135_v19 = vld [vmem:[%s247_s20 + $0x30] sm:$0xff]  ;;  %v1137_v20 = vld [vmem:[%s247_s20 + $0x38] sm:$0xff]  ;;  %832 = vmatprep.subr.bf16.mxu1 %v878_v28 }
  0x4b   : > { %v274_v12 = vpack.c.bf16 %v267_v6, %v266_v5  ;;  %v272_v21 = vmul.f32 %v1135_v19, %v1135_v19  ;;  %v273_v22 = vmul.f32 %v1137_v20, %v1137_v20 }
  0x4c   : > { %819 = vmatpush3.bf16.msra.mxu0 %v870_v2  ;;  %v275_v17 = vpack.c.bf16 %v269_v14, %v268_v13  ;;  %v276_v18 = vpack.c.bf16 %v271_v16, %v270_v15 }
  0x4d   : > { %822 = vmatprep.mubr.msk.bf16.mxu0 %vm310_vm0, %v274_v12  ;;  %820 = vmatprep.subr.bf16.mxu0 %v871_v8  ;;  %v277_v23 = vpack.c.bf16 %v273_v22, %v272_v21 }
  0x4e   : > { %836 = vmatpush1.bf16.msra.mxu1 %v880_v29 }
  0x4f   : > { %833 = vmatprep.subr.bf16.mxu1 %v881_v30 }
  0x50   : > { %821 = vmatpush3.bf16.msra.mxu0 %v871_v8 }
  0x51   : > { %542 = vmatprep.subr.bf16.mxu0 %v872_v24 }
  0x52   : > { %837 = vmatpush1.bf16.msra.mxu1 %v883_v31 }
  0x53   : > { %823 = vmatmul.mubr.msk.bf16.vlgmr.msra.gmra.mrb[0].mxu0 %vm310_vm0, %v275_v17 }
  0x54   : > { %826 = vmatprep.mubr.msk.bf16.mxu0 %vm310_vm0, %v276_v18  ;;  %543 = vmatpush1.bf16.msra.mxu0 %v874_v25 }
  0x55   : > { %544 = vmatprep.subr.bf16.mxu0 %v875_v26 }
  0x58   : > { %545 = vmatpush1.bf16.msra.mxu0 %v877_v27 }
  0x59   : > { %546 = vmatprep.subr.bf16.mxu0 %v878_v28 }
  0x5b   : > { %827 = vmatmul.mubr.msk.bf16.gmra.mrb[4].mxu0 %vm310_vm0, %v277_v23 }
  0x5c   : > { %547 = vmatpush1.bf16.msra.mxu0 %v880_v29  ;;  %574 = vmatprep.mubr.bf16.mxu0 %v974_v32 }
  0x5d   : > { %548 = vmatprep.subr.bf16.mxu0 %v881_v30 }
  0x60   : > { %549 = vmatpush1.bf16.msra.mxu0 %v883_v31 }
 0x126   : > { %v824_v34 = vpop.f32.mrb[0].mxu0 }
 0x127   : > { %v396_v35 = vadd.f32 %v824_v34, %v782_v33  ;;  %v357_v36 = vpop.f32.mrb[1].mxu0 }
 0x128   : > { %v394_v37 = vadd.f32 %v782_v33, %v357_v36  ;;  %v825_v38 = vpop.f32.mrb[2].mxu0 }
 0x129   : > { %884 = vrsqrt.f32 %v396_v35  ;;  %v397_v39 = vadd.f32 %v825_v38, %v782_v33  ;;  %v360_v40 = vpop.f32.mrb[3].mxu0  ;;  %vm418_vm1 = vcmp.eq.f32.partialorder %v396_v35, inf  ;;  %vm420_vm3 = vcmp.eq.f32.partialorder %v396_v35, 0.0 }
 0x12a   : > { %886 = vrsqrt.f32 %v394_v37  ;;  %v395_v41 = vadd.f32 %v782_v33, %v360_v40  ;;  %vm404_vm2 = vcmp.eq.f32.partialorder %v394_v37, inf  ;;  %v421_v55 = vand.u32 2147483648, %v396_v35 }
 0x12b   : > { %888 = vrsqrt.f32 %v397_v39  ;;  %vm406_vm4 = vcmp.eq.f32.partialorder %v394_v37, 0.0  ;;  %v407_v56 = vand.u32 2147483648, %v394_v37  ;;  %vm425_vm5 = vcmp.eq.f32.partialorder %v397_v39, inf }
 0x12c   : > { %890 = vrsqrt.f32 %v395_v41  ;;  %v428_v62 = vand.u32 2147483648, %v397_v39  ;;  %vm411_vm6 = vcmp.eq.f32.partialorder %v395_v41, inf  ;;  %vm427_vm7 = vcmp.eq.f32.partialorder %v397_v39, 0.0 }
 0x12d   : > { %vm413_vm8 = vcmp.eq.f32.partialorder %v395_v41, 0.0  ;;  %v414_v1 = vand.u32 2147483648, %v395_v41 }
 0x12e   : > { %v828_v42 = vpop.f32.mrb[4].mxu0 }
 0x12f   : > { %v1172_v43 = vadd.f32 %v828_v42, %v782_v33  ;;  %v373_v44 = vpop.f32.mrb[5].mxu0 }
 0x130   : > { %v1174_v45 = vadd.f32 %v782_v33, %v373_v44  ;;  %v829_v46 = vpop.f32.mrb[6].mxu0 }
 0x131   : > { %892 = vrsqrt.f32 %v1172_v43  ;;  %v1177_v47 = vadd.f32 %v829_v46, %v782_v33  ;;  %v376_v48 = vpop.f32.mrb[7].mxu0  ;;  %vm446_vm9 = vcmp.eq.f32.partialorder %v1172_v43, inf  ;;  %vm448_vm12 = vcmp.eq.f32.partialorder %v1172_v43, 0.0  ;;  %v478_v46 = vld [vmem:[#allocation4] sm:$0x3] }
 0x132   : > { %894 = vrsqrt.f32 %v1174_v45  ;;  %v1180_v49 = vadd.f32 %v782_v33, %v376_v48  ;;  %vm432_vm10 = vcmp.eq.f32.partialorder %v1174_v45, inf  ;;  %vm434_vm11 = vcmp.eq.f32.partialorder %v1174_v45, 0.0 }
 0x133   : > { %v885_v50 = vpop.eup %884  ;;  %896 = vrsqrt.f32 %v1177_v47  ;;  %v435_v22 = vand.u32 2147483648, %v1174_v45  ;;  %v449_v23 = vand.u32 2147483648, %v1172_v43  ;;  %vm453_vm13 = vcmp.eq.f32.partialorder %v1177_v47, inf }
 0x134   : > { %v887_v51 = vpop.eup %886  ;;  %898 = vrsqrt.f32 %v1180_v49  ;;  %v417_v52 = vmul.f32 %v885_v50, %v396_v35  ;;  %vm439_vm14 = vcmp.eq.f32.partialorder %v1180_v49, inf  ;;  %v456_v29 = vand.u32 2147483648, %v1177_v47 }
 0x135   : > { %v889_v53 = vpop.eup %888  ;;  %v403_v54 = vmul.f32 %v887_v51, %v394_v37  ;;  %v442_v31 = vand.u32 2147483648, %v1180_v49  ;;  %vm455_vm15 = vcmp.eq.f32.partialorder %v1177_v47, 0.0 }
 0x136   : > { %v419_v57 = vsel %vm418_vm1, %v396_v35, %v417_v52  ;;  %v424_v58 = vmul.f32 %v889_v53, %v397_v39  ;;  %v891_v59 = vpop.eup %890  ;;  %vm441_vm1 = vcmp.eq.f32.partialorder %v1180_v49, 0.0 }
 0x137   : > { %v405_v60 = vsel %vm404_vm2, %v394_v37, %v403_v54  ;;  %v422_v61 = vsel %vm420_vm3, %v421_v55, %v419_v57  ;;  %v410_v63 = vmul.f32 %v891_v59, %v395_v41 }
 0x138   : > { %v426_v0 = vsel %vm425_vm5, %v397_v39, %v424_v58  ;;  %v408_v5 = vsel %vm406_vm4, %v407_v56, %v405_v60  ;;  %v460_v8 = vmul.f32 %v422_v61, %v1115_v7 }
 0x139   : > { %v429_v2 = vsel %vm427_vm7, %v428_v62, %v426_v0  ;;  %v412_v6 = vsel %vm411_vm6, %v395_v41, %v410_v63  ;;  %v458_v17 = vmul.f32 %v408_v5, %v1107_v3 }
 0x13a   : > { %v461_v12 = vmul.f32 %v429_v2, %v1120_v9  ;;  %v415_v14 = vsel %vm413_vm8, %v414_v1, %v412_v6 }
 0x13b   : > { %v893_v13 = vpop.eup %892  ;;  %v459_v18 = vmul.f32 %v415_v14, %v1109_v4 }
 0x13c   : > { %v895_v15 = vpop.eup %894  ;;  %v467_v16 = vpack.c.bf16 %v461_v12, %v460_v8  ;;  %v445_v7 = vmul.f32 %v893_v13, %v1172_v43 }
 0x13d   : > { %v897_v21 = vpop.eup %896  ;;  %v431_v9 = vmul.f32 %v895_v15, %v1174_v45  ;;  %v466_v25 = vpack.c.bf16 %v459_v18, %v458_v17 }
 0x13e   : > { %v899_v24 = vpop.eup %898  ;;  %792 = vmatmul.mubr.msk.bf16.vlgmr.msra.gmra.mrb[0].mxu1 %vm310_vm0, %v467_v16  ;;  %v447_v3 = vsel %vm446_vm9, %v1172_v43, %v445_v7  ;;  %v452_v4 = vmul.f32 %v897_v21, %v1177_v47  ;;  %v480_v43 = vlaneseq }
 0x13f   : > { %594 = vmatprep.mubr.bf16.mxu1 %v974_v32  ;;  %v433_v26 = vsel %vm432_vm10, %v1174_v45, %v431_v9  ;;  %v438_v27 = vmul.f32 %v899_v24, %v1180_v49  ;;  %v450_v28 = vsel %vm448_vm12, %v449_v23, %v447_v3  ;;  %791 = vmatmul.mubr.msk.bf16.vlgmr.msra.gmra.mrb[8].mxu0 %vm310_vm0, %v466_v25 }
 0x140   : > { %v436_v30 = vsel %vm434_vm11, %v435_v22, %v433_v26  ;;  %v454_v33 = vsel %vm453_vm13, %v1177_v47, %v452_v4  ;;  %v464_v37 = vmul.f32 %v450_v28, %v1135_v19  ;;  %v481_v44 = vshrl.u32 %v480_v43, 7 }
 0x141   : > { %v440_v34 = vsel %vm439_vm14, %v1180_v49, %v438_v27  ;;  %v457_v35 = vsel %vm455_vm15, %v456_v29, %v454_v33  ;;  %v462_v39 = vmul.f32 %v436_v30, %v1122_v10 }
 0x142   : > { %v443_v36 = vsel %vm441_vm1, %v442_v31, %v440_v34  ;;  %v465_v38 = vmul.f32 %v457_v35, %v1137_v20  ;;  %v482_v45 = vsub.s32 0, %v481_v44  ;;  %v486_v19 = vsub.s32 1, %v481_v44 }
 0x143   : > { %v463_v40 = vmul.f32 %v443_v36, %v1124_v11 }
 0x144   : > { %v469_v41 = vpack.c.bf16 %v465_v38, %v464_v37  ;;  %v1227_v47 = vrot.slane %v478_v46, %v482_v45  ;;  %v1229_v20 = vrot.slane %v478_v46, %v486_v19 }
 0x145   : > { %v468_v42 = vpack.c.bf16 %v463_v40, %v462_v39 }
 0x147   : > { %793 = vmatmul.mubr.msk.bf16.gmra.mrb[4].mxu1 %vm310_vm0, %v468_v42 }
 0x148   : > { %604 = vmatprep.mubr.bf16.mxu1 %v974_v32 }
 0x14f   : > { %794 = vmatmul.mubr.msk.bf16.gmra.mrb[8].mxu1 %vm310_vm0, %v469_v41 }
 0x211   : > { %v586_v10 = vpop.f32.mrb[0].mxu1 }
 0x212   : > { %v587_v11 = vadd.f32 %v586_v10, %v1227_v47  ;;  %v588_v48 = vpop.f32.mrb[1].mxu1  ;;  %v576_v49 = vpop.f32.mrb[8].mxu0 }
 0x213   : > { %v589_v50 = vadd.f32 %v588_v48, %v1229_v20  ;;  %v590_v32 = vpop.f32.mrb[2].mxu1  ;;  %v577_v52 = vadd.f32 %v576_v49, %v1227_v47  ;;  %v578_v53 = vpop.f32.mrb[9].mxu0 }
 0x214   : > { %vm619_vm0 = vcmp.ge.f32.partialorder %v587_v11, 0.0  ;;  %v635_v51 = vmul.f32 0.01, %v587_v11  ;;  %v591_v54 = vadd.f32 %v590_v32, %v1227_v47  ;;  %v592_v55 = vpop.f32.mrb[3].mxu1  ;;  %v579_v57 = vadd.f32 %v578_v53, %v1229_v20  ;;  %v580_v58 = vpop.f32.mrb[10].mxu0 }
 0x215   : > { %vm620_vm2 = vcmp.ge.f32.partialorder %v589_v50, 0.0  ;;  %v636_v56 = vmul.f32 0.01, %v589_v50  ;;  %v593_v59 = vadd.f32 %v592_v55, %v1229_v20  ;;  %vm615_vm3 = vcmp.ge.f32.partialorder %v577_v52, 0.0  ;;  %v582_v62 = vpop.f32.mrb[11].mxu0 }
 0x216   : > { %v651_v60 = vsel %vm619_vm0, %v587_v11, %v635_v51  ;;  %v631_v61 = vmul.f32 0.01, %v577_v52  ;;  %vm621_vm4 = vcmp.ge.f32.partialorder %v591_v54, 0.0  ;;  %vm616_vm5 = vcmp.ge.f32.partialorder %v579_v57, 0.0 }
 0x217   : > { %665 = vst [vmem:[%s1237_s19 + $0x20] sm:$0xff] %v651_v60  ;;  %v652_v63 = vsel %vm620_vm2, %v589_v50, %v636_v56  ;;  %v632_v0 = vmul.f32 0.01, %v579_v57  ;;  %v637_v1 = vmul.f32 0.01, %v591_v54  ;;  %v581_v5 = vadd.f32 %v580_v58, %v1227_v47 }
 0x218   : > { %v647_v2 = vsel %vm615_vm3, %v577_v52, %v631_v61  ;;  %797 = vst [vmem:[%s1237_s19 + $0x28] sm:$0xff] %v652_v63  ;;  %vm622_vm6 = vcmp.ge.f32.partialorder %v593_v59, 0.0  ;;  %v638_v6 = vmul.f32 0.01, %v593_v59  ;;  %v583_v13 = vadd.f32 %v582_v62, %v1229_v20 }
 0x219   : > { %663 = vst [vmem:[%s1237_s19] sm:$0xff] %v647_v2  ;;  %v648_v8 = vsel %vm616_vm5, %v579_v57, %v632_v0  ;;  %v653_v12 = vsel %vm621_vm4, %v591_v54, %v637_v1  ;;  %vm617_vm7 = vcmp.ge.f32.partialorder %v581_v5, 0.0  ;;  %v633_v14 = vmul.f32 0.01, %v581_v5 }
 0x21a   : > { %795 = vst [vmem:[%s1237_s19 + $0x8] sm:$0xff] %v648_v8  ;;  %666 = vst [vmem:[%s1237_s19 + $0x30] sm:$0xff] %v653_v12  ;;  %v654_v15 = vsel %vm622_vm6, %v593_v59, %v638_v6  ;;  %v596_v16 = vpop.f32.mrb[4].mxu1  ;;  %vm618_vm8 = vcmp.ge.f32.partialorder %v583_v13, 0.0  ;;  %v634_v17 = vmul.f32 0.01, %v583_v13 }
 0x21b   : > { %798 = vst [vmem:[%s1237_s19 + $0x38] sm:$0xff] %v654_v15  ;;  %v597_v18 = vadd.f32 %v596_v16, %v1227_v47  ;;  %v598_v7 = vpop.f32.mrb[5].mxu1  ;;  %v649_v21 = vsel %vm617_vm7, %v581_v5, %v633_v14 }
 0x21c   : > { %v599_v9 = vadd.f32 %v598_v7, %v1229_v20  ;;  %v600_v22 = vpop.f32.mrb[6].mxu1  ;;  %664 = vst [vmem:[%s1237_s19 + $0x10] sm:$0xff] %v649_v21  ;;  %v650_v23 = vsel %vm618_vm8, %v583_v13, %v634_v17 }
 0x21d   : > { %vm623_vm9 = vcmp.ge.f32.partialorder %v597_v18, 0.0  ;;  %v639_v24 = vmul.f32 0.01, %v597_v18  ;;  %v601_v25 = vadd.f32 %v600_v22, %v1227_v47  ;;  %v602_v3 = vpop.f32.mrb[7].mxu1  ;;  %796 = vst [vmem:[%s1237_s19 + $0x18] sm:$0xff] %v650_v23 }
 0x21e   : > { %vm624_vm10 = vcmp.ge.f32.partialorder %v599_v9, 0.0  ;;  %v640_v4 = vmul.f32 0.01, %v599_v9  ;;  %v603_v26 = vadd.f32 %v602_v3, %v1229_v20 }
 0x21f   : > { %v655_v27 = vsel %vm623_vm9, %v597_v18, %v639_v24  ;;  %vm625_vm11 = vcmp.ge.f32.partialorder %v601_v25, 0.0  ;;  %v641_v28 = vmul.f32 0.01, %v601_v25 }
 0x220   : > { %667 = vst [vmem:[%s1237_s19 + $0x40] sm:$0xff] %v655_v27  ;;  %v656_v29 = vsel %vm624_vm10, %v599_v9, %v640_v4  ;;  %vm626_vm12 = vcmp.ge.f32.partialorder %v603_v26, 0.0  ;;  %v642_v30 = vmul.f32 0.01, %v603_v26 }
 0x221   : > { %799 = vst [vmem:[%s1237_s19 + $0x48] sm:$0xff] %v656_v29  ;;  %v657_v31 = vsel %vm625_vm11, %v601_v25, %v641_v28 }
 0x222   : > { %668 = vst [vmem:[%s1237_s19 + $0x50] sm:$0xff] %v657_v31  ;;  %v658_v33 = vsel %vm626_vm12, %v603_v26, %v642_v30  ;;  %v606_v34 = vpop.f32.mrb[8].mxu1 }
 0x223   : > { %800 = vst [vmem:[%s1237_s19 + $0x58] sm:$0xff] %v658_v33  ;;  %v607_v35 = vadd.f32 %v606_v34, %v1227_v47  ;;  %v608_v36 = vpop.f32.mrb[9].mxu1 }
 0x224   : > { %v609_v37 = vadd.f32 %v608_v36, %v1229_v20  ;;  %v610_v38 = vpop.f32.mrb[10].mxu1 }
 0x225   : > { %vm627_vm13 = vcmp.ge.f32.partialorder %v607_v35, 0.0  ;;  %v643_v39 = vmul.f32 0.01, %v607_v35  ;;  %v611_v40 = vadd.f32 %v610_v38, %v1227_v47  ;;  %v612_v41 = vpop.f32.mrb[11].mxu1 }
 0x226   : > { %vm628_vm14 = vcmp.ge.f32.partialorder %v609_v37, 0.0  ;;  %v644_v42 = vmul.f32 0.01, %v609_v37  ;;  %v613_v43 = vadd.f32 %v612_v41, %v1229_v20 }
 0x227   : > { %v659_v44 = vsel %vm627_vm13, %v607_v35, %v643_v39  ;;  %vm629_vm15 = vcmp.ge.f32.partialorder %v611_v40, 0.0  ;;  %v645_v45 = vmul.f32 0.01, %v611_v40 }
 0x228   : > { %669 = vst [vmem:[%s1237_s19 + $0x60] sm:$0xff] %v659_v44  ;;  %v660_v46 = vsel %vm628_vm14, %v609_v37, %v644_v42  ;;  %vm630_vm1 = vcmp.ge.f32.partialorder %v613_v43, 0.0  ;;  %v646_v19 = vmul.f32 0.01, %v613_v43 }
 0x229   : > { %801 = vst [vmem:[%s1237_s19 + $0x68] sm:$0xff] %v660_v46  ;;  %v661_v10 = vsel %vm629_vm15, %v611_v40, %v645_v45 }
 0x22a   : > { %670 = vst [vmem:[%s1237_s19 + $0x70] sm:$0xff] %v661_v10  ;;  %v662_v11 = vsel %vm630_vm1, %v613_v43, %v646_v19 }
 0x22b   : > { %802 = vst [vmem:[%s1237_s19 + $0x78] sm:$0xff] %v662_v11 }
 0x22c PF: > { %s17_s18 = sadd.s32 1, %s970_s18  }
 0x22d   : > { %p14_p5 = scmp.ge.s32.totalorder %s17_s18, 4  }
 0x22f   :  { %16 = sbr.rel (!%p14_p5) target bundleno = 2 (0x2), region = 80 }
 0x236   :  { %704 = vsyncpa [#allocation3], 1 }
 0x237   :  { %706 = vsyncpa [#allocation3 + $0x1], 1 }
 0x238   :  { %707 = vsyncpa [#allocation5], 1 }

// kernel: decode_net_forward.4
= control target key start
LH: loop header
LB: loop body
LE: loop exit
PB: predicated region body
PF: predicated region fallthrough
CT: control target
= control target key end

     0   :  { %10 = vsyncpa [#allocation3], 0  ;;  %s1143_s0 = inlined_call_operand.hbm [shape: f32[32,64], index: 0, kind: input, shape index: {}]   ;;  %s1144_s1 = inlined_call_operand.vmem [shape: bf16[64,64], index: 1, kind: input, shape index: {}]   ;;  %s1145_s2 = inlined_call_operand.hbm [shape: f32[1,64], index: 2, kind: input, shape index: {}]   ;;  %s1146_s3 = inlined_call_operand.vmem [shape: bf16[64,256], index: 3, kind: input, shape index: {}]   ;;  %s1147_s4 = inlined_call_operand.hbm [shape: f32[1,256], index: 4, kind: input, shape index: {}]   ;;  %s1148_s5 = inlined_call_operand.vmem [shape: f32[8,2,4,128], index: 5, kind: output, shape index: {}]  }
   0x1   :  { %12 = vsyncpa [#allocation3 + $0x1], 0 }
   0x2   :  { %13 = vsyncpa [#allocation5], 0  ;;  %s917_s18 = smov 0   ;;  %s919_s19 = smov 0  }
   0x3   :  { %s921_s20 = smov 0   ;;  %s923_s21 = smov 0  }
   0x4 LB: > { %s612_s22 = sadd.s32 4294967295, %s877_s21   ;;  %s937_s23 = sadd.s32 1, %s877_s21   ;;  %s877_s21 = sphi %s923_s21, %s1167_s21   ;;  %s873_s20 = sphi %s921_s20, %s1166_s20   ;;  %s869_s19 = sphi %s919_s19, %s1165_s19   ;;  %s865_s18 = sphi %s917_s18, %s1164_s18  }
   0x5   : > { %s23_s24 = ssub.s32 %s877_s21, %s937_s23  ;;  %s26_s25 = sadd.s32 1, %s873_s20 }
   0x6   : > { %p24_p0 = scmp.eq.s32.totalorder %s23_s24, 0  ;;  %p33_p1 = scmp.ne.s32.totalorder %s873_s20, %s869_s19 }
   0x7   : > { %p34_p2 = scmp.eq.s32.totalorder %s877_s21, 0  ;;  %p39_p3 = scmp.ne.s32.totalorder %s869_s19, %s865_s18 }
   0x8   : > { %s947_s26 = scalar_select %p24_p0, %s873_s20, %s26_s25  }
   0x9   : > { %p949_p4 = por %p34_p2, %p33_p1  ;;  %p955_p5 = scmp.eq.s32.totalorder %s612_s22, 0 }
   0xa   : > { %p614_p6 = scmp.ge.s32.totalorder %s877_s21, 1  ;;  %p160_p7 = scmp.lt.s32.totalorder %s877_s21, 3 }
   0xb   : > { %s1155_s28 = scalar_select %p955_p5, 1, 0 }
   0xc   : > { %p963_p8 = por %p955_p5, %p39_p3  ;;  %p967_p9 = pnand %p614_p6, %p160_p7 }
   0xd   : > { %s879_s6 = smov [#allocation4]   ;;  %p691_p11 = scmp.lt.s32.totalorder %s877_s21, 2 }
   0xe   : > { %s1156_s29 = scalar_select %p963_p8, 1, 0 }
   0xf   : > { %s1157_s30 = scalar_select %p967_p9, 1, 0 }
  0x10   : > { %s176_s7 = sshll.u32 %s879_s6, 4  ;;  %p678_p10 = pneg %p967_p9  ;;  %s177_s7 = int_to_ptr.vmem [resolvable:$true] %s176_s7 }
  0x11   : > { %s880_s9 = smov [#allocation6]   ;;  %p982_p13 = pnand %p691_p11, %p949_p4 }
  0x12   : > { %p976_p12 = pnand %p678_p10, %p955_p5  ;;  %s190_s10 = sshll.u32 %s880_s9, 4  ;;  %s986_s10 = int_to_ptr.vmem [resolvable:$true] %s190_s10 }
  0x13   : > { %s1159_s11 = scalar_select %p982_p13, 1, 0 }
  0x14   : > { %s201_s12 = sand.u32 1, %s873_s20   ;;  %s753_s15 = scalar_lea.hbm %s1145_s2, 16 }
  0x15   : > { %p754_p0 = scmp.ne.s32.totalorder %s1145_s2, %s753_s15  ;;  %p755_p1 = pneg %p976_p12 }
  0x16   : > { %p760_p4 = scmp.lt.u32.totalorder %s753_s15, %s1145_s2 }
  0x17   : > { %p756_p2 = pnand %p755_p1, %p754_p0 }
  0x19   : > { %p757_p3 = pneg %p756_p2 }
  0x1b   : > { %p762_p6 = pnand %p760_p4, %p757_p3 }
  0x1d   : > { %765 = shalt.err (!%p762_p6)
}
  0x1e   : > { %s766_s25 = scalar_lea.vmem %s177_s7, 16  ;;  %s773_s27 = scalar_lea.vmem %s177_s7, 32 }
  0x1f   : > { %p767_p7 = scmp.ne.s32.totalorder %s177_s7, %s766_s25  ;;  %p774_p5 = scmp.lt.s32.totalorder %s177_s7, %s177_s7 }
  0x20   : > { %p775_p8 = scmp.lt.s32.totalorder %s773_s27, %s766_s25 }
  0x21   : > { %p769_p10 = pnand %p767_p7, %p755_p1 }
  0x22   : > { %p776_p9 = por %p775_p8, %p774_p5 }
  0x23   : > { %p770_p11 = pneg %p769_p10 }
  0x25   : > { %p777_p13 = pnand %p776_p9, %p770_p11 }
  0x27   : > { %780 = shalt.err (!%p777_p13)
}
  0x28   : > { %681 = dma.hbm_to_vmem [thread:$0]  (!%p976_p12), %s1145_s2, 16, %s177_s7, [#allocation5]  }
  0x29   : > { %s781_s15 = scalar_lea.hbm %s1147_s4, 32 }
  0x2a   : > { %p782_p0 = scmp.ne.s32.totalorder %s1147_s4, %s781_s15  ;;  %p788_p9 = scmp.lt.u32.totalorder %s781_s15, %s1147_s4 }
  0x2c   : > { %p784_p5 = pnand %p782_p0, %p755_p1 }
  0x2e   : > { %p785_p8 = pneg %p784_p5 }
  0x30   : > { %p790_p13 = pnand %p788_p9, %p785_p8 }
  0x32   : > { %793 = shalt.err (!%p790_p13)
}
  0x33   : > { %s794_s7 = scalar_lea.vmem %s986_s10, 32  ;;  %p802_p6 = scmp.lt.s32.totalorder %s986_s10, %s986_s10 }
  0x34   : > { %p795_p2 = scmp.ne.s32.totalorder %s986_s10, %s794_s7  ;;  %p803_p7 = scmp.lt.s32.totalorder %s794_s7, %s794_s7 }
  0x36   : > { %p797_p3 = pnand %p795_p2, %p755_p1  ;;  %p804_p10 = por %p803_p7, %p802_p6 }
  0x38   : > { %p798_p4 = pneg %p797_p3 }
  0x3a   : > { %p805_p11 = pnand %p804_p10, %p798_p4 }
  0x3c   : > { %808 = shalt.err (!%p805_p11)
}
  0x3d   : > { %684 = dma.hbm_to_vmem [thread:$0]  (!%p976_p12), %s1147_s4, 32, %s986_s10, [#allocation5]  }
  0x3e   : > { %s618_s6 = sshll.u32 %s201_s12, 4  ;;  %s649_s9 = sshll.u32 %s877_s21, 8 }
  0x3f   : > { %s1042_s15 = scalar_lea.hbm %s1143_s0, %s649_s9  ;;  %s205_s8 = scalar_lea.vmem [#allocation2], %s618_s6 }
  0x40   : > { %s212_s16 = sshll.u32 %s205_s8, 4  ;;  %s1048_s17 = scalar_lea.sflag [#allocation3], %s201_s12  ;;  %s1044_s16 = int_to_ptr.vmem [resolvable:$true] %s212_s16 }
  0x41   : > { %s809_s10 = scalar_lea.hbm %s1042_s15, 256  ;;  %p1160_p1 = scmp.ne.s32.totalorder %s1159_s11, 0 }
  0x42   : > { %p810_p12 = scmp.ne.s32.totalorder %s1042_s15, %s809_s10  ;;  %s814_s7 = scalar_lea.hbm %s1143_s0, 512 }
  0x43   : > { %p811_p0 = pneg %p1160_p1  ;;  %p815_p9 = scmp.lt.u32.totalorder %s1042_s15, %s1143_s0 }
  0x44   : > { %p816_p13 = scmp.lt.u32.totalorder %s814_s7, %s809_s10  ;;  %p818_p3 = scmp.lt.u32.totalorder %s809_s10, %s1042_s15 }
  0x45   : > { %p812_p5 = pnand %p811_p0, %p810_p12 }
  0x46   : > { %p817_p2 = por %p816_p13, %p815_p9 }
  0x47   : > { %p813_p8 = pneg %p812_p5 }
  0x48   : > { %p819_p4 = por %p818_p3, %p817_p2 }
  0x4a   : > { %p820_p6 = pnand %p819_p4, %p813_p8 }
  0x4c   : > { %823 = shalt.err (!%p820_p6)
}
  0x4d   : > { %s824_s12 = scalar_lea.vmem %s1044_s16, 256  ;;  %s881_s6 = smov [#allocation2]  }
  0x4e   : > { %p825_p7 = scmp.ne.s32.totalorder %s1044_s16, %s824_s12  ;;  %s829_s9 = sshll.u32 %s881_s6, 4  ;;  %s830_s9 = int_to_ptr.vmem [resolvable:$false] %s829_s9 }
  0x4f   : > { %s831_s13 = scalar_lea.vmem %s830_s9, 512  ;;  %p832_p12 = scmp.lt.s32.totalorder %s1044_s16, %s830_s9 }
  0x50   : > { %p827_p10 = pnand %p825_p7, %p811_p0  ;;  %p833_p5 = scmp.lt.s32.totalorder %s831_s13, %s824_s12 }
  0x52   : > { %p828_p11 = pneg %p827_p10  ;;  %p834_p9 = por %p833_p5, %p832_p12 }
  0x54   : > { %p835_p13 = pnand %p834_p9, %p828_p11 }
  0x56   : > { %838 = shalt.err (!%p835_p13)
}
  0x57   : > { %s882_s14 = smov 128   ;;  %s883_s8 = smov 8  }
  0x58   : > { %688 = dma.hbm_to_vmem [thread:$0]  (!%p1160_p1), %s1042_s15, 256, %s1044_s16, %s1048_s17, %s882_s14, %s882_s14, %s883_s8  }
  0x59   : > { %p1161_p0 = scmp.ne.s32.totalorder %s1157_s30, 0 }
  0x5a   : > { %s226_s10 = sand.u32 (!%p1161_p0), 1, %s869_s19   ;;  %p1162_p8 = scmp.ne.s32.totalorder (!%p1161_p0), %s1156_s29, 0 }
  0x5b   : > { %224 = sbr.rel (%p1161_p0) target bundleno = 577 (0x241), region = 40  ;;  %s622_s18 = sshll.u32 (!%p1161_p0), %s226_s10, 4 }
  0x5c   : > { %s227_s24 = scalar_lea.sflag (!%p1161_p0), [#allocation3], %s226_s10  ;;  %s230_s7 = scalar_lea.vmem (!%p1161_p0), [#allocation2], %s622_s18 }
  0x62   : > { %856 = dma.done.wait (%p1162_p8), %s227_s24, 256  }
  0x63   : > { %858 = vsyncadd (%p1162_p8), %s227_s24, 4294967040  ;;  %p1163_p2 = scmp.ne.s32.totalorder %s1155_s28, 0 }
  0x65   : > { %860 = dma.done.wait (%p1163_p2), [#allocation5], 48  }
  0x66   : > { %862 = vsyncadd (%p1163_p2), [#allocation5], 4294967248  ;;  %v884_v0 = vmov 0.0   ;;  %vm885_vm0 = vmmov 0   ;;  %v733_v1 = vld [vmem:[%s1144_s1] sm:$0xff]   ;;  %v734_v2 = vld [vmem:[%s1144_s1 + $0x8] sm:$0xff]   ;;  %v395_v41 = vlaneseq }
  0x67   : > { %656 = vmatprep.subr.bf16.mxu0 %v884_v0  ;;  %664 = vmatprep.mubr.msk.bf16.mxu0 %vm885_vm0, %v884_v0  ;;  %v735_v3 = vld [vmem:[%s1144_s1 + $0x10] sm:$0xff]   ;;  %v276_v5 = vld [vmem:[%s230_s7 + $0x8] sm:$0xff]  ;;  %vm315_vm1 = vcmask 523264   ;;  %v886_v16 = vmov 0   ;;  %v633_v21 = vld [vmem:[#allocation4] ss:$0 sm:$0xff] }
  0x68   : > { %657 = vmatpush3.bf16.msra.mxu0 %v733_v1  ;;  %v275_v4 = vld [vmem:[%s230_s7] sm:$0xff]  ;;  %v278_v7 = vmul.f32 0.003921569, %v276_v5  ;;  %v736_v10 = vld [vmem:[%s1144_s1 + $0x18] sm:$0xff]   ;;  %480 = vmatprep.mubr.bf16.mxu1 %v886_v16  ;;  %s625_s17 = sshll.u32 %s612_s22, 2  ;;  %v396_v42 = vshrl.u32 %v395_v41, 7 }
  0x69   : > { %658 = vmatprep.subr.bf16.mxu0 %v884_v0  ;;  %v277_v6 = vmul.f32 0.003921569, %v275_v4  ;;  %v737_v12 = vld [vmem:[%s1146_s3 + $0x4] ss:$8 sps:$4 sm:$0xff]   ;;  %v739_v13 = vld [vmem:[%s1146_s3] ss:$8 sps:$4 sm:$0xff]  }
  0x6a   : > { %v281_v9 = vmul.f32 %v278_v7, %v278_v7  ;;  %v740_v14 = vld [vmem:[%s1146_s3 + $0x14] ss:$8 sps:$4 sm:$0xff]   ;;  %448 = vmatprep.subr.bf16.mxu1 %v737_v12  ;;  %v742_v15 = vld [vmem:[%s1146_s3 + $0x10] ss:$8 sps:$4 sm:$0xff]   ;;  %v743_v17 = vld [vmem:[%s1146_s3 + $0x24] ss:$8 sps:$4 sm:$0xff]  }
  0x6b   : > { %v280_v8 = vmul.f32 %v277_v6, %v277_v6  ;;  %449 = vmatpush1.bf16.msra.mxu1 %v739_v13  ;;  %v745_v18 = vld [vmem:[%s1146_s3 + $0x20] ss:$8 sps:$4 sm:$0xff]   ;;  %v746_v19 = vld [vmem:[%s1146_s3 + $0x34] ss:$8 sps:$4 sm:$0xff]   ;;  %v748_v20 = vld [vmem:[%s1146_s3 + $0x30] ss:$8 sps:$4 sm:$0xff]  }
  0x6c   : > { %659 = vmatpush3.bf16.msra.mxu0 %v734_v2  ;;  %450 = vmatprep.subr.bf16.mxu1 %v740_v14  ;;  %p268_p1 = scmp.lt.s32.totalorder %s625_s17, 7  ;;  %v397_v43 = vsub.s32 0, %v396_v42  ;;  %v393_v44 = vld [vmem:[#allocation6] sm:$0x3]  ;;  %v401_v45 = vsub.s32 1, %v396_v42 }
  0x6d   : > { %660 = vmatprep.subr.bf16.mxu0 %v884_v0  ;;  %v282_v11 = vpack.c.bf16 %v281_v9, %v280_v8 }
  0x6e   : > { %s1169_s17 = smov (!%p268_p1, %s625_s17), 7  ;;  %v398_v46 = vrot.slane %v393_v44, %v397_v43  ;;  %v402_v47 = vrot.slane %v393_v44, %v401_v45 }
  0x6f   : > { %451 = vmatpush1.bf16.msra.mxu1 %v742_v15  ;;  %s650_s28 = sshll.u32 %s1169_s17, 3 }
  0x70   : > { %661 = vmatpush3.bf16.msra.mxu0 %v735_v3  ;;  %452 = vmatprep.subr.bf16.mxu1 %v743_v17  ;;  %s272_s12 = scalar_lea.vmem %s1148_s5, %s650_s28 }
  0x71   : > { %662 = vmatprep.subr.bf16.mxu0 %v884_v0 }
  0x73   : > { %453 = vmatpush1.bf16.msra.mxu1 %v745_v18 }
  0x74   : > { %663 = vmatpush3.bf16.msra.mxu0 %v736_v10  ;;  %454 = vmatprep.subr.bf16.mxu1 %v746_v19 }
  0x77   : > { %665 = vmatmul.mubr.msk.bf16.vlgmr.msra.gmra.mrb[0].mxu0 %vm315_vm1, %v282_v11  ;;  %455 = vmatpush1.bf16.msra.mxu1 %v748_v20 }
 0x14a   : > { %v353_v22 = vpop.f32.mrb[0].mxu0 }
 0x14b   : > { %v366_v23 = vadd.f32 %v633_v21, %v353_v22  ;;  %v666_v24 = vpop.f32.mrb[1].mxu0 }
 0x14c   : > { %v356_v25 = vpop.f32.mrb[2].mxu0 }
 0x14d   : > { %749 = vrsqrt.f32 %v366_v23  ;;  %v367_v26 = vadd.f32 %v633_v21, %v356_v25  ;;  %v667_v27 = vpop.f32.mrb[3].mxu0  ;;  %vm370_vm2 = vcmp.eq.f32.partialorder %v366_v23, inf  ;;  %v373_v31 = vand.u32 2147483648, %v366_v23 }
 0x14e   : > { %vm372_vm3 = vcmp.eq.f32.partialorder %v366_v23, 0.0 }
 0x14f   : > { %751 = vrsqrt.f32 %v367_v26  ;;  %vm377_vm4 = vcmp.eq.f32.partialorder %v367_v26, inf  ;;  %v380_v35 = vand.u32 2147483648, %v367_v26  ;;  %vm379_vm5 = vcmp.eq.f32.partialorder %v367_v26, 0.0 }
 0x157   : > { %v750_v28 = vpop.eup %749 }
 0x158   : > { %v369_v29 = vmul.f32 %v750_v28, %v366_v23 }
 0x159   : > { %v752_v30 = vpop.eup %751 }
 0x15a   : > { %v371_v32 = vsel %vm370_vm2, %v366_v23, %v369_v29  ;;  %v376_v33 = vmul.f32 %v752_v30, %v367_v26 }
 0x15b   : > { %v374_v34 = vsel %vm372_vm3, %v373_v31, %v371_v32 }
 0x15c   : > { %v378_v36 = vsel %vm377_vm4, %v367_v26, %v376_v33  ;;  %v382_v38 = vmul.f32 %v374_v34, %v277_v6 }
 0x15d   : > { %v381_v37 = vsel %vm379_vm5, %v380_v35, %v378_v36 }
 0x15e   : > { %v383_v39 = vmul.f32 %v381_v37, %v278_v7 }
 0x160   : > { %v384_v40 = vpack.c.bf16 %v383_v39, %v382_v38 }
 0x162   : > { %642 = vmatmul.mubr.msk.bf16.vlgmr.msra.gmra.mrb[0].mxu1 %vm315_vm1, %v384_v40 }
 0x235   : > { %v482_v48 = vpop.f32.mrb[0].mxu1 }
 0x236   : > { %v483_v49 = vadd.f32 %v482_v48, %v398_v46  ;;  %v484_v50 = vpop.f32.mrb[1].mxu1 }
 0x237   : > { %v485_v51 = vadd.f32 %v484_v50, %v402_v47  ;;  %v486_v52 = vpop.f32.mrb[2].mxu1 }
 0x238   : > { %vm491_vm6 = vcmp.ge.f32.partialorder %v483_v49, 0.0  ;;  %v495_v53 = vmul.f32 0.01, %v483_v49  ;;  %v487_v54 = vadd.f32 %v486_v52, %v398_v46  ;;  %v488_v55 = vpop.f32.mrb[3].mxu1 }
 0x239   : > { %vm492_vm7 = vcmp.ge.f32.partialorder %v485_v51, 0.0  ;;  %v496_v56 = vmul.f32 0.01, %v485_v51  ;;  %v489_v57 = vadd.f32 %v488_v55, %v402_v47 }
 0x23a   : > { %v499_v58 = vsel %vm491_vm6, %v483_v49, %v495_v53  ;;  %vm493_vm8 = vcmp.ge.f32.partialorder %v487_v54, 0.0  ;;  %v497_v59 = vmul.f32 0.01, %v487_v54 }
 0x23b   : > { %v505_v60 = vcombine.high %v499_v58, %v499_v58  ;;  %509 = vst [vmem:[%s272_s12] sm:$0xf] %v499_v58  ;;  %v500_v61 = vsel %vm492_vm7, %v485_v51, %v496_v56  ;;  %vm494_vm9 = vcmp.ge.f32.partialorder %v489_v57, 0.0  ;;  %v498_v62 = vmul.f32 0.01, %v489_v57 }
 0x23c   : > { %v515_v63 = vcombine.high %v500_v61, %v500_v61  ;;  %643 = vst [vmem:[%s272_s12 + $0x4] sm:$0xf] %v500_v61  ;;  %v501_v0 = vsel %vm493_vm8, %v487_v54, %v497_v59 }
 0x23d   : > { %510 = vst [vmem:[%s272_s12 + $0x8] sm:$0xf] %v505_v60  ;;  %v506_v1 = vcombine.high %v501_v0, %v501_v0  ;;  %v502_v2 = vsel %vm494_vm9, %v489_v57, %v498_v62  ;;  %511 = vst [vmem:[%s272_s12 + $0x10] sm:$0xf] %v501_v0 }
 0x23e   : > { %644 = vst [vmem:[%s272_s12 + $0xc] sm:$0xf] %v515_v63  ;;  %v516_v3 = vcombine.high %v502_v2, %v502_v2  ;;  %645 = vst [vmem:[%s272_s12 + $0x14] sm:$0xf] %v502_v2 }
 0x23f   : > { %512 = vst [vmem:[%s272_s12 + $0x18] sm:$0xf] %v506_v1 }
 0x240   : > { %646 = vst [vmem:[%s272_s12 + $0x1c] sm:$0xf] %v516_v3 }
 0x241 PF: > { %p16_p3 = scmp.ge.s32.totalorder %s937_s23, 4   ;;  %s1164_s18 = smov %s869_s19 }
 0x242   : > { %s1165_s19 = smov %s873_s20  ;;  %s1166_s20 = smov %s947_s26 }
 0x243   : > { %s1167_s21 = smov %s937_s23  ;;  %18 = sbr.rel (!%p16_p3) target bundleno = 4 (0x4), region = 89 }
 0x24a   :  { %548 = vsyncpa [#allocation3], 1 }
 0x24b   :  { %550 = vsyncpa [#allocation3 + $0x1], 1 }
 0x24c   :  { %551 = vsyncpa [#allocation5], 1 }

// kernel: decode_net_forward.6
= control target key start
LH: loop header
LB: loop body
LE: loop exit
PB: predicated region body
PF: predicated region fallthrough
CT: control target
= control target key end

     0   :  { %10 = vsyncpa [#allocation3], 0  ;;  %s2808_s0 = inlined_call_operand.vmem [shape: f32[512,64], index: 0, kind: input, shape index: {}]   ;;  %s2809_s1 = inlined_call_operand.vmem [shape: bf16[64,64], index: 1, kind: input, shape index: {}]   ;;  %s2810_s2 = inlined_call_operand.hbm [shape: f32[1,64], index: 2, kind: input, shape index: {}]   ;;  %s2811_s3 = inlined_call_operand.vmem [shape: bf16[64,256], index: 3, kind: input, shape index: {}]   ;;  %s2812_s4 = inlined_call_operand.hbm [shape: f32[1,256], index: 4, kind: input, shape index: {}]   ;;  %s2813_s5 = inlined_call_operand.vmem [shape: f32[32,2,16,128], index: 5, kind: output, shape index: {}]  }
   0x1   :  { %11 = vsyncpa [#allocation5], 0  ;;  %s1905_s18 = smov 0  }
   0x2 LB: > { %s1911_s19 = sadd.s32 4294967295, %s1870_s18   ;;  %p1530_p0 = scmp.ge.s32.totalorder %s1870_s18, 1  ;;  %s1870_s18 = sphi %s1905_s18, %s17_s18  }
   0x3   : > { %p158_p1 = scmp.lt.s32.totalorder %s1870_s18, 3  ;;  %p2814_p2 = scmp.eq.s32.totalorder %s1911_s19, 0 }
   0x4   : > { %s1872_s21 = smov [#allocation2]   ;;  %s1873_s23 = smov [#allocation4]  }
   0x5   : > { %p1916_p3 = pnand %p1530_p0, %p158_p1  ;;  %s174_s22 = sshll.u32 %s1872_s21, 4  ;;  %s175_s22 = int_to_ptr.vmem [resolvable:$true] %s174_s22 }
   0x6   : > { %s188_s24 = sshll.u32 %s1873_s23, 4  ;;  %s1800_s28 = scalar_lea.hbm %s2810_s2, 16  ;;  %s1928_s24 = int_to_ptr.vmem [resolvable:$true] %s188_s24 }
   0x7   : > { %s2816_s20 = scalar_select %p1916_p3, 1, 0 }
   0x8   : > { %p1698_p4 = pneg %p1916_p3  ;;  %p1801_p6 = scmp.ne.s32.totalorder %s2810_s2, %s1800_s28 }
   0x9   : > { %p1807_p10 = scmp.lt.u32.totalorder %s1800_s28, %s2810_s2 }
   0xa   : > { %p1924_p5 = pnand %p2814_p2, %p1698_p4 }
   0xc   : > { %p1802_p7 = pneg %p1924_p5 }
   0xe   : > { %p1803_p8 = pnand %p1802_p7, %p1801_p6 }
  0x10   : > { %p1804_p9 = pneg %p1803_p8 }
  0x12   : > { %p1809_p11 = pnand %p1807_p10, %p1804_p9 }
  0x14   : > { %1812 = shalt.err (!%p1809_p11)
}
  0x15   : > { %s1813_s8 = scalar_lea.vmem %s175_s22, 16  ;;  %s1820_s9 = scalar_lea.vmem %s175_s22, 32 }
  0x16   : > { %p1814_p12 = scmp.ne.s32.totalorder %s175_s22, %s1813_s8  ;;  %p1821_p1 = scmp.lt.s32.totalorder %s175_s22, %s175_s22 }
  0x17   : > { %p1822_p4 = scmp.lt.s32.totalorder %s1820_s9, %s1813_s8 }
  0x18   : > { %p1816_p13 = pnand %p1814_p12, %p1802_p7 }
  0x19   : > { %p1823_p2 = por %p1822_p4, %p1821_p1 }
  0x1a   : > { %p1817_p0 = pneg %p1816_p13 }
  0x1c   : > { %p1824_p3 = pnand %p1823_p2, %p1817_p0 }
  0x1e   : > { %1827 = shalt.err (!%p1824_p3)
}
  0x1f   : > { %1701 = dma.hbm_to_vmem [thread:$0]  (!%p1924_p5), %s2810_s2, 16, %s175_s22, [#allocation3]  }
  0x20   : > { %s1828_s14 = scalar_lea.hbm %s2812_s4, 32 }
  0x21   : > { %p1829_p6 = scmp.ne.s32.totalorder %s2812_s4, %s1828_s14  ;;  %p1835_p3 = scmp.lt.u32.totalorder %s1828_s14, %s2812_s4 }
  0x23   : > { %p1831_p8 = pnand %p1829_p6, %p1802_p7 }
  0x25   : > { %p1832_p2 = pneg %p1831_p8 }
  0x27   : > { %p1837_p9 = pnand %p1835_p3, %p1832_p2 }
  0x29   : > { %1840 = shalt.err (!%p1837_p9)
}
  0x2a   : > { %s1841_s22 = scalar_lea.vmem %s1928_s24, 32  ;;  %p1849_p13 = scmp.lt.s32.totalorder %s1928_s24, %s1928_s24 }
  0x2b   : > { %p1842_p10 = scmp.ne.s32.totalorder %s1928_s24, %s1841_s22  ;;  %p1850_p0 = scmp.lt.s32.totalorder %s1841_s22, %s1841_s22 }
  0x2d   : > { %p1844_p11 = pnand %p1842_p10, %p1802_p7  ;;  %p1851_p1 = por %p1850_p0, %p1849_p13 }
  0x2f   : > { %p1845_p12 = pneg %p1844_p11 }
  0x31   : > { %p1852_p4 = pnand %p1851_p1, %p1845_p12 }
  0x33   : > { %1855 = shalt.err (!%p1852_p4)
}
  0x34   : > { %1704 = dma.hbm_to_vmem [thread:$0]  (!%p1924_p5), %s2812_s4, 32, %s1928_s24, [#allocation5]  }
  0x35   : > { %p2818_p6 = scmp.ne.s32.totalorder %s2816_s20, 0 }
  0x36   : > { %p2819_p8 = scmp.eq.s32.totalorder (!%p2818_p6), %s1911_s19, 0 }
  0x37   : > { %210 = sbr.rel (%p2818_p6) target bundleno = 645 (0x285), region = 40 }
  0x3e   : > { %1861 = dma.done.wait (%p2819_p8), [#allocation3], 16   ;;  %p2820_p7 = pmov %p2819_p8 }
  0x40   : > { %1863 = vsyncadd (%p2820_p7), [#allocation3], 4294967280  ;;  %p2821_p2 = pmov %p2820_p7 }
  0x42   : > { %1865 = dma.done.wait (%p2821_p2), [#allocation5], 32   ;;  %p2822_p3 = pmov %p2821_p2 }
  0x43   : > { %s1537_s25 = sshll.u32 %s1911_s19, 5  ;;  %v1720_v0 = vld [vmem:[%s2809_s1] sm:$0xff]   ;;  %v1721_v1 = vld [vmem:[%s2809_s1 + $0x8] sm:$0xff]   ;;  %v1722_v2 = vld [vmem:[%s2809_s1 + $0x10] sm:$0xff]   ;;  %vm370_vm0 = vcmask 523264   ;;  %s1539_s30 = sshll.u32 %s1911_s19, 4 }
  0x44   : > { %1867 = vsyncadd (%p2822_p3), [#allocation5], 4294967264  ;;  %p244_p9 = scmp.lt.s32.totalorder %s1537_s25, 63  ;;  %1642 = vmatprep.subr.bf16.mxu0 %v1720_v0  ;;  %v1723_v10 = vld [vmem:[%s2809_s1 + $0x18] sm:$0xff]   ;;  %p250_p5 = scmp.lt.s32.totalorder %s1539_s30, 31 }
  0x45   : > { %1643 = vmatpush3.bf16.msra.mxu0 %v1720_v0 }
  0x46   : > { %s2824_s25 = smov (!%p244_p9, %s1537_s25), 63  ;;  %1644 = vmatprep.subr.bf16.mxu0 %v1721_v1  ;;  %s2826_s30 = smov (!%p250_p5, %s1539_s30), 31 }
  0x47   : > { %s1538_s24 = sshll.u32 %s2824_s25, 3  ;;  %s1621_s6 = sshll.u32 %s2826_s30, 5 }
  0x48   : > { %s1997_s7 = scalar_lea.vmem %s2808_s0, %s1538_s24  ;;  %s2677_s8 = scalar_lea.vmem %s2813_s5, %s1621_s6 }
  0x49   : > { %v2003_v3 = vld [vmem:[%s1997_s7] sm:$0xff]  ;;  %v2006_v4 = vld [vmem:[%s1997_s7 + $0x8] sm:$0xff]  ;;  %1645 = vmatpush3.bf16.msra.mxu0 %v1721_v1  ;;  %v2013_v8 = vld [vmem:[%s1997_s7 + $0x10] sm:$0xff] }
  0x4a   : > { %v290_v5 = vmul.f32 %v2003_v3, %v2003_v3  ;;  %v291_v6 = vmul.f32 %v2006_v4, %v2006_v4  ;;  %v2016_v9 = vld [vmem:[%s1997_s7 + $0x18] sm:$0xff]  ;;  %1646 = vmatprep.subr.bf16.mxu0 %v1722_v2  ;;  %v2022_v11 = vld [vmem:[%s1997_s7 + $0x20] sm:$0xff]  ;;  %v2025_v12 = vld [vmem:[%s1997_s7 + $0x28] sm:$0xff]  ;;  %v292_v13 = vmul.f32 %v2013_v8, %v2013_v8 }
  0x4b   : > { %v293_v14 = vmul.f32 %v2016_v9, %v2016_v9  ;;  %v294_v15 = vmul.f32 %v2022_v11, %v2022_v11  ;;  %v295_v16 = vmul.f32 %v2025_v12, %v2025_v12  ;;  %v2037_v17 = vld [vmem:[%s1997_s7 + $0x30] sm:$0xff]  ;;  %v2040_v19 = vld [vmem:[%s1997_s7 + $0x38] sm:$0xff]  ;;  %v2043_v20 = vld [vmem:[%s1997_s7 + $0x40] sm:$0xff] }
  0x4c   : > { %v322_v7 = vpack.c.bf16 %v291_v6, %v290_v5  ;;  %v2046_v21 = vld [vmem:[%s1997_s7 + $0x48] sm:$0xff]  ;;  %v296_v23 = vmul.f32 %v2037_v17, %v2037_v17  ;;  %v297_v24 = vmul.f32 %v2040_v19, %v2040_v19  ;;  %v298_v25 = vmul.f32 %v2043_v20, %v2043_v20  ;;  %v2059_v29 = vld [vmem:[%s1997_s7 + $0x50] sm:$0xff]  ;;  %v2062_v30 = vld [vmem:[%s1997_s7 + $0x58] sm:$0xff] }
  0x4d   : > { %1647 = vmatpush3.bf16.msra.mxu0 %v1722_v2  ;;  %v323_v18 = vpack.c.bf16 %v293_v14, %v292_v13  ;;  %v324_v22 = vpack.c.bf16 %v295_v16, %v294_v15  ;;  %v299_v26 = vmul.f32 %v2046_v21, %v2046_v21  ;;  %v2065_v31 = vld [vmem:[%s1997_s7 + $0x60] sm:$0xff]  ;;  %v2068_v32 = vld [vmem:[%s1997_s7 + $0x68] sm:$0xff]  ;;  %v300_v33 = vmul.f32 %v2059_v29, %v2059_v29  ;;  %v2081_v39 = vld [vmem:[%s1997_s7 + $0x70] sm:$0xff] }
  0x4e   : > { %1650 = vmatprep.mubr.msk.bf16.mxu0 %vm370_vm0, %v322_v7  ;;  %1648 = vmatprep.subr.bf16.mxu0 %v1723_v10  ;;  %v325_v27 = vpack.c.bf16 %v297_v24, %v296_v23  ;;  %v301_v34 = vmul.f32 %v2062_v30, %v2062_v30  ;;  %v302_v35 = vmul.f32 %v2065_v31, %v2065_v31  ;;  %v2084_v40 = vld [vmem:[%s1997_s7 + $0x78] sm:$0xff]  ;;  %v2087_v41 = vld [vmem:[%s1997_s7 + $0x80] sm:$0xff]  ;;  %v2090_v42 = vld [vmem:[%s1997_s7 + $0x88] sm:$0xff] }
  0x4f   : > { %v326_v28 = vpack.c.bf16 %v299_v26, %v298_v25  ;;  %v303_v36 = vmul.f32 %v2068_v32, %v2068_v32  ;;  %v304_v43 = vmul.f32 %v2081_v39, %v2081_v39  ;;  %v305_v44 = vmul.f32 %v2084_v40, %v2084_v40  ;;  %v2103_v49 = vld [vmem:[%s1997_s7 + $0x90] sm:$0xff]  ;;  %v2106_v50 = vld [vmem:[%s1997_s7 + $0x98] sm:$0xff]  ;;  %v2109_v51 = vld [vmem:[%s1997_s7 + $0xa0] sm:$0xff] }
  0x50   : > { %v327_v37 = vpack.c.bf16 %v301_v34, %v300_v33  ;;  %v306_v45 = vmul.f32 %v2087_v41, %v2087_v41  ;;  %v307_v46 = vmul.f32 %v2090_v42, %v2090_v42  ;;  %v2112_v52 = vld [vmem:[%s1997_s7 + $0xa8] sm:$0xff]  ;;  %v308_v53 = vmul.f32 %v2103_v49, %v2103_v49  ;;  %v2125_v59 = vld [vmem:[%s1997_s7 + $0xb0] sm:$0xff]  ;;  %v2128_v60 = vld [vmem:[%s1997_s7 + $0xb8] sm:$0xff] }
  0x51   : > { %1649 = vmatpush3.bf16.msra.mxu0 %v1723_v10  ;;  %v328_v38 = vpack.c.bf16 %v303_v36, %v302_v35  ;;  %v329_v47 = vpack.c.bf16 %v305_v44, %v304_v43  ;;  %v309_v54 = vmul.f32 %v2106_v50, %v2106_v50  ;;  %v310_v55 = vmul.f32 %v2109_v51, %v2109_v51  ;;  %v2131_v61 = vld [vmem:[%s1997_s7 + $0xc0] sm:$0xff]  ;;  %v2134_v62 = vld [vmem:[%s1997_s7 + $0xc8] sm:$0xff]  ;;  %v2147_v7 = vld [vmem:[%s1997_s7 + $0xd0] sm:$0xff] }
  0x52   : > { %v330_v48 = vpack.c.bf16 %v307_v46, %v306_v45  ;;  %v311_v56 = vmul.f32 %v2112_v52, %v2112_v52  ;;  %v312_v63 = vmul.f32 %v2125_v59, %v2125_v59  ;;  %v313_v0 = vmul.f32 %v2128_v60, %v2128_v60  ;;  %v2150_v10 = vld [vmem:[%s1997_s7 + $0xd8] sm:$0xff]  ;;  %v2153_v13 = vld [vmem:[%s1997_s7 + $0xe0] sm:$0xff]  ;;  %v2156_v14 = vld [vmem:[%s1997_s7 + $0xe8] sm:$0xff] }
  0x53   : > { %v331_v57 = vpack.c.bf16 %v309_v54, %v308_v53  ;;  %v314_v1 = vmul.f32 %v2131_v61, %v2131_v61  ;;  %v315_v2 = vmul.f32 %v2134_v62, %v2134_v62  ;;  %v316_v15 = vmul.f32 %v2147_v7, %v2147_v7  ;;  %v2169_v25 = vld [vmem:[%s1997_s7 + $0xf0] sm:$0xff]  ;;  %v2172_v26 = vld [vmem:[%s1997_s7 + $0xf8] sm:$0xff]  ;;  %v1726_v34 = vld [vmem:[%s2811_s3 + $0x4] ss:$8 sps:$4 sm:$0xff]  }
  0x54   : > { %1651 = vmatmul.mubr.msk.bf16.vlgmr.msra.gmra.mrb[0].mxu0 %vm370_vm0, %v323_v18  ;;  %v332_v58 = vpack.c.bf16 %v311_v56, %v310_v55  ;;  %v333_v5 = vpack.c.bf16 %v313_v0, %v312_v63  ;;  %v317_v16 = vmul.f32 %v2150_v10, %v2150_v10  ;;  %v318_v18 = vmul.f32 %v2153_v13, %v2153_v13  ;;  %v1724_v35 = vld [vmem:[%s2811_s3] ss:$8 sps:$4 sm:$0xff]   ;;  %v1729_v36 = vld [vmem:[%s2811_s3 + $0x14] ss:$8 sps:$4 sm:$0xff]   ;;  %v1733_v45 = vld [vmem:[%s2811_s3 + $0x30] ss:$8 sps:$4 sm:$0xff]  }
  0x55   : > { %1654 = vmatprep.mubr.msk.bf16.mxu0 %vm370_vm0, %v324_v22  ;;  %v334_v6 = vpack.c.bf16 %v315_v2, %v314_v1  ;;  %v319_v22 = vmul.f32 %v2156_v14, %v2156_v14  ;;  %998 = vmatprep.subr.bf16.mxu0 %v1726_v34  ;;  %v1730_v43 = vld [vmem:[%s2811_s3 + $0x20] ss:$8 sps:$4 sm:$0xff]   ;;  %v1735_v44 = vld [vmem:[%s2811_s3 + $0x34] ss:$8 sps:$4 sm:$0xff]   ;;  %v1874_v46 = vmov 0  }
  0x56   : > { %v335_v23 = vpack.c.bf16 %v317_v16, %v316_v15  ;;  %1682 = vmatprep.subr.bf16.mxu1 %v1726_v34  ;;  %999 = vmatpush1.bf16.msra.mxu0 %v1724_v35 }
  0x57   : > { %v336_v24 = vpack.c.bf16 %v319_v22, %v318_v18  ;;  %1686 = vmatpush1.bf16.msra.mxu1 %v1724_v35  ;;  %1000 = vmatprep.subr.bf16.mxu0 %v1729_v36 }
  0x58   : > { %1683 = vmatprep.subr.bf16.mxu1 %v1729_v36  ;;  %1070 = vmatprep.mubr.bf16.mxu1 %v1874_v46 }
  0x5c   : > { %1655 = vmatmul.mubr.msk.bf16.gmra.mrb[4].mxu0 %vm370_vm0, %v325_v27  ;;  %v320_v27 = vmul.f32 %v2169_v25, %v2169_v25 }
  0x5d   : > { %1658 = vmatprep.mubr.msk.bf16.mxu0 %vm370_vm0, %v326_v28  ;;  %v321_v28 = vmul.f32 %v2172_v26, %v2172_v26 }
  0x5f   : > { %v337_v33 = vpack.c.bf16 %v321_v28, %v320_v27 }
  0x64   : > { %1659 = vmatmul.mubr.msk.bf16.gmra.mrb[8].mxu0 %vm370_vm0, %v327_v37  ;;  %v1727_v37 = vld [vmem:[%s2811_s3 + $0x10] ss:$8 sps:$4 sm:$0xff]  }
  0x65   : > { %1662 = vmatprep.mubr.msk.bf16.mxu0 %vm370_vm0, %v328_v38  ;;  %1001 = vmatpush1.bf16.msra.mxu0 %v1727_v37  ;;  %v1732_v38 = vld [vmem:[%s2811_s3 + $0x24] ss:$8 sps:$4 sm:$0xff]  }
  0x66   : > { %1687 = vmatpush1.bf16.msra.mxu1 %v1727_v37  ;;  %1002 = vmatprep.subr.bf16.mxu0 %v1732_v38 }
  0x67   : > { %1684 = vmatprep.subr.bf16.mxu1 %v1732_v38 }
  0x69   : > { %1003 = vmatpush1.bf16.msra.mxu0 %v1730_v43 }
  0x6a   : > { %1688 = vmatpush1.bf16.msra.mxu1 %v1730_v43  ;;  %1004 = vmatprep.subr.bf16.mxu0 %v1735_v44 }
  0x6b   : > { %1685 = vmatprep.subr.bf16.mxu1 %v1735_v44 }
  0x6c   : > { %1663 = vmatmul.mubr.msk.bf16.gmra.mrb[12].mxu0 %vm370_vm0, %v329_v47  ;;  %v2207_v47 = vld [vmem:[#allocation2] ss:$0 sm:$0xff] }
  0x6d   : > { %1666 = vmatprep.mubr.msk.bf16.mxu0 %vm370_vm0, %v330_v48  ;;  %1005 = vmatpush1.bf16.msra.mxu0 %v1733_v45 }
  0x6e   : > { %1689 = vmatpush1.bf16.msra.mxu1 %v1733_v45 }
  0x74   : > { %1667 = vmatmul.mubr.msk.bf16.gmra.mrb[16].mxu0 %vm370_vm0, %v331_v57 }
  0x75   : > { %1670 = vmatprep.mubr.msk.bf16.mxu0 %vm370_vm0, %v332_v58 }
  0x7c   : > { %1671 = vmatmul.mubr.msk.bf16.gmra.mrb[20].mxu0 %vm370_vm0, %v333_v5 }
  0x7d   : > { %1674 = vmatprep.mubr.msk.bf16.mxu0 %vm370_vm0, %v334_v6 }
  0x84   : > { %1675 = vmatmul.mubr.msk.bf16.gmra.mrb[24].mxu0 %vm370_vm0, %v335_v23 }
  0x85   : > { %1678 = vmatprep.mubr.msk.bf16.mxu0 %vm370_vm0, %v336_v24 }
  0x8c   : > { %1679 = vmatmul.mubr.msk.bf16.gmra.mrb[28].mxu0 %vm370_vm0, %v337_v33 }
  0x8d   : > { %1030 = vmatprep.mubr.bf16.mxu0 %v1874_v46 }
 0x127   : > { %v1652_v48 = vpop.f32.mrb[0].mxu0 }
 0x128   : > { %v588_v53 = vadd.f32 %v1652_v48, %v2207_v47  ;;  %v453_v54 = vpop.f32.mrb[1].mxu0 }
 0x129   : > { %v586_v55 = vadd.f32 %v2207_v47, %v453_v54  ;;  %v1653_v56 = vpop.f32.mrb[2].mxu0 }
 0x12a   : > { %1736 = vrsqrt.f32 %v588_v53  ;;  %v589_v57 = vadd.f32 %v1653_v56, %v2207_v47  ;;  %v456_v58 = vpop.f32.mrb[3].mxu0  ;;  %vm634_vm1 = vcmp.eq.f32.partialorder %v588_v53, inf  ;;  %vm636_vm2 = vcmp.eq.f32.partialorder %v588_v53, 0.0 }
 0x12b   : > { %1738 = vrsqrt.f32 %v586_v55  ;;  %v2213_v63 = vadd.f32 %v2207_v47, %v456_v58  ;;  %vm620_vm3 = vcmp.eq.f32.partialorder %v586_v55, inf  ;;  %vm622_vm4 = vcmp.eq.f32.partialorder %v586_v55, 0.0 }
 0x12c   : > { %1740 = vrsqrt.f32 %v589_v57  ;;  %v623_v23 = vand.u32 2147483648, %v586_v55  ;;  %v637_v24 = vand.u32 2147483648, %v588_v53  ;;  %vm641_vm5 = vcmp.eq.f32.partialorder %v589_v57, inf }
 0x12d   : > { %1742 = vrsqrt.f32 %v2213_v63  ;;  %vm643_vm6 = vcmp.eq.f32.partialorder %v589_v57, 0.0  ;;  %v644_v33 = vand.u32 2147483648, %v589_v57  ;;  %vm627_vm7 = vcmp.eq.f32.partialorder %v2213_v63, inf }
 0x12e   : > { %vm629_vm8 = vcmp.eq.f32.partialorder %v2213_v63, 0.0  ;;  %v630_v36 = vand.u32 2147483648, %v2213_v63 }
 0x12f   : > { %v1656_v0 = vpop.f32.mrb[4].mxu0 }
 0x130   : > { %v2217_v1 = vadd.f32 %v1656_v0, %v2207_v47  ;;  %v469_v2 = vpop.f32.mrb[5].mxu0 }
 0x131   : > { %v2220_v5 = vadd.f32 %v2207_v47, %v469_v2  ;;  %v1657_v6 = vpop.f32.mrb[6].mxu0 }
 0x132   : > { %1744 = vrsqrt.f32 %v2217_v1  ;;  %v2224_v15 = vadd.f32 %v1657_v6, %v2207_v47  ;;  %v472_v16 = vpop.f32.mrb[7].mxu0  ;;  %vm662_vm11 = vcmp.eq.f32.partialorder %v2217_v1, inf  ;;  %v665_v58 = vand.u32 2147483648, %v2217_v1 }
 0x133   : > { %1746 = vrsqrt.f32 %v2220_v5  ;;  %v2228_v18 = vadd.f32 %v2207_v47, %v472_v16  ;;  %vm648_vm9 = vcmp.eq.f32.partialorder %v2220_v5, inf  ;;  %v651_v44 = vand.u32 2147483648, %v2220_v5 }
 0x134   : > { %v1737_v22 = vpop.eup %1736  ;;  %1748 = vrsqrt.f32 %v2224_v15  ;;  %vm650_vm10 = vcmp.eq.f32.partialorder %v2220_v5, 0.0  ;;  %vm669_vm12 = vcmp.eq.f32.partialorder %v2224_v15, inf  ;;  %vm664_vm15 = vcmp.eq.f32.partialorder %v2217_v1, 0.0 }
 0x135   : > { %v1739_v27 = vpop.eup %1738  ;;  %1750 = vrsqrt.f32 %v2228_v18  ;;  %v633_v28 = vmul.f32 %v1737_v22, %v588_v53  ;;  %vm655_vm13 = vcmp.eq.f32.partialorder %v2228_v18, inf  ;;  %vm657_vm14 = vcmp.eq.f32.partialorder %v2228_v18, 0.0 }
 0x136   : > { %v1741_v34 = vpop.eup %1740  ;;  %v619_v35 = vmul.f32 %v1739_v27, %v586_v55 }
 0x137   : > { %v1660_v37 = vpop.f32.mrb[8].mxu0  ;;  %v635_v38 = vsel %vm634_vm1, %v588_v53, %v633_v28  ;;  %v640_v43 = vmul.f32 %v1741_v34, %v589_v57  ;;  %v1743_v45 = vpop.eup %1742  ;;  %vm671_vm1 = vcmp.eq.f32.partialorder %v2224_v15, 0.0 }
 0x138   : > { %v621_v48 = vsel %vm620_vm3, %v586_v55, %v619_v35  ;;  %v2240_v54 = vadd.f32 %v1660_v37, %v2207_v47  ;;  %v485_v56 = vpop.f32.mrb[9].mxu0  ;;  %v626_v0 = vmul.f32 %v1743_v45, %v2213_v63  ;;  %v638_v16 = vsel %vm636_vm2, %v637_v24, %v635_v38 }
 0x139   : > { %v2248_v2 = vadd.f32 %v2207_v47, %v485_v56  ;;  %v1661_v6 = vpop.f32.mrb[10].mxu0  ;;  %v642_v22 = vsel %vm641_vm5, %v589_v57, %v640_v43  ;;  %v624_v34 = vsel %vm622_vm4, %v623_v23, %v621_v48  ;;  %v658_v37 = vand.u32 2147483648, %v2228_v18 }
 0x13a   : > { %1752 = vrsqrt.f32 %v2240_v54  ;;  %v2255_v27 = vadd.f32 %v1661_v6, %v2207_v47  ;;  %v488_v28 = vpop.f32.mrb[11].mxu0  ;;  %v645_v35 = vsel %vm643_vm6, %v644_v33, %v642_v22  ;;  %v628_v53 = vsel %vm627_vm7, %v2213_v63, %v626_v0 }
 0x13b   : > { %1754 = vrsqrt.f32 %v2248_v2  ;;  %v2266_v24 = vadd.f32 %v2207_v47, %v488_v28  ;;  %v631_v55 = vsel %vm629_vm8, %v630_v36, %v628_v53  ;;  %v2273_v57 = vmul.f32 %v638_v16, %v2013_v8 }
 0x13c   : > { %v1745_v38 = vpop.eup %1744  ;;  %1756 = vrsqrt.f32 %v2255_v27  ;;  %v2276_v23 = vmul.f32 %v645_v35, %v2016_v9  ;;  %v842_v43 = vmul.f32 %v624_v34, %v2003_v3  ;;  %v843_v45 = vmul.f32 %v631_v55, %v2006_v4 }
 0x13d   : > { %v1747_v33 = vpop.eup %1746  ;;  %1758 = vrsqrt.f32 %v2266_v24  ;;  %v679_v8 = vand.u32 2147483648, %v2248_v2  ;;  %v672_v9 = vand.u32 2147483648, %v2224_v15  ;;  %vm676_vm2 = vcmp.eq.f32.partialorder %v2248_v2, inf }
 0x13e   : > { %v1749_v48 = vpop.eup %1748  ;;  %v875_v63 = vpack.c.bf16 %v2276_v23, %v2273_v57  ;;  %v647_v36 = vmul.f32 %v1747_v33, %v2220_v5  ;;  %v874_v6 = vpack.c.bf16 %v843_v45, %v842_v43  ;;  %v686_v3 = vand.u32 2147483648, %v2266_v24 }
 0x13f   : > { %v1751_v56 = vpop.eup %1750  ;;  %v1664_v0 = vpop.f32.mrb[12].mxu0  ;;  %v661_v4 = vmul.f32 %v1745_v38, %v2217_v1  ;;  %v668_v16 = vmul.f32 %v1749_v48, %v2224_v15  ;;  %vm678_vm3 = vcmp.eq.f32.partialorder %v2248_v2, 0.0  ;;  %vm690_vm4 = vcmp.eq.f32.partialorder %v2240_v54, inf }
 0x140   : > { %v2292_v22 = vadd.f32 %v1664_v0, %v2207_v47  ;;  %v501_v28 = vpop.f32.mrb[13].mxu0  ;;  %v649_v34 = vsel %vm648_vm9, %v2220_v5, %v647_v36  ;;  %v654_v35 = vmul.f32 %v1751_v56, %v2228_v18  ;;  %1571 = vmatmul.mubr.msk.bf16.vlgmr.msra.gmra.mrb[32].mxu0 %vm370_vm0, %v874_v6  ;;  %vm683_vm5 = vcmp.eq.f32.partialorder %v2266_v24, inf }
 0x141   : > { %v2301_v53 = vadd.f32 %v2207_v47, %v501_v28  ;;  %v1665_v38 = vpop.f32.mrb[14].mxu0  ;;  %v652_v55 = vsel %vm650_vm10, %v651_v44, %v649_v34  ;;  %v663_v57 = vsel %vm662_vm11, %v2217_v1, %v661_v4  ;;  %v670_v23 = vsel %vm669_vm12, %v2224_v15, %v668_v16  ;;  %1040 = vmatprep.mubr.bf16.mxu0 %v1874_v46 }
 0x142   : > { %1760 = vrsqrt.f32 %v2292_v22  ;;  %v2315_v33 = vadd.f32 %v1665_v38, %v2207_v47  ;;  %v504_v43 = vpop.f32.mrb[15].mxu0  ;;  %v656_v5 = vsel %vm655_vm13, %v2228_v18, %v654_v35  ;;  %v2322_v44 = vmul.f32 %v652_v55, %v2022_v11 }
 0x143   : > { %vm685_vm6 = vcmp.eq.f32.partialorder %v2266_v24, 0.0  ;;  %1762 = vrsqrt.f32 %v2301_v53  ;;  %v2327_v45 = vadd.f32 %v2207_v47, %v504_v43  ;;  %v659_v48 = vsel %vm657_vm14, %v658_v37, %v656_v5 }
 0x144   : > { %v666_v36 = vsel %vm664_vm15, %v665_v58, %v663_v57  ;;  %v1753_v56 = vpop.eup %1752  ;;  %1764 = vrsqrt.f32 %v2315_v33  ;;  %v2337_v11 = vmul.f32 %v659_v48, %v2025_v12  ;;  %v673_v0 = vsel %vm671_vm1, %v672_v9, %v670_v23 }
 0x145   : > { %v2342_v6 = vmul.f32 %v666_v36, %v2037_v17  ;;  %v1755_v4 = vpop.eup %1754  ;;  %1766 = vrsqrt.f32 %v2327_v45  ;;  %v2346_v18 = vmul.f32 %v673_v0, %v2040_v19  ;;  %v689_v1 = vmul.f32 %v1753_v56, %v2240_v54 }
 0x146   : > { %vm692_vm7 = vcmp.eq.f32.partialorder %v2240_v54, 0.0  ;;  %v1757_v58 = vpop.eup %1756  ;;  %v876_v12 = vpack.c.bf16 %v2337_v11, %v2322_v44  ;;  %v675_v15 = vmul.f32 %v1755_v4, %v2248_v2  ;;  %v693_v37 = vand.u32 2147483648, %v2240_v54 }
 0x147   : > { %vm697_vm8 = vcmp.eq.f32.partialorder %v2255_v27, inf  ;;  %v1759_v17 = vpop.eup %1758  ;;  %v1668_v9 = vpop.f32.mrb[16].mxu0  ;;  %v877_v19 = vpack.c.bf16 %v2346_v18, %v2342_v6  ;;  %v691_v16 = vsel %vm690_vm4, %v2240_v54, %v689_v1  ;;  %v696_v28 = vmul.f32 %v1757_v58, %v2255_v27 }
 0x148   : > { %vm699_vm9 = vcmp.eq.f32.partialorder %v2255_v27, 0.0  ;;  %v2363_v34 = vadd.f32 %v1668_v9, %v2207_v47  ;;  %v517_v35 = vpop.f32.mrb[17].mxu0  ;;  %v677_v38 = vsel %vm676_vm2, %v2248_v2, %v675_v15  ;;  %v682_v55 = vmul.f32 %v1759_v17, %v2266_v24  ;;  %1572 = vmatmul.mubr.msk.bf16.gmra.mrb[36].mxu0 %vm370_vm0, %v875_v63 }
 0x149   : > { %v694_v57 = vsel %vm692_vm7, %v693_v37, %v691_v16  ;;  %v2372_v23 = vadd.f32 %v2207_v47, %v517_v35  ;;  %v1669_v43 = vpop.f32.mrb[18].mxu0  ;;  %v680_v5 = vsel %vm678_vm3, %v679_v8, %v677_v38  ;;  %v698_v44 = vsel %vm697_vm8, %v2255_v27, %v696_v28  ;;  %1050 = vmatprep.mubr.bf16.mxu0 %v1874_v46 }
 0x14a   : > { %v700_v48 = vand.u32 2147483648, %v2255_v27  ;;  %1768 = vrsqrt.f32 %v2363_v34  ;;  %v2385_v54 = vadd.f32 %v1669_v43, %v2207_v47  ;;  %v520_v36 = vpop.f32.mrb[19].mxu0  ;;  %v684_v63 = vsel %vm683_vm5, %v2266_v24, %v682_v55 }
 0x14b   : > { %v850_v2 = vmul.f32 %v680_v5, %v2043_v20  ;;  %1770 = vrsqrt.f32 %v2372_v23  ;;  %v2394_v8 = vadd.f32 %v2207_v47, %v520_v36  ;;  %v687_v56 = vsel %vm685_vm6, %v686_v3, %v684_v63 }
 0x14c   : > { %v701_v11 = vsel %vm699_vm9, %v700_v48, %v698_v44  ;;  %v1761_v0 = vpop.eup %1760  ;;  %1772 = vrsqrt.f32 %v2385_v54  ;;  %v851_v4 = vmul.f32 %v687_v56, %v2046_v21  ;;  %v2405_v20 = vmul.f32 %v694_v57, %v2059_v29 }
 0x14d   : > { %v853_v1 = vmul.f32 %v701_v11, %v2062_v30  ;;  %v1763_v58 = vpop.eup %1762  ;;  %1774 = vrsqrt.f32 %v2394_v8  ;;  %vm704_vm10 = vcmp.eq.f32.partialorder %v2301_v53, inf  ;;  %vm706_vm11 = vcmp.eq.f32.partialorder %v2301_v53, 0.0 }
 0x14e   : > { %v707_v27 = vand.u32 2147483648, %v2301_v53  ;;  %v1765_v24 = vpop.eup %1764  ;;  %v878_v3 = vpack.c.bf16 %v851_v4, %v850_v2  ;;  %v703_v21 = vmul.f32 %v1763_v58, %v2301_v53  ;;  %vm711_vm12 = vcmp.eq.f32.partialorder %v2327_v45, inf }
 0x14f   : > { %v879_v15 = vpack.c.bf16 %v853_v1, %v2405_v20  ;;  %v1767_v29 = vpop.eup %1766  ;;  %v1672_v37 = vpop.f32.mrb[20].mxu0  ;;  %vm713_vm13 = vcmp.eq.f32.partialorder %v2327_v45, 0.0  ;;  %v714_v30 = vand.u32 2147483648, %v2327_v45  ;;  %v717_v17 = vmul.f32 %v1761_v0, %v2292_v22 }
 0x150   : > { %vm718_vm14 = vcmp.eq.f32.partialorder %v2292_v22, inf  ;;  %1575 = vmatmul.mubr.msk.bf16.vlgmr.msra.gmra.mrb[0].mxu1 %vm370_vm0, %v878_v3  ;;  %v2421_v9 = vadd.f32 %v1672_v37, %v2207_v47  ;;  %v533_v16 = vpop.f32.mrb[21].mxu0  ;;  %v705_v28 = vsel %vm704_vm10, %v2301_v53, %v703_v21  ;;  %v710_v35 = vmul.f32 %v1767_v29, %v2327_v45  ;;  %1573 = vmatmul.mubr.msk.bf16.gmra.mrb[40].mxu0 %vm370_vm0, %v876_v12 }
 0x151   : > { %vm720_vm15 = vcmp.eq.f32.partialorder %v2292_v22, 0.0  ;;  %1080 = vmatprep.mubr.bf16.mxu1 %v1874_v46  ;;  %v2431_v38 = vadd.f32 %v2207_v47, %v533_v16  ;;  %v1673_v55 = vpop.f32.mrb[22].mxu0  ;;  %v708_v57 = vsel %vm706_vm11, %v707_v27, %v705_v28  ;;  %v719_v43 = vsel %vm718_vm14, %v2292_v22, %v717_v17  ;;  %1060 = vmatprep.mubr.bf16.mxu0 %v1874_v46 }
 0x152   : > { %v721_v5 = vand.u32 2147483648, %v2292_v22  ;;  %1776 = vrsqrt.f32 %v2421_v9  ;;  %v2440_v44 = vadd.f32 %v1673_v55, %v2207_v47  ;;  %v536_v12 = vpop.f32.mrb[23].mxu0  ;;  %v712_v48 = vsel %vm711_vm12, %v2327_v45, %v710_v35 }
 0x153   : > { %v2446_v36 = vmul.f32 %v708_v57, %v2065_v31  ;;  %1778 = vrsqrt.f32 %v2431_v38  ;;  %v2450_v53 = vadd.f32 %v2207_v47, %v536_v12  ;;  %v715_v63 = vsel %vm713_vm13, %v714_v30, %v712_v48 }
 0x154   : > { %v722_v2 = vsel %vm720_vm15, %v721_v5, %v719_v43  ;;  %v1769_v56 = vpop.eup %1768  ;;  %1780 = vrsqrt.f32 %v2440_v44  ;;  %v2458_v11 = vmul.f32 %v715_v63, %v2068_v32  ;;  %v724_v31 = vmul.f32 %v1765_v24, %v2315_v33 }
 0x155   : > { %vm725_vm1 = vcmp.eq.f32.partialorder %v2315_v33, inf  ;;  %v1771_v0 = vpop.eup %1770  ;;  %1782 = vrsqrt.f32 %v2450_v53  ;;  %vm727_vm2 = vcmp.eq.f32.partialorder %v2315_v33, 0.0  ;;  %v728_v45 = vand.u32 2147483648, %v2315_v33 }
 0x156   : > { %v2466_v22 = vmul.f32 %v722_v2, %v2081_v39  ;;  %v1773_v4 = vpop.eup %1772  ;;  %v880_v20 = vpack.c.bf16 %v2458_v11, %v2446_v36  ;;  %v726_v32 = vsel %vm725_vm1, %v2315_v33, %v724_v31  ;;  %v731_v1 = vmul.f32 %v1771_v0, %v2372_v23 }
 0x157   : > { %vm732_vm3 = vcmp.eq.f32.partialorder %v2372_v23, inf  ;;  %v1775_v58 = vpop.eup %1774  ;;  %v1676_v27 = vpop.f32.mrb[24].mxu0  ;;  %v729_v24 = vsel %vm727_vm2, %v728_v45, %v726_v32  ;;  %vm734_vm4 = vcmp.eq.f32.partialorder %v2372_v23, 0.0  ;;  %v735_v3 = vand.u32 2147483648, %v2372_v23 }
 0x158   : > { %vm739_vm5 = vcmp.eq.f32.partialorder %v2394_v8, inf  ;;  %1576 = vmatmul.mubr.msk.bf16.gmra.mrb[4].mxu1 %vm370_vm0, %v879_v15  ;;  %v2478_v39 = vadd.f32 %v1676_v27, %v2207_v47  ;;  %v549_v21 = vpop.f32.mrb[25].mxu0  ;;  %v2481_v33 = vmul.f32 %v729_v24, %v2084_v40  ;;  %v733_v29 = vsel %vm732_vm3, %v2372_v23, %v731_v1  ;;  %1574 = vmatmul.mubr.msk.bf16.gmra.mrb[44].mxu0 %vm370_vm0, %v877_v19 }
 0x159   : > { %v738_v37 = vmul.f32 %v1775_v58, %v2394_v8  ;;  %1090 = vmatprep.mubr.bf16.mxu1 %v1874_v46  ;;  %v2491_v15 = vadd.f32 %v2207_v47, %v549_v21  ;;  %v1677_v30 = vpop.f32.mrb[26].mxu0  ;;  %v736_v17 = vsel %vm734_vm4, %v735_v3, %v733_v29  ;;  %vm741_vm6 = vcmp.eq.f32.partialorder %v2394_v8, 0.0 }
 0x15a   : > { %v742_v40 = vand.u32 2147483648, %v2394_v8  ;;  %1784 = vrsqrt.f32 %v2478_v39  ;;  %v881_v23 = vpack.c.bf16 %v2481_v33, %v2466_v22  ;;  %v2499_v6 = vadd.f32 %v1677_v30, %v2207_v47  ;;  %v552_v18 = vpop.f32.mrb[27].mxu0 }
 0x15b   : > { %v740_v19 = vsel %vm739_vm5, %v2394_v8, %v738_v37  ;;  %1786 = vrsqrt.f32 %v2491_v15  ;;  %v2506_v16 = vadd.f32 %v2207_v47, %v552_v18  ;;  %v2509_v35 = vmul.f32 %v736_v17, %v2087_v41 }
 0x15c   : > { %v743_v28 = vsel %vm741_vm6, %v742_v40, %v740_v19  ;;  %v1777_v55 = vpop.eup %1776  ;;  %1788 = vrsqrt.f32 %v2499_v6  ;;  %v745_v43 = vmul.f32 %v1769_v56, %v2363_v34  ;;  %vm746_vm7 = vcmp.eq.f32.partialorder %v2363_v34, inf }
 0x15d   : > { %v2513_v57 = vmul.f32 %v743_v28, %v2090_v42  ;;  %v1779_v8 = vpop.eup %1778  ;;  %1790 = vrsqrt.f32 %v2506_v16  ;;  %vm748_vm8 = vcmp.eq.f32.partialorder %v2363_v34, 0.0  ;;  %v749_v5 = vand.u32 2147483648, %v2363_v34 }
 0x15e   : > { %v752_v41 = vmul.f32 %v1773_v4, %v2385_v54  ;;  %v1781_v12 = vpop.eup %1780  ;;  %v747_v42 = vsel %vm746_vm7, %v2363_v34, %v745_v43  ;;  %vm753_vm9 = vcmp.eq.f32.partialorder %v2385_v54, inf  ;;  %vm755_vm10 = vcmp.eq.f32.partialorder %v2385_v54, 0.0 }
 0x15f   : > { %v882_v48 = vpack.c.bf16 %v2513_v57, %v2509_v35  ;;  %v1783_v36 = vpop.eup %1782  ;;  %v1680_v63 = vpop.f32.mrb[28].mxu0  ;;  %v750_v2 = vsel %vm748_vm8, %v749_v5, %v747_v42  ;;  %v756_v11 = vand.u32 2147483648, %v2385_v54  ;;  %v759_v31 = vmul.f32 %v1779_v8, %v2431_v38 }
 0x160   : > { %v754_v56 = vsel %vm753_vm9, %v2385_v54, %v752_v41  ;;  %1577 = vmatmul.mubr.msk.bf16.gmra.mrb[8].mxu1 %vm370_vm0, %v880_v20  ;;  %v2531_v0 = vadd.f32 %v1680_v63, %v2207_v47  ;;  %v565_v45 = vpop.f32.mrb[29].mxu0  ;;  %v2534_v34 = vmul.f32 %v750_v2, %v2103_v49  ;;  %vm760_vm11 = vcmp.eq.f32.partialorder %v2431_v38, inf }
 0x161   : > { %vm762_vm12 = vcmp.eq.f32.partialorder %v2431_v38, 0.0  ;;  %1100 = vmatprep.mubr.bf16.mxu1 %v1874_v46  ;;  %v2540_v4 = vadd.f32 %v2207_v47, %v565_v45  ;;  %v757_v54 = vsel %vm755_vm10, %v756_v11, %v754_v56  ;;  %v1681_v32 = vpop.f32.mrb[30].mxu0  ;;  %v761_v20 = vsel %vm760_vm11, %v2431_v38, %v759_v31 }
 0x162   : > { %v763_v1 = vand.u32 2147483648, %v2431_v38  ;;  %1792 = vrsqrt.f32 %v2531_v0  ;;  %v2546_v49 = vmul.f32 %v757_v54, %v2106_v50  ;;  %v2549_v58 = vadd.f32 %v1681_v32, %v2207_v47  ;;  %v568_v27 = vpop.f32.mrb[31].mxu0 }
 0x163   : > { %v766_v24 = vmul.f32 %v1783_v36, %v2450_v53  ;;  %1794 = vrsqrt.f32 %v2540_v4  ;;  %v2554_v3 = vadd.f32 %v2207_v47, %v568_v27  ;;  %vm767_vm13 = vcmp.eq.f32.partialorder %v2450_v53, inf }
 0x164   : > { %v764_v21 = vsel %vm762_vm12, %v763_v1, %v761_v20  ;;  %v1785_v38 = vpop.eup %1784  ;;  %v883_v29 = vpack.c.bf16 %v2546_v49, %v2534_v34  ;;  %1796 = vrsqrt.f32 %v2549_v58  ;;  %vm769_vm14 = vcmp.eq.f32.partialorder %v2450_v53, 0.0  ;;  %v898_v49 = vld [vmem:[#allocation4] sm:$0x3] }
 0x165   : > { %v768_v50 = vsel %vm767_vm13, %v2450_v53, %v766_v24  ;;  %v1787_v37 = vpop.eup %1786  ;;  %1798 = vrsqrt.f32 %v2554_v3  ;;  %v770_v30 = vand.u32 2147483648, %v2450_v53  ;;  %v2565_v47 = vmul.f32 %v764_v21, %v2109_v51 }
 0x166   : > { %v773_v17 = vmul.f32 %v1777_v55, %v2421_v9  ;;  %v1789_v40 = vpop.eup %1788  ;;  %vm774_vm15 = vcmp.eq.f32.partialorder %v2421_v9, inf  ;;  %vm776_vm1 = vcmp.eq.f32.partialorder %v2421_v9, 0.0  ;;  %v777_v18 = vand.u32 2147483648, %v2421_v9 }
 0x167   : > { %v780_v19 = vmul.f32 %v1781_v12, %v2440_v44  ;;  %v1791_v28 = vpop.eup %1790  ;;  %v771_v43 = vsel %vm769_vm14, %v770_v30, %v768_v50  ;;  %vm781_vm2 = vcmp.eq.f32.partialorder %v2440_v44, inf  ;;  %vm783_vm3 = vcmp.eq.f32.partialorder %v2440_v44, 0.0 }
 0x168   : > { %v775_v8 = vsel %vm774_vm15, %v2421_v9, %v773_v17  ;;  %1578 = vmatmul.mubr.msk.bf16.gmra.mrb[12].mxu1 %vm370_vm0, %v881_v23  ;;  %v2580_v51 = vmul.f32 %v771_v43, %v2112_v52  ;;  %v784_v5 = vand.u32 2147483648, %v2440_v44  ;;  %v787_v41 = vmul.f32 %v1787_v37, %v2491_v15 }
 0x169   : > { %v778_v53 = vsel %vm776_vm1, %v777_v18, %v775_v8  ;;  %v782_v55 = vsel %vm781_vm2, %v2440_v44, %v780_v19  ;;  %1110 = vmatprep.mubr.bf16.mxu1 %v1874_v46  ;;  %vm788_vm4 = vcmp.eq.f32.partialorder %v2491_v15, inf  ;;  %vm790_vm5 = vcmp.eq.f32.partialorder %v2491_v15, 0.0 }
 0x16a   : > { %v2586_v9 = vmul.f32 %v778_v53, %v2125_v59  ;;  %v884_v52 = vpack.c.bf16 %v2580_v51, %v2565_v47  ;;  %v785_v22 = vsel %vm783_vm3, %v784_v5, %v782_v55  ;;  %v791_v33 = vand.u32 2147483648, %v2491_v15 }
 0x16b   : > { %v794_v23 = vmul.f32 %v1791_v28, %v2506_v16  ;;  %v2596_v44 = vmul.f32 %v785_v22, %v2128_v60  ;;  %v789_v59 = vsel %vm788_vm4, %v2491_v15, %v787_v41  ;;  %vm795_vm6 = vcmp.eq.f32.partialorder %v2506_v16, inf }
 0x16c   : > { %vm797_vm7 = vcmp.eq.f32.partialorder %v2506_v16, 0.0  ;;  %v1793_v12 = vpop.eup %1792  ;;  %v792_v42 = vsel %vm790_vm5, %v791_v33, %v789_v59  ;;  %v798_v63 = vand.u32 2147483648, %v2506_v16  ;;  %v801_v2 = vmul.f32 %v1785_v38, %v2478_v39 }
 0x16d   : > { %v796_v36 = vsel %vm795_vm6, %v2506_v16, %v794_v23  ;;  %v1795_v56 = vpop.eup %1794  ;;  %v885_v11 = vpack.c.bf16 %v2596_v44, %v2586_v9  ;;  %v866_v60 = vmul.f32 %v792_v42, %v2131_v61  ;;  %vm802_vm8 = vcmp.eq.f32.partialorder %v2478_v39, inf }
 0x16e   : > { %vm804_vm9 = vcmp.eq.f32.partialorder %v2478_v39, 0.0  ;;  %v1797_v15 = vpop.eup %1796  ;;  %v799_v31 = vsel %vm797_vm7, %v798_v63, %v796_v36  ;;  %v803_v45 = vsel %vm802_vm8, %v2478_v39, %v801_v2  ;;  %v805_v54 = vand.u32 2147483648, %v2478_v39 }
 0x16f   : > { %v808_v16 = vmul.f32 %v1789_v40, %v2499_v6  ;;  %v1799_v32 = vpop.eup %1798  ;;  %v867_v20 = vmul.f32 %v799_v31, %v2134_v62  ;;  %vm809_vm10 = vcmp.eq.f32.partialorder %v2499_v6, inf  ;;  %vm811_vm11 = vcmp.eq.f32.partialorder %v2499_v6, 0.0 }
 0x170   : > { %v812_v61 = vand.u32 2147483648, %v2499_v6  ;;  %1579 = vmatmul.mubr.msk.bf16.gmra.mrb[16].mxu1 %vm370_vm0, %v882_v48  ;;  %v806_v1 = vsel %vm804_vm9, %v805_v54, %v803_v45  ;;  %v815_v39 = vmul.f32 %v1795_v56, %v2540_v4  ;;  %vm816_vm12 = vcmp.eq.f32.partialorder %v2540_v4, inf }
 0x171   : > { %v810_v27 = vsel %vm809_vm10, %v2499_v6, %v808_v16  ;;  %1120 = vmatprep.mubr.bf16.mxu1 %v1874_v46  ;;  %v886_v62 = vpack.c.bf16 %v867_v20, %v866_v60  ;;  %v868_v21 = vmul.f32 %v806_v1, %v2147_v7  ;;  %vm818_vm13 = vcmp.eq.f32.partialorder %v2540_v4, 0.0 }
 0x172   : > { %v813_v24 = vsel %vm811_vm11, %v812_v61, %v810_v27  ;;  %v817_v35 = vsel %vm816_vm12, %v2540_v4, %v815_v39  ;;  %v819_v57 = vand.u32 2147483648, %v2540_v4  ;;  %v822_v6 = vmul.f32 %v1799_v32, %v2554_v3 }
 0x173   : > { %v869_v38 = vmul.f32 %v813_v24, %v2150_v10  ;;  %vm823_vm14 = vcmp.eq.f32.partialorder %v2554_v3, inf  ;;  %vm825_vm15 = vcmp.eq.f32.partialorder %v2554_v3, 0.0  ;;  %v826_v48 = vand.u32 2147483648, %v2554_v3 }
 0x174   : > { %v829_v50 = vmul.f32 %v1793_v12, %v2531_v0  ;;  %v820_v7 = vsel %vm818_vm13, %v819_v57, %v817_v35  ;;  %v824_v30 = vsel %vm823_vm14, %v2554_v3, %v822_v6  ;;  %vm830_vm1 = vcmp.eq.f32.partialorder %v2531_v0, inf }
 0x175   : > { %v887_v37 = vpack.c.bf16 %v869_v38, %v868_v21  ;;  %v827_v10 = vsel %vm825_vm15, %v826_v48, %v824_v30  ;;  %v870_v17 = vmul.f32 %v820_v7, %v2153_v13  ;;  %vm832_vm2 = vcmp.eq.f32.partialorder %v2531_v0, 0.0 }
 0x176   : > { %v831_v4 = vsel %vm830_vm1, %v2531_v0, %v829_v50  ;;  %v871_v40 = vmul.f32 %v827_v10, %v2156_v14  ;;  %v833_v18 = vand.u32 2147483648, %v2531_v0  ;;  %v836_v19 = vmul.f32 %v1797_v15, %v2549_v58 }
 0x177   : > { %vm837_vm3 = vcmp.eq.f32.partialorder %v2549_v58, inf  ;;  %vm839_vm4 = vcmp.eq.f32.partialorder %v2549_v58, 0.0  ;;  %v840_v3 = vand.u32 2147483648, %v2549_v58 }
 0x178   : > { %1580 = vmatmul.mubr.msk.bf16.gmra.mrb[20].mxu1 %vm370_vm0, %v883_v29  ;;  %v888_v13 = vpack.c.bf16 %v871_v40, %v870_v17  ;;  %v834_v28 = vsel %vm832_vm2, %v833_v18, %v831_v4  ;;  %v838_v43 = vsel %vm837_vm3, %v2549_v58, %v836_v19 }
 0x179   : > { %1130 = vmatprep.mubr.bf16.mxu1 %v1874_v46  ;;  %v841_v14 = vsel %vm839_vm4, %v840_v3, %v838_v43  ;;  %v872_v0 = vmul.f32 %v834_v28, %v2169_v25  ;;  %v900_v25 = vlaneseq }
 0x17a   : > { %v873_v8 = vmul.f32 %v841_v14, %v2172_v26 }
 0x17b   : > { %v901_v26 = vshrl.u32 %v900_v25, 7 }
 0x17c   : > { %v889_v53 = vpack.c.bf16 %v873_v8, %v872_v0 }
 0x17d   : > { %v902_v34 = vsub.s32 0, %v901_v26  ;;  %v906_v58 = vsub.s32 1, %v901_v26 }
 0x17f   : > { %v2668_v29 = vrot.slane %v898_v49, %v902_v34  ;;  %v2670_v47 = vrot.slane %v898_v49, %v906_v58 }
 0x180   : > { %1581 = vmatmul.mubr.msk.bf16.gmra.mrb[24].mxu1 %vm370_vm0, %v884_v52 }
 0x181   : > { %1140 = vmatprep.mubr.bf16.mxu1 %v1874_v46 }
 0x188   : > { %1582 = vmatmul.mubr.msk.bf16.gmra.mrb[28].mxu1 %vm370_vm0, %v885_v11 }
 0x189   : > { %1150 = vmatprep.mubr.bf16.mxu1 %v1874_v46 }
 0x190   : > { %1583 = vmatmul.mubr.msk.bf16.gmra.mrb[32].mxu1 %vm370_vm0, %v886_v62 }
 0x191   : > { %1160 = vmatprep.mubr.bf16.mxu1 %v1874_v46 }
 0x198   : > { %1584 = vmatmul.mubr.msk.bf16.gmra.mrb[36].mxu1 %vm370_vm0, %v887_v37 }
 0x199   : > { %1170 = vmatprep.mubr.bf16.mxu1 %v1874_v46 }
 0x1a0   : > { %1585 = vmatmul.mubr.msk.bf16.gmra.mrb[40].mxu1 %vm370_vm0, %v888_v13 }
 0x1a1   : > { %1180 = vmatprep.mubr.bf16.mxu1 %v1874_v46 }
 0x1a8   : > { %1586 = vmatmul.mubr.msk.bf16.gmra.mrb[44].mxu1 %vm370_vm0, %v889_v53 }
 0x213   : > { %v1032_v51 = vpop.f32.mrb[32].mxu0 }
 0x214   : > { %v1033_v55 = vadd.f32 %v1032_v51, %v2668_v29  ;;  %v1034_v5 = vpop.f32.mrb[33].mxu0 }
 0x215   : > { %v1035_v46 = vadd.f32 %v1034_v5, %v2670_v47  ;;  %v1036_v9 = vpop.f32.mrb[34].mxu0 }
 0x216   : > { %vm1191_vm0 = vcmp.ge.f32.partialorder %v1033_v55, 0.0  ;;  %v1255_v41 = vmul.f32 0.01, %v1033_v55  ;;  %v1037_v52 = vadd.f32 %v1036_v9, %v2668_v29  ;;  %v1038_v22 = vpop.f32.mrb[35].mxu0 }
 0x217   : > { %vm1192_vm5 = vcmp.ge.f32.partialorder %v1035_v46, 0.0  ;;  %v1256_v33 = vmul.f32 0.01, %v1035_v46  ;;  %v1039_v23 = vadd.f32 %v1038_v22, %v2670_v47 }
 0x218   : > { %v1319_v44 = vsel %vm1191_vm0, %v1033_v55, %v1255_v41  ;;  %vm1193_vm6 = vcmp.ge.f32.partialorder %v1037_v52, 0.0  ;;  %v1257_v59 = vmul.f32 0.01, %v1037_v52 }
 0x219   : > { %1383 = vst [vmem:[%s2677_s8] sm:$0xff] %v1319_v44  ;;  %v1320_v12 = vsel %vm1192_vm5, %v1035_v46, %v1256_v33  ;;  %vm1194_vm7 = vcmp.ge.f32.partialorder %v1039_v23, 0.0  ;;  %v1258_v42 = vmul.f32 0.01, %v1039_v23 }
 0x21a   : > { %1587 = vst [vmem:[%s2677_s8 + $0x10] sm:$0xff] %v1320_v12  ;;  %v1321_v36 = vsel %vm1193_vm6, %v1037_v52, %v1257_v59 }
 0x21b   : > { %1384 = vst [vmem:[%s2677_s8 + $0x8] sm:$0xff] %v1321_v36  ;;  %v1322_v63 = vsel %vm1194_vm7, %v1039_v23, %v1258_v42  ;;  %v1042_v2 = vpop.f32.mrb[36].mxu0 }
 0x21c   : > { %1588 = vst [vmem:[%s2677_s8 + $0x18] sm:$0xff] %v1322_v63  ;;  %v1043_v56 = vadd.f32 %v1042_v2, %v2668_v29  ;;  %v1044_v11 = vpop.f32.mrb[37].mxu0 }
 0x21d   : > { %v1045_v60 = vadd.f32 %v1044_v11, %v2670_v47  ;;  %v1046_v15 = vpop.f32.mrb[38].mxu0 }
 0x21e   : > { %vm1195_vm8 = vcmp.ge.f32.partialorder %v1043_v56, 0.0  ;;  %v1259_v31 = vmul.f32 0.01, %v1043_v56  ;;  %v1047_v45 = vadd.f32 %v1046_v15, %v2668_v29  ;;  %v1048_v54 = vpop.f32.mrb[39].mxu0 }
 0x21f   : > { %vm1196_vm9 = vcmp.ge.f32.partialorder %v1045_v60, 0.0  ;;  %v1260_v16 = vmul.f32 0.01, %v1045_v60  ;;  %v1049_v32 = vadd.f32 %v1048_v54, %v2670_v47 }
 0x220   : > { %v1323_v20 = vsel %vm1195_vm8, %v1043_v56, %v1259_v31  ;;  %vm1197_vm10 = vcmp.ge.f32.partialorder %v1047_v45, 0.0  ;;  %v1261_v61 = vmul.f32 0.01, %v1047_v45 }
 0x221   : > { %1385 = vst [vmem:[%s2677_s8 + $0x20] sm:$0xff] %v1323_v20  ;;  %v1324_v1 = vsel %vm1196_vm9, %v1045_v60, %v1260_v16  ;;  %vm1198_vm11 = vcmp.ge.f32.partialorder %v1049_v32, 0.0  ;;  %v1262_v27 = vmul.f32 0.01, %v1049_v32 }
 0x222   : > { %1589 = vst [vmem:[%s2677_s8 + $0x30] sm:$0xff] %v1324_v1  ;;  %v1325_v39 = vsel %vm1197_vm10, %v1047_v45, %v1261_v61 }
 0x223   : > { %v1072_v62 = vpop.f32.mrb[0].mxu1  ;;  %1386 = vst [vmem:[%s2677_s8 + $0x28] sm:$0xff] %v1325_v39  ;;  %v1326_v24 = vsel %vm1198_vm11, %v1049_v32, %v1262_v27  ;;  %v1052_v21 = vpop.f32.mrb[40].mxu0 }
 0x224   : > { %v1073_v38 = vadd.f32 %v1072_v62, %v2668_v29  ;;  %v1074_v35 = vpop.f32.mrb[1].mxu1  ;;  %1590 = vst [vmem:[%s2677_s8 + $0x38] sm:$0xff] %v1326_v24  ;;  %v1053_v57 = vadd.f32 %v1052_v21, %v2668_v29  ;;  %v1054_v6 = vpop.f32.mrb[41].mxu0 }
 0x225   : > { %v1075_v48 = vadd.f32 %v1074_v35, %v2670_v47  ;;  %v1076_v50 = vpop.f32.mrb[2].mxu1  ;;  %v1055_v7 = vadd.f32 %v1054_v6, %v2670_v47  ;;  %v1056_v30 = vpop.f32.mrb[42].mxu0 }
 0x226   : > { %vm1207_vm12 = vcmp.ge.f32.partialorder %v1073_v38, 0.0  ;;  %v1271_v37 = vmul.f32 0.01, %v1073_v38  ;;  %v1077_v10 = vadd.f32 %v1076_v50, %v2668_v29  ;;  %v1078_v17 = vpop.f32.mrb[3].mxu1  ;;  %vm1199_vm13 = vcmp.ge.f32.partialorder %v1053_v57, 0.0  ;;  %v1058_v13 = vpop.f32.mrb[43].mxu0 }
 0x227   : > { %v1263_v4 = vmul.f32 0.01, %v1053_v57  ;;  %vm1208_vm14 = vcmp.ge.f32.partialorder %v1075_v48, 0.0  ;;  %v1272_v40 = vmul.f32 0.01, %v1075_v48  ;;  %vm1200_vm15 = vcmp.ge.f32.partialorder %v1055_v7, 0.0 }
 0x228   : > { %v1335_v18 = vsel %vm1207_vm12, %v1073_v38, %v1271_v37  ;;  %v1264_v19 = vmul.f32 0.01, %v1055_v7  ;;  %v1057_v3 = vadd.f32 %v1056_v30, %v2668_v29  ;;  %vm1209_vm1 = vcmp.ge.f32.partialorder %v1077_v10, 0.0 }
 0x229   : > { %v1327_v28 = vsel %vm1199_vm13, %v1053_v57, %v1263_v4  ;;  %1391 = vst [vmem:[%s2677_s8 + $0x80] sm:$0xff] %v1335_v18  ;;  %v1336_v43 = vsel %vm1208_vm14, %v1075_v48, %v1272_v40  ;;  %v1273_v14 = vmul.f32 0.01, %v1077_v10  ;;  %v1059_v53 = vadd.f32 %v1058_v13, %v2670_v47 }
 0x22a   : > { %1387 = vst [vmem:[%s2677_s8 + $0x40] sm:$0xff] %v1327_v28  ;;  %v1328_v0 = vsel %vm1200_vm15, %v1055_v7, %v1264_v19  ;;  %1595 = vst [vmem:[%s2677_s8 + $0x90] sm:$0xff] %v1336_v43  ;;  %vm1201_vm2 = vcmp.ge.f32.partialorder %v1057_v3, 0.0  ;;  %v1265_v8 = vmul.f32 0.01, %v1057_v3  ;;  %v1079_v26 = vadd.f32 %v1078_v17, %v2670_v47 }
 0x22b   : > { %1591 = vst [vmem:[%s2677_s8 + $0x50] sm:$0xff] %v1328_v0  ;;  %v1337_v25 = vsel %vm1209_vm1, %v1077_v10, %v1273_v14  ;;  %v1082_v34 = vpop.f32.mrb[4].mxu1  ;;  %vm1202_vm3 = vcmp.ge.f32.partialorder %v1059_v53, 0.0  ;;  %v1266_v58 = vmul.f32 0.01, %v1059_v53  ;;  %v1062_v51 = vpop.f32.mrb[44].mxu0 }
 0x22c   : > { %v1329_v49 = vsel %vm1201_vm2, %v1057_v3, %v1265_v8  ;;  %1392 = vst [vmem:[%s2677_s8 + $0x88] sm:$0xff] %v1337_v25  ;;  %v1083_v55 = vadd.f32 %v1082_v34, %v2668_v29  ;;  %v1084_v5 = vpop.f32.mrb[5].mxu1  ;;  %vm1210_vm4 = vcmp.ge.f32.partialorder %v1079_v26, 0.0  ;;  %v1274_v46 = vmul.f32 0.01, %v1079_v26  ;;  %v1064_v41 = vpop.f32.mrb[45].mxu0 }
 0x22d   : > { %1388 = vst [vmem:[%s2677_s8 + $0x48] sm:$0xff] %v1329_v49  ;;  %v1063_v9 = vadd.f32 %v1062_v51, %v2668_v29  ;;  %v1085_v52 = vadd.f32 %v1084_v5, %v2670_v47  ;;  %v1086_v22 = vpop.f32.mrb[6].mxu1  ;;  %v1330_v33 = vsel %vm1202_vm3, %v1059_v53, %v1266_v58  ;;  %v1065_v44 = vadd.f32 %v1064_v41, %v2670_v47  ;;  %v1066_v59 = vpop.f32.mrb[46].mxu0 }
 0x22e   : > { %vm1211_vm0 = vcmp.ge.f32.partialorder %v1083_v55, 0.0  ;;  %v1275_v23 = vmul.f32 0.01, %v1083_v55  ;;  %v1088_v12 = vpop.f32.mrb[7].mxu1  ;;  %1592 = vst [vmem:[%s2677_s8 + $0x58] sm:$0xff] %v1330_v33  ;;  %v1338_v42 = vsel %vm1210_vm4, %v1079_v26, %v1274_v46  ;;  %v1068_v63 = vpop.f32.mrb[47].mxu0  ;;  %v1067_v15 = vadd.f32 %v1066_v59, %v2668_v29 }
 0x22f   : > { %vm1203_vm5 = vcmp.ge.f32.partialorder %v1063_v9, 0.0  ;;  %v1267_v36 = vmul.f32 0.01, %v1063_v9  ;;  %vm1212_vm6 = vcmp.ge.f32.partialorder %v1085_v52, 0.0  ;;  %1596 = vst [vmem:[%s2677_s8 + $0x98] sm:$0xff] %v1338_v42  ;;  %vm1204_vm7 = vcmp.ge.f32.partialorder %v1065_v44, 0.0 }
 0x230   : > { %v1339_v2 = vsel %vm1211_vm0, %v1083_v55, %v1275_v23  ;;  %v1268_v56 = vmul.f32 0.01, %v1065_v44  ;;  %v1276_v11 = vmul.f32 0.01, %v1085_v52  ;;  %v1087_v31 = vadd.f32 %v1086_v22, %v2668_v29 }
 0x231   : > { %v1331_v60 = vsel %vm1203_vm5, %v1063_v9, %v1267_v36  ;;  %1393 = vst [vmem:[%s2677_s8 + $0xa0] sm:$0xff] %v1339_v2  ;;  %v1069_v45 = vadd.f32 %v1068_v63, %v2670_v47  ;;  %v1089_v32 = vadd.f32 %v1088_v12, %v2670_v47  ;;  %vm1205_vm8 = vcmp.ge.f32.partialorder %v1067_v15, 0.0 }
 0x232   : > { %1389 = vst [vmem:[%s2677_s8 + $0x60] sm:$0xff] %v1331_v60  ;;  %v1332_v54 = vsel %vm1204_vm7, %v1065_v44, %v1268_v56  ;;  %v1340_v16 = vsel %vm1212_vm6, %v1085_v52, %v1276_v11  ;;  %v1269_v20 = vmul.f32 0.01, %v1067_v15  ;;  %vm1213_vm9 = vcmp.ge.f32.partialorder %v1087_v31, 0.0 }
 0x233   : > { %1593 = vst [vmem:[%s2677_s8 + $0x70] sm:$0xff] %v1332_v54  ;;  %1597 = vst [vmem:[%s2677_s8 + $0xb0] sm:$0xff] %v1340_v16  ;;  %v1277_v61 = vmul.f32 0.01, %v1087_v31  ;;  %vm1206_vm10 = vcmp.ge.f32.partialorder %v1069_v45, 0.0  ;;  %vm1214_vm11 = vcmp.ge.f32.partialorder %v1089_v32, 0.0 }
 0x234   : > { %v1270_v1 = vmul.f32 0.01, %v1069_v45  ;;  %v1278_v27 = vmul.f32 0.01, %v1089_v32  ;;  %v1333_v39 = vsel %vm1205_vm8, %v1067_v15, %v1269_v20  ;;  %v1092_v24 = vpop.f32.mrb[8].mxu1 }
 0x235   : > { %v1341_v62 = vsel %vm1213_vm9, %v1087_v31, %v1277_v61  ;;  %1390 = vst [vmem:[%s2677_s8 + $0x68] sm:$0xff] %v1333_v39  ;;  %v1093_v35 = vadd.f32 %v1092_v24, %v2668_v29  ;;  %v1094_v57 = vpop.f32.mrb[9].mxu1 }
 0x236   : > { %1394 = vst [vmem:[%s2677_s8 + $0xa8] sm:$0xff] %v1341_v62  ;;  %v1334_v21 = vsel %vm1206_vm10, %v1069_v45, %v1270_v1  ;;  %v1342_v38 = vsel %vm1214_vm11, %v1089_v32, %v1278_v27  ;;  %v1095_v6 = vadd.f32 %v1094_v57, %v2670_v47  ;;  %v1096_v48 = vpop.f32.mrb[10].mxu1 }
 0x237   : > { %1594 = vst [vmem:[%s2677_s8 + $0x78] sm:$0xff] %v1334_v21  ;;  %1598 = vst [vmem:[%s2677_s8 + $0xb8] sm:$0xff] %v1342_v38  ;;  %vm1215_vm12 = vcmp.ge.f32.partialorder %v1093_v35, 0.0  ;;  %v1279_v50 = vmul.f32 0.01, %v1093_v35  ;;  %v1097_v37 = vadd.f32 %v1096_v48, %v2668_v29  ;;  %v1098_v7 = vpop.f32.mrb[11].mxu1 }
 0x238   : > { %vm1216_vm13 = vcmp.ge.f32.partialorder %v1095_v6, 0.0  ;;  %v1280_v30 = vmul.f32 0.01, %v1095_v6  ;;  %v1099_v10 = vadd.f32 %v1098_v7, %v2670_v47 }
 0x239   : > { %v1343_v17 = vsel %vm1215_vm12, %v1093_v35, %v1279_v50  ;;  %vm1217_vm14 = vcmp.ge.f32.partialorder %v1097_v37, 0.0  ;;  %v1281_v4 = vmul.f32 0.01, %v1097_v37 }
 0x23a   : > { %1395 = vst [vmem:[%s2677_s8 + $0xc0] sm:$0xff] %v1343_v17  ;;  %v1344_v40 = vsel %vm1216_vm13, %v1095_v6, %v1280_v30  ;;  %vm1218_vm15 = vcmp.ge.f32.partialorder %v1099_v10, 0.0  ;;  %v1282_v18 = vmul.f32 0.01, %v1099_v10 }
 0x23b   : > { %v1102_v19 = vpop.f32.mrb[12].mxu1  ;;  %1599 = vst [vmem:[%s2677_s8 + $0xd0] sm:$0xff] %v1344_v40  ;;  %v1345_v3 = vsel %vm1217_vm14, %v1097_v37, %v1281_v4 }
 0x23c   : > { %v1103_v13 = vadd.f32 %v1102_v19, %v2668_v29  ;;  %v1104_v28 = vpop.f32.mrb[13].mxu1  ;;  %1396 = vst [vmem:[%s2677_s8 + $0xc8] sm:$0xff] %v1345_v3  ;;  %v1346_v43 = vsel %vm1218_vm15, %v1099_v10, %v1282_v18 }
 0x23d   : > { %v1105_v14 = vadd.f32 %v1104_v28, %v2670_v47  ;;  %v1106_v0 = vpop.f32.mrb[14].mxu1  ;;  %1600 = vst [vmem:[%s2677_s8 + $0xd8] sm:$0xff] %v1346_v43 }
 0x23e   : > { %vm1219_vm1 = vcmp.ge.f32.partialorder %v1103_v13, 0.0  ;;  %v1283_v8 = vmul.f32 0.01, %v1103_v13  ;;  %v1107_v53 = vadd.f32 %v1106_v0, %v2668_v29  ;;  %v1108_v25 = vpop.f32.mrb[15].mxu1 }
 0x23f   : > { %vm1220_vm2 = vcmp.ge.f32.partialorder %v1105_v14, 0.0  ;;  %v1284_v26 = vmul.f32 0.01, %v1105_v14  ;;  %v1109_v34 = vadd.f32 %v1108_v25, %v2670_v47 }
 0x240   : > { %v1347_v49 = vsel %vm1219_vm1, %v1103_v13, %v1283_v8  ;;  %vm1221_vm3 = vcmp.ge.f32.partialorder %v1107_v53, 0.0  ;;  %v1285_v58 = vmul.f32 0.01, %v1107_v53 }
 0x241   : > { %1397 = vst [vmem:[%s2677_s8 + $0xe0] sm:$0xff] %v1347_v49  ;;  %v1348_v51 = vsel %vm1220_vm2, %v1105_v14, %v1284_v26  ;;  %vm1222_vm4 = vcmp.ge.f32.partialorder %v1109_v34, 0.0  ;;  %v1286_v55 = vmul.f32 0.01, %v1109_v34 }
 0x242   : > { %1601 = vst [vmem:[%s2677_s8 + $0xf0] sm:$0xff] %v1348_v51  ;;  %v1349_v5 = vsel %vm1221_vm3, %v1107_v53, %v1285_v58 }
 0x243   : > { %1398 = vst [vmem:[%s2677_s8 + $0xe8] sm:$0xff] %v1349_v5  ;;  %v1350_v46 = vsel %vm1222_vm4, %v1109_v34, %v1286_v55  ;;  %v1112_v9 = vpop.f32.mrb[16].mxu1 }
 0x244   : > { %1602 = vst [vmem:[%s2677_s8 + $0xf8] sm:$0xff] %v1350_v46  ;;  %v1113_v41 = vadd.f32 %v1112_v9, %v2668_v29  ;;  %v1114_v52 = vpop.f32.mrb[17].mxu1 }
 0x245   : > { %v1115_v22 = vadd.f32 %v1114_v52, %v2670_v47  ;;  %v1116_v33 = vpop.f32.mrb[18].mxu1 }
 0x246   : > { %vm1223_vm0 = vcmp.ge.f32.partialorder %v1113_v41, 0.0  ;;  %v1287_v23 = vmul.f32 0.01, %v1113_v41  ;;  %v1117_v44 = vadd.f32 %v1116_v33, %v2668_v29  ;;  %v1118_v59 = vpop.f32.mrb[19].mxu1 }
 0x247   : > { %vm1224_vm5 = vcmp.ge.f32.partialorder %v1115_v22, 0.0  ;;  %v1288_v12 = vmul.f32 0.01, %v1115_v22  ;;  %v1119_v42 = vadd.f32 %v1118_v59, %v2670_v47 }
 0x248   : > { %v1351_v36 = vsel %vm1223_vm0, %v1113_v41, %v1287_v23  ;;  %vm1225_vm6 = vcmp.ge.f32.partialorder %v1117_v44, 0.0  ;;  %v1289_v63 = vmul.f32 0.01, %v1117_v44 }
 0x249   : > { %1399 = vst [vmem:[%s2677_s8 + $0x100] sm:$0xff] %v1351_v36  ;;  %v1352_v2 = vsel %vm1224_vm5, %v1115_v22, %v1288_v12  ;;  %vm1226_vm7 = vcmp.ge.f32.partialorder %v1119_v42, 0.0  ;;  %v1290_v56 = vmul.f32 0.01, %v1119_v42 }
 0x24a   : > { %1603 = vst [vmem:[%s2677_s8 + $0x110] sm:$0xff] %v1352_v2  ;;  %v1353_v11 = vsel %vm1225_vm6, %v1117_v44, %v1289_v63 }
 0x24b   : > { %1400 = vst [vmem:[%s2677_s8 + $0x108] sm:$0xff] %v1353_v11  ;;  %v1354_v60 = vsel %vm1226_vm7, %v1119_v42, %v1290_v56  ;;  %v1122_v15 = vpop.f32.mrb[20].mxu1 }
 0x24c   : > { %1604 = vst [vmem:[%s2677_s8 + $0x118] sm:$0xff] %v1354_v60  ;;  %v1123_v31 = vadd.f32 %v1122_v15, %v2668_v29  ;;  %v1124_v45 = vpop.f32.mrb[21].mxu1 }
 0x24d   : > { %v1125_v54 = vadd.f32 %v1124_v45, %v2670_v47  ;;  %v1126_v16 = vpop.f32.mrb[22].mxu1 }
 0x24e   : > { %vm1227_vm8 = vcmp.ge.f32.partialorder %v1123_v31, 0.0  ;;  %v1291_v32 = vmul.f32 0.01, %v1123_v31  ;;  %v1127_v20 = vadd.f32 %v1126_v16, %v2668_v29  ;;  %v1128_v61 = vpop.f32.mrb[23].mxu1 }
 0x24f   : > { %vm1228_vm9 = vcmp.ge.f32.partialorder %v1125_v54, 0.0  ;;  %v1292_v1 = vmul.f32 0.01, %v1125_v54  ;;  %v1129_v27 = vadd.f32 %v1128_v61, %v2670_v47 }
 0x250   : > { %v1355_v39 = vsel %vm1227_vm8, %v1123_v31, %v1291_v32  ;;  %vm1229_vm10 = vcmp.ge.f32.partialorder %v1127_v20, 0.0  ;;  %v1293_v62 = vmul.f32 0.01, %v1127_v20 }
 0x251   : > { %1401 = vst [vmem:[%s2677_s8 + $0x120] sm:$0xff] %v1355_v39  ;;  %v1356_v24 = vsel %vm1228_vm9, %v1125_v54, %v1292_v1  ;;  %vm1230_vm11 = vcmp.ge.f32.partialorder %v1129_v27, 0.0  ;;  %v1294_v21 = vmul.f32 0.01, %v1129_v27 }
 0x252   : > { %1605 = vst [vmem:[%s2677_s8 + $0x130] sm:$0xff] %v1356_v24  ;;  %v1357_v38 = vsel %vm1229_vm10, %v1127_v20, %v1293_v62 }
 0x253   : > { %1402 = vst [vmem:[%s2677_s8 + $0x128] sm:$0xff] %v1357_v38  ;;  %v1358_v35 = vsel %vm1230_vm11, %v1129_v27, %v1294_v21  ;;  %v1132_v57 = vpop.f32.mrb[24].mxu1 }
 0x254   : > { %1606 = vst [vmem:[%s2677_s8 + $0x138] sm:$0xff] %v1358_v35  ;;  %v1133_v6 = vadd.f32 %v1132_v57, %v2668_v29  ;;  %v1134_v48 = vpop.f32.mrb[25].mxu1 }
 0x255   : > { %v1135_v50 = vadd.f32 %v1134_v48, %v2670_v47  ;;  %v1136_v37 = vpop.f32.mrb[26].mxu1 }
 0x256   : > { %vm1231_vm12 = vcmp.ge.f32.partialorder %v1133_v6, 0.0  ;;  %v1295_v7 = vmul.f32 0.01, %v1133_v6  ;;  %v1137_v30 = vadd.f32 %v1136_v37, %v2668_v29  ;;  %v1138_v10 = vpop.f32.mrb[27].mxu1 }
 0x257   : > { %vm1232_vm13 = vcmp.ge.f32.partialorder %v1135_v50, 0.0  ;;  %v1296_v17 = vmul.f32 0.01, %v1135_v50  ;;  %v1139_v4 = vadd.f32 %v1138_v10, %v2670_v47 }
 0x258   : > { %v1359_v40 = vsel %vm1231_vm12, %v1133_v6, %v1295_v7  ;;  %vm1233_vm14 = vcmp.ge.f32.partialorder %v1137_v30, 0.0  ;;  %v1297_v18 = vmul.f32 0.01, %v1137_v30 }
 0x259   : > { %1403 = vst [vmem:[%s2677_s8 + $0x140] sm:$0xff] %v1359_v40  ;;  %v1360_v19 = vsel %vm1232_vm13, %v1135_v50, %v1296_v17  ;;  %vm1234_vm15 = vcmp.ge.f32.partialorder %v1139_v4, 0.0  ;;  %v1298_v3 = vmul.f32 0.01, %v1139_v4 }
 0x25a   : > { %1607 = vst [vmem:[%s2677_s8 + $0x150] sm:$0xff] %v1360_v19  ;;  %v1361_v13 = vsel %vm1233_vm14, %v1137_v30, %v1297_v18 }
 0x25b   : > { %1404 = vst [vmem:[%s2677_s8 + $0x148] sm:$0xff] %v1361_v13  ;;  %v1362_v28 = vsel %vm1234_vm15, %v1139_v4, %v1298_v3  ;;  %v1142_v43 = vpop.f32.mrb[28].mxu1 }
 0x25c   : > { %1608 = vst [vmem:[%s2677_s8 + $0x158] sm:$0xff] %v1362_v28  ;;  %v1143_v14 = vadd.f32 %v1142_v43, %v2668_v29  ;;  %v1144_v0 = vpop.f32.mrb[29].mxu1 }
 0x25d   : > { %v1145_v8 = vadd.f32 %v1144_v0, %v2670_v47  ;;  %v1146_v53 = vpop.f32.mrb[30].mxu1 }
 0x25e   : > { %vm1235_vm1 = vcmp.ge.f32.partialorder %v1143_v14, 0.0  ;;  %v1299_v25 = vmul.f32 0.01, %v1143_v14  ;;  %v1147_v26 = vadd.f32 %v1146_v53, %v2668_v29  ;;  %v1148_v34 = vpop.f32.mrb[31].mxu1 }
 0x25f   : > { %vm1236_vm2 = vcmp.ge.f32.partialorder %v1145_v8, 0.0  ;;  %v1300_v49 = vmul.f32 0.01, %v1145_v8  ;;  %v1149_v58 = vadd.f32 %v1148_v34, %v2670_v47 }
 0x260   : > { %v1363_v51 = vsel %vm1235_vm1, %v1143_v14, %v1299_v25  ;;  %vm1237_vm3 = vcmp.ge.f32.partialorder %v1147_v26, 0.0  ;;  %v1301_v55 = vmul.f32 0.01, %v1147_v26 }
 0x261   : > { %1405 = vst [vmem:[%s2677_s8 + $0x160] sm:$0xff] %v1363_v51  ;;  %v1364_v5 = vsel %vm1236_vm2, %v1145_v8, %v1300_v49  ;;  %vm1238_vm4 = vcmp.ge.f32.partialorder %v1149_v58, 0.0  ;;  %v1302_v46 = vmul.f32 0.01, %v1149_v58 }
 0x262   : > { %1609 = vst [vmem:[%s2677_s8 + $0x170] sm:$0xff] %v1364_v5  ;;  %v1365_v9 = vsel %vm1237_vm3, %v1147_v26, %v1301_v55 }
 0x263   : > { %1406 = vst [vmem:[%s2677_s8 + $0x168] sm:$0xff] %v1365_v9  ;;  %v1366_v41 = vsel %vm1238_vm4, %v1149_v58, %v1302_v46  ;;  %v1152_v52 = vpop.f32.mrb[32].mxu1 }
 0x264   : > { %1610 = vst [vmem:[%s2677_s8 + $0x178] sm:$0xff] %v1366_v41  ;;  %v1153_v22 = vadd.f32 %v1152_v52, %v2668_v29  ;;  %v1154_v33 = vpop.f32.mrb[33].mxu1 }
 0x265   : > { %v1155_v23 = vadd.f32 %v1154_v33, %v2670_v47  ;;  %v1156_v44 = vpop.f32.mrb[34].mxu1 }
 0x266   : > { %vm1239_vm0 = vcmp.ge.f32.partialorder %v1153_v22, 0.0  ;;  %v1303_v59 = vmul.f32 0.01, %v1153_v22  ;;  %v1157_v12 = vadd.f32 %v1156_v44, %v2668_v29  ;;  %v1158_v42 = vpop.f32.mrb[35].mxu1 }
 0x267   : > { %vm1240_vm5 = vcmp.ge.f32.partialorder %v1155_v23, 0.0  ;;  %v1304_v36 = vmul.f32 0.01, %v1155_v23  ;;  %v1159_v63 = vadd.f32 %v1158_v42, %v2670_v47 }
 0x268   : > { %v1367_v2 = vsel %vm1239_vm0, %v1153_v22, %v1303_v59  ;;  %vm1241_vm6 = vcmp.ge.f32.partialorder %v1157_v12, 0.0  ;;  %v1305_v56 = vmul.f32 0.01, %v1157_v12 }
 0x269   : > { %1407 = vst [vmem:[%s2677_s8 + $0x180] sm:$0xff] %v1367_v2  ;;  %v1368_v11 = vsel %vm1240_vm5, %v1155_v23, %v1304_v36  ;;  %vm1242_vm7 = vcmp.ge.f32.partialorder %v1159_v63, 0.0  ;;  %v1306_v60 = vmul.f32 0.01, %v1159_v63 }
 0x26a   : > { %1611 = vst [vmem:[%s2677_s8 + $0x190] sm:$0xff] %v1368_v11  ;;  %v1369_v15 = vsel %vm1241_vm6, %v1157_v12, %v1305_v56 }
 0x26b   : > { %1408 = vst [vmem:[%s2677_s8 + $0x188] sm:$0xff] %v1369_v15  ;;  %v1370_v31 = vsel %vm1242_vm7, %v1159_v63, %v1306_v60  ;;  %v1162_v45 = vpop.f32.mrb[36].mxu1 }
 0x26c   : > { %1612 = vst [vmem:[%s2677_s8 + $0x198] sm:$0xff] %v1370_v31  ;;  %v1163_v54 = vadd.f32 %v1162_v45, %v2668_v29  ;;  %v1164_v16 = vpop.f32.mrb[37].mxu1 }
 0x26d   : > { %v1165_v32 = vadd.f32 %v1164_v16, %v2670_v47  ;;  %v1166_v20 = vpop.f32.mrb[38].mxu1 }
 0x26e   : > { %vm1243_vm8 = vcmp.ge.f32.partialorder %v1163_v54, 0.0  ;;  %v1307_v61 = vmul.f32 0.01, %v1163_v54  ;;  %v1167_v1 = vadd.f32 %v1166_v20, %v2668_v29  ;;  %v1168_v27 = vpop.f32.mrb[39].mxu1 }
 0x26f   : > { %vm1244_vm9 = vcmp.ge.f32.partialorder %v1165_v32, 0.0  ;;  %v1308_v39 = vmul.f32 0.01, %v1165_v32  ;;  %v1169_v62 = vadd.f32 %v1168_v27, %v2670_v47 }
 0x270   : > { %v1371_v24 = vsel %vm1243_vm8, %v1163_v54, %v1307_v61  ;;  %vm1245_vm10 = vcmp.ge.f32.partialorder %v1167_v1, 0.0  ;;  %v1309_v21 = vmul.f32 0.01, %v1167_v1 }
 0x271   : > { %1409 = vst [vmem:[%s2677_s8 + $0x1a0] sm:$0xff] %v1371_v24  ;;  %v1372_v38 = vsel %vm1244_vm9, %v1165_v32, %v1308_v39  ;;  %vm1246_vm11 = vcmp.ge.f32.partialorder %v1169_v62, 0.0  ;;  %v1310_v35 = vmul.f32 0.01, %v1169_v62 }
 0x272   : > { %1613 = vst [vmem:[%s2677_s8 + $0x1b0] sm:$0xff] %v1372_v38  ;;  %v1373_v57 = vsel %vm1245_vm10, %v1167_v1, %v1309_v21 }
 0x273   : > { %1410 = vst [vmem:[%s2677_s8 + $0x1a8] sm:$0xff] %v1373_v57  ;;  %v1374_v6 = vsel %vm1246_vm11, %v1169_v62, %v1310_v35  ;;  %v1172_v48 = vpop.f32.mrb[40].mxu1 }
 0x274   : > { %1614 = vst [vmem:[%s2677_s8 + $0x1b8] sm:$0xff] %v1374_v6  ;;  %v1173_v50 = vadd.f32 %v1172_v48, %v2668_v29  ;;  %v1174_v37 = vpop.f32.mrb[41].mxu1 }
 0x275   : > { %v1175_v7 = vadd.f32 %v1174_v37, %v2670_v47  ;;  %v1176_v30 = vpop.f32.mrb[42].mxu1 }
 0x276   : > { %vm1247_vm12 = vcmp.ge.f32.partialorder %v1173_v50, 0.0  ;;  %v1311_v10 = vmul.f32 0.01, %v1173_v50  ;;  %v1177_v17 = vadd.f32 %v1176_v30, %v2668_v29  ;;  %v1178_v4 = vpop.f32.mrb[43].mxu1 }
 0x277   : > { %vm1248_vm13 = vcmp.ge.f32.partialorder %v1175_v7, 0.0  ;;  %v1312_v40 = vmul.f32 0.01, %v1175_v7  ;;  %v1179_v18 = vadd.f32 %v1178_v4, %v2670_v47 }
 0x278   : > { %v1375_v19 = vsel %vm1247_vm12, %v1173_v50, %v1311_v10  ;;  %vm1249_vm14 = vcmp.ge.f32.partialorder %v1177_v17, 0.0  ;;  %v1313_v3 = vmul.f32 0.01, %v1177_v17 }
 0x279   : > { %1411 = vst [vmem:[%s2677_s8 + $0x1c0] sm:$0xff] %v1375_v19  ;;  %v1376_v13 = vsel %vm1248_vm13, %v1175_v7, %v1312_v40  ;;  %vm1250_vm15 = vcmp.ge.f32.partialorder %v1179_v18, 0.0  ;;  %v1314_v28 = vmul.f32 0.01, %v1179_v18 }
 0x27a   : > { %1615 = vst [vmem:[%s2677_s8 + $0x1d0] sm:$0xff] %v1376_v13  ;;  %v1377_v43 = vsel %vm1249_vm14, %v1177_v17, %v1313_v3 }
 0x27b   : > { %1412 = vst [vmem:[%s2677_s8 + $0x1c8] sm:$0xff] %v1377_v43  ;;  %v1378_v14 = vsel %vm1250_vm15, %v1179_v18, %v1314_v28  ;;  %v1182_v0 = vpop.f32.mrb[44].mxu1 }
 0x27c   : > { %1616 = vst [vmem:[%s2677_s8 + $0x1d8] sm:$0xff] %v1378_v14  ;;  %v1183_v8 = vadd.f32 %v1182_v0, %v2668_v29  ;;  %v1184_v53 = vpop.f32.mrb[45].mxu1 }
 0x27d   : > { %v1185_v25 = vadd.f32 %v1184_v53, %v2670_v47  ;;  %v1186_v26 = vpop.f32.mrb[46].mxu1 }
 0x27e   : > { %vm1251_vm1 = vcmp.ge.f32.partialorder %v1183_v8, 0.0  ;;  %v1315_v34 = vmul.f32 0.01, %v1183_v8  ;;  %v1187_v49 = vadd.f32 %v1186_v26, %v2668_v29  ;;  %v1188_v58 = vpop.f32.mrb[47].mxu1 }
 0x27f   : > { %vm1252_vm2 = vcmp.ge.f32.partialorder %v1185_v25, 0.0  ;;  %v1316_v51 = vmul.f32 0.01, %v1185_v25  ;;  %v1189_v55 = vadd.f32 %v1188_v58, %v2670_v47 }
 0x280   : > { %v1379_v5 = vsel %vm1251_vm1, %v1183_v8, %v1315_v34  ;;  %vm1253_vm3 = vcmp.ge.f32.partialorder %v1187_v49, 0.0  ;;  %v1317_v46 = vmul.f32 0.01, %v1187_v49 }
 0x281   : > { %1413 = vst [vmem:[%s2677_s8 + $0x1e0] sm:$0xff] %v1379_v5  ;;  %v1380_v9 = vsel %vm1252_vm2, %v1185_v25, %v1316_v51  ;;  %vm1254_vm4 = vcmp.ge.f32.partialorder %v1189_v55, 0.0  ;;  %v1318_v41 = vmul.f32 0.01, %v1189_v55 }
 0x282   : > { %1617 = vst [vmem:[%s2677_s8 + $0x1f0] sm:$0xff] %v1380_v9  ;;  %v1381_v52 = vsel %vm1253_vm3, %v1187_v49, %v1317_v46 }
 0x283   : > { %1414 = vst [vmem:[%s2677_s8 + $0x1e8] sm:$0xff] %v1381_v52  ;;  %v1382_v22 = vsel %vm1254_vm4, %v1189_v55, %v1318_v41 }
 0x284   : > { %1618 = vst [vmem:[%s2677_s8 + $0x1f8] sm:$0xff] %v1382_v22 }
 0x285 PF: > { %s17_s18 = sadd.s32 1, %s1870_s18  }
 0x286   : > { %p14_p10 = scmp.ge.s32.totalorder %s17_s18, 4  }
 0x288   :  { %16 = sbr.rel (!%p14_p10) target bundleno = 2 (0x2), region = 80 }
 0x28f   :  { %1472 = vsyncpa [#allocation3], 1 }
 0x290   :  { %1474 = vsyncpa [#allocation3 + $0x1], 1 }
 0x291   :  { %1475 = vsyncpa [#allocation5], 1 }

// kernel: decode_net_forward.7
= control target key start
LH: loop header
LB: loop body
LE: loop exit
PB: predicated region body
PF: predicated region fallthrough
CT: control target
= control target key end

     0   :  { %s6660_s26 = smov 0   ;;  %s10229_s0 = inlined_call_operand.vmem [shape: f32[2048,64], index: 0, kind: input, shape index: {}]   ;;  %s10230_s1 = inlined_call_operand.vmem [shape: bf16[64,64], index: 1, kind: input, shape index: {}]   ;;  %s10231_s2 = inlined_call_operand.vmem [shape: f32[1,64], index: 2, kind: input, shape index: {}]   ;;  %s10232_s3 = inlined_call_operand.vmem [shape: bf16[64,256], index: 3, kind: input, shape index: {}]   ;;  %s10233_s4 = inlined_call_operand.vmem [shape: f32[1,256], index: 4, kind: input, shape index: {}]   ;;  %s10234_s5 = inlined_call_operand.vmem [shape: bf16[256,4], index: 5, kind: input, shape index: {}]   ;;  %s10235_s6 = inlined_call_operand.<no memory space> [shape: f32[1,1], index: 6, kind: input, shape index: {}]   ;;  %s10236_s7 = inlined_call_operand.vmem [shape: f32[2048,4], index: 7, kind: output, shape index: {}]  }
   0x1   :  { %v12_v0 = vstv %s10235_s6 }
   0x2   :  { %13 = vst [vmem:[#allocation2] sm:$0x1] %v12_v0 }
   0x3 LB: > { %s5799_s27 = sadd.s32 4294967295, %s6614_s26   ;;  %p5803_p0 = scmp.ge.s32.totalorder %s6614_s26, 1  ;;  %s6614_s26 = sphi %s6660_s26, %s19_s26  }
   0x4   : > { %p240_p1 = scmp.lt.s32.totalorder %s6614_s26, 3 }
   0x6   : > { %p241_p2 = pnand %p5803_p0, %p240_p1 }
   0x8   : > { %244 = sbr.rel (%p241_p2) target bundleno = 1227 (0x4cb), region = 48 }
   0xf   : > { %v6190_v1 = vld [vmem:[%s10230_s1] sm:$0xff]   ;;  %s5804_s6 = sshll.u32 %s5799_s27, 7  ;;  %v6191_v2 = vld [vmem:[%s10230_s1 + $0x8] sm:$0xff]   ;;  %v6192_v3 = vld [vmem:[%s10230_s1 + $0x10] sm:$0xff]   ;;  %vm638_vm0 = vcmask 523264  }
  0x10   : > { %p273_p3 = scmp.lt.s32.totalorder %s5804_s6, 255  ;;  %6036 = vmatprep.subr.bf16.mxu0 %v6190_v1  ;;  %6172 = vmatprep.subr.bf16.mxu1 %v6190_v1  ;;  %v6193_v4 = vld [vmem:[%s10230_s1 + $0x18] sm:$0xff]   ;;  %v6196_v19 = vld [vmem:[%s10232_s3 + $0x4] ss:$8 sps:$4 sm:$0xff]   ;;  %v6194_v44 = vld [vmem:[%s10232_s3] ss:$8 sps:$4 sm:$0xff]  }
  0x11   : > { %6037 = vmatpush3.bf16.msra.mxu0 %v6190_v1  ;;  %6176 = vmatpush3.bf16.msra.mxu1 %v6190_v1  ;;  %v6199_v57 = vld [vmem:[%s10232_s3 + $0x14] ss:$8 sps:$4 sm:$0xff]   ;;  %v6197_v60 = vld [vmem:[%s10232_s3 + $0x10] ss:$8 sps:$4 sm:$0xff]  }
  0x12   : > { %s10577_s6 = smov (!%p273_p3, %s5804_s6), 255  ;;  %6038 = vmatprep.subr.bf16.mxu0 %v6191_v2  ;;  %6173 = vmatprep.subr.bf16.mxu1 %v6191_v2 }
  0x13   : > { %s5805_s11 = sshll.u32 %s10577_s6, 3 }
  0x14   : > { %s6688_s16 = scalar_lea.vmem %s10229_s0, %s5805_s11  ;;  %s9582_s13 = scalar_lea.vmem %s10236_s7, %s5805_s11 }
  0x15   : > { %6039 = vmatpush3.bf16.msra.mxu0 %v6191_v2  ;;  %v285_v5 = vld [vmem:[%s6688_s16] sm:$0xff]  ;;  %v286_v6 = vld [vmem:[%s6688_s16 + $0x8] sm:$0xff]  ;;  %v287_v7 = vld [vmem:[%s6688_s16 + $0x10] sm:$0xff]  ;;  %6177 = vmatpush3.bf16.msra.mxu1 %v6191_v2 }
  0x16   : > { %6040 = vmatprep.subr.bf16.mxu0 %v6192_v3  ;;  %v414_v8 = vmul.f32 %v285_v5, %v285_v5  ;;  %v415_v9 = vmul.f32 %v286_v6, %v286_v6  ;;  %v288_v10 = vld [vmem:[%s6688_s16 + $0x18] sm:$0xff]  ;;  %v289_v11 = vld [vmem:[%s6688_s16 + $0x20] sm:$0xff]  ;;  %v290_v12 = vld [vmem:[%s6688_s16 + $0x28] sm:$0xff]  ;;  %6174 = vmatprep.subr.bf16.mxu1 %v6192_v3  ;;  %v416_v14 = vmul.f32 %v287_v7, %v287_v7 }
  0x17   : > { %v417_v15 = vmul.f32 %v288_v10, %v288_v10  ;;  %v418_v16 = vmul.f32 %v289_v11, %v289_v11  ;;  %v419_v17 = vmul.f32 %v290_v12, %v290_v12  ;;  %v291_v21 = vld [vmem:[%s6688_s16 + $0x30] sm:$0xff]  ;;  %v292_v22 = vld [vmem:[%s6688_s16 + $0x38] sm:$0xff]  ;;  %v293_v23 = vld [vmem:[%s6688_s16 + $0x40] sm:$0xff] }
  0x18   : > { %v542_v13 = vpack.c.bf16 %v415_v9, %v414_v8  ;;  %v294_v24 = vld [vmem:[%s6688_s16 + $0x48] sm:$0xff]  ;;  %v349_v25 = vld [vmem:[%s6688_s16 + $0x200] sm:$0xff]  ;;  %v351_v27 = vld [vmem:[%s6688_s16 + $0x210] sm:$0xff]  ;;  %v420_v29 = vmul.f32 %v291_v21, %v291_v21  ;;  %v421_v30 = vmul.f32 %v292_v22, %v292_v22  ;;  %v422_v31 = vmul.f32 %v293_v23, %v293_v23 }
  0x19   : > { %6041 = vmatpush3.bf16.msra.mxu0 %v6192_v3  ;;  %6178 = vmatpush3.bf16.msra.mxu1 %v6192_v3  ;;  %v543_v18 = vpack.c.bf16 %v417_v15, %v416_v14  ;;  %v544_v20 = vpack.c.bf16 %v419_v17, %v418_v16  ;;  %v350_v26 = vld [vmem:[%s6688_s16 + $0x208] sm:$0xff]  ;;  %v352_v28 = vld [vmem:[%s6688_s16 + $0x218] sm:$0xff]  ;;  %v478_v32 = vmul.f32 %v349_v25, %v349_v25  ;;  %v353_v37 = vld [vmem:[%s6688_s16 + $0x220] sm:$0xff] }
  0x1a   : > { %6042 = vmatprep.subr.bf16.mxu0 %v6193_v4  ;;  %6044 = vmatprep.mubr.msk.bf16.mxu0 %vm638_vm0, %v542_v13  ;;  %v423_v33 = vmul.f32 %v294_v24, %v294_v24  ;;  %v479_v34 = vmul.f32 %v350_v26, %v350_v26  ;;  %v480_v35 = vmul.f32 %v351_v27, %v351_v27  ;;  %v354_v38 = vld [vmem:[%s6688_s16 + $0x228] sm:$0xff]  ;;  %v355_v42 = vld [vmem:[%s6688_s16 + $0x230] sm:$0xff]  ;;  %v356_v43 = vld [vmem:[%s6688_s16 + $0x238] sm:$0xff] }
  0x1b   : > { %6175 = vmatprep.subr.bf16.mxu1 %v6193_v4  ;;  %v481_v36 = vmul.f32 %v352_v28, %v352_v28  ;;  %v482_v41 = vmul.f32 %v353_v37, %v353_v37  ;;  %v545_v45 = vpack.c.bf16 %v421_v30, %v420_v29  ;;  %v483_v46 = vmul.f32 %v354_v38, %v354_v38  ;;  %v357_v47 = vld [vmem:[%s6688_s16 + $0x240] sm:$0xff]  ;;  %v358_v48 = vld [vmem:[%s6688_s16 + $0x248] sm:$0xff]  ;;  %v295_v50 = vld [vmem:[%s6688_s16 + $0x50] sm:$0xff] }
  0x1c   : > { %v574_v39 = vpack.c.bf16 %v479_v34, %v478_v32  ;;  %v546_v49 = vpack.c.bf16 %v423_v33, %v422_v31  ;;  %v296_v51 = vld [vmem:[%s6688_s16 + $0x58] sm:$0xff]  ;;  %v297_v52 = vld [vmem:[%s6688_s16 + $0x60] sm:$0xff]  ;;  %v298_v53 = vld [vmem:[%s6688_s16 + $0x68] sm:$0xff]  ;;  %v484_v55 = vmul.f32 %v355_v42, %v355_v42  ;;  %v485_v56 = vmul.f32 %v356_v43, %v356_v43 }
  0x1d   : > { %6043 = vmatpush3.bf16.msra.mxu0 %v6193_v4  ;;  %6179 = vmatpush3.bf16.msra.mxu1 %v6193_v4  ;;  %v575_v40 = vpack.c.bf16 %v481_v36, %v480_v35  ;;  %v576_v54 = vpack.c.bf16 %v483_v46, %v482_v41  ;;  %v486_v58 = vmul.f32 %v357_v47, %v357_v47  ;;  %v359_v3 = vld [vmem:[%s6688_s16 + $0x250] sm:$0xff]  ;;  %v360_v4 = vld [vmem:[%s6688_s16 + $0x258] sm:$0xff]  ;;  %v361_v6 = vld [vmem:[%s6688_s16 + $0x260] sm:$0xff] }
  0x1e   : > { %2850 = vmatprep.subr.bf16.mxu1 %v6196_v19  ;;  %6108 = vmatprep.mubr.msk.bf16.mxu1 %vm638_vm0, %v574_v39  ;;  %v487_v59 = vmul.f32 %v358_v48, %v358_v48  ;;  %v424_v61 = vmul.f32 %v295_v50, %v295_v50  ;;  %v425_v62 = vmul.f32 %v296_v51, %v296_v51  ;;  %v362_v7 = vld [vmem:[%s6688_s16 + $0x268] sm:$0xff]  ;;  %v299_v9 = vld [vmem:[%s6688_s16 + $0x70] sm:$0xff]  ;;  %v300_v10 = vld [vmem:[%s6688_s16 + $0x78] sm:$0xff] }
  0x1f   : > { %v426_v63 = vmul.f32 %v297_v52, %v297_v52  ;;  %v427_v0 = vmul.f32 %v298_v53, %v298_v53  ;;  %v577_v1 = vpack.c.bf16 %v485_v56, %v484_v55  ;;  %v301_v11 = vld [vmem:[%s6688_s16 + $0x80] sm:$0xff]  ;;  %v302_v12 = vld [vmem:[%s6688_s16 + $0x88] sm:$0xff]  ;;  %v488_v13 = vmul.f32 %v359_v3, %v359_v3  ;;  %v363_v22 = vld [vmem:[%s6688_s16 + $0x270] sm:$0xff] }
  0x20   : > { %6045 = vmatmul.mubr.msk.bf16.vlgmr.msra.gmra.mrb[0].mxu0 %vm638_vm0, %v543_v18  ;;  %6109 = vmatmul.mubr.msk.bf16.vlgmr.msra.gmra.mrb[0].mxu1 %vm638_vm0, %v575_v40  ;;  %v578_v2 = vpack.c.bf16 %v487_v59, %v486_v58  ;;  %v547_v5 = vpack.c.bf16 %v425_v62, %v424_v61  ;;  %v489_v14 = vmul.f32 %v360_v4, %v360_v4  ;;  %v364_v24 = vld [vmem:[%s6688_s16 + $0x278] sm:$0xff]  ;;  %v6202_v25 = vld [vmem:[%s10232_s3 + $0x24] ss:$8 sps:$4 sm:$0xff]   ;;  %v6200_v29 = vld [vmem:[%s10232_s3 + $0x20] ss:$8 sps:$4 sm:$0xff]  }
  0x21   : > { %6048 = vmatprep.mubr.msk.bf16.mxu0 %vm638_vm0, %v544_v20  ;;  %2851 = vmatpush1.bf16.msra.mxu1 %v6194_v44  ;;  %v548_v8 = vpack.c.bf16 %v427_v0, %v426_v63  ;;  %v490_v15 = vmul.f32 %v361_v6, %v361_v6  ;;  %v491_v16 = vmul.f32 %v362_v7, %v362_v7  ;;  %v365_v27 = vld [vmem:[%s6688_s16 + $0x280] sm:$0xff]  ;;  %v366_v28 = vld [vmem:[%s6688_s16 + $0x288] sm:$0xff]  ;;  %v303_v31 = vld [vmem:[%s6688_s16 + $0x90] sm:$0xff] }
  0x22   : > { %6112 = vmatprep.mubr.msk.bf16.mxu1 %vm638_vm0, %v576_v54  ;;  %2852 = vmatprep.subr.bf16.mxu1 %v6199_v57  ;;  %v428_v17 = vmul.f32 %v299_v9, %v299_v9  ;;  %v429_v18 = vmul.f32 %v300_v10, %v300_v10  ;;  %v430_v19 = vmul.f32 %v301_v11, %v301_v11  ;;  %v304_v32 = vld [vmem:[%s6688_s16 + $0x98] sm:$0xff]  ;;  %v305_v33 = vld [vmem:[%s6688_s16 + $0xa0] sm:$0xff]  ;;  %v306_v34 = vld [vmem:[%s6688_s16 + $0xa8] sm:$0xff] }
  0x23   : > { %v431_v20 = vmul.f32 %v302_v12, %v302_v12  ;;  %v579_v21 = vpack.c.bf16 %v489_v14, %v488_v13  ;;  %v580_v23 = vpack.c.bf16 %v491_v16, %v490_v15  ;;  %v492_v35 = vmul.f32 %v363_v22, %v363_v22  ;;  %v368_v46 = vld [vmem:[%s6688_s16 + $0x298] sm:$0xff]  ;;  %v369_v47 = vld [vmem:[%s6688_s16 + $0x2a0] sm:$0xff]  ;;  %v307_v51 = vld [vmem:[%s6688_s16 + $0xb0] sm:$0xff] }
  0x24   : > { %v549_v26 = vpack.c.bf16 %v429_v18, %v428_v17  ;;  %v493_v36 = vmul.f32 %v364_v24, %v364_v24  ;;  %v494_v37 = vmul.f32 %v365_v27, %v365_v27  ;;  %v495_v38 = vmul.f32 %v366_v28, %v366_v28  ;;  %v308_v52 = vld [vmem:[%s6688_s16 + $0xb8] sm:$0xff]  ;;  %v309_v54 = vld [vmem:[%s6688_s16 + $0xc0] sm:$0xff]  ;;  %v310_v55 = vld [vmem:[%s6688_s16 + $0xc8] sm:$0xff] }
  0x25   : > { %2853 = vmatpush1.bf16.msra.mxu1 %v6197_v60  ;;  %v550_v30 = vpack.c.bf16 %v431_v20, %v430_v19  ;;  %v432_v39 = vmul.f32 %v303_v31, %v303_v31  ;;  %v433_v40 = vmul.f32 %v304_v32, %v304_v32  ;;  %v434_v41 = vmul.f32 %v305_v33, %v305_v33  ;;  %v6205_v53 = vld [vmem:[%s10232_s3 + $0x34] ss:$8 sps:$4 sm:$0xff]   ;;  %v6203_v58 = vld [vmem:[%s10232_s3 + $0x30] ss:$8 sps:$4 sm:$0xff]   ;;  %v373_v4 = vld [vmem:[%s6688_s16 + $0x2c0] sm:$0xff] }
  0x26   : > { %2854 = vmatprep.subr.bf16.mxu1 %v6202_v25  ;;  %v435_v42 = vmul.f32 %v306_v34, %v306_v34  ;;  %v581_v43 = vpack.c.bf16 %v493_v36, %v492_v35  ;;  %v582_v44 = vpack.c.bf16 %v495_v38, %v494_v37  ;;  %v497_v57 = vmul.f32 %v368_v46, %v368_v46  ;;  %v311_v6 = vld [vmem:[%s6688_s16 + $0xd0] sm:$0xff]  ;;  %v312_v7 = vld [vmem:[%s6688_s16 + $0xd8] sm:$0xff]  ;;  %v313_v10 = vld [vmem:[%s6688_s16 + $0xe0] sm:$0xff] }
  0x27   : > { %v551_v48 = vpack.c.bf16 %v433_v40, %v432_v39  ;;  %v498_v59 = vmul.f32 %v369_v47, %v369_v47  ;;  %v436_v61 = vmul.f32 %v307_v51, %v307_v51  ;;  %v437_v62 = vmul.f32 %v308_v52, %v308_v52  ;;  %v314_v11 = vld [vmem:[%s6688_s16 + $0xe8] sm:$0xff]  ;;  %v376_v24 = vld [vmem:[%s6688_s16 + $0x2d8] sm:$0xff]  ;;  %v317_v31 = vld [vmem:[%s6688_s16 + $0x100] sm:$0xff] }
  0x28   : > { %6049 = vmatmul.mubr.msk.bf16.gmra.mrb[4].mxu0 %vm638_vm0, %v545_v45  ;;  %6113 = vmatmul.mubr.msk.bf16.gmra.mrb[4].mxu1 %vm638_vm0, %v577_v1  ;;  %v367_v45 = vld [vmem:[%s6688_s16 + $0x290] sm:$0xff]  ;;  %v552_v50 = vpack.c.bf16 %v435_v42, %v434_v41  ;;  %v438_v63 = vmul.f32 %v309_v54, %v309_v54  ;;  %v439_v0 = vmul.f32 %v310_v55, %v310_v55  ;;  %v378_v27 = vld [vmem:[%s6688_s16 + $0x2e8] sm:$0xff]  ;;  %v381_v46 = vld [vmem:[%s6688_s16 + $0x300] sm:$0xff] }
  0x29   : > { %6052 = vmatprep.mubr.msk.bf16.mxu0 %vm638_vm0, %v546_v49  ;;  %6116 = vmatprep.mubr.msk.bf16.mxu1 %vm638_vm0, %v578_v2  ;;  %v370_v49 = vld [vmem:[%s6688_s16 + $0x2a8] sm:$0xff]  ;;  %v496_v56 = vmul.f32 %v367_v45, %v367_v45  ;;  %v371_v1 = vld [vmem:[%s6688_s16 + $0x2b0] sm:$0xff]  ;;  %v372_v2 = vld [vmem:[%s6688_s16 + $0x2b8] sm:$0xff]  ;;  %v553_v9 = vpack.c.bf16 %v437_v62, %v436_v61  ;;  %v502_v15 = vmul.f32 %v373_v4, %v373_v4 }
  0x2a   : > { %2855 = vmatpush1.bf16.msra.mxu1 %v6200_v29  ;;  %v499_v60 = vmul.f32 %v370_v49, %v370_v49  ;;  %v554_v12 = vpack.c.bf16 %v439_v0, %v438_v63  ;;  %v500_v13 = vmul.f32 %v371_v1, %v371_v1  ;;  %v501_v14 = vmul.f32 %v372_v2, %v372_v2  ;;  %v315_v29 = vld [vmem:[%s6688_s16 + $0xf0] sm:$0xff]  ;;  %v318_v32 = vld [vmem:[%s6688_s16 + $0x108] sm:$0xff]  ;;  %v321_v51 = vld [vmem:[%s6688_s16 + $0x120] sm:$0xff] }
  0x2b   : > { %2856 = vmatprep.subr.bf16.mxu1 %v6205_v53  ;;  %v583_v3 = vpack.c.bf16 %v497_v57, %v496_v56  ;;  %v440_v17 = vmul.f32 %v311_v6, %v311_v6  ;;  %v441_v18 = vmul.f32 %v312_v7, %v312_v7  ;;  %v442_v19 = vmul.f32 %v313_v10, %v313_v10  ;;  %v382_v47 = vld [vmem:[%s6688_s16 + $0x308] sm:$0xff]  ;;  %v319_v49 = vld [vmem:[%s6688_s16 + $0x110] sm:$0xff]  ;;  %v384_v0 = vld [vmem:[%s6688_s16 + $0x318] sm:$0xff] }
  0x2c   : > { %v443_v20 = vmul.f32 %v314_v11, %v314_v11  ;;  %v505_v34 = vmul.f32 %v376_v24, %v376_v24  ;;  %v507_v36 = vmul.f32 %v378_v27, %v378_v27  ;;  %v444_v37 = vmul.f32 %v315_v29, %v315_v29  ;;  %v322_v52 = vld [vmem:[%s6688_s16 + $0x128] sm:$0xff]  ;;  %v383_v63 = vld [vmem:[%s6688_s16 + $0x310] sm:$0xff]  ;;  %v385_v2 = vld [vmem:[%s6688_s16 + $0x320] sm:$0xff] }
  0x2d   : > { %v555_v25 = vpack.c.bf16 %v441_v18, %v440_v17  ;;  %v446_v39 = vmul.f32 %v317_v31, %v317_v31  ;;  %v447_v40 = vmul.f32 %v318_v32, %v318_v32  ;;  %v510_v55 = vmul.f32 %v381_v46, %v381_v46  ;;  %v324_v6 = vld [vmem:[%s6688_s16 + $0x138] sm:$0xff]  ;;  %v325_v7 = vld [vmem:[%s6688_s16 + $0x140] sm:$0xff] }
  0x2e   : > { %2857 = vmatpush1.bf16.msra.mxu1 %v6203_v58  ;;  %v556_v28 = vpack.c.bf16 %v443_v20, %v442_v19  ;;  %v511_v56 = vmul.f32 %v382_v47, %v382_v47  ;;  %v448_v57 = vmul.f32 %v319_v49, %v319_v49  ;;  %v513_v10 = vmul.f32 %v384_v0, %v384_v0  ;;  %v387_v19 = vld [vmem:[%s6688_s16 + $0x330] sm:$0xff]  ;;  %v388_v20 = vld [vmem:[%s6688_s16 + $0x338] sm:$0xff]  ;;  %v329_v27 = vld [vmem:[%s6688_s16 + $0x160] sm:$0xff] }
  0x2f   : > { %v514_v11 = vmul.f32 %v385_v2, %v385_v2  ;;  %v516_v29 = vmul.f32 %v387_v19, %v387_v19  ;;  %v332_v46 = vld [vmem:[%s6688_s16 + $0x178] sm:$0xff]  ;;  %v333_v49 = vld [vmem:[%s6688_s16 + $0x180] sm:$0xff]  ;;  %v402_v19 = vld [vmem:[%s6688_s16 + $0x3a8] sm:$0xff] }
  0x30   : > { %6053 = vmatmul.mubr.msk.bf16.gmra.mrb[8].mxu0 %vm638_vm0, %v547_v5  ;;  %6117 = vmatmul.mubr.msk.bf16.gmra.mrb[8].mxu1 %vm638_vm0, %v579_v21  ;;  %v374_v5 = vld [vmem:[%s6688_s16 + $0x2c8] sm:$0xff]  ;;  %v585_v21 = vpack.c.bf16 %v501_v14, %v500_v13  ;;  %v590_v62 = vpack.c.bf16 %v511_v56, %v510_v55  ;;  %v453_v14 = vmul.f32 %v324_v6, %v324_v6  ;;  %v336_v2 = vld [vmem:[%s6688_s16 + $0x198] sm:$0xff] }
  0x31   : > { %6056 = vmatprep.mubr.msk.bf16.mxu0 %vm638_vm0, %v548_v8  ;;  %6120 = vmatprep.mubr.msk.bf16.mxu1 %vm638_vm0, %v580_v23  ;;  %v584_v8 = vpack.c.bf16 %v499_v60, %v498_v59  ;;  %v503_v16 = vmul.f32 %v374_v5, %v374_v5  ;;  %v375_v23 = vld [vmem:[%s6688_s16 + $0x2d0] sm:$0xff]  ;;  %v450_v59 = vmul.f32 %v321_v51, %v321_v51  ;;  %v338_v6 = vld [vmem:[%s6688_s16 + $0x1a8] sm:$0xff] }
  0x32   : > { %v504_v33 = vmul.f32 %v375_v23, %v375_v23  ;;  %v451_v60 = vmul.f32 %v322_v52, %v322_v52  ;;  %v323_v5 = vld [vmem:[%s6688_s16 + $0x130] sm:$0xff]  ;;  %v390_v23 = vld [vmem:[%s6688_s16 + $0x348] sm:$0xff]  ;;  %v462_v55 = vmul.f32 %v333_v49, %v333_v49 }
  0x33   : > { %v586_v22 = vpack.c.bf16 %v503_v16, %v502_v15  ;;  %v452_v13 = vmul.f32 %v323_v5, %v323_v5  ;;  %v454_v15 = vmul.f32 %v325_v7, %v325_v7  ;;  %v519_v32 = vmul.f32 %v390_v23, %v390_v23  ;;  %v337_v5 = vld [vmem:[%s6688_s16 + $0x1a0] sm:$0xff] }
  0x34   : > { %v587_v41 = vpack.c.bf16 %v505_v34, %v504_v33  ;;  %v560_v4 = vpack.c.bf16 %v451_v60, %v450_v59  ;;  %v395_v59 = vld [vmem:[%s6688_s16 + $0x370] sm:$0xff]  ;;  %v396_v60 = vld [vmem:[%s6688_s16 + $0x378] sm:$0xff] }
  0x38   : > { %6057 = vmatmul.mubr.msk.bf16.gmra.mrb[12].mxu0 %vm638_vm0, %v549_v26  ;;  %6121 = vmatmul.mubr.msk.bf16.gmra.mrb[12].mxu1 %vm638_vm0, %v581_v43  ;;  %v377_v26 = vld [vmem:[%s6688_s16 + $0x2e0] sm:$0xff]  ;;  %v379_v43 = vld [vmem:[%s6688_s16 + $0x2f0] sm:$0xff] }
  0x39   : > { %6060 = vmatprep.mubr.msk.bf16.mxu0 %vm638_vm0, %v550_v30  ;;  %6124 = vmatprep.mubr.msk.bf16.mxu1 %vm638_vm0, %v582_v44  ;;  %v316_v30 = vld [vmem:[%s6688_s16 + $0xf8] sm:$0xff]  ;;  %v506_v35 = vmul.f32 %v377_v26, %v377_v26  ;;  %v508_v53 = vmul.f32 %v379_v43, %v379_v43  ;;  %v394_v43 = vld [vmem:[%s6688_s16 + $0x368] sm:$0xff] }
  0x3a   : > { %v445_v38 = vmul.f32 %v316_v30, %v316_v30  ;;  %v380_v44 = vld [vmem:[%s6688_s16 + $0x2f8] sm:$0xff]  ;;  %v517_v30 = vmul.f32 %v388_v20, %v388_v20  ;;  %v523_v52 = vmul.f32 %v394_v43, %v394_v43 }
  0x3b   : > { %v588_v42 = vpack.c.bf16 %v507_v36, %v506_v35  ;;  %v509_v54 = vmul.f32 %v380_v44, %v380_v44  ;;  %v328_v26 = vld [vmem:[%s6688_s16 + $0x158] sm:$0xff]  ;;  %v458_v35 = vmul.f32 %v329_v27, %v329_v27 }
  0x3c   : > { %v557_v45 = vpack.c.bf16 %v445_v38, %v444_v37  ;;  %v457_v34 = vmul.f32 %v328_v26, %v328_v26  ;;  %v593_v37 = vpack.c.bf16 %v517_v30, %v516_v29  ;;  %v342_v26 = vld [vmem:[%s6688_s16 + $0x1c8] sm:$0xff] }
  0x3d   : > { %v589_v61 = vpack.c.bf16 %v509_v54, %v508_v53  ;;  %v461_v54 = vmul.f32 %v332_v46, %v332_v46  ;;  %v346_v46 = vld [vmem:[%s6688_s16 + $0x1e8] sm:$0xff] }
  0x40   : > { %6061 = vmatmul.mubr.msk.bf16.gmra.mrb[16].mxu0 %vm638_vm0, %v551_v48  ;;  %6125 = vmatmul.mubr.msk.bf16.gmra.mrb[16].mxu1 %vm638_vm0, %v583_v3  ;;  %v558_v48 = vpack.c.bf16 %v447_v40, %v446_v39  ;;  %v386_v3 = vld [vmem:[%s6688_s16 + $0x328] sm:$0xff]  ;;  %v391_v39 = vld [vmem:[%s6688_s16 + $0x350] sm:$0xff]  ;;  %v392_v40 = vld [vmem:[%s6688_s16 + $0x358] sm:$0xff] }
  0x41   : > { %6064 = vmatprep.mubr.msk.bf16.mxu0 %vm638_vm0, %v552_v50  ;;  %6128 = vmatprep.mubr.msk.bf16.mxu1 %vm638_vm0, %v584_v8  ;;  %v320_v50 = vld [vmem:[%s6688_s16 + $0x118] sm:$0xff]  ;;  %v326_v8 = vld [vmem:[%s6688_s16 + $0x148] sm:$0xff]  ;;  %v520_v47 = vmul.f32 %v391_v39, %v391_v39 }
  0x42   : > { %v449_v58 = vmul.f32 %v320_v50, %v320_v50  ;;  %v455_v16 = vmul.f32 %v326_v8, %v326_v8  ;;  %v334_v50 = vld [vmem:[%s6688_s16 + $0x188] sm:$0xff] }
  0x43   : > { %v463_v56 = vmul.f32 %v334_v50, %v334_v50  ;;  %v406_v39 = vld [vmem:[%s6688_s16 + $0x3c8] sm:$0xff] }
  0x44   : > { %v559_v1 = vpack.c.bf16 %v449_v58, %v448_v57  ;;  %v562_v24 = vpack.c.bf16 %v455_v16, %v454_v15  ;;  %v399_v15 = vld [vmem:[%s6688_s16 + $0x390] sm:$0xff]  ;;  %v400_v16 = vld [vmem:[%s6688_s16 + $0x398] sm:$0xff] }
  0x45   : > { %v566_v0 = vpack.c.bf16 %v463_v56, %v462_v55  ;;  %v528_v23 = vmul.f32 %v399_v15, %v399_v15  ;;  %v407_v56 = vld [vmem:[%s6688_s16 + $0x3d0] sm:$0xff]  ;;  %v6207_v15 = vld [vmem:[%s10234_s5 + $0x8] sm:$0xff]  }
  0x48   : > { %6065 = vmatmul.mubr.msk.bf16.gmra.mrb[20].mxu0 %vm638_vm0, %v553_v9  ;;  %6129 = vmatmul.mubr.msk.bf16.gmra.mrb[20].mxu1 %vm638_vm0, %v585_v21  ;;  %v512_v9 = vmul.f32 %v383_v63, %v383_v63  ;;  %v561_v21 = vpack.c.bf16 %v453_v14, %v452_v13  ;;  %v398_v63 = vld [vmem:[%s6688_s16 + $0x388] sm:$0xff] }
  0x49   : > { %6068 = vmatprep.mubr.msk.bf16.mxu0 %vm638_vm0, %v554_v12  ;;  %6132 = vmatprep.mubr.msk.bf16.mxu1 %vm638_vm0, %v586_v22  ;;  %v515_v12 = vmul.f32 %v386_v3, %v386_v3  ;;  %v389_v22 = vld [vmem:[%s6688_s16 + $0x340] sm:$0xff]  ;;  %v524_v3 = vmul.f32 %v395_v59, %v395_v59  ;;  %v527_v8 = vmul.f32 %v398_v63, %v398_v63  ;;  %v348_v63 = vld [vmem:[%s6688_s16 + $0x1f8] sm:$0xff] }
  0x4a   : > { %v591_v17 = vpack.c.bf16 %v513_v10, %v512_v9  ;;  %v518_v31 = vmul.f32 %v389_v22, %v389_v22  ;;  %v465_v10 = vmul.f32 %v336_v2, %v336_v2  ;;  %v340_v22 = vld [vmem:[%s6688_s16 + $0x1b8] sm:$0xff]  ;;  %v409_v59 = vld [vmem:[%s6688_s16 + $0x3e0] sm:$0xff] }
  0x4b   : > { %v592_v18 = vpack.c.bf16 %v515_v12, %v514_v11  ;;  %v466_v11 = vmul.f32 %v337_v5, %v337_v5  ;;  %v467_v12 = vmul.f32 %v338_v6, %v338_v6  ;;  %v469_v30 = vmul.f32 %v340_v22, %v340_v22 }
  0x4c   : > { %v594_v38 = vpack.c.bf16 %v519_v32, %v518_v31  ;;  %v471_v32 = vmul.f32 %v342_v26, %v342_v26  ;;  %v538_v2 = vmul.f32 %v409_v59, %v409_v59  ;;  %v477_v5 = vmul.f32 %v348_v63, %v348_v63 }
  0x4d   : > { %v568_v20 = vpack.c.bf16 %v467_v12, %v466_v11 }
  0x50   : > { %6069 = vmatmul.mubr.msk.bf16.gmra.mrb[24].mxu0 %vm638_vm0, %v555_v25  ;;  %6133 = vmatmul.mubr.msk.bf16.gmra.mrb[24].mxu1 %vm638_vm0, %v587_v41  ;;  %v327_v25 = vld [vmem:[%s6688_s16 + $0x150] sm:$0xff] }
  0x51   : > { %6072 = vmatprep.mubr.msk.bf16.mxu0 %vm638_vm0, %v556_v28  ;;  %6136 = vmatprep.mubr.msk.bf16.mxu1 %vm638_vm0, %v588_v42  ;;  %v330_v28 = vld [vmem:[%s6688_s16 + $0x168] sm:$0xff]  ;;  %v456_v33 = vmul.f32 %v327_v25, %v327_v25  ;;  %v393_v42 = vld [vmem:[%s6688_s16 + $0x360] sm:$0xff] }
  0x52   : > { %v459_v36 = vmul.f32 %v330_v28, %v330_v28  ;;  %v522_v51 = vmul.f32 %v393_v42, %v393_v42  ;;  %v341_v25 = vld [vmem:[%s6688_s16 + $0x1c0] sm:$0xff]  ;;  %v531_v28 = vmul.f32 %v402_v19, %v402_v19  ;;  %v344_v42 = vld [vmem:[%s6688_s16 + $0x1d8] sm:$0xff] }
  0x53   : > { %v563_v41 = vpack.c.bf16 %v457_v34, %v456_v33  ;;  %v470_v31 = vmul.f32 %v341_v25, %v341_v25  ;;  %v473_v50 = vmul.f32 %v344_v42, %v344_v42 }
  0x54   : > { %v564_v44 = vpack.c.bf16 %v459_v36, %v458_v35  ;;  %v596_v58 = vpack.c.bf16 %v523_v52, %v522_v51  ;;  %v403_v35 = vld [vmem:[%s6688_s16 + $0x3b0] sm:$0xff]  ;;  %v404_v36 = vld [vmem:[%s6688_s16 + $0x3b8] sm:$0xff]  ;;  %v475_v52 = vmul.f32 %v346_v46, %v346_v46 }
  0x55   : > { %v532_v43 = vmul.f32 %v403_v35, %v403_v35 }
  0x58   : > { %6073 = vmatmul.mubr.msk.bf16.gmra.mrb[28].mxu0 %vm638_vm0, %v557_v45  ;;  %6137 = vmatmul.mubr.msk.bf16.gmra.mrb[28].mxu1 %vm638_vm0, %v589_v61  ;;  %v331_v45 = vld [vmem:[%s6688_s16 + $0x170] sm:$0xff] }
  0x59   : > { %6076 = vmatprep.mubr.msk.bf16.mxu0 %vm638_vm0, %v558_v48  ;;  %6140 = vmatprep.mubr.msk.bf16.mxu1 %vm638_vm0, %v590_v62  ;;  %v521_v48 = vmul.f32 %v392_v40, %v392_v40  ;;  %v460_v53 = vmul.f32 %v331_v45, %v331_v45  ;;  %v397_v62 = vld [vmem:[%s6688_s16 + $0x380] sm:$0xff]  ;;  %v570_v40 = vpack.c.bf16 %v471_v32, %v470_v31 }
  0x5a   : > { %v526_v7 = vmul.f32 %v397_v62, %v397_v62  ;;  %v345_v45 = vld [vmem:[%s6688_s16 + $0x1e0] sm:$0xff]  ;;  %v347_v62 = vld [vmem:[%s6688_s16 + $0x1f0] sm:$0xff] }
  0x5b   : > { %v595_v57 = vpack.c.bf16 %v521_v48, %v520_v47  ;;  %v565_v61 = vpack.c.bf16 %v461_v54, %v460_v53  ;;  %v535_v48 = vmul.f32 %v406_v39, %v406_v39  ;;  %v474_v51 = vmul.f32 %v345_v45, %v345_v45 }
  0x5c   : > { %v598_v14 = vpack.c.bf16 %v527_v8, %v526_v7  ;;  %v10237_v54 = vmov 0   ;;  %v411_v8 = vld [vmem:[%s6688_s16 + $0x3f0] sm:$0xff] }
  0x5d   : > { %4557 = vmatprep.subr.bf16.mxu0 %v10237_v54  ;;  %6189 = vset.pattern.permute.xlu0 %v10237_v54  ;;  %v540_v11 = vmul.f32 %v411_v8, %v411_v8 }
  0x60   : > { %6077 = vmatmul.mubr.msk.bf16.gmra.mrb[32].mxu0 %vm638_vm0, %v559_v1  ;;  %6141 = vmatmul.mubr.msk.bf16.gmra.mrb[32].mxu1 %vm638_vm0, %v591_v17  ;;  %v335_v1 = vld [vmem:[%s6688_s16 + $0x190] sm:$0xff] }
  0x61   : > { %6080 = vmatprep.mubr.msk.bf16.mxu0 %vm638_vm0, %v560_v4  ;;  %6144 = vmatprep.mubr.msk.bf16.mxu1 %vm638_vm0, %v592_v18  ;;  %v525_v4 = vmul.f32 %v396_v60, %v396_v60  ;;  %v464_v9 = vmul.f32 %v335_v1, %v335_v1  ;;  %v401_v18 = vld [vmem:[%s6688_s16 + $0x3a0] sm:$0xff]  ;;  %v410_v60 = vld [vmem:[%s6688_s16 + $0x3e8] sm:$0xff] }
  0x62   : > { %v530_v27 = vmul.f32 %v401_v18, %v401_v18 }
  0x63   : > { %v597_v13 = vpack.c.bf16 %v525_v4, %v524_v3  ;;  %v567_v17 = vpack.c.bf16 %v465_v10, %v464_v9  ;;  %v539_v3 = vmul.f32 %v410_v60, %v410_v60  ;;  %v476_v4 = vmul.f32 %v347_v62, %v347_v62  ;;  %v412_v9 = vld [vmem:[%s6688_s16 + $0x3f8] sm:$0xff] }
  0x64   : > { %v600_v34 = vpack.c.bf16 %v531_v28, %v530_v27  ;;  %v541_v12 = vmul.f32 %v412_v9, %v412_v9 }
  0x65   : > { %v604_v7 = vpack.c.bf16 %v539_v3, %v538_v2  ;;  %v573_v10 = vpack.c.bf16 %v477_v5, %v476_v4 }
  0x68   : > { %6081 = vmatmul.mubr.msk.bf16.gmra.mrb[36].mxu0 %vm638_vm0, %v561_v21  ;;  %6145 = vmatmul.mubr.msk.bf16.gmra.mrb[36].mxu1 %vm638_vm0, %v593_v37  ;;  %v339_v21 = vld [vmem:[%s6688_s16 + $0x1b0] sm:$0xff] }
  0x69   : > { %6084 = vmatprep.mubr.msk.bf16.mxu0 %vm638_vm0, %v562_v24  ;;  %6148 = vmatprep.mubr.msk.bf16.mxu1 %vm638_vm0, %v594_v38  ;;  %v529_v24 = vmul.f32 %v400_v16, %v400_v16  ;;  %v468_v29 = vmul.f32 %v339_v21, %v339_v21  ;;  %v405_v38 = vld [vmem:[%s6688_s16 + $0x3c0] sm:$0xff] }
  0x6a   : > { %v534_v47 = vmul.f32 %v405_v38, %v405_v38  ;;  %v6919_v16 = vld [vmem:[%s10231_s2] ss:$0 sm:$0xff] }
  0x6b   : > { %v599_v33 = vpack.c.bf16 %v529_v24, %v528_v23  ;;  %v569_v37 = vpack.c.bf16 %v469_v30, %v468_v29  ;;  %v6208_v24 = vld [vmem:[%s10234_s5 + $0x10] sm:$0xff]  }
  0x6c   : > { %v602_v55 = vpack.c.bf16 %v535_v48, %v534_v47 }
  0x70   : > { %6085 = vmatmul.mubr.msk.bf16.gmra.mrb[40].mxu0 %vm638_vm0, %v563_v41  ;;  %6149 = vmatmul.mubr.msk.bf16.gmra.mrb[40].mxu1 %vm638_vm0, %v595_v57  ;;  %v343_v41 = vld [vmem:[%s6688_s16 + $0x1d0] sm:$0xff]  ;;  %v408_v57 = vld [vmem:[%s6688_s16 + $0x3d8] sm:$0xff] }
  0x71   : > { %6088 = vmatprep.mubr.msk.bf16.mxu0 %vm638_vm0, %v564_v44  ;;  %6152 = vmatprep.mubr.msk.bf16.mxu1 %vm638_vm0, %v596_v58  ;;  %v533_v44 = vmul.f32 %v404_v36, %v404_v36  ;;  %v472_v49 = vmul.f32 %v343_v41, %v343_v41  ;;  %v537_v1 = vmul.f32 %v408_v57, %v408_v57 }
  0x73   : > { %v601_v53 = vpack.c.bf16 %v533_v44, %v532_v43  ;;  %v571_v58 = vpack.c.bf16 %v473_v50, %v472_v49 }
  0x78   : > { %6089 = vmatmul.mubr.msk.bf16.gmra.mrb[44].mxu0 %vm638_vm0, %v565_v61  ;;  %6153 = vmatmul.mubr.msk.bf16.gmra.mrb[44].mxu1 %vm638_vm0, %v597_v13  ;;  %v572_v61 = vpack.c.bf16 %v475_v52, %v474_v51  ;;  %v605_v13 = vpack.c.bf16 %v541_v12, %v540_v11 }
  0x79   : > { %6092 = vmatprep.mubr.msk.bf16.mxu0 %vm638_vm0, %v566_v0  ;;  %6156 = vmatprep.mubr.msk.bf16.mxu1 %vm638_vm0, %v598_v14  ;;  %v536_v0 = vmul.f32 %v407_v56, %v407_v56  ;;  %v6206_v14 = vld [vmem:[%s10234_s5] sm:$0xff]  }
  0x7a   : > { %4558 = vmatpush1.bf16.msra.mxu0 %v6206_v14  ;;  %v6210_v14 = vld [vmem:[%s10234_s5 + $0x20] sm:$0xff]  }
  0x7b   : > { %v603_v6 = vpack.c.bf16 %v537_v1, %v536_v0  ;;  %4559 = vmatprep.subr.bf16.mxu0 %v10237_v54 }
  0x7e   : > { %4560 = vmatpush1.bf16.msra.mxu0 %v6207_v15 }
  0x7f   : > { %4561 = vmatprep.subr.bf16.mxu0 %v10237_v54 }
  0x80   : > { %6093 = vmatmul.mubr.msk.bf16.gmra.mrb[48].mxu0 %vm638_vm0, %v567_v17  ;;  %6157 = vmatmul.mubr.msk.bf16.gmra.mrb[48].mxu1 %vm638_vm0, %v599_v33 }
  0x81   : > { %6096 = vmatprep.mubr.msk.bf16.mxu0 %vm638_vm0, %v568_v20  ;;  %6160 = vmatprep.mubr.msk.bf16.mxu1 %vm638_vm0, %v600_v34 }
  0x82   : > { %4562 = vmatpush1.bf16.msra.mxu0 %v6208_v24 }
  0x83   : > { %4563 = vmatprep.subr.bf16.mxu0 %v10237_v54 }
  0x88   : > { %6097 = vmatmul.mubr.msk.bf16.gmra.mrb[52].mxu0 %vm638_vm0, %v569_v37  ;;  %6161 = vmatmul.mubr.msk.bf16.gmra.mrb[52].mxu1 %vm638_vm0, %v601_v53 }
  0x89   : > { %6100 = vmatprep.mubr.msk.bf16.mxu0 %vm638_vm0, %v570_v40  ;;  %6164 = vmatprep.mubr.msk.bf16.mxu1 %vm638_vm0, %v602_v55  ;;  %v6209_v40 = vld [vmem:[%s10234_s5 + $0x18] sm:$0xff]  }
  0x8a   : > { %4564 = vmatpush1.bf16.msra.mxu0 %v6209_v40 }
  0x8b   : > { %4565 = vmatprep.subr.bf16.mxu0 %v10237_v54 }
  0x8e   : > { %4566 = vmatpush1.bf16.msra.mxu0 %v6210_v14  ;;  %v6211_v14 = vld [vmem:[%s10234_s5 + $0x28] sm:$0xff]  }
  0x8f   : > { %4567 = vmatprep.subr.bf16.mxu0 %v10237_v54 }
  0x90   : > { %6101 = vmatmul.mubr.msk.bf16.gmra.mrb[56].mxu0 %vm638_vm0, %v571_v58  ;;  %6165 = vmatmul.mubr.msk.bf16.gmra.mrb[56].mxu1 %vm638_vm0, %v603_v6 }
  0x91   : > { %6104 = vmatprep.mubr.msk.bf16.mxu0 %vm638_vm0, %v572_v61  ;;  %6168 = vmatprep.mubr.msk.bf16.mxu1 %vm638_vm0, %v604_v7 }
  0x92   : > { %4568 = vmatpush1.bf16.msra.mxu0 %v6211_v14  ;;  %v6212_v14 = vld [vmem:[%s10234_s5 + $0x30] sm:$0xff]  }
  0x93   : > { %4569 = vmatprep.subr.bf16.mxu0 %v10237_v54 }
  0x96   : > { %4570 = vmatpush1.bf16.msra.mxu0 %v6212_v14 }
  0x97   : > { %4571 = vmatprep.subr.bf16.mxu0 %v10237_v54 }
  0x98   : > { %6105 = vmatmul.mubr.msk.bf16.gmra.mrb[60].mxu0 %vm638_vm0, %v573_v10  ;;  %6169 = vmatmul.mubr.msk.bf16.gmra.mrb[60].mxu1 %vm638_vm0, %v605_v13 }
  0x99   : > { %2882 = vmatprep.mubr.bf16.mxu1 %v10237_v54 }
  0xf3   : > { %v6046_v17 = vpop.f32.mrb[0].mxu0  ;;  %v6110_v26 = vpop.f32.mrb[0].mxu1 }
  0xf4   : > { %v6923_v18 = vadd.f32 %v6046_v17, %v6919_v16  ;;  %v865_v19 = vpop.f32.mrb[1].mxu0  ;;  %v1121_v27 = vpop.f32.mrb[1].mxu1  ;;  %v6944_v29 = vadd.f32 %v6110_v26, %v6919_v16  ;;  %v6480_v26 = vld [vmem:[%s6688_s16 + $0x18] sm:$0xff] }
  0xf5   : > { %v6926_v20 = vadd.f32 %v6919_v16, %v865_v19  ;;  %v6047_v21 = vpop.f32.mrb[2].mxu0  ;;  %v6111_v30 = vpop.f32.mrb[2].mxu1  ;;  %v6973_v43 = vadd.f32 %v6919_v16, %v1121_v27  ;;  %v6478_v19 = vld [vmem:[%s6688_s16] sm:$0xff] }
  0xf6   : > { %6222 = vrsqrt.f32 %v6923_v18  ;;  %v6930_v22 = vadd.f32 %v6047_v21, %v6919_v16  ;;  %v868_v23 = vpop.f32.mrb[3].mxu0  ;;  %vm1526_vm1 = vcmp.eq.f32.partialorder %v6923_v18, inf  ;;  %10331 = vst [vmem:[#allocation3_spill] sm:$0xff] %v6944_v29  ;;  %vm1528_vm4 = vcmp.eq.f32.partialorder %v6923_v18, 0.0  ;;  %v1124_v33 = vpop.f32.mrb[3].mxu1 }
  0xf7   : > { %6224 = vrsqrt.f32 %v6926_v20  ;;  %v6938_v25 = vadd.f32 %v6919_v16, %v868_v23  ;;  %vm1512_vm2 = vcmp.eq.f32.partialorder %v6926_v20, inf  ;;  %vm1514_vm3 = vcmp.eq.f32.partialorder %v6926_v20, 0.0  ;;  %10332 = vst [vmem:[#allocation4_spill] sm:$0xff] %v6973_v43  ;;  %v6479_v23 = vld [vmem:[%s6688_s16 + $0x10] sm:$0xff] }
  0xf8   : > { %6226 = vrsqrt.f32 %v6930_v22  ;;  %v1515_v34 = vand.u32 2147483648, %v6926_v20  ;;  %v1529_v37 = vand.u32 2147483648, %v6923_v18  ;;  %vm1533_vm5 = vcmp.eq.f32.partialorder %v6930_v22, inf }
  0xf9   : > { %6228 = vrsqrt.f32 %v6938_v25  ;;  %vm1535_vm6 = vcmp.eq.f32.partialorder %v6930_v22, 0.0  ;;  %v1536_v42 = vand.u32 2147483648, %v6930_v22  ;;  %vm1519_vm7 = vcmp.eq.f32.partialorder %v6938_v25, inf }
  0xfa   : > { %6230 = vrsqrt.f32 %v6944_v29  ;;  %vm1521_vm8 = vcmp.eq.f32.partialorder %v6938_v25, 0.0  ;;  %v6979_v45 = vadd.f32 %v6111_v30, %v6919_v16  ;;  %v1522_v47 = vand.u32 2147483648, %v6938_v25  ;;  %v6481_v30 = vld [vmem:[%s6688_s16 + $0x8] sm:$0xff] }
  0xfb   : > { %v6050_v28 = vpop.f32.mrb[4].mxu0  ;;  %v6985_v49 = vadd.f32 %v6919_v16, %v1124_v33  ;;  %v6114_v50 = vpop.f32.mrb[4].mxu1 }
  0xfc   : > { %v6949_v31 = vadd.f32 %v6050_v28, %v6919_v16  ;;  %v881_v32 = vpop.f32.mrb[5].mxu0  ;;  %10333 = vst [vmem:[#allocation5_spill] sm:$0xff] %v6979_v45  ;;  %v6993_v57 = vpop.f32.mrb[5].mxu1  ;;  %v7037_v13 = vadd.f32 %v6114_v50, %v6919_v16 }
  0xfd   : > { %v6954_v35 = vadd.f32 %v6919_v16, %v881_v32  ;;  %v6051_v36 = vpop.f32.mrb[6].mxu0  ;;  %10334 = vst [vmem:[#allocation6_spill] sm:$0xff] %v6985_v49  ;;  %v7003_v62 = vpop.f32.mrb[6].mxu1 }
  0xfe   : > { %6232 = vrsqrt.f32 %v6949_v31  ;;  %v6960_v38 = vadd.f32 %v6051_v36, %v6919_v16  ;;  %v884_v39 = vpop.f32.mrb[7].mxu0  ;;  %vm1554_vm9 = vcmp.eq.f32.partialorder %v6949_v31, inf  ;;  %v1557_v56 = vand.u32 2147483648, %v6949_v31  ;;  %v7016_v4 = vpop.f32.mrb[7].mxu1  ;;  %10335 = vst [vmem:[#allocation7_spill] sm:$0xff] %v7037_v13 }
  0xff   : > { %6234 = vrsqrt.f32 %v6954_v35  ;;  %v6969_v41 = vadd.f32 %v6919_v16, %v884_v39  ;;  %v1543_v53 = vand.u32 2147483648, %v6954_v35  ;;  %vm1540_vm10 = vcmp.eq.f32.partialorder %v6954_v35, inf }
 0x100   : > { %v6223_v44 = vpop.eup %6222  ;;  %6236 = vrsqrt.f32 %v6960_v38  ;;  %vm1556_vm11 = vcmp.eq.f32.partialorder %v6949_v31, 0.0  ;;  %v1564_v61 = vand.u32 2147483648, %v6960_v38  ;;  %vm1542_vm12 = vcmp.eq.f32.partialorder %v6954_v35, 0.0 }
 0x101   : > { %v6225_v46 = vpop.eup %6224  ;;  %6238 = vrsqrt.f32 %v6969_v41  ;;  %v1525_v48 = vmul.f32 %v6223_v44, %v6923_v18  ;;  %v1550_v55 = vand.u32 2147483648, %v6969_v41  ;;  %vm1561_vm13 = vcmp.eq.f32.partialorder %v6960_v38, inf }
 0x102   : > { %v6227_v51 = vpop.eup %6226  ;;  %v1511_v52 = vmul.f32 %v6225_v46, %v6926_v20  ;;  %6240 = vrsqrt.f32 %v6973_v43  ;;  %vm1547_vm14 = vcmp.eq.f32.partialorder %v6969_v41, inf  ;;  %vm1549_vm15 = vcmp.eq.f32.partialorder %v6969_v41, 0.0 }
 0x103   : > { %v6054_v58 = vpop.f32.mrb[8].mxu0  ;;  %v1527_v59 = vsel %vm1526_vm1, %v6923_v18, %v1525_v48  ;;  %v1532_v60 = vmul.f32 %v6227_v51, %v6930_v22  ;;  %v6229_v63 = vpop.eup %6228  ;;  %6242 = vrsqrt.f32 %v6979_v45  ;;  %vm1563_vm1 = vcmp.eq.f32.partialorder %v6960_v38, 0.0 }
 0x104   : > { %v1513_v0 = vsel %vm1512_vm2, %v6926_v20, %v1511_v52  ;;  %v7009_v1 = vadd.f32 %v6054_v58, %v6919_v16  ;;  %v897_v2 = vpop.f32.mrb[9].mxu0  ;;  %v1530_v3 = vsel %vm1528_vm4, %v1529_v37, %v1527_v59  ;;  %v1518_v5 = vmul.f32 %v6229_v63, %v6938_v25  ;;  %v7042_v15 = vpop.eup %6230 }
 0x105   : > { %v7020_v6 = vadd.f32 %v6919_v16, %v897_v2  ;;  %v6055_v7 = vpop.f32.mrb[10].mxu0  ;;  %v1516_v8 = vsel %vm1514_vm3, %v1515_v34, %v1513_v0  ;;  %v1534_v9 = vsel %vm1533_vm5, %v6930_v22, %v1532_v60  ;;  %10336 = vst [vmem:[#allocation8_spill] sm:$0xff] %v7042_v15  ;;  %v7056_v24 = vmul.f32 %v6479_v23, %v1530_v3  ;;  %v7065_v34 = vpop.f32.mrb[8].mxu1 }
 0x106   : > { %6244 = vrsqrt.f32 %v7009_v1  ;;  %v7030_v10 = vadd.f32 %v6055_v7, %v6919_v16  ;;  %v900_v11 = vpop.f32.mrb[11].mxu0  ;;  %v1537_v12 = vsel %vm1535_vm6, %v1536_v42, %v1534_v9  ;;  %v1520_v17 = vsel %vm1519_vm7, %v6938_v25, %v1518_v5  ;;  %v7073_v40 = vpop.f32.mrb[9].mxu1 }
 0x107   : > { %6246 = vrsqrt.f32 %v7020_v6  ;;  %v7049_v18 = vadd.f32 %v6919_v16, %v900_v11  ;;  %v2406_v20 = vmul.f32 %v6478_v19, %v1516_v8  ;;  %v1523_v22 = vsel %vm1521_vm8, %v1522_v47, %v1520_v17  ;;  %v7080_v50 = vpop.f32.mrb[10].mxu1  ;;  %v6483_v11 = vld [vmem:[%s6688_s16 + $0x20] sm:$0xff] }
 0x108   : > { %v6233_v21 = vpop.eup %6232  ;;  %6248 = vrsqrt.f32 %v7030_v10  ;;  %v7059_v27 = vmul.f32 %v6480_v26, %v1537_v12  ;;  %v2407_v32 = vmul.f32 %v6481_v30, %v1523_v22  ;;  %vm1568_vm2 = vcmp.eq.f32.partialorder %v7020_v6, inf  ;;  %v7094_v63 = vpop.f32.mrb[11].mxu1  ;;  %v6484_v22 = vld [vmem:[%s6688_s16 + $0x28] sm:$0xff]  ;;  %v6485_v26 = vld [vmem:[%s6688_s16 + $0x38] sm:$0xff] }
 0x109   : > { %v6235_v28 = vpop.eup %6234  ;;  %6250 = vrsqrt.f32 %v7049_v18  ;;  %v1553_v33 = vmul.f32 %v6233_v21, %v6949_v31  ;;  %vm1570_vm3 = vcmp.eq.f32.partialorder %v7020_v6, 0.0  ;;  %v1571_v39 = vand.u32 2147483648, %v7020_v6 }
 0x10a   : > { %v6237_v25 = vpop.eup %6236  ;;  %v2535_v36 = vpack.c.bf16 %v7059_v27, %v7056_v24  ;;  %v1539_v37 = vmul.f32 %v6235_v28, %v6954_v35  ;;  %v2534_v44 = vpack.c.bf16 %v2407_v32, %v2406_v20  ;;  %vm1575_vm4 = vcmp.eq.f32.partialorder %v7049_v18, inf }
 0x10b   : > { %v6239_v42 = vpop.eup %6238  ;;  %v6058_v46 = vpop.f32.mrb[12].mxu0  ;;  %v1555_v47 = vsel %vm1554_vm9, %v6949_v31, %v1553_v33  ;;  %v1560_v48 = vmul.f32 %v6237_v25, %v6960_v38  ;;  %vm1577_vm5 = vcmp.eq.f32.partialorder %v7049_v18, 0.0  ;;  %v1578_v30 = vand.u32 2147483648, %v7049_v18 }
 0x10c   : > { %v7083_v51 = vadd.f32 %v6058_v46, %v6919_v16  ;;  %v913_v52 = vpop.f32.mrb[13].mxu0  ;;  %v1541_v58 = vsel %vm1540_vm10, %v6954_v35, %v1539_v37  ;;  %v1546_v59 = vmul.f32 %v6239_v42, %v6969_v41  ;;  %v1558_v60 = vsel %vm1556_vm11, %v1557_v56, %v1555_v47  ;;  %v7096_v0 = vpop.eup %6240  ;;  %5885 = vmatmul.mubr.msk.bf16.vlgmr.msra.gmra.mrb[64].mxu1 %vm638_vm0, %v2534_v44  ;;  %v6482_v56 = vld [vmem:[%s6688_s16 + $0x30] sm:$0xff] }
 0x10d   : > { %10337 = vst [vmem:[#allocation9_spill] sm:$0xff] %v7096_v0  ;;  %v7100_v2 = vadd.f32 %v6919_v16, %v913_v52  ;;  %v6059_v3 = vpop.f32.mrb[14].mxu0  ;;  %v1544_v5 = vsel %vm1542_vm12, %v1543_v53, %v1541_v58  ;;  %v1562_v31 = vsel %vm1561_vm13, %v6960_v38, %v1560_v48  ;;  %v7110_v7 = vmul.f32 %v6482_v56, %v1558_v60  ;;  %v7112_v8 = vpop.eup %6242  ;;  %v6498_v0 = vld [vmem:[%s6688_s16 + $0xa0] sm:$0xff] }
 0x10e   : > { %10338 = vst [vmem:[#allocation10_spill] sm:$0xff] %v7112_v8  ;;  %6252 = vrsqrt.f32 %v7083_v51  ;;  %2892 = vmatprep.mubr.bf16.mxu1 %v10237_v54  ;;  %v7117_v9 = vadd.f32 %v6059_v3, %v6919_v16  ;;  %v916_v35 = vpop.f32.mrb[15].mxu0  ;;  %v1548_v53 = vsel %vm1547_vm14, %v6969_v41, %v1546_v59  ;;  %v7123_v12 = vmul.f32 %v6483_v11, %v1544_v5  ;;  %v7152_v38 = vpop.f32.mrb[12].mxu1 }
 0x10f   : > { %6254 = vrsqrt.f32 %v7100_v2  ;;  %v7130_v17 = vadd.f32 %v6919_v16, %v916_v35  ;;  %v1551_v19 = vsel %vm1549_vm15, %v1550_v55, %v1548_v53  ;;  %v1565_v20 = vsel %vm1563_vm1, %v1564_v61, %v1562_v31  ;;  %v7161_v42 = vpop.f32.mrb[13].mxu1 }
 0x110   : > { %v6245_v21 = vpop.eup %6244  ;;  %6256 = vrsqrt.f32 %v7117_v9  ;;  %v7142_v23 = vmul.f32 %v6484_v22, %v1551_v19  ;;  %v7145_v28 = vmul.f32 %v6485_v26, %v1565_v20  ;;  %vm1582_vm6 = vcmp.eq.f32.partialorder %v7009_v1, inf  ;;  %v7167_v52 = vpop.f32.mrb[14].mxu1  ;;  %v6487_v26 = vld [vmem:[%s6688_s16 + $0x48] sm:$0xff] }
 0x111   : > { %v6247_v32 = vpop.eup %6246  ;;  %6258 = vrsqrt.f32 %v7130_v17  ;;  %v1581_v41 = vmul.f32 %v6245_v21, %v7009_v1  ;;  %vm1584_vm7 = vcmp.eq.f32.partialorder %v7009_v1, 0.0  ;;  %v1585_v37 = vand.u32 2147483648, %v7009_v1  ;;  %v7178_v31 = vpop.f32.mrb[15].mxu1 }
 0x112   : > { %v6249_v55 = vpop.eup %6248  ;;  %v2536_v61 = vpack.c.bf16 %v7142_v23, %v7123_v12  ;;  %v2537_v33 = vpack.c.bf16 %v7145_v28, %v7110_v7  ;;  %v1567_v25 = vmul.f32 %v6247_v32, %v7020_v6  ;;  %vm1589_vm8 = vcmp.eq.f32.partialorder %v7030_v10, inf }
 0x113   : > { %v6251_v44 = vpop.eup %6250  ;;  %v6062_v46 = vpop.f32.mrb[16].mxu0  ;;  %v1583_v47 = vsel %vm1582_vm6, %v7009_v1, %v1581_v41  ;;  %v1588_v48 = vmul.f32 %v6249_v55, %v7030_v10  ;;  %vm1591_vm9 = vcmp.eq.f32.partialorder %v7030_v10, 0.0  ;;  %v1592_v1 = vand.u32 2147483648, %v7030_v10  ;;  %v6488_v41 = vld [vmem:[%s6688_s16 + $0x50] sm:$0xff] }
 0x114   : > { %v7170_v58 = vadd.f32 %v6062_v46, %v6919_v16  ;;  %v929_v59 = vpop.f32.mrb[17].mxu0  ;;  %v1569_v60 = vsel %vm1568_vm2, %v7020_v6, %v1567_v25  ;;  %v1574_v3 = vmul.f32 %v6251_v44, %v7049_v18  ;;  %v1586_v5 = vsel %vm1584_vm7, %v1585_v37, %v1583_v47  ;;  %5886 = vmatmul.mubr.msk.bf16.gmra.mrb[68].mxu1 %vm638_vm0, %v2535_v36  ;;  %v6486_v36 = vld [vmem:[%s6688_s16 + $0x40] sm:$0xff]  ;;  %v6489_v25 = vld [vmem:[%s6688_s16 + $0x58] sm:$0xff] }
 0x115   : > { %v7185_v56 = vadd.f32 %v6919_v16, %v929_v59  ;;  %v6063_v35 = vpop.f32.mrb[18].mxu0  ;;  %v1572_v53 = vsel %vm1570_vm3, %v1571_v39, %v1569_v60  ;;  %v1590_v11 = vsel %vm1589_vm8, %v7030_v10, %v1588_v48  ;;  %2902 = vmatprep.mubr.bf16.mxu1 %v10237_v54  ;;  %v7220_v55 = vmul.f32 %v6488_v41, %v1586_v5  ;;  %v6490_v41 = vld [vmem:[%s6688_s16 + $0x60] sm:$0xff] }
 0x116   : > { %6260 = vrsqrt.f32 %v7170_v58  ;;  %v7196_v24 = vadd.f32 %v6063_v35, %v6919_v16  ;;  %v932_v27 = vpop.f32.mrb[19].mxu0  ;;  %v1576_v6 = vsel %vm1575_vm4, %v7049_v18, %v1574_v3  ;;  %v7202_v39 = vmul.f32 %v6486_v36, %v1572_v53  ;;  %v7229_v18 = vpop.f32.mrb[16].mxu1 }
 0x117   : > { %6262 = vrsqrt.f32 %v7185_v56  ;;  %v7209_v19 = vadd.f32 %v6919_v16, %v932_v27  ;;  %v1579_v20 = vsel %vm1577_vm5, %v1578_v30, %v1576_v6  ;;  %v1593_v21 = vsel %vm1591_vm9, %v1592_v1, %v1590_v11  ;;  %v7238_v59 = vpop.f32.mrb[17].mxu1 }
 0x118   : > { %v6253_v22 = vpop.eup %6252  ;;  %6264 = vrsqrt.f32 %v7196_v24  ;;  %v7217_v32 = vmul.f32 %v6487_v26, %v1579_v20  ;;  %v7223_v37 = vmul.f32 %v6489_v25, %v1593_v21  ;;  %vm1596_vm10 = vcmp.eq.f32.partialorder %v7100_v2, inf  ;;  %v7244_v53 = vpop.f32.mrb[18].mxu1  ;;  %v6213_v25 = vld [vmem:[%s10234_s5 + $0x38] sm:$0xff]  }
 0x119   : > { %v6255_v44 = vpop.eup %6254  ;;  %6266 = vrsqrt.f32 %v7209_v19  ;;  %vm1598_vm11 = vcmp.eq.f32.partialorder %v7100_v2, 0.0  ;;  %v1599_v10 = vand.u32 2147483648, %v7100_v2  ;;  %vm1603_vm12 = vcmp.eq.f32.partialorder %v7130_v17, inf  ;;  %v7254_v36 = vpop.f32.mrb[19].mxu1  ;;  %4572 = vmatpush1.bf16.msra.mxu0 %v6213_v25 }
 0x11a   : > { %v6257_v30 = vpop.eup %6256  ;;  %v1595_v48 = vmul.f32 %v6255_v44, %v7100_v2  ;;  %vm1605_vm13 = vcmp.eq.f32.partialorder %v7130_v17, 0.0  ;;  %v1606_v5 = vand.u32 2147483648, %v7130_v17  ;;  %v1609_v35 = vmul.f32 %v6253_v22, %v7083_v51  ;;  %4573 = vmatprep.subr.bf16.mxu0 %v10237_v54 }
 0x11b   : > { %v6259_v60 = vpop.eup %6258  ;;  %v6066_v3 = vpop.f32.mrb[20].mxu0  ;;  %vm1610_vm14 = vcmp.eq.f32.partialorder %v7083_v51, inf  ;;  %vm1612_vm15 = vcmp.eq.f32.partialorder %v7083_v51, 0.0  ;;  %v1613_v26 = vand.u32 2147483648, %v7083_v51  ;;  %vm1617_vm1 = vcmp.eq.f32.partialorder %v7117_v9, inf }
 0x11c   : > { %v7247_v11 = vadd.f32 %v6066_v3, %v6919_v16  ;;  %v945_v1 = vpop.f32.mrb[21].mxu0  ;;  %v1597_v27 = vsel %vm1596_vm10, %v7100_v2, %v1595_v48  ;;  %v1602_v6 = vmul.f32 %v6259_v60, %v7130_v17  ;;  %5887 = vmatmul.mubr.msk.bf16.gmra.mrb[72].mxu1 %vm638_vm0, %v2536_v61  ;;  %v1611_v22 = vsel %vm1610_vm14, %v7083_v51, %v1609_v35  ;;  %v6491_v3 = vld [vmem:[%s6688_s16 + $0x68] sm:$0xff]  ;;  %v6492_v51 = vld [vmem:[%s6688_s16 + $0x70] sm:$0xff] }
 0x11d   : > { %v7261_v14 = vadd.f32 %v6919_v16, %v945_v1  ;;  %v6067_v20 = vpop.f32.mrb[22].mxu0  ;;  %v1600_v21 = vsel %vm1598_vm11, %v1599_v10, %v1597_v27  ;;  %2912 = vmatprep.mubr.bf16.mxu1 %v10237_v54  ;;  %v1614_v48 = vsel %vm1612_vm15, %v1613_v26, %v1611_v22  ;;  %v1616_v1 = vmul.f32 %v6257_v30, %v7117_v9 }
 0x11e   : > { %6268 = vrsqrt.f32 %v7247_v11  ;;  %v7270_v12 = vadd.f32 %v6067_v20, %v6919_v16  ;;  %v948_v23 = vpop.f32.mrb[23].mxu0  ;;  %v1604_v61 = vsel %vm1603_vm12, %v7130_v17, %v1602_v6  ;;  %v7276_v2 = vmul.f32 %v6490_v41, %v1600_v21  ;;  %v7301_v6 = vpop.f32.mrb[20].mxu1 }
 0x11f   : > { %6270 = vrsqrt.f32 %v7261_v14  ;;  %v7283_v44 = vadd.f32 %v6919_v16, %v948_v23  ;;  %v1607_v10 = vsel %vm1605_vm13, %v1606_v5, %v1604_v61  ;;  %vm1619_vm2 = vcmp.eq.f32.partialorder %v7117_v9, 0.0  ;;  %v7309_v26 = vpop.f32.mrb[21].mxu1 }
 0x120   : > { %v6261_v60 = vpop.eup %6260  ;;  %6272 = vrsqrt.f32 %v7270_v12  ;;  %v7291_v35 = vmul.f32 %v6491_v3, %v1607_v10  ;;  %v1620_v17 = vand.u32 2147483648, %v7117_v9  ;;  %v7299_v5 = vmul.f32 %v6492_v51, %v1614_v48  ;;  %v7314_v10 = vpop.f32.mrb[22].mxu1  ;;  %v6493_v3 = vld [vmem:[%s6688_s16 + $0x78] sm:$0xff] }
 0x121   : > { %v6263_v27 = vpop.eup %6262  ;;  %6274 = vrsqrt.f32 %v7283_v44  ;;  %v1618_v21 = vsel %vm1617_vm1, %v7117_v9, %v1616_v1  ;;  %vm1624_vm3 = vcmp.eq.f32.partialorder %v7185_v56, inf  ;;  %vm1626_vm4 = vcmp.eq.f32.partialorder %v7185_v56, 0.0 }
 0x122   : > { %v6265_v20 = vpop.eup %6264  ;;  %v1623_v22 = vmul.f32 %v6263_v27, %v7185_v56  ;;  %v1621_v41 = vsel %vm1619_vm2, %v1620_v17, %v1618_v21  ;;  %v1627_v25 = vand.u32 2147483648, %v7185_v56  ;;  %vm1631_vm5 = vcmp.eq.f32.partialorder %v7209_v19, inf  ;;  %v7324_v17 = vpop.f32.mrb[23].mxu1 }
 0x123   : > { %v6267_v23 = vpop.eup %6266  ;;  %v6070_v61 = vpop.f32.mrb[24].mxu0  ;;  %v7320_v1 = vmul.f32 %v6493_v3, %v1621_v41  ;;  %vm1633_vm6 = vcmp.eq.f32.partialorder %v7209_v19, 0.0  ;;  %vm1638_vm7 = vcmp.eq.f32.partialorder %v7170_v58, inf  ;;  %vm1640_vm8 = vcmp.eq.f32.partialorder %v7170_v58, 0.0 }
 0x124   : > { %v7317_v48 = vadd.f32 %v6070_v61, %v6919_v16  ;;  %v961_v9 = vpop.f32.mrb[25].mxu0  ;;  %v1625_v27 = vsel %vm1624_vm3, %v7185_v56, %v1623_v22  ;;  %v1630_v51 = vmul.f32 %v6267_v23, %v7209_v19  ;;  %5888 = vmatmul.mubr.msk.bf16.gmra.mrb[76].mxu1 %vm638_vm0, %v2537_v33  ;;  %v1634_v56 = vand.u32 2147483648, %v7209_v19  ;;  %v6214_v23 = vld [vmem:[%s10234_s5 + $0x40] sm:$0xff]  }
 0x125   : > { %v7331_v21 = vadd.f32 %v6919_v16, %v961_v9  ;;  %v6071_v61 = vpop.f32.mrb[26].mxu0  ;;  %v1628_v30 = vsel %vm1626_vm4, %v1627_v25, %v1625_v27  ;;  %2922 = vmatprep.mubr.bf16.mxu1 %v10237_v54  ;;  %v6494_v9 = vld [vmem:[%s6688_s16 + $0x80] sm:$0xff]  ;;  %4574 = vmatpush1.bf16.msra.mxu0 %v6214_v23  ;;  %vm1645_vm9 = vcmp.eq.f32.partialorder %v7196_v24, inf  ;;  %vm1647_vm10 = vcmp.eq.f32.partialorder %v7196_v24, 0.0 }
 0x126   : > { %6276 = vrsqrt.f32 %v7317_v48  ;;  %v7340_v28 = vadd.f32 %v6071_v61, %v6919_v16  ;;  %v964_v33 = vpop.f32.mrb[27].mxu0  ;;  %v1632_v22 = vsel %vm1631_vm5, %v7209_v19, %v1630_v51  ;;  %v7353_v3 = vmul.f32 %v6494_v9, %v1628_v30  ;;  %v6495_v61 = vld [vmem:[%s6688_s16 + $0x88] sm:$0xff]  ;;  %4575 = vmatprep.subr.bf16.mxu0 %v10237_v54 }
 0x127   : > { %6278 = vrsqrt.f32 %v7331_v21  ;;  %v7350_v41 = vadd.f32 %v6919_v16, %v964_v33  ;;  %v1635_v25 = vsel %vm1633_vm6, %v1634_v56, %v1632_v22  ;;  %v1637_v19 = vmul.f32 %v6261_v60, %v7170_v58  ;;  %v7367_v33 = vpop.f32.mrb[24].mxu1 }
 0x128   : > { %v7355_v27 = vpop.eup %6268  ;;  %6280 = vrsqrt.f32 %v7340_v28  ;;  %v7359_v7 = vmul.f32 %v6495_v61, %v1635_v25  ;;  %v1641_v30 = vand.u32 2147483648, %v7170_v58  ;;  %v1644_v56 = vmul.f32 %v6265_v20, %v7196_v24  ;;  %v7377_v25 = vpop.f32.mrb[25].mxu1 }
 0x129   : > { %v6271_v51 = vpop.eup %6270  ;;  %6282 = vrsqrt.f32 %v7350_v41  ;;  %v1639_v23 = vsel %vm1638_vm7, %v7170_v58, %v1637_v19  ;;  %v1648_v54 = vand.u32 2147483648, %v7196_v24  ;;  %v7382_v46 = vpop.f32.mrb[26].mxu1  ;;  %v6496_v19 = vld [vmem:[%s6688_s16 + $0x90] sm:$0xff]  ;;  %vm1652_vm11 = vcmp.eq.f32.partialorder %v7261_v14, inf }
 0x12a   : > { %v7370_v22 = vpop.eup %6272  ;;  %6284 = vrsqrt.f32 %v6985_v49  ;;  %v1642_v61 = vsel %vm1640_vm8, %v1641_v30, %v1639_v23  ;;  %v1646_v47 = vsel %vm1645_vm9, %v7196_v24, %v1644_v56  ;;  %v7393_v30 = vadd.f32 %v6919_v16, %v6993_v57  ;;  %v7395_v56 = vpop.f32.mrb[27].mxu1 }
 0x12b   : > { %v6275_v9 = vpop.eup %6274  ;;  %v6074_v20 = vpop.f32.mrb[28].mxu0  ;;  %v7388_v8 = vmul.f32 %v6496_v19, %v1642_v61  ;;  %6286 = vrsqrt.f32 %v7037_v13  ;;  %v10340_v24 = vpack.c.bf16 %v7217_v32, %v7202_v39  ;;  %v7406_v61 = vadd.f32 %v7003_v62, %v6919_v16  ;;  %v6497_v39 = vld [vmem:[%s6688_s16 + $0x98] sm:$0xff]  ;;  %v6215_v62 = vld [vmem:[%s10234_s5 + $0x48] sm:$0xff]  }
 0x12c   : > { %v7385_v60 = vadd.f32 %v6074_v20, %v6919_v16  ;;  %v977_v58 = vpop.f32.mrb[29].mxu0  ;;  %10339 = vst [vmem:[#allocation11_spill] sm:$0xff] %v7393_v30  ;;  %v1649_v20 = vsel %vm1647_vm10, %v1648_v54, %v1646_v47  ;;  %v7410_v57 = vadd.f32 %v6919_v16, %v7016_v4  ;;  %v10343_v19 = vmov 0   ;;  %4576 = vmatpush1.bf16.msra.mxu0 %v6215_v62  ;;  %v7443_v13 = vpop.f32.mrb[28].mxu1 }
 0x12d   : > { %5889 = vmatmul.mubr.msk.bf16.gmra.mrb[80].mxu1 %vm638_vm0, %v10340_v24  ;;  %v7402_v23 = vadd.f32 %v6919_v16, %v977_v58  ;;  %v6075_v45 = vpop.f32.mrb[30].mxu0  ;;  %10341 = vst [vmem:[#allocation12_spill] sm:$0xff] %v7406_v61  ;;  %v7415_v32 = vmul.f32 %v6497_v39, %v1649_v20  ;;  %v1651_v47 = vmul.f32 %v6271_v51, %v7261_v14  ;;  %vm1654_vm12 = vcmp.eq.f32.partialorder %v7261_v14, 0.0  ;;  %v7456_v15 = vpop.f32.mrb[29].mxu1 }
 0x12e   : > { %10342 = vst [vmem:[#allocation13_spill] sm:$0xff] %v7410_v57  ;;  %2932 = vmatprep.mubr.bf16.mxu1 %v10343_v19  ;;  %6288 = vrsqrt.f32 %v7385_v60  ;;  %v7418_v58 = vadd.f32 %v6075_v45, %v6919_v16  ;;  %v980_v54 = vpop.f32.mrb[31].mxu0  ;;  %v1655_v20 = vand.u32 2147483648, %v7261_v14  ;;  %vm1659_vm13 = vcmp.eq.f32.partialorder %v7283_v44, inf  ;;  %4577 = vmatprep.subr.bf16.mxu0 %v10343_v19 }
 0x12f   : > { %6290 = vrsqrt.f32 %v7402_v23  ;;  %v7426_v4 = vadd.f32 %v6919_v16, %v980_v54  ;;  %v1653_v51 = vsel %vm1652_vm11, %v7261_v14, %v1651_v47  ;;  %v1658_v54 = vmul.f32 %v6275_v9, %v7283_v44 }
 0x130   : > { %v7430_v24 = vpop.eup %6276  ;;  %6292 = vrsqrt.f32 %v7418_v58  ;;  %vm1661_vm14 = vcmp.eq.f32.partialorder %v7283_v44, 0.0  ;;  %v1656_v47 = vsel %vm1654_vm12, %v1655_v20, %v1653_v51  ;;  %v1662_v62 = vand.u32 2147483648, %v7283_v44  ;;  %v7469_v20 = vpop.f32.mrb[30].mxu1 }
 0x131   : > { %v7437_v39 = vpop.eup %6278  ;;  %6294 = vrsqrt.f32 %v7426_v4  ;;  %v7454_v9 = vadd.f32 %v7065_v34, %v6919_v16  ;;  %v1660_v49 = vsel %vm1659_vm13, %v7283_v44, %v1658_v54  ;;  %v7467_v14 = vadd.f32 %v6919_v16, %v7073_v40 }
 0x132   : > { %v7446_v45 = vpop.eup %6280  ;;  %6296 = vrsqrt.f32 %v7393_v30  ;;  %v7463_v30 = vmul.f32 %v6498_v0, %v1656_v47  ;;  %v1663_v43 = vsel %vm1661_vm14, %v1662_v62, %v1660_v49  ;;  %v7478_v54 = vadd.f32 %v7080_v50, %v6919_v16  ;;  %v7484_v47 = vpop.f32.mrb[31].mxu1 }
 0x133   : > { %10344 = vst [vmem:[#allocation14_spill] sm:$0xff] %v7454_v9  ;;  %v7458_v29 = vpop.eup %6282  ;;  %6298 = vrsqrt.f32 %v7406_v61  ;;  %10346 = vst [vmem:[#allocation16_spill] sm:$0xff] %v7467_v14  ;;  %v6078_v51 = vpop.f32.mrb[32].mxu0  ;;  %v7482_v0 = vadd.f32 %v6919_v16, %v7094_v63  ;;  %v10350_v61 = vpack.c.bf16 %v7223_v37, %v7220_v55  ;;  %v1665_v55 = vmul.f32 %v7355_v27, %v7247_v11 }
 0x134   : > { %10345 = vst [vmem:[#allocation15_spill] sm:$0xff] %v7463_v30  ;;  %v7471_v34 = vpop.eup %6284  ;;  %6300 = vrsqrt.f32 %v7410_v57  ;;  %10348 = vst [vmem:[#allocation18_spill] sm:$0xff] %v7478_v54  ;;  %v993_v40 = vpop.f32.mrb[33].mxu0  ;;  %v6499_v57 = vld [vmem:[%s6688_s16 + $0xa8] sm:$0xff]  ;;  %v7495_v49 = vadd.f32 %v6078_v51, %v6919_v16  ;;  %vm1666_vm15 = vcmp.eq.f32.partialorder %v7247_v11, inf  ;;  %vm1668_vm1 = vcmp.eq.f32.partialorder %v7247_v11, 0.0 }
 0x135   : > { %10347 = vst [vmem:[#allocation17_spill] sm:$0xff] %v7471_v34  ;;  %10349 = vst [vmem:[#allocation19_spill] sm:$0xff] %v7482_v0  ;;  %5890 = vmatmul.mubr.msk.bf16.gmra.mrb[84].mxu1 %vm638_vm0, %v10350_v61  ;;  %v7491_v34 = vmul.f32 %v6499_v57, %v1663_v43  ;;  %6302 = vrsqrt.f32 %v7454_v9  ;;  %v7498_v50 = vadd.f32 %v6919_v16, %v993_v40  ;;  %v6079_v63 = vpop.f32.mrb[34].mxu0  ;;  %v7500_v44 = vpop.eup %6286  ;;  %v1669_v61 = vand.u32 2147483648, %v7247_v11 }
 0x136   : > { %10352 = vst [vmem:[#allocation21_spill] sm:$0xff] %v7495_v49  ;;  %10353 = vst [vmem:[#allocation22_spill] sm:$0xff] %v7500_v44  ;;  %2942 = vmatprep.mubr.bf16.mxu1 %v10343_v19  ;;  %6304 = vrsqrt.f32 %v7467_v14  ;;  %v996_v43 = vpop.f32.mrb[35].mxu0  ;;  %v1672_v57 = vmul.f32 %v7370_v22, %v7270_v12  ;;  %v1667_v27 = vsel %vm1666_vm15, %v7247_v11, %v1665_v55  ;;  %vm1673_vm2 = vcmp.eq.f32.partialorder %v7270_v12, inf  ;;  %v7525_v22 = vpop.f32.mrb[32].mxu1  ;;  %v6500_v11 = vld [vmem:[%s6688_s16 + $0xb0] sm:$0xff] }
 0x137   : > { %10351 = vst [vmem:[#allocation20_spill] sm:$0xff] %v7491_v34  ;;  %6306 = vrsqrt.f32 %v7478_v54  ;;  %vm1675_vm3 = vcmp.eq.f32.partialorder %v7270_v12, 0.0  ;;  %v1670_v40 = vsel %vm1668_vm1, %v1669_v61, %v1667_v27  ;;  %v1676_v54 = vand.u32 2147483648, %v7270_v12  ;;  %v7539_v61 = vpop.f32.mrb[33].mxu1 }
 0x138   : > { %v7514_v62 = vpop.eup %6288  ;;  %6308 = vrsqrt.f32 %v7482_v0  ;;  %v1674_v37 = vsel %vm1673_vm2, %v7270_v12, %v1672_v57  ;;  %v7531_v55 = vmul.f32 %v6500_v11, %v1670_v40  ;;  %v7534_v0 = vadd.f32 %v6079_v63, %v6919_v16  ;;  %v6216_v11 = vld [vmem:[%s10234_s5 + $0x50] sm:$0xff]  }
 0x139   : > { %v7520_v51 = vpop.eup %6290  ;;  %6310 = vrsqrt.f32 %v7495_v49  ;;  %v7537_v14 = vadd.f32 %v6919_v16, %v996_v43  ;;  %v1677_v12 = vsel %vm1675_vm3, %v1676_v54, %v1674_v37  ;;  %v7545_v27 = vadd.f32 %v7152_v38, %v6919_v16  ;;  %v7555_v43 = vpop.f32.mrb[34].mxu1  ;;  %v6501_v37 = vld [vmem:[%s6688_s16 + $0xb8] sm:$0xff]  ;;  %4578 = vmatpush1.bf16.msra.mxu0 %v6216_v11 }
 0x13a   : > { %v7527_v9 = vpop.eup %6292  ;;  %6312 = vrsqrt.f32 %v7498_v50  ;;  %v7549_v44 = vadd.f32 %v6919_v16, %v7161_v42  ;;  %v7553_v63 = vadd.f32 %v7167_v52, %v6919_v16  ;;  %v7563_v38 = vmul.f32 %v6501_v37, %v1677_v12  ;;  %v7572_v30 = vpop.f32.mrb[35].mxu1  ;;  %4579 = vmatprep.subr.bf16.mxu0 %v10343_v19 }
 0x13b   : > { %v7541_v57 = vpop.eup %6294  ;;  %10354 = vst [vmem:[#allocation23_spill] sm:$0xff] %v7545_v27  ;;  %v6082_v40 = vpop.f32.mrb[36].mxu0  ;;  %6314 = vrsqrt.f32 %v7534_v0  ;;  %v7568_v42 = vadd.f32 %v6919_v16, %v7178_v31  ;;  %v1679_v52 = vmul.f32 %v7437_v39, %v7331_v21  ;;  %vm1680_vm4 = vcmp.eq.f32.partialorder %v7331_v21, inf }
 0x13c   : > { %10355 = vst [vmem:[#allocation24_spill] sm:$0xff] %v7549_v44  ;;  %10356 = vst [vmem:[#allocation25_spill] sm:$0xff] %v7553_v63  ;;  %v7560_v54 = vpop.eup %6296  ;;  %v1009_v49 = vpop.f32.mrb[37].mxu0  ;;  %6316 = vrsqrt.f32 %v7537_v14  ;;  %vm1682_vm5 = vcmp.eq.f32.partialorder %v7331_v21, 0.0  ;;  %v1683_v31 = vand.u32 2147483648, %v7331_v21  ;;  %vm1687_vm6 = vcmp.eq.f32.partialorder %v7350_v41, inf }
 0x13d   : > { %10357 = vst [vmem:[#allocation26_spill] sm:$0xff] %v7560_v54  ;;  %10358 = vst [vmem:[#allocation27_spill] sm:$0xff] %v7568_v42  ;;  %v7574_v34 = vpop.eup %6298  ;;  %v10360_v54 = vpack.c.bf16 %v7291_v35, %v7276_v2  ;;  %v7584_v12 = vpop.f32.mrb[38].mxu0  ;;  %6318 = vrsqrt.f32 %v7545_v27  ;;  %v1681_v35 = vsel %vm1680_vm4, %v7331_v21, %v1679_v52  ;;  %vm1689_vm7 = vcmp.eq.f32.partialorder %v7350_v41, 0.0  ;;  %v6502_v52 = vld [vmem:[%s6688_s16 + $0xc0] sm:$0xff] }
 0x13e   : > { %10359 = vst [vmem:[#allocation28_spill] sm:$0xff] %v7574_v34  ;;  %v7586_v39 = vpop.eup %6300  ;;  %v7595_v37 = vpop.f32.mrb[39].mxu0  ;;  %6320 = vrsqrt.f32 %v7549_v44  ;;  %v1684_v34 = vsel %vm1682_vm5, %v1683_v31, %v1681_v35  ;;  %v7616_v31 = vadd.f32 %v7229_v18, %v6919_v16  ;;  %v7620_v35 = vadd.f32 %v6919_v16, %v7238_v59 }
 0x13f   : > { %5891 = vmatmul.mubr.msk.bf16.gmra.mrb[88].mxu1 %vm638_vm0, %v10360_v54  ;;  %10361 = vst [vmem:[#allocation29_spill] sm:$0xff] %v7586_v39  ;;  %v1686_v54 = vmul.f32 %v7458_v29, %v7350_v41  ;;  %v7598_v11 = vpop.eup %6302  ;;  %6322 = vrsqrt.f32 %v7553_v63  ;;  %v1690_v29 = vand.u32 2147483648, %v7350_v41  ;;  %v7609_v27 = vmul.f32 %v6502_v52, %v1684_v34 }
 0x140   : > { %2952 = vmatprep.mubr.bf16.mxu1 %v10343_v19  ;;  %10362 = vst [vmem:[#allocation30_spill] sm:$0xff] %v7598_v11  ;;  %v7603_v2 = vpop.eup %6304  ;;  %6324 = vrsqrt.f32 %v7568_v42  ;;  %10365 = vst [vmem:[#allocation33_spill] sm:$0xff] %v7616_v31  ;;  %v7632_v63 = vadd.f32 %v6919_v16, %v7254_v36  ;;  %v7635_v18 = vadd.f32 %v6082_v40, %v6919_v16  ;;  %vm1694_vm8 = vcmp.eq.f32.partialorder %v7317_v48, inf }
 0x141   : > { %10363 = vst [vmem:[#allocation31_spill] sm:$0xff] %v7603_v2  ;;  %v1688_v21 = vsel %vm1687_vm6, %v7350_v41, %v1686_v54  ;;  %v7611_v11 = vpop.eup %6306  ;;  %10366 = vst [vmem:[#allocation34_spill] sm:$0xff] %v7620_v35  ;;  %v7624_v54 = vadd.f32 %v7244_v53, %v6919_v16  ;;  %v7626_v41 = vpop.f32.mrb[36].mxu1  ;;  %v7638_v42 = vadd.f32 %v6919_v16, %v1009_v49  ;;  %v6503_v53 = vld [vmem:[%s6688_s16 + $0xc8] sm:$0xff]  ;;  %6326 = vrsqrt.f32 %v7616_v31  ;;  %v6217_v31 = vld [vmem:[%s10234_s5 + $0x58] sm:$0xff]  }
 0x142   : > { %10364 = vst [vmem:[#allocation32_spill] sm:$0xff] %v7611_v11  ;;  %v7628_v34 = vpop.eup %6308  ;;  %v1691_v52 = vsel %vm1689_vm7, %v1690_v29, %v1688_v21  ;;  %10369 = vst [vmem:[#allocation37_spill] sm:$0xff] %v7632_v63  ;;  %v7640_v59 = vpop.f32.mrb[37].mxu1  ;;  %v1693_v21 = vmul.f32 %v7430_v24, %v7317_v48  ;;  %6328 = vrsqrt.f32 %v7620_v35  ;;  %vm1696_vm9 = vcmp.eq.f32.partialorder %v7317_v48, 0.0  ;;  %4580 = vmatpush1.bf16.msra.mxu0 %v6217_v31 }
 0x143   : > { %10367 = vst [vmem:[#allocation35_spill] sm:$0xff] %v7624_v54  ;;  %10368 = vst [vmem:[#allocation36_spill] sm:$0xff] %v7628_v34  ;;  %v7642_v44 = vpop.eup %6310  ;;  %v7645_v11 = vmul.f32 %v6503_v53, %v1691_v52  ;;  %v7651_v36 = vpop.f32.mrb[40].mxu0  ;;  %v1697_v29 = vand.u32 2147483648, %v7317_v48  ;;  %v1700_v52 = vmul.f32 %v7446_v45, %v7340_v28  ;;  %v10370_v34 = vpack.c.bf16 %v7320_v1, %v7299_v5 }
 0x144   : > { %v7653_v40 = vpop.f32.mrb[38].mxu1  ;;  %v7655_v49 = vpop.eup %6312  ;;  %6330 = vrsqrt.f32 %v7624_v54  ;;  %v1695_v45 = vsel %vm1694_vm8, %v7317_v48, %v1693_v21  ;;  %vm1701_vm10 = vcmp.eq.f32.partialorder %v7340_v28, inf  ;;  %vm1703_vm11 = vcmp.eq.f32.partialorder %v7340_v28, 0.0  ;;  %v6504_v21 = vld [vmem:[%s6688_s16 + $0xd0] sm:$0xff]  ;;  %4581 = vmatprep.subr.bf16.mxu0 %v10343_v19 }
 0x145   : > { %v7662_v53 = vpop.f32.mrb[41].mxu0  ;;  %v7664_v24 = vpop.f32.mrb[39].mxu1  ;;  %6332 = vrsqrt.f32 %v7632_v63  ;;  %v1698_v5 = vsel %vm1696_vm9, %v1697_v29, %v1695_v45  ;;  %v1702_v1 = vsel %vm1701_vm10, %v7340_v28, %v1700_v52  ;;  %v1704_v48 = vand.u32 2147483648, %v7340_v28  ;;  %v6506_v28 = vld [vmem:[%s6688_s16 + $0xd8] sm:$0xff] }
 0x146   : > { %v7678_v2 = vpop.f32.mrb[42].mxu0  ;;  %v7680_v39 = vpop.eup %6314  ;;  %6334 = vrsqrt.f32 %v7635_v18  ;;  %v7693_v54 = vmul.f32 %v6504_v21, %v1698_v5  ;;  %v7697_v29 = vadd.f32 %v7584_v12, %v6919_v16  ;;  %v7705_v31 = vadd.f32 %v6919_v16, %v7595_v37 }
 0x147   : > { %5892 = vmatmul.mubr.msk.bf16.gmra.mrb[92].mxu1 %vm638_vm0, %v10370_v34  ;;  %v7686_v34 = vpop.f32.mrb[43].mxu0  ;;  %v7688_v35 = vpop.eup %6316  ;;  %6336 = vrsqrt.f32 %v7638_v42  ;;  %v7709_v45 = vadd.f32 %v7301_v6, %v6919_v16  ;;  %v7713_v5 = vadd.f32 %v6919_v16, %v7309_v26  ;;  %v1705_v21 = vsel %vm1703_vm11, %v1704_v48, %v1702_v1  ;;  %v7727_v6 = vld [vmem:[%s10231_s2] ss:$0 sm:$0xff] }
 0x148   : > { %2962 = vmatprep.mubr.bf16.mxu1 %v10343_v19  ;;  %10371 = vst [vmem:[#allocation38_spill] sm:$0xff] %v7697_v29  ;;  %v7700_v52 = vpop.eup %6318  ;;  %6338 = vrsqrt.f32 %v7697_v29  ;;  %v7722_v63 = vadd.f32 %v7314_v10, %v6919_v16  ;;  %v7731_v26 = vadd.f32 %v7727_v6, %v7324_v17  ;;  %v7733_v37 = vpop.f32.mrb[40].mxu1  ;;  %v7738_v1 = vmul.f32 %v6506_v28, %v1705_v21 }
 0x149   : > { %10372 = vst [vmem:[#allocation39_spill] sm:$0xff] %v7700_v52  ;;  %10373 = vst [vmem:[#allocation40_spill] sm:$0xff] %v7709_v45  ;;  %v7715_v12 = vpop.eup %6320  ;;  %6340 = vrsqrt.f32 %v7705_v31  ;;  %v1707_v16 = vmul.f32 %v7520_v51, %v7402_v23  ;;  %vm1708_vm12 = vcmp.eq.f32.partialorder %v7402_v23, inf  ;;  %v7744_v10 = vpop.f32.mrb[41].mxu1  ;;  %vm1710_vm13 = vcmp.eq.f32.partialorder %v7402_v23, 0.0 }
 0x14a   : > { %10374 = vst [vmem:[#allocation41_spill] sm:$0xff] %v7713_v5  ;;  %10375 = vst [vmem:[#allocation42_spill] sm:$0xff] %v7715_v12  ;;  %v7735_v52 = vpop.eup %6322  ;;  %6342 = vrsqrt.f32 %v7709_v45  ;;  %v1711_v17 = vand.u32 2147483648, %v7402_v23  ;;  %v1714_v21 = vmul.f32 %v7541_v57, %v7426_v4  ;;  %vm1715_vm14 = vcmp.eq.f32.partialorder %v7426_v4, inf }
 0x14b   : > { %10376 = vst [vmem:[#allocation43_spill] sm:$0xff] %v7722_v63  ;;  %10377 = vst [vmem:[#allocation44_spill] sm:$0xff] %v7731_v26  ;;  %v7746_v48 = vpop.eup %6324  ;;  %v7753_v28 = vpop.f32.mrb[44].mxu0  ;;  %6344 = vrsqrt.f32 %v7713_v5  ;;  %v10381_v57 = vpack.c.bf16 %v7359_v7, %v7353_v3  ;;  %vm1717_vm15 = vcmp.eq.f32.partialorder %v7426_v4, 0.0  ;;  %v6507_v7 = vld [vmem:[%s6688_s16 + $0xe0] sm:$0xff]  ;;  %vm1722_vm1 = vcmp.eq.f32.partialorder %v7385_v60, inf }
 0x14c   : > { %10378 = vst [vmem:[#allocation45_spill] sm:$0xff] %v7735_v52  ;;  %10379 = vst [vmem:[#allocation46_spill] sm:$0xff] %v7746_v48  ;;  %v7755_v52 = vpop.f32.mrb[42].mxu1  ;;  %v1709_v48 = vsel %vm1708_vm12, %v7402_v23, %v1707_v16  ;;  %v7762_v45 = vpop.f32.mrb[45].mxu0  ;;  %6346 = vrsqrt.f32 %v7722_v63  ;;  %v1716_v5 = vsel %vm1715_vm14, %v7426_v4, %v1714_v21  ;;  %v7799_v63 = vadd.f32 %v7727_v6, %v7382_v46 }
 0x14d   : > { %v7764_v12 = vpop.f32.mrb[43].mxu1  ;;  %v7766_v29 = vpop.eup %6326  ;;  %v1712_v51 = vsel %vm1710_vm13, %v1711_v17, %v1709_v48  ;;  %6348 = vrsqrt.f32 %v7731_v26  ;;  %v7787_v48 = vadd.f32 %v7727_v6, %v7367_v33  ;;  %v7807_v33 = vadd.f32 %v7727_v6, %v7651_v36 }
 0x14e   : > { %10380 = vst [vmem:[#allocation47_spill] sm:$0xff] %v7766_v29  ;;  %v7775_v23 = vpop.f32.mrb[46].mxu0  ;;  %v7777_v16 = vpop.eup %6328  ;;  %v1718_v29 = vand.u32 2147483648, %v7426_v4  ;;  %v7783_v3 = vmul.f32 %v6507_v7, %v1712_v51  ;;  %10386 = vst [vmem:[#allocation52_spill] sm:$0xff] %v7799_v63  ;;  %v7803_v51 = vadd.f32 %v7727_v6, %v7395_v56  ;;  %v1721_v46 = vmul.f32 %v7514_v62, %v7385_v60 }
 0x14f   : > { %5893 = vmatmul.mubr.msk.bf16.gmra.mrb[96].mxu1 %vm638_vm0, %v10381_v57  ;;  %10382 = vst [vmem:[#allocation48_spill] sm:$0xff] %v7777_v16  ;;  %10383 = vst [vmem:[#allocation49_spill] sm:$0xff] %v7787_v48  ;;  %v7789_v17 = vpop.f32.mrb[47].mxu0  ;;  %v7791_v21 = vpop.eup %6330  ;;  %v7795_v57 = vadd.f32 %v7727_v6, %v7377_v25  ;;  %6350 = vrsqrt.f32 %v7787_v48  ;;  %v7816_v25 = vadd.f32 %v7727_v6, %v7662_v53  ;;  %vm1724_vm2 = vcmp.eq.f32.partialorder %v7385_v60, 0.0 }
 0x150   : > { %2972 = vmatprep.mubr.bf16.mxu1 %v10343_v19  ;;  %10384 = vst [vmem:[#allocation50_spill] sm:$0xff] %v7791_v21  ;;  %10387 = vst [vmem:[#allocation53_spill] sm:$0xff] %v7803_v51  ;;  %v7809_v7 = vpop.eup %6332  ;;  %v1719_v26 = vsel %vm1717_vm15, %v1718_v29, %v1716_v5  ;;  %v6508_v21 = vld [vmem:[%s6688_s16 + $0xe8] sm:$0xff]  ;;  %v7828_v4 = vpop.f32.mrb[44].mxu1  ;;  %v1723_v53 = vsel %vm1722_vm1, %v7385_v60, %v1721_v46  ;;  %v1725_v62 = vand.u32 2147483648, %v7385_v60  ;;  %vm1729_vm3 = vcmp.eq.f32.partialorder %v7418_v58, inf }
 0x151   : > { %10385 = vst [vmem:[#allocation51_spill] sm:$0xff] %v7795_v57  ;;  %10388 = vst [vmem:[#allocation54_spill] sm:$0xff] %v7807_v33  ;;  %v7820_v56 = vpop.eup %6334  ;;  %v7823_v16 = vmul.f32 %v6508_v21, %v1719_v26  ;;  %6352 = vrsqrt.f32 %v7795_v57  ;;  %v1728_v29 = vmul.f32 %v7527_v9, %v7418_v58  ;;  %v7837_v5 = vpop.f32.mrb[45].mxu1  ;;  %vm1731_vm4 = vcmp.eq.f32.partialorder %v7418_v58, 0.0  ;;  %v6509_v60 = vld [vmem:[%s6688_s16 + $0xf0] sm:$0xff] }
 0x152   : > { %10389 = vst [vmem:[#allocation55_spill] sm:$0xff] %v7809_v7  ;;  %v7830_v36 = vpop.eup %6336  ;;  %6354 = vrsqrt.f32 %v7799_v63  ;;  %10390 = vst [vmem:[#allocation56_spill] sm:$0xff] %v7837_v5  ;;  %v7848_v63 = vpop.f32.mrb[46].mxu1  ;;  %v1726_v9 = vsel %vm1724_vm2, %v1725_v62, %v1723_v53  ;;  %v1732_v57 = vand.u32 2147483648, %v7418_v58  ;;  %v7873_v62 = vadd.f32 %v7727_v6, %v7678_v2 }
 0x153   : > { %v7839_v26 = vpop.eup %6338  ;;  %6356 = vrsqrt.f32 %v7803_v51  ;;  %v7846_v46 = vpop.f32.mrb[48].mxu0  ;;  %10391 = vst [vmem:[#allocation57_spill] sm:$0xff] %v7848_v63  ;;  %v1730_v21 = vsel %vm1729_vm3, %v7418_v58, %v1728_v29  ;;  %v10393_v63 = vpack.c.bf16 %v7415_v32, %v7388_v8  ;;  %v7869_v53 = vmul.f32 %v6509_v60, %v1726_v9  ;;  %v6510_v60 = vld [vmem:[%s6688_s16 + $0xf8] sm:$0xff] }
 0x154   : > { %v7850_v48 = vpop.eup %6340  ;;  %6358 = vrsqrt.f32 %v7807_v33  ;;  %v7857_v51 = vpop.f32.mrb[49].mxu0  ;;  %10394 = vst [vmem:[#allocation59_spill] sm:$0xff] %v7873_v62  ;;  %v7877_v29 = vadd.f32 %v7727_v6, %v7686_v34  ;;  %v1733_v8 = vsel %vm1731_vm4, %v1732_v57, %v1730_v21  ;;  %v7888_v32 = vadd.f32 %v7727_v6, %v7443_v13  ;;  %v6218_v57 = vld [vmem:[%s10234_s5 + $0x60] sm:$0xff]  }
 0x155   : > { %v7859_v7 = vpop.f32.mrb[47].mxu1  ;;  %v7861_v5 = vpop.eup %6342  ;;  %6360 = vrsqrt.f32 %v7816_v25  ;;  %v7896_v2 = vadd.f32 %v7727_v6, %v7469_v20  ;;  %v7908_v13 = vadd.f32 %v7727_v6, %v7484_v47  ;;  %vm1736_vm5 = vcmp.eq.f32.partialorder %v7498_v50, inf  ;;  %4582 = vmatpush1.bf16.msra.mxu0 %v6218_v57  ;;  %v6511_v57 = vld [vmem:[%s6688_s16 + $0x100] sm:$0xff] }
 0x156   : > { %10392 = vst [vmem:[#allocation58_spill] sm:$0xff] %v7861_v5  ;;  %v7879_v5 = vpop.f32.mrb[50].mxu0  ;;  %v7881_v33 = vpop.eup %6344  ;;  %10396 = vst [vmem:[#allocation61_spill] sm:$0xff] %v7888_v32  ;;  %6362 = vrsqrt.f32 %v7873_v62  ;;  %vm1738_vm6 = vcmp.eq.f32.partialorder %v7498_v50, 0.0  ;;  %v1739_v20 = vand.u32 2147483648, %v7498_v50  ;;  %v1742_v21 = vmul.f32 %v7688_v35, %v7537_v14  ;;  %4583 = vmatprep.subr.bf16.mxu0 %v10343_v19 }
 0x157   : > { %5894 = vmatmul.mubr.msk.bf16.gmra.mrb[100].mxu1 %vm638_vm0, %v10393_v63  ;;  %10395 = vst [vmem:[#allocation60_spill] sm:$0xff] %v7881_v33  ;;  %v7892_v63 = vadd.f32 %v7727_v6, %v7456_v15  ;;  %10398 = vst [vmem:[#allocation63_spill] sm:$0xff] %v7896_v2  ;;  %v7898_v34 = vpop.f32.mrb[51].mxu0  ;;  %v7900_v9 = vpop.eup %6346  ;;  %v7903_v33 = vmul.f32 %v6510_v60, %v1733_v8  ;;  %v1735_v15 = vmul.f32 %v7655_v49, %v7498_v50 }
 0x158   : > { %2982 = vmatprep.mubr.bf16.mxu1 %v10343_v19  ;;  %10399 = vst [vmem:[#allocation64_spill] sm:$0xff] %v7900_v9  ;;  %10400 = vst [vmem:[#allocation65_spill] sm:$0xff] %v7908_v13  ;;  %v7912_v58 = vpop.eup %6348  ;;  %6364 = vrsqrt.f32 %v7877_v29  ;;  %v7927_v8 = vpop.f32.mrb[48].mxu1  ;;  %vm1743_vm7 = vcmp.eq.f32.partialorder %v7537_v14, inf  ;;  %vm1745_vm8 = vcmp.eq.f32.partialorder %v7537_v14, 0.0  ;;  %vm1757_vm1 = vcmp.eq.f32.partialorder %v7534_v0, inf }
 0x159   : > { %10397 = vst [vmem:[#allocation62_spill] sm:$0xff] %v7892_v63  ;;  %10401 = vst [vmem:[#allocation66_spill] sm:$0xff] %v7912_v58  ;;  %6366 = vrsqrt.f32 %v7888_v32  ;;  %v1737_v49 = vsel %vm1736_vm5, %v7498_v50, %v1735_v15  ;;  %v7929_v60 = vpop.eup %6350  ;;  %v7934_v47 = vpop.f32.mrb[49].mxu1  ;;  %v6219_v50 = vld [vmem:[%s10234_s5 + $0x68] sm:$0xff]   ;;  %v1744_v15 = vsel %vm1743_vm7, %v7537_v14, %v1742_v21  ;;  %v1746_v32 = vand.u32 2147483648, %v7537_v14 }
 0x15a   : > { %10402 = vst [vmem:[#allocation67_spill] sm:$0xff] %v7929_v60  ;;  %6368 = vrsqrt.f32 %v7892_v63  ;;  %v1740_v9 = vsel %vm1738_vm6, %v1739_v20, %v1737_v49  ;;  %v7944_v20 = vpop.f32.mrb[50].mxu1  ;;  %v7960_v21 = vadd.f32 %v7727_v6, %v7539_v61  ;;  %v7981_v61 = vadd.f32 %v7727_v6, %v7572_v30  ;;  %4584 = vmatpush1.bf16.msra.mxu0 %v6219_v50  ;;  %v6220_v30 = vld [vmem:[%s10234_s5 + $0x70] sm:$0xff]  }
 0x15b   : > { %v7939_v35 = vpop.eup %6352  ;;  %6370 = vrsqrt.f32 %v7896_v2  ;;  %v7946_v49 = vpop.f32.mrb[52].mxu0  ;;  %v7952_v60 = vmul.f32 %v6511_v57, %v1740_v9  ;;  %v7964_v2 = vadd.f32 %v7727_v6, %v7555_v43  ;;  %v10409_v9 = vld [vmem:[#allocation20_spill] sm:$0xff]  ;;  %v10410_v57 = vld [vmem:[#allocation15_spill] sm:$0xff]  ;;  %4585 = vmatprep.subr.bf16.mxu0 %v10343_v19  ;;  %vm1759_vm2 = vcmp.eq.f32.partialorder %v7534_v0, 0.0 }
 0x15c   : > { %10403 = vst [vmem:[#allocation68_spill] sm:$0xff] %v7939_v35  ;;  %10404 = vst [vmem:[#allocation69_spill] sm:$0xff] %v7946_v49  ;;  %v7949_v63 = vpop.eup %6354  ;;  %v7956_v35 = vadd.f32 %v7727_v6, %v7525_v22  ;;  %v7966_v58 = vpop.f32.mrb[51].mxu1  ;;  %v10411_v49 = vpack.c.bf16 %v10409_v9, %v10410_v57  ;;  %6372 = vrsqrt.f32 %v7908_v13  ;;  %v1747_v22 = vsel %vm1745_vm8, %v1746_v32, %v1744_v15 }
 0x15d   : > { %10405 = vst [vmem:[#allocation70_spill] sm:$0xff] %v7949_v63  ;;  %10406 = vst [vmem:[#allocation71_spill] sm:$0xff] %v7966_v58  ;;  %v7968_v62 = vpop.f32.mrb[53].mxu0  ;;  %v7970_v63 = vpop.eup %6356  ;;  %vm2184_vm11 = vcmp.eq.f32.partialorder %v7960_v21, inf  ;;  %vm2186_vm12 = vcmp.eq.f32.partialorder %v7960_v21, 0.0  ;;  %vm2205_vm13 = vcmp.eq.f32.partialorder %v7964_v2, inf }
 0x15e   : > { %10407 = vst [vmem:[#allocation72_spill] sm:$0xff] %v7968_v62  ;;  %10408 = vst [vmem:[#allocation73_spill] sm:$0xff] %v7970_v63  ;;  %v7983_v43 = vpop.f32.mrb[54].mxu0  ;;  %v7985_v58 = vpop.eup %6358  ;;  %v6512_v63 = vld [vmem:[%s6688_s16 + $0x108] sm:$0xff]  ;;  %6374 = vrsqrt.f32 %v7956_v35  ;;  %vm2198_vm9 = vcmp.eq.f32.partialorder %v7956_v35, inf  ;;  %vm2200_vm10 = vcmp.eq.f32.partialorder %v7956_v35, 0.0  ;;  %4586 = vmatpush1.bf16.msra.mxu0 %v6220_v30 }
 0x15f   : > { %5895 = vmatmul.mubr.msk.bf16.gmra.mrb[104].mxu1 %vm638_vm0, %v10411_v49  ;;  %v7989_v62 = vmul.f32 %v6512_v63, %v1747_v22  ;;  %v7994_v49 = vadd.f32 %v7727_v6, %v7753_v28  ;;  %v7996_v14 = vpop.f32.mrb[55].mxu0  ;;  %v8001_v32 = vpop.eup %6360  ;;  %6376 = vrsqrt.f32 %v7960_v21  ;;  %v8006_v63 = vadd.f32 %v7727_v6, %v7762_v45  ;;  %v10416_v22 = vld [vmem:[#allocation21_spill] sm:$0xff]  ;;  %4587 = vmatprep.subr.bf16.mxu0 %v10343_v19 }
 0x160   : > { %2992 = vmatprep.mubr.bf16.mxu1 %v10343_v19  ;;  %10413 = vst [vmem:[#allocation15_spill] sm:$0xff] %v7996_v14  ;;  %6378 = vrsqrt.f32 %v7964_v2  ;;  %v8013_v50 = vpop.eup %6362  ;;  %v8019_v45 = vpop.f32.mrb[52].mxu1  ;;  %v1749_v28 = vmul.f32 %v7642_v44, %v10416_v22  ;;  %vm1750_vm14 = vcmp.eq.f32.partialorder %v10416_v22, inf  ;;  %vm1752_vm15 = vcmp.eq.f32.partialorder %v10416_v22, 0.0 }
 0x161   : > { %10412 = vst [vmem:[#allocation20_spill] sm:$0xff] %v7994_v49  ;;  %10414 = vst [vmem:[#allocation74_spill] sm:$0xff] %v8006_v63  ;;  %6380 = vrsqrt.f32 %v7981_v61  ;;  %v8029_v15 = vpop.f32.mrb[53].mxu1  ;;  %v1753_v57 = vand.u32 2147483648, %v10416_v22  ;;  %vm2207_vm3 = vcmp.eq.f32.partialorder %v7964_v2, 0.0  ;;  %vm2191_vm4 = vcmp.eq.f32.partialorder %v7981_v61, inf }
 0x162   : > { %10415 = vst [vmem:[#allocation75_spill] sm:$0xff] %v8019_v45  ;;  %v8021_v9 = vpop.eup %6364  ;;  %6382 = vrsqrt.f32 %v7994_v49  ;;  %v8037_v14 = vpop.f32.mrb[54].mxu1  ;;  %v1751_v30 = vsel %vm1750_vm14, %v10416_v22, %v1749_v28  ;;  %v1760_v28 = vand.u32 2147483648, %v7534_v0  ;;  %v8066_v22 = vadd.f32 %v7727_v6, %v7789_v17 }
 0x163   : > { %v8031_v13 = vpop.eup %6366  ;;  %6384 = vrsqrt.f32 %v8006_v63  ;;  %10418 = vst [vmem:[#allocation76_spill] sm:$0xff] %v8037_v14  ;;  %v8039_v45 = vpop.f32.mrb[56].mxu0  ;;  %vm2193_vm5 = vcmp.eq.f32.partialorder %v7981_v61, 0.0  ;;  %vm1773_vm14 = vcmp.eq.f32.partialorder %v7705_v31, 0.0 }
 0x164   : > { %10417 = vst [vmem:[#allocation21_spill] sm:$0xff] %v8031_v13  ;;  %10419 = vst [vmem:[#allocation77_spill] sm:$0xff] %v8039_v45  ;;  %v8042_v44 = vpop.eup %6368  ;;  %v1756_v13 = vmul.f32 %v7680_v39, %v7534_v0  ;;  %v8049_v49 = vpop.f32.mrb[55].mxu1  ;;  %v10424_v45 = vpack.c.bf16 %v7563_v38, %v7531_v55  ;;  %v8062_v39 = vadd.f32 %v7727_v6, %v7775_v23  ;;  %v6513_v38 = vld [vmem:[%s6688_s16 + $0x110] sm:$0xff] }
 0x165   : > { %10420 = vst [vmem:[#allocation78_spill] sm:$0xff] %v8042_v44  ;;  %10421 = vst [vmem:[#allocation79_spill] sm:$0xff] %v8049_v49  ;;  %v8051_v63 = vpop.f32.mrb[57].mxu0  ;;  %v8053_v14 = vpop.eup %6370  ;;  %v1754_v44 = vsel %vm1752_vm15, %v1753_v57, %v1751_v30  ;;  %v8077_v57 = vadd.f32 %v7727_v6, %v7626_v41  ;;  %v8081_v23 = vadd.f32 %v7727_v6, %v7640_v59  ;;  %v6514_v59 = vld [vmem:[%s6688_s16 + $0x118] sm:$0xff] }
 0x166   : > { %10422 = vst [vmem:[#allocation80_spill] sm:$0xff] %v8051_v63  ;;  %10423 = vst [vmem:[#allocation81_spill] sm:$0xff] %v8053_v14  ;;  %v8068_v49 = vpop.f32.mrb[58].mxu0  ;;  %v1758_v55 = vsel %vm1757_vm1, %v7534_v0, %v1756_v13  ;;  %v8085_v30 = vpop.eup %6372  ;;  %6386 = vrsqrt.f32 %v8062_v39  ;;  %v6221_v0 = vld [vmem:[%s10234_s5 + $0x78] sm:$0xff]  }
 0x167   : > { %5896 = vmatmul.mubr.msk.bf16.gmra.mrb[108].mxu1 %vm638_vm0, %v10424_v45  ;;  %10425 = vst [vmem:[#allocation82_spill] sm:$0xff] %v8062_v39  ;;  %10426 = vst [vmem:[#allocation83_spill] sm:$0xff] %v8066_v22  ;;  %v8073_v45 = vmul.f32 %v6513_v38, %v1754_v44  ;;  %v8083_v17 = vpop.f32.mrb[59].mxu0  ;;  %v1761_v13 = vsel %vm1759_vm2, %v1760_v28, %v1758_v55  ;;  %v8093_v44 = vadd.f32 %v7727_v6, %v7653_v40 }
 0x168   : > { %10427 = vst [vmem:[#allocation84_spill] sm:$0xff] %v8068_v49  ;;  %3002 = vmatprep.mubr.bf16.mxu1 %v10343_v19  ;;  %10428 = vst [vmem:[#allocation85_spill] sm:$0xff] %v8083_v17  ;;  %v6375_v41 = vpop.eup %6374  ;;  %v2208_v38 = vand.u32 2147483648, %v7964_v2  ;;  %v8098_v14 = vmul.f32 %v6514_v59, %v1761_v13  ;;  %6388 = vrsqrt.f32 %v8066_v22  ;;  %v2194_v40 = vand.u32 2147483648, %v7981_v61  ;;  %4588 = vmatpush1.bf16.msra.mxu0 %v6221_v0 }
 0x169   : > { %10429 = vst [vmem:[#allocation86_spill] sm:$0xff] %v8085_v30  ;;  %v6377_v28 = vpop.eup %6376  ;;  %v2197_v55 = vmul.f32 %v6375_v41, %v7956_v35  ;;  %6390 = vrsqrt.f32 %v8077_v57  ;;  %v8108_v30 = vpop.f32.mrb[56].mxu1  ;;  %v8116_v49 = vadd.f32 %v7727_v6, %v7664_v24  ;;  %vm2226_vm6 = vcmp.eq.f32.partialorder %v8077_v57, inf }
 0x16a   : > { %10430 = vst [vmem:[#allocation87_spill] sm:$0xff] %v8108_v30  ;;  %v6379_v17 = vpop.eup %6378  ;;  %v2183_v13 = vmul.f32 %v6377_v28, %v7960_v21  ;;  %6392 = vrsqrt.f32 %v8081_v23  ;;  %v8118_v41 = vpop.f32.mrb[57].mxu1  ;;  %v10435_v0 = vand.u32 2147483648, %v7956_v35  ;;  %vm2228_vm7 = vcmp.eq.f32.partialorder %v8077_v57, 0.0 }
 0x16b   : > { %10431 = vst [vmem:[#allocation88_spill] sm:$0xff] %v8118_v41  ;;  %v6381_v39 = vpop.eup %6380  ;;  %v2199_v63 = vsel %vm2198_vm9, %v7956_v35, %v2197_v55  ;;  %v2204_v28 = vmul.f32 %v6379_v17, %v7964_v2  ;;  %6394 = vrsqrt.f32 %v8093_v44  ;;  %v8126_v59 = vpop.f32.mrb[58].mxu1  ;;  %v10438_v35 = vpack.c.bf16 %v7645_v11, %v7609_v27  ;;  %v6516_v27 = vld [vmem:[%s6688_s16 + $0x300] sm:$0xff] }
 0x16c   : > { %10432 = vst [vmem:[#allocation89_spill] sm:$0xff] %v8126_v59  ;;  %v8128_v30 = vpop.f32.mrb[60].mxu0  ;;  %v8130_v24 = vpop.eup %6382  ;;  %v2202_v41 = vsel %vm2200_vm10, %v10435_v0, %v2199_v63  ;;  %v2185_v17 = vsel %vm2184_vm11, %v7960_v21, %v2183_v13  ;;  %v2190_v55 = vmul.f32 %v6381_v39, %v7981_v61  ;;  %v6515_v63 = vld [vmem:[%s6688_s16 + $0x310] sm:$0xff]  ;;  %v10440_v13 = vand.u32 2147483648, %v7960_v21 }
 0x16d   : > { %10433 = vst [vmem:[#allocation90_spill] sm:$0xff] %v8128_v30  ;;  %10434 = vst [vmem:[#allocation91_spill] sm:$0xff] %v8130_v24  ;;  %v8141_v22 = vpop.f32.mrb[59].mxu1  ;;  %v8143_v59 = vpop.f32.mrb[61].mxu0  ;;  %v8152_v0 = vmul.f32 %v6515_v63, %v2202_v41  ;;  %v2229_v24 = vand.u32 2147483648, %v8077_v57  ;;  %vm2212_vm8 = vcmp.eq.f32.partialorder %v8081_v23, inf  ;;  %6396 = vrsqrt.f32 %v8116_v49 }
 0x16e   : > { %10436 = vst [vmem:[#allocation92_spill] sm:$0xff] %v8141_v22  ;;  %10437 = vst [vmem:[#allocation93_spill] sm:$0xff] %v8143_v59  ;;  %v8145_v30 = vpop.eup %6384  ;;  %v2188_v39 = vsel %vm2186_vm12, %v10440_v13, %v2185_v17  ;;  %v2206_v59 = vsel %vm2205_vm13, %v7964_v2, %v2204_v28  ;;  %v8162_v22 = vpop.f32.mrb[62].mxu0  ;;  %v2192_v21 = vsel %vm2191_vm4, %v7981_v61, %v2190_v55  ;;  %v6517_v28 = vld [vmem:[%s6688_s16 + $0x318] sm:$0xff]  ;;  %vm2214_vm9 = vcmp.eq.f32.partialorder %v8081_v23, 0.0  ;;  %v6518_v2 = vld [vmem:[%s6688_s16 + $0x308] sm:$0xff] }
 0x16f   : > { %5897 = vmatmul.mubr.msk.bf16.gmra.mrb[112].mxu1 %vm638_vm0, %v10438_v35  ;;  %10439 = vst [vmem:[#allocation94_spill] sm:$0xff] %v8152_v0  ;;  %v8166_v11 = vmul.f32 %v6516_v27, %v2188_v39  ;;  %v2209_v41 = vsel %vm2207_vm3, %v2208_v38, %v2206_v59  ;;  %v8174_v17 = vpop.f32.mrb[63].mxu0  ;;  %v2195_v63 = vsel %vm2193_vm5, %v2194_v40, %v2192_v21  ;;  %v2215_v59 = vand.u32 2147483648, %v8081_v23  ;;  %v8197_v39 = vpop.f32.mrb[60].mxu1 }
 0x170   : > { %3012 = vmatprep.mubr.bf16.mxu1 %v10343_v19  ;;  %v8177_v35 = vmul.f32 %v6517_v28, %v2209_v41  ;;  %v8184_v38 = vmul.f32 %v6518_v2, %v2195_v63  ;;  %vm2233_vm10 = vcmp.eq.f32.partialorder %v8093_v44, inf  ;;  %v1763_v55 = vmul.f32 %v7830_v36, %v7638_v42  ;;  %v8190_v13 = vpop.eup %6386  ;;  %v8207_v28 = vpop.f32.mrb[61].mxu1 }
 0x171   : > { %10441 = vst [vmem:[#allocation95_spill] sm:$0xff] %v8166_v11  ;;  %vm1764_vm11 = vcmp.eq.f32.partialorder %v7638_v42, inf  ;;  %vm1766_vm12 = vcmp.eq.f32.partialorder %v7638_v42, 0.0  ;;  %v1767_v40 = vand.u32 2147483648, %v7638_v42  ;;  %v1770_v21 = vmul.f32 %v7850_v48, %v7705_v31  ;;  %v8215_v41 = vpop.f32.mrb[62].mxu1 }
 0x172   : > { %10442 = vst [vmem:[#allocation96_spill] sm:$0xff] %v8177_v35  ;;  %10443 = vst [vmem:[#allocation97_spill] sm:$0xff] %v8184_v38  ;;  %v8199_v27 = vpop.eup %6388  ;;  %v1765_v36 = vsel %vm1764_vm11, %v7638_v42, %v1763_v55  ;;  %vm1771_vm13 = vcmp.eq.f32.partialorder %v7705_v31, inf  ;;  %v1774_v61 = vand.u32 2147483648, %v7705_v31  ;;  %v8213_v0 = vadd.f32 %v7727_v6, %v7733_v37  ;;  %v6519_v35 = vld [vmem:[%s6688_s16 + $0x120] sm:$0xff] }
 0x173   : > { %v6391_v63 = vpop.eup %6390  ;;  %v1768_v2 = vsel %vm1766_vm12, %v1767_v40, %v1765_v36  ;;  %v1772_v48 = vsel %vm1771_vm13, %v7705_v31, %v1770_v21  ;;  %v8224_v40 = vadd.f32 %v7727_v6, %v7744_v10  ;;  %v8226_v36 = vpop.f32.mrb[63].mxu1  ;;  %v10444_v37 = vpack.c.bf16 %v7738_v1, %v7693_v54  ;;  %v6520_v54 = vld [vmem:[%s6688_s16 + $0x128] sm:$0xff] }
 0x174   : > { %v6393_v42 = vpop.eup %6392  ;;  %v2225_v55 = vmul.f32 %v6391_v63, %v8077_v57  ;;  %v8220_v11 = vmul.f32 %v6519_v35, %v1768_v2  ;;  %v2236_v31 = vand.u32 2147483648, %v8093_v44  ;;  %v1775_v21 = vsel %vm1773_vm14, %v1774_v61, %v1772_v48 }
 0x175   : > { %v6395_v38 = vpop.eup %6394  ;;  %v2211_v63 = vmul.f32 %v6393_v42, %v8081_v23  ;;  %6398 = vrsqrt.f32 %v8213_v0  ;;  %vm2235_vm15 = vcmp.eq.f32.partialorder %v8093_v44, 0.0  ;;  %v8242_v1 = vmul.f32 %v6520_v54, %v1775_v21  ;;  %v6521_v42 = vld [vmem:[%s6688_s16 + $0x330] sm:$0xff]  ;;  %v6522_v21 = vld [vmem:[%s6688_s16 + $0x338] sm:$0xff] }
 0x176   : > { %v2227_v10 = vsel %vm2226_vm6, %v8077_v57, %v2225_v55  ;;  %v2232_v35 = vmul.f32 %v6395_v38, %v8093_v44  ;;  %vm2219_vm1 = vcmp.eq.f32.partialorder %v8116_v49, inf  ;;  %6400 = vrsqrt.f32 %v8224_v40 }
 0x177   : > { %5898 = vmatmul.mubr.msk.bf16.gmra.mrb[116].mxu1 %vm638_vm0, %v10444_v37  ;;  %v2230_v2 = vsel %vm2228_vm7, %v2229_v24, %v2227_v10  ;;  %v2213_v61 = vsel %vm2212_vm8, %v8081_v23, %v2211_v63  ;;  %v2552_v24 = vpack.c.bf16 %v8242_v1, %v8220_v11  ;;  %v6397_v48 = vpop.eup %6396  ;;  %vm2221_vm2 = vcmp.eq.f32.partialorder %v8116_v49, 0.0 }
 0x178   : > { %3022 = vmatprep.mubr.bf16.mxu1 %v10343_v19  ;;  %v8252_v38 = vmul.f32 %v6521_v42, %v2230_v2  ;;  %v2216_v55 = vsel %vm2214_vm9, %v2215_v59, %v2213_v61  ;;  %v2234_v57 = vsel %vm2233_vm10, %v8093_v44, %v2232_v35  ;;  %v2222_v63 = vand.u32 2147483648, %v8116_v49  ;;  %v6523_v59 = vld [vmem:[%s6688_s16 + $0x320] sm:$0xff] }
 0x179   : > { %v2237_v37 = vsel %vm2235_vm15, %v2236_v31, %v2234_v57  ;;  %vm2254_vm3 = vcmp.eq.f32.partialorder %v8213_v0, inf  ;;  %v2218_v23 = vmul.f32 %v6397_v48, %v8116_v49  ;;  %vm2256_vm4 = vcmp.eq.f32.partialorder %v8213_v0, 0.0  ;;  %v6532_v48 = vld [vmem:[%s6688_s16 + $0x148] sm:$0xff] }
 0x17a   : > { %v8265_v10 = vmul.f32 %v6522_v21, %v2237_v37  ;;  %v8271_v44 = vadd.f32 %v7727_v6, %v7755_v52  ;;  %v8274_v31 = vmul.f32 %v6523_v59, %v2216_v55  ;;  %v2257_v35 = vand.u32 2147483648, %v8213_v0  ;;  %v6524_v55 = vld [vmem:[%s6688_s16 + $0x328] sm:$0xff] }
 0x17b   : > { %v8279_v54 = vadd.f32 %v7727_v6, %v7764_v12  ;;  %v8283_v2 = vadd.f32 %v7727_v6, %v7846_v46  ;;  %v2220_v52 = vsel %vm2219_vm1, %v8116_v49, %v2218_v23  ;;  %v1777_v42 = vmul.f32 %v7820_v56, %v7635_v18  ;;  %v10446_v23 = vld [vmem:[#allocation38_spill] sm:$0xff] }
 0x17c   : > { %6402 = vrsqrt.f32 %v8271_v44  ;;  %v10445_v12 = vpack.c.bf16 %v7823_v16, %v7783_v3  ;;  %v2223_v46 = vsel %vm2221_vm2, %v2222_v63, %v2220_v52  ;;  %vm2240_vm5 = vcmp.eq.f32.partialorder %v8224_v40, inf }
 0x17d   : > { %vm2242_vm6 = vcmp.eq.f32.partialorder %v8224_v40, 0.0  ;;  %6404 = vrsqrt.f32 %v8279_v54  ;;  %v8304_v57 = vmul.f32 %v6524_v55, %v2223_v46  ;;  %v2243_v56 = vand.u32 2147483648, %v8224_v40  ;;  %v6525_v46 = vld [vmem:[%s6688_s16 + $0x130] sm:$0xff] }
 0x17e   : > { %vm2261_vm7 = vcmp.eq.f32.partialorder %v8271_v44, inf  ;;  %v8310_v16 = vadd.f32 %v7727_v6, %v7857_v51  ;;  %vm2263_vm8 = vcmp.eq.f32.partialorder %v8271_v44, 0.0  ;;  %vm1778_vm9 = vcmp.eq.f32.partialorder %v7635_v18, inf }
 0x17f   : > { %5899 = vmatmul.mubr.msk.bf16.gmra.mrb[120].mxu1 %vm638_vm0, %v10445_v12  ;;  %v6399_v3 = vpop.eup %6398  ;;  %vm1780_vm10 = vcmp.eq.f32.partialorder %v7635_v18, 0.0  ;;  %v1781_v49 = vand.u32 2147483648, %v7635_v18  ;;  %6406 = vrsqrt.f32 %v8283_v2  ;;  %v1779_v51 = vsel %vm1778_vm9, %v7635_v18, %v1777_v42 }
 0x180   : > { %3032 = vmatprep.mubr.bf16.mxu1 %v10343_v19  ;;  %v2253_v37 = vmul.f32 %v6399_v3, %v8213_v0  ;;  %v6401_v63 = vpop.eup %6400  ;;  %v1784_v59 = vmul.f32 %v7839_v26, %v10446_v23  ;;  %vm1785_vm11 = vcmp.eq.f32.partialorder %v10446_v23, inf  ;;  %vm1787_vm12 = vcmp.eq.f32.partialorder %v10446_v23, 0.0 }
 0x181   : > { %v1782_v21 = vsel %vm1780_vm10, %v1781_v49, %v1779_v51  ;;  %v2239_v12 = vmul.f32 %v6401_v63, %v8224_v40  ;;  %6408 = vrsqrt.f32 %v8310_v16  ;;  %v1788_v18 = vand.u32 2147483648, %v10446_v23 }
 0x182   : > { %v2255_v52 = vsel %vm2254_vm3, %v8213_v0, %v2253_v37  ;;  %v1786_v42 = vsel %vm1785_vm11, %v10446_v23, %v1784_v59  ;;  %v8333_v55 = vmul.f32 %v6525_v46, %v1782_v21  ;;  %v8337_v26 = vadd.f32 %v7727_v6, %v7879_v5  ;;  %v6526_v0 = vld [vmem:[%s6688_s16 + $0x138] sm:$0xff]  ;;  %v10448_v21 = vld [vmem:[#allocation56_spill] sm:$0xff] }
 0x183   : > { %v8341_v3 = vadd.f32 %v7727_v6, %v7898_v34  ;;  %v2258_v49 = vsel %vm2256_vm4, %v2257_v35, %v2255_v52  ;;  %v2241_v37 = vsel %vm2240_vm5, %v8224_v40, %v2239_v12  ;;  %v1789_v51 = vsel %vm1787_vm12, %v1788_v18, %v1786_v42  ;;  %v6527_v52 = vld [vmem:[%s6688_s16 + $0x350] sm:$0xff]  ;;  %v6528_v18 = vld [vmem:[%s6688_s16 + $0x340] sm:$0xff] }
 0x184   : > { %v8350_v63 = vadd.f32 %v7727_v6, %v7828_v4  ;;  %v10447_v5 = vpack.c.bf16 %v7903_v33, %v7869_v53  ;;  %v2244_v34 = vsel %vm2242_vm6, %v2243_v56, %v2241_v37  ;;  %v8359_v35 = vmul.f32 %v6526_v0, %v1789_v51  ;;  %v10449_v51 = vld [vmem:[#allocation57_spill] sm:$0xff] }
 0x185   : > { %6410 = vrsqrt.f32 %v8337_v26  ;;  %v8364_v23 = vadd.f32 %v7727_v6, %v10448_v21  ;;  %v2264_v33 = vand.u32 2147483648, %v8271_v44  ;;  %vm2247_vm13 = vcmp.eq.f32.partialorder %v8279_v54, inf }
 0x186   : > { %v6403_v4 = vpop.eup %6402  ;;  %vm2249_vm14 = vcmp.eq.f32.partialorder %v8279_v54, 0.0  ;;  %6412 = vrsqrt.f32 %v8341_v3  ;;  %v2250_v56 = vand.u32 2147483648, %v8279_v54  ;;  %v8377_v12 = vmul.f32 %v6527_v52, %v2258_v49 }
 0x187   : > { %5900 = vmatmul.mubr.msk.bf16.gmra.mrb[124].mxu1 %vm638_vm0, %v10447_v5  ;;  %v6405_v53 = vpop.eup %6404  ;;  %v2260_v40 = vmul.f32 %v6403_v4, %v8271_v44  ;;  %6414 = vrsqrt.f32 %v8350_v63  ;;  %v8380_v42 = vmul.f32 %v6528_v18, %v2244_v34  ;;  %vm2282_vm15 = vcmp.eq.f32.partialorder %v8350_v63, inf }
 0x188   : > { %3042 = vmatprep.mubr.bf16.mxu1 %v10343_v19  ;;  %v2246_v46 = vmul.f32 %v6405_v53, %v8279_v54  ;;  %6416 = vrsqrt.f32 %v8364_v23  ;;  %v8390_v5 = vadd.f32 %v7727_v6, %v10449_v51  ;;  %v8394_v49 = vadd.f32 %v7727_v6, %v7859_v7  ;;  %v6529_v53 = vld [vmem:[%s6688_s16 + $0x358] sm:$0xff] }
 0x189   : > { %v2262_v37 = vsel %vm2261_vm7, %v8271_v44, %v2260_v40  ;;  %v8396_v34 = vpop.eup %6406  ;;  %vm2284_vm1 = vcmp.eq.f32.partialorder %v8350_v63, 0.0  ;;  %v1791_v4 = vmul.f32 %v8001_v32, %v7816_v25  ;;  %vm1792_vm2 = vcmp.eq.f32.partialorder %v7816_v25, inf }
 0x18a   : > { %v2265_v0 = vsel %vm2263_vm8, %v2264_v33, %v2262_v37  ;;  %v2248_v21 = vsel %vm2247_vm13, %v8279_v54, %v2246_v46  ;;  %6418 = vrsqrt.f32 %v8390_v5  ;;  %v6530_v33 = vld [vmem:[%s6688_s16 + $0x348] sm:$0xff]  ;;  %v2285_v18 = vand.u32 2147483648, %v8350_v63 }
 0x18b   : > { %v8407_v40 = vmul.f32 %v6529_v53, %v2265_v0  ;;  %v2251_v7 = vsel %vm2249_vm14, %v2250_v56, %v2248_v21  ;;  %v8413_v44 = vpop.eup %6408  ;;  %vm2268_vm3 = vcmp.eq.f32.partialorder %v8364_v23, inf  ;;  %6420 = vrsqrt.f32 %v8394_v49 }
 0x18c   : > { %v8416_v52 = vmul.f32 %v6530_v33, %v2251_v7  ;;  %v10450_v32 = vpack.c.bf16 %v7989_v62, %v7952_v60  ;;  %vm2270_vm4 = vcmp.eq.f32.partialorder %v8364_v23, 0.0  ;;  %v2271_v56 = vand.u32 2147483648, %v8364_v23 }
 0x18d   : > { %vm2289_vm5 = vcmp.eq.f32.partialorder %v8390_v5, inf  ;;  %vm2291_vm6 = vcmp.eq.f32.partialorder %v8390_v5, 0.0  ;;  %v1793_v62 = vsel %vm1792_vm2, %v7816_v25, %v1791_v4  ;;  %vm1794_vm7 = vcmp.eq.f32.partialorder %v7816_v25, 0.0 }
 0x18e   : > { %v1795_v60 = vand.u32 2147483648, %v7816_v25  ;;  %v1798_v51 = vmul.f32 %v8021_v9, %v7877_v29  ;;  %vm1799_vm8 = vcmp.eq.f32.partialorder %v7877_v29, inf  ;;  %vm1801_vm9 = vcmp.eq.f32.partialorder %v7877_v29, 0.0 }
 0x18f   : > { %5901 = vmatmul.mubr.msk.bf16.gmra.mrb[128].mxu1 %vm638_vm0, %v10450_v32  ;;  %v8437_v37 = vpop.eup %6410  ;;  %v1802_v0 = vand.u32 2147483648, %v7877_v29  ;;  %v2292_v4 = vand.u32 2147483648, %v8390_v5  ;;  %v8449_v25 = vadd.f32 %v7727_v6, %v7927_v8  ;;  %v8453_v7 = vadd.f32 %v7727_v6, %v7934_v47  ;;  %v6531_v32 = vld [vmem:[%s6688_s16 + $0x140] sm:$0xff] }
 0x190   : > { %3052 = vmatprep.mubr.bf16.mxu1 %v10343_v19  ;;  %v8444_v21 = vpop.eup %6412  ;;  %v1796_v53 = vsel %vm1794_vm7, %v1795_v60, %v1793_v62  ;;  %vm2275_vm10 = vcmp.eq.f32.partialorder %v8394_v49, inf  ;;  %vm2277_vm11 = vcmp.eq.f32.partialorder %v8394_v49, 0.0  ;;  %v1800_v33 = vsel %vm1799_vm8, %v7877_v29, %v1798_v51  ;;  %v10451_v29 = vld [vmem:[#allocation71_spill] sm:$0xff] }
 0x191   : > { %v6415_v9 = vpop.eup %6414  ;;  %v8459_v54 = vmul.f32 %v6531_v32, %v1796_v53  ;;  %v1803_v46 = vsel %vm1801_vm9, %v1802_v0, %v1800_v33  ;;  %6422 = vrsqrt.f32 %v8449_v25  ;;  %v8465_v47 = vadd.f32 %v7727_v6, %v7944_v20  ;;  %v10452_v20 = vld [vmem:[#allocation69_spill] sm:$0xff] }
 0x192   : > { %v6417_v62 = vpop.eup %6416  ;;  %v2281_v60 = vmul.f32 %v6415_v9, %v8350_v63  ;;  %v2278_v61 = vand.u32 2147483648, %v8394_v49  ;;  %v8470_v59 = vmul.f32 %v6532_v48, %v1803_v46  ;;  %v8474_v51 = vadd.f32 %v7727_v6, %v10451_v29 }
 0x193   : > { %v2267_v8 = vmul.f32 %v6417_v62, %v8364_v23  ;;  %vm2310_vm12 = vcmp.eq.f32.partialorder %v8449_v25, inf  ;;  %6424 = vrsqrt.f32 %v8453_v7  ;;  %v8483_v53 = vadd.f32 %v7727_v6, %v10452_v20 }
 0x194   : > { %v2283_v0 = vsel %vm2282_vm15, %v8350_v63, %v2281_v60  ;;  %v6419_v9 = vpop.eup %6418  ;;  %v10453_v48 = vpack.c.bf16 %v8098_v14, %v8073_v45  ;;  %v2554_v32 = vpack.c.bf16 %v8470_v59, %v8459_v54  ;;  %vm2312_vm13 = vcmp.eq.f32.partialorder %v8449_v25, 0.0 }
 0x195   : > { %v2286_v46 = vsel %vm2284_vm1, %v2285_v18, %v2283_v0  ;;  %v2269_v33 = vsel %vm2268_vm3, %v8364_v23, %v2267_v8  ;;  %v6421_v62 = vpop.eup %6420  ;;  %v2288_v45 = vmul.f32 %v6419_v9, %v8390_v5  ;;  %v2313_v63 = vand.u32 2147483648, %v8449_v25  ;;  %v6533_v8 = vld [vmem:[%s6688_s16 + $0x370] sm:$0xff]  ;;  %v6534_v23 = vld [vmem:[%s6688_s16 + $0x360] sm:$0xff] }
 0x196   : > { %v2272_v14 = vsel %vm2270_vm4, %v2271_v56, %v2269_v33  ;;  %6426 = vrsqrt.f32 %v8465_v47  ;;  %v2274_v18 = vmul.f32 %v6421_v62, %v8394_v49  ;;  %vm2296_vm14 = vcmp.eq.f32.partialorder %v8453_v7, inf }
 0x197   : > { %5902 = vmatmul.mubr.msk.bf16.gmra.mrb[132].mxu1 %vm638_vm0, %v10453_v48  ;;  %vm2298_vm15 = vcmp.eq.f32.partialorder %v8453_v7, 0.0  ;;  %v2299_v60 = vand.u32 2147483648, %v8453_v7  ;;  %v8508_v29 = vmul.f32 %v6533_v8, %v2286_v46  ;;  %v8511_v56 = vmul.f32 %v6534_v23, %v2272_v14  ;;  %v6535_v48 = vld [vmem:[%s6688_s16 + $0x378] sm:$0xff] }
 0x198   : > { %3062 = vmatprep.mubr.bf16.mxu1 %v10343_v19  ;;  %v2290_v0 = vsel %vm2289_vm5, %v8390_v5, %v2288_v45  ;;  %6428 = vrsqrt.f32 %v8474_v51  ;;  %v2276_v9 = vsel %vm2275_vm10, %v8394_v49, %v2274_v18  ;;  %vm2317_vm1 = vcmp.eq.f32.partialorder %v8465_v47, inf  ;;  %v6536_v5 = vld [vmem:[%s6688_s16 + $0x368] sm:$0xff]  ;;  %v10456_v14 = vld [vmem:[#allocation54_spill] sm:$0xff] }
 0x199   : > { %10454 = vst [vmem:[#allocation38_spill] sm:$0xff] %v8508_v29  ;;  %v2293_v20 = vsel %vm2291_vm6, %v2292_v4, %v2290_v0  ;;  %vm2319_vm2 = vcmp.eq.f32.partialorder %v8465_v47, 0.0  ;;  %v2279_v33 = vsel %vm2277_vm11, %v2278_v61, %v2276_v9  ;;  %v2320_v62 = vand.u32 2147483648, %v8465_v47  ;;  %v10457_v49 = vld [vmem:[#allocation72_spill] sm:$0xff]  ;;  %v10458_v0 = vld [vmem:[#allocation59_spill] sm:$0xff] }
 0x19a   : > { %v8525_v46 = vmul.f32 %v6535_v48, %v2293_v20  ;;  %vm2303_vm3 = vcmp.eq.f32.partialorder %v8474_v51, inf  ;;  %v8532_v4 = vmul.f32 %v6536_v5, %v2279_v33  ;;  %v1805_v45 = vmul.f32 %v7985_v58, %v10456_v14  ;;  %v10472_v58 = vld [vmem:[#allocation89_spill] sm:$0xff] }
 0x19b   : > { %vm1806_vm4 = vcmp.eq.f32.partialorder %v10456_v14, inf  ;;  %vm1808_vm5 = vcmp.eq.f32.partialorder %v10456_v14, 0.0  ;;  %v6423_v18 = vpop.eup %6422  ;;  %v8542_v61 = vadd.f32 %v7727_v6, %v10457_v49  ;;  %v1809_v23 = vand.u32 2147483648, %v10456_v14 }
 0x19c   : > { %10455 = vst [vmem:[#allocation56_spill] sm:$0xff] %v8525_v46  ;;  %v1812_v20 = vmul.f32 %v8013_v50, %v10458_v0  ;;  %v2309_v9 = vmul.f32 %v6423_v18, %v8449_v25  ;;  %v1807_v48 = vsel %vm1806_vm4, %v10456_v14, %v1805_v45  ;;  %vm1813_vm6 = vcmp.eq.f32.partialorder %v10458_v0, inf  ;;  %v6537_v14 = vld [vmem:[%s6688_s16 + $0x150] sm:$0xff] }
 0x19d   : > { %v6425_v33 = vpop.eup %6424  ;;  %v1810_v5 = vsel %vm1808_vm5, %v1809_v23, %v1807_v48  ;;  %vm1815_vm7 = vcmp.eq.f32.partialorder %v10458_v0, 0.0  ;;  %v1816_v11 = vand.u32 2147483648, %v10458_v0  ;;  %vm2305_vm8 = vcmp.eq.f32.partialorder %v8474_v51, 0.0  ;;  %v6538_v48 = vld [vmem:[%s6688_s16 + $0x158] sm:$0xff] }
 0x19e   : > { %v1814_v50 = vsel %vm1813_vm6, %v10458_v0, %v1812_v20  ;;  %v2311_v1 = vsel %vm2310_vm12, %v8449_v25, %v2309_v9  ;;  %v8566_v45 = vmul.f32 %v6537_v14, %v1810_v5  ;;  %6430 = vrsqrt.f32 %v8483_v53  ;;  %v10459_v5 = vld [vmem:[#allocation75_spill] sm:$0xff] }
 0x19f   : > { %5903 = vmatmul.mubr.msk.bf16.gmra.mrb[136].mxu1 %vm638_vm0, %v2552_v24  ;;  %v2295_v24 = vmul.f32 %v6425_v33, %v8453_v7  ;;  %v2314_v49 = vsel %vm2312_vm13, %v2313_v63, %v2311_v1  ;;  %v1817_v23 = vsel %vm1815_vm7, %v1816_v11, %v1814_v50  ;;  %v8573_v0 = vadd.f32 %v7727_v6, %v7983_v43  ;;  %v10460_v11 = vld [vmem:[#allocation15_spill] sm:$0xff] }
 0x1a0   : > { %3072 = vmatprep.mubr.bf16.mxu1 %v10343_v19  ;;  %v6427_v18 = vpop.eup %6426  ;;  %v8580_v33 = vmul.f32 %v6538_v48, %v1817_v23  ;;  %v8584_v25 = vadd.f32 %v7727_v6, %v10459_v5  ;;  %v2306_v50 = vand.u32 2147483648, %v8474_v51  ;;  %6432 = vrsqrt.f32 %v8542_v61  ;;  %v6541_v5 = vld [vmem:[%s6688_s16 + $0x398] sm:$0xff] }
 0x1a1   : > { %v2297_v20 = vsel %vm2296_vm14, %v8453_v7, %v2295_v24  ;;  %v2316_v9 = vmul.f32 %v6427_v18, %v8465_v47  ;;  %v8592_v1 = vadd.f32 %v7727_v6, %v10460_v11  ;;  %v6539_v24 = vld [vmem:[%s6688_s16 + $0x390] sm:$0xff]  ;;  %6434 = vrsqrt.f32 %v8573_v0 }
 0x1a2   : > { %v6429_v63 = vpop.eup %6428  ;;  %v2300_v43 = vsel %vm2298_vm15, %v2299_v60, %v2297_v20  ;;  %v8595_v14 = vmul.f32 %v6539_v24, %v2314_v49  ;;  %v6540_v60 = vld [vmem:[%s6688_s16 + $0x380] sm:$0xff]  ;;  %v8611_v49 = vadd.f32 %v7727_v6, %v8029_v15  ;;  %6436 = vrsqrt.f32 %v8584_v25 }
 0x1a3   : > { %v2318_v18 = vsel %vm2317_vm1, %v8465_v47, %v2316_v9  ;;  %v2302_v23 = vmul.f32 %v6429_v63, %v8474_v51  ;;  %v8604_v20 = vmul.f32 %v6540_v60, %v2300_v43  ;;  %v10463_v9 = vpack.c.bf16 %v8359_v35, %v8333_v55  ;;  %v10465_v47 = vld [vmem:[#allocation76_spill] sm:$0xff]  ;;  %v10468_v60 = vld [vmem:[#allocation74_spill] sm:$0xff] }
 0x1a4   : > { %10461 = vst [vmem:[#allocation57_spill] sm:$0xff] %v8595_v14  ;;  %v2321_v48 = vsel %vm2319_vm2, %v2320_v62, %v2318_v18  ;;  %v8626_v62 = vadd.f32 %v7727_v6, %v10465_v47  ;;  %6438 = vrsqrt.f32 %v8611_v49  ;;  %v6542_v35 = vld [vmem:[%s6688_s16 + $0x388] sm:$0xff]  ;;  %vm2338_vm9 = vcmp.eq.f32.partialorder %v8584_v25, inf  ;;  %v6544_v14 = vld [vmem:[%s6688_s16 + $0x160] sm:$0xff] }
 0x1a5   : > { %10462 = vst [vmem:[#allocation71_spill] sm:$0xff] %v8604_v20  ;;  %v8618_v63 = vmul.f32 %v6541_v5, %v2321_v48  ;;  %v2304_v43 = vsel %vm2303_vm3, %v8474_v51, %v2302_v23  ;;  %vm2340_vm10 = vcmp.eq.f32.partialorder %v8584_v25, 0.0  ;;  %v2341_v24 = vand.u32 2147483648, %v8584_v25  ;;  %v10467_v51 = vld [vmem:[#allocation79_spill] sm:$0xff] }
 0x1a6   : > { %v2307_v15 = vsel %vm2305_vm8, %v2306_v50, %v2304_v43  ;;  %6440 = vrsqrt.f32 %v8626_v62  ;;  %vm2324_vm11 = vcmp.eq.f32.partialorder %v8611_v49, inf  ;;  %v8645_v50 = vadd.f32 %v7727_v6, %v10467_v51  ;;  %v10469_v43 = vld [vmem:[#allocation83_spill] sm:$0xff] }
 0x1a7   : > { %5904 = vmatmul.mubr.msk.bf16.gmra.mrb[140].mxu1 %vm638_vm0, %v10463_v9  ;;  %10464 = vst [vmem:[#allocation69_spill] sm:$0xff] %v8618_v63  ;;  %v8635_v11 = vmul.f32 %v6542_v35, %v2307_v15  ;;  %6442 = vrsqrt.f32 %v8592_v1  ;;  %vm2326_vm12 = vcmp.eq.f32.partialorder %v8611_v49, 0.0  ;;  %v2327_v23 = vand.u32 2147483648, %v8611_v49  ;;  %v8672_v35 = vld [vmem:[%s10231_s2] ss:$0 sm:$0xff]  ;;  %v10470_v51 = vld [vmem:[#allocation87_spill] sm:$0xff] }
 0x1a8   : > { %3082 = vmatprep.mubr.bf16.mxu1 %v10343_v19  ;;  %v1819_v48 = vmul.f32 %v8145_v30, %v10468_v60  ;;  %vm1820_vm13 = vcmp.eq.f32.partialorder %v10468_v60, inf  ;;  %v8654_v9 = vpop.eup %6430  ;;  %vm2345_vm14 = vcmp.eq.f32.partialorder %v8626_v62, inf  ;;  %vm2347_vm15 = vcmp.eq.f32.partialorder %v8626_v62, 0.0  ;;  %v6546_v63 = vld [vmem:[%s6688_s16 + $0x3b0] sm:$0xff] }
 0x1a9   : > { %10466 = vst [vmem:[#allocation54_spill] sm:$0xff] %v8635_v11  ;;  %6444 = vrsqrt.f32 %v8645_v50  ;;  %vm1822_vm1 = vcmp.eq.f32.partialorder %v10468_v60, 0.0  ;;  %v1823_v5 = vand.u32 2147483648, %v10468_v60  ;;  %v1826_v47 = vmul.f32 %v8199_v27, %v10469_v43 }
 0x1aa   : > { %v1821_v6 = vsel %vm1820_vm13, %v10468_v60, %v1819_v48  ;;  %vm1827_vm2 = vcmp.eq.f32.partialorder %v10469_v43, inf  ;;  %v8665_v30 = vpop.eup %6432  ;;  %vm1829_vm3 = vcmp.eq.f32.partialorder %v10469_v43, 0.0  ;;  %v1830_v15 = vand.u32 2147483648, %v10469_v43  ;;  %v10471_v48 = vld [vmem:[#allocation88_spill] sm:$0xff] }
 0x1ab   : > { %v8676_v60 = vadd.f32 %v8672_v35, %v10470_v51  ;;  %v8680_v27 = vadd.f32 %v8672_v35, %v10471_v48  ;;  %v2348_v55 = vand.u32 2147483648, %v8626_v62  ;;  %v1824_v18 = vsel %vm1822_vm1, %v1823_v5, %v1821_v6  ;;  %v8692_v51 = vpop.eup %6434 }
 0x1ac   : > { %v1828_v8 = vsel %vm1827_vm2, %v10469_v43, %v1826_v47  ;;  %v8690_v7 = vadd.f32 %v8672_v35, %v10472_v58  ;;  %vm2331_vm4 = vcmp.eq.f32.partialorder %v8645_v50, inf  ;;  %v8697_v59 = vmul.f32 %v6544_v14, %v1824_v18  ;;  %v6437_v54 = vpop.eup %6436  ;;  %v10473_v58 = vld [vmem:[#allocation92_spill] sm:$0xff] }
 0x1ad   : > { %v1831_v48 = vsel %vm1829_vm3, %v1830_v15, %v1828_v8  ;;  %6446 = vrsqrt.f32 %v8676_v60  ;;  %vm2333_vm5 = vcmp.eq.f32.partialorder %v8645_v50, 0.0  ;;  %v8707_v5 = vadd.f32 %v8672_v35, %v10473_v58 }
 0x1ae   : > { %6448 = vrsqrt.f32 %v8680_v27  ;;  %v6439_v43 = vpop.eup %6438  ;;  %v2337_v8 = vmul.f32 %v6437_v54, %v8584_v25  ;;  %v2334_v14 = vand.u32 2147483648, %v8645_v50  ;;  %vm2366_vm6 = vcmp.eq.f32.partialorder %v8676_v60, inf }
 0x1af   : > { %5905 = vmatmul.mubr.msk.bf16.gmra.mrb[144].mxu1 %vm638_vm0, %v2554_v32  ;;  %v6545_v32 = vld [vmem:[%s6688_s16 + $0x168] sm:$0xff]  ;;  %v2323_v15 = vmul.f32 %v6439_v43, %v8611_v49  ;;  %vm2368_vm7 = vcmp.eq.f32.partialorder %v8676_v60, 0.0  ;;  %vm2352_vm8 = vcmp.eq.f32.partialorder %v8680_v27, inf  ;;  %6450 = vrsqrt.f32 %v8690_v7 }
 0x1b0   : > { %3092 = vmatprep.mubr.bf16.mxu1 %v10343_v19  ;;  %v8702_v6 = vmul.f32 %v6545_v32, %v1831_v48  ;;  %v6441_v47 = vpop.eup %6440  ;;  %v2339_v32 = vsel %vm2338_vm9, %v8584_v25, %v2337_v8  ;;  %vm2354_vm13 = vcmp.eq.f32.partialorder %v8680_v27, 0.0  ;;  %v2355_v43 = vand.u32 2147483648, %v8680_v27 }
 0x1b1   : > { %v8719_v54 = vpop.eup %6442  ;;  %v2344_v58 = vmul.f32 %v6441_v47, %v8626_v62  ;;  %v2342_v48 = vsel %vm2340_vm10, %v2341_v24, %v2339_v32  ;;  %v2325_v18 = vsel %vm2324_vm11, %v8611_v49, %v2323_v15  ;;  %vm2373_vm1 = vcmp.eq.f32.partialorder %v8690_v7, inf  ;;  %v6547_v32 = vld [vmem:[%s6688_s16 + $0x3a0] sm:$0xff] }
 0x1b2   : > { %6452 = vrsqrt.f32 %v8707_v5  ;;  %v8735_v20 = vmul.f32 %v6546_v63, %v2342_v48  ;;  %v2328_v47 = vsel %vm2326_vm12, %v2327_v23, %v2325_v18  ;;  %vm2375_vm9 = vcmp.eq.f32.partialorder %v8690_v7, 0.0  ;;  %v6548_v18 = vld [vmem:[%s6688_s16 + $0x3b8] sm:$0xff] }
 0x1b3   : > { %v6445_v8 = vpop.eup %6444  ;;  %v2346_v25 = vsel %vm2345_vm14, %v8626_v62, %v2344_v58  ;;  %v2376_v24 = vand.u32 2147483648, %v8690_v7  ;;  %v10474_v15 = vpack.c.bf16 %v8580_v33, %v8566_v45  ;;  %v8749_v11 = vmul.f32 %v6547_v32, %v2328_v47  ;;  %v10475_v45 = vld [vmem:[#allocation77_spill] sm:$0xff]  ;;  %v10476_v62 = vld [vmem:[#allocation80_spill] sm:$0xff] }
 0x1b4   : > { %v2349_v49 = vsel %vm2347_vm15, %v2348_v55, %v2346_v25  ;;  %v2330_v63 = vmul.f32 %v6445_v8, %v8645_v50  ;;  %vm2359_vm10 = vcmp.eq.f32.partialorder %v8707_v5, inf  ;;  %vm2361_vm11 = vcmp.eq.f32.partialorder %v8707_v5, 0.0  ;;  %v10477_v58 = vld [vmem:[#allocation20_spill] sm:$0xff]  ;;  %v10478_v8 = vld [vmem:[#allocation91_spill] sm:$0xff] }
 0x1b5   : > { %v8757_v48 = vmul.f32 %v6548_v18, %v2349_v49  ;;  %v8763_v33 = vadd.f32 %v8672_v35, %v10475_v45  ;;  %v8767_v55 = vadd.f32 %v8672_v35, %v10476_v62  ;;  %v1833_v47 = vmul.f32 %v10478_v8, %v10477_v58  ;;  %v10479_v49 = vld [vmem:[#allocation82_spill] sm:$0xff] }
 0x1b6   : > { %v2332_v25 = vsel %vm2331_vm4, %v8645_v50, %v2330_v63  ;;  %vm1834_vm12 = vcmp.eq.f32.partialorder %v10477_v58, inf  ;;  %vm1836_vm14 = vcmp.eq.f32.partialorder %v10477_v58, 0.0  ;;  %v6549_v63 = vld [vmem:[%s6688_s16 + $0x3a8] sm:$0xff]  ;;  %v1840_v50 = vmul.f32 %v8190_v13, %v10479_v49 }
 0x1b7   : > { %5906 = vmatmul.mubr.msk.bf16.gmra.mrb[148].mxu1 %vm638_vm0, %v10474_v15  ;;  %v1837_v15 = vand.u32 2147483648, %v10477_v58  ;;  %v6447_v32 = vpop.eup %6446  ;;  %v2335_v18 = vsel %vm2333_vm5, %v2334_v14, %v2332_v25  ;;  %6454 = vrsqrt.f32 %v8763_v33  ;;  %v1835_v45 = vsel %vm1834_vm12, %v10477_v58, %v1833_v47 }
 0x1b8   : > { %3102 = vmatprep.mubr.bf16.mxu1 %v10343_v19  ;;  %v6449_v62 = vpop.eup %6448  ;;  %v8784_v8 = vmul.f32 %v6549_v63, %v2335_v18  ;;  %v2365_v23 = vmul.f32 %v6447_v32, %v8676_v60  ;;  %6456 = vrsqrt.f32 %v8767_v55  ;;  %vm1841_vm15 = vcmp.eq.f32.partialorder %v10479_v49, inf }
 0x1b9   : > { %v1838_v29 = vsel %vm1836_vm14, %v1837_v15, %v1835_v45  ;;  %v2351_v46 = vmul.f32 %v6449_v62, %v8680_v27  ;;  %vm1843_vm2 = vcmp.eq.f32.partialorder %v10479_v49, 0.0  ;;  %v6451_v14 = vpop.eup %6450  ;;  %v1844_v25 = vand.u32 2147483648, %v10479_v49  ;;  %v6550_v15 = vld [vmem:[%s6688_s16 + $0x170] sm:$0xff] }
 0x1ba   : > { %v2367_v47 = vsel %vm2366_vm6, %v8676_v60, %v2365_v23  ;;  %v2452_v32 = vmul.f32 %v6550_v15, %v1838_v29  ;;  %v10480_v18 = vand.u32 2147483648, %v8676_v60  ;;  %v2372_v62 = vmul.f32 %v6451_v14, %v8690_v7  ;;  %v6551_v29 = vld [vmem:[%s6688_s16 + $0x3d0] sm:$0xff] }
 0x1bb   : > { %v2353_v45 = vsel %vm2352_vm8, %v8680_v27, %v2351_v46  ;;  %v1842_v63 = vsel %vm1841_vm15, %v10479_v49, %v1840_v50  ;;  %v10481_v23 = vpack.c.bf16 %v8702_v6, %v8697_v59  ;;  %v6552_v50 = vld [vmem:[%s6688_s16 + $0x3c0] sm:$0xff]  ;;  %v6553_v27 = vld [vmem:[%s6688_s16 + $0x178] sm:$0xff]  ;;  %vm1848_vm5 = vcmp.eq.f32.partialorder %v8310_v16, inf }
 0x1bc   : > { %v2370_v13 = vsel %vm2368_vm7, %v10480_v18, %v2367_v47  ;;  %v6453_v58 = vpop.eup %6452  ;;  %v2356_v60 = vsel %vm2354_vm13, %v2355_v43, %v2353_v45  ;;  %v1845_v46 = vsel %vm1843_vm2, %v1844_v25, %v1842_v63  ;;  %v10482_v47 = vld [vmem:[#allocation84_spill] sm:$0xff]  ;;  %v2374_v59 = vsel %vm2373_vm1, %v8690_v7, %v2372_v62  ;;  %v10483_v25 = vld [vmem:[#allocation85_spill] sm:$0xff]  ;;  %v5949_v62 = vld [vmem:[#allocation2] ss:$0 sm:$0xff] }
 0x1bd   : > { %v8814_v15 = vmul.f32 %v6551_v29, %v2370_v13  ;;  %v8822_v14 = vadd.f32 %v8672_v35, %v10482_v47  ;;  %v8825_v18 = vmul.f32 %v6552_v50, %v2356_v60  ;;  %v2358_v6 = vmul.f32 %v6453_v58, %v8707_v5  ;;  %v6554_v58 = vld [vmem:[%s6688_s16 + $0x3d8] sm:$0xff]  ;;  %4458 = vperm.xlu0 %6189, %v5949_v62   ;;  %v6555_v47 = vld [vmem:[%s6688_s16 + $0x3c8] sm:$0xff] }
 0x1be   : > { %v2453_v43 = vmul.f32 %v6553_v27, %v1845_v46  ;;  %v2377_v49 = vsel %vm2375_vm9, %v2376_v24, %v2374_v59  ;;  %v8838_v13 = vadd.f32 %v8672_v35, %v10483_v25  ;;  %v8842_v45 = vadd.f32 %v8672_v35, %v8197_v39 }
 0x1bf   : > { %5907 = vmatmul.mubr.msk.bf16.gmra.mrb[152].mxu1 %vm638_vm0, %v10481_v23  ;;  %6458 = vrsqrt.f32 %v8822_v14  ;;  %v8845_v63 = vmul.f32 %v6554_v58, %v2377_v49  ;;  %v2360_v7 = vsel %vm2359_vm10, %v8707_v5, %v2358_v6  ;;  %v8852_v24 = vadd.f32 %v8672_v35, %v8207_v28 }
 0x1c0   : > { %3112 = vmatprep.mubr.bf16.mxu1 %v10343_v19  ;;  %v2557_v23 = vpack.c.bf16 %v2453_v43, %v2452_v32  ;;  %v10484_v29 = vand.u32 2147483648, %v8707_v5  ;;  %6460 = vrsqrt.f32 %v8838_v13  ;;  %vm2394_vm3 = vcmp.eq.f32.partialorder %v8842_v45, inf }
 0x1c1   : > { %v8859_v60 = vpop.eup %6454  ;;  %6462 = vrsqrt.f32 %v8842_v45  ;;  %v8875_v32 = vadd.f32 %v8672_v35, %v8215_v41  ;;  %v8879_v59 = vadd.f32 %v8672_v35, %v8226_v36  ;;  %v1847_v6 = vmul.f32 %v8413_v44, %v8310_v16 }
 0x1c2   : > { %v2363_v39 = vsel %vm2361_vm11, %v10484_v29, %v2360_v7  ;;  %v8867_v28 = vpop.eup %6456  ;;  %6464 = vrsqrt.f32 %v8852_v24  ;;  %vm2396_vm4 = vcmp.eq.f32.partialorder %v8842_v45, 0.0  ;;  %v2397_v27 = vand.u32 2147483648, %v8842_v45 }
 0x1c3   : > { %v8864_v50 = vmul.f32 %v6555_v47, %v2363_v39  ;;  %v1851_v43 = vand.u32 2147483648, %v8310_v16  ;;  %v1854_v41 = vmul.f32 %v8444_v21, %v8341_v3  ;;  %vm2380_vm6 = vcmp.eq.f32.partialorder %v8852_v24, inf }
 0x1c4   : > { %vm2382_vm7 = vcmp.eq.f32.partialorder %v8852_v24, 0.0  ;;  %6466 = vrsqrt.f32 %v8875_v32  ;;  %vm1850_vm8 = vcmp.eq.f32.partialorder %v8310_v16, 0.0  ;;  %v2383_v36 = vand.u32 2147483648, %v8852_v24 }
 0x1c5   : > { %v2404_v44 = vand.u32 2147483648, %v8875_v32  ;;  %6468 = vrsqrt.f32 %v8879_v59  ;;  %vm2401_vm13 = vcmp.eq.f32.partialorder %v8875_v32, inf  ;;  %v1849_v21 = vsel %vm1848_vm5, %v8310_v16, %v1847_v6  ;;  %v10486_v16 = vld [vmem:[#allocation93_spill] sm:$0xff]  ;;  %v6556_v6 = vld [vmem:[%s6688_s16 + $0x180] sm:$0xff] }
 0x1c6   : > { %vm1855_vm1 = vcmp.eq.f32.partialorder %v8341_v3, inf  ;;  %vm1857_vm9 = vcmp.eq.f32.partialorder %v8341_v3, 0.0  ;;  %v1858_v25 = vand.u32 2147483648, %v8341_v3  ;;  %vm2403_vm10 = vcmp.eq.f32.partialorder %v8875_v32, 0.0 }
 0x1c7   : > { %5908 = vmatmul.mubr.msk.bf16.gmra.mrb[156].mxu1 %vm638_vm0, %v2557_v23  ;;  %vm2387_vm11 = vcmp.eq.f32.partialorder %v8879_v59, inf  ;;  %v1852_v58 = vsel %vm1850_vm8, %v1851_v43, %v1849_v21  ;;  %v1856_v7 = vsel %vm1855_vm1, %v8341_v3, %v1854_v41  ;;  %v10485_v23 = vld [vmem:[#allocation90_spill] sm:$0xff]  ;;  %v8915_v39 = vadd.f32 %v8672_v35, %v10486_v16  ;;  %v6557_v3 = vld [vmem:[%s6688_s16 + $0x188] sm:$0xff] }
 0x1c8   : > { %3122 = vmatprep.mubr.bf16.mxu1 %v10343_v19  ;;  %v8911_v29 = vadd.f32 %v8672_v35, %v10485_v23  ;;  %vm2389_vm12 = vcmp.eq.f32.partialorder %v8879_v59, 0.0  ;;  %v1859_v47 = vsel %vm1857_vm9, %v1858_v25, %v1856_v7  ;;  %v2454_v46 = vmul.f32 %v6556_v6, %v1852_v58 }
 0x1c9   : > { %v8904_v62 = vpop.eup %6458  ;;  %v1861_v5 = vmul.f32 %v8396_v34, %v8283_v2  ;;  %vm1862_vm14 = vcmp.eq.f32.partialorder %v8283_v2, inf  ;;  %v2455_v41 = vmul.f32 %v6557_v3, %v1859_v47  ;;  %vm1864_vm15 = vcmp.eq.f32.partialorder %v8283_v2, 0.0 }
 0x1ca   : > { %v8922_v43 = vpop.eup %6460  ;;  %6470 = vrsqrt.f32 %v8911_v29  ;;  %v1865_v21 = vand.u32 2147483648, %v8283_v2  ;;  %v1868_v34 = vmul.f32 %v8437_v37, %v8337_v26  ;;  %vm1869_vm2 = vcmp.eq.f32.partialorder %v8337_v26, inf }
 0x1cb   : > { %v6463_v23 = vpop.eup %6462  ;;  %6472 = vrsqrt.f32 %v8915_v39  ;;  %v1863_v25 = vsel %vm1862_vm14, %v8283_v2, %v1861_v5  ;;  %v2558_v16 = vpack.c.bf16 %v2455_v41, %v2454_v46  ;;  %vm1871_vm5 = vcmp.eq.f32.partialorder %v8337_v26, 0.0  ;;  %v6558_v2 = vld [vmem:[%s6688_s16 + $0x190] sm:$0xff] }
 0x1cc   : > { %v6465_v58 = vpop.eup %6464  ;;  %v2393_v7 = vmul.f32 %v6463_v23, %v8842_v45  ;;  %v1866_v47 = vsel %vm1864_vm15, %v1865_v21, %v1863_v25  ;;  %v1870_v3 = vsel %vm1869_vm2, %v8337_v26, %v1868_v34  ;;  %v1872_v49 = vand.u32 2147483648, %v8337_v26 }
 0x1cd   : > { %v2379_v6 = vmul.f32 %v6465_v58, %v8852_v24  ;;  %v2456_v5 = vmul.f32 %v6558_v2, %v1866_v47  ;;  %v8945_v46 = vadd.f32 %v8672_v35, %v8162_v22  ;;  %v8949_v41 = vadd.f32 %v8672_v35, %v8174_v17  ;;  %v6559_v58 = vld [vmem:[%s6688_s16 + $0x3f0] sm:$0xff] }
 0x1ce   : > { %v2395_v37 = vsel %vm2394_vm3, %v8842_v45, %v2393_v7  ;;  %v1875_v26 = vmul.f32 %v8665_v30, %v8542_v61  ;;  %v6467_v21 = vpop.eup %6466  ;;  %v1873_v22 = vsel %vm1871_vm5, %v1872_v49, %v1870_v3  ;;  %vm1876_vm3 = vcmp.eq.f32.partialorder %v8542_v61, inf  ;;  %v6560_v45 = vld [vmem:[%s6688_s16 + $0x198] sm:$0xff]  ;;  %v6561_v7 = vld [vmem:[%s6688_s16 + $0x3e0] sm:$0xff] }
 0x1cf   : > { %5909 = vmatmul.mubr.msk.bf16.gmra.mrb[160].mxu1 %vm638_vm0, %v2558_v16  ;;  %v2398_v23 = vsel %vm2396_vm4, %v2397_v27, %v2395_v37  ;;  %v2381_v25 = vsel %vm2380_vm6, %v8852_v24, %v2379_v6  ;;  %v6469_v34 = vpop.eup %6468  ;;  %v2400_v35 = vmul.f32 %v6467_v21, %v8875_v32  ;;  %v2457_v27 = vmul.f32 %v6560_v45, %v1873_v22 }
 0x1d0   : > { %3132 = vmatprep.mubr.bf16.mxu1 %v10343_v19  ;;  %v8961_v17 = vmul.f32 %v6559_v58, %v2398_v23  ;;  %v2384_v30 = vsel %vm2382_vm7, %v2383_v36, %v2381_v25  ;;  %v2386_v47 = vmul.f32 %v6469_v34, %v8879_v59  ;;  %6474 = vrsqrt.f32 %v8945_v46 }
 0x1d1   : > { %v8968_v16 = vmul.f32 %v6561_v7, %v2384_v30  ;;  %v1877_v49 = vsel %vm1876_vm3, %v8542_v61, %v1875_v26  ;;  %v2402_v24 = vsel %vm2401_vm13, %v8875_v32, %v2400_v35  ;;  %v2559_v36 = vpack.c.bf16 %v2457_v27, %v2456_v5  ;;  %v6562_v26 = vld [vmem:[%s6688_s16 + $0x3f8] sm:$0xff] }
 0x1d2   : > { %6476 = vrsqrt.f32 %v8949_v41  ;;  %vm1878_vm4 = vcmp.eq.f32.partialorder %v8542_v61, 0.0  ;;  %v2405_v6 = vsel %vm2403_vm10, %v2404_v44, %v2402_v24  ;;  %v2388_v3 = vsel %vm2387_vm11, %v8879_v59, %v2386_v47 }
 0x1d3   : > { %v1879_v2 = vand.u32 2147483648, %v8542_v61  ;;  %v1882_v37 = vmul.f32 %v8719_v54, %v8592_v1  ;;  %v8991_v21 = vmul.f32 %v6562_v26, %v2405_v6  ;;  %v10487_v23 = vand.u32 2147483648, %v8879_v59  ;;  %v6563_v61 = vld [vmem:[%s6688_s16 + $0x3e8] sm:$0xff]  ;;  %v6564_v59 = vld [vmem:[%s6688_s16 + $0x1a0] sm:$0xff] }
 0x1d4   : > { %v8988_v5 = vpop.eup %6470  ;;  %vm1883_vm6 = vcmp.eq.f32.partialorder %v8592_v1, inf  ;;  %vm1885_vm7 = vcmp.eq.f32.partialorder %v8592_v1, 0.0  ;;  %v1886_v34 = vand.u32 2147483648, %v8592_v1  ;;  %v2608_v35 = vlaneseq }
 0x1d5   : > { %v2391_v32 = vsel %vm2389_vm12, %v10487_v23, %v2388_v3  ;;  %v8999_v44 = vpop.eup %6472  ;;  %v1880_v54 = vsel %vm1878_vm4, %v1879_v2, %v1877_v49  ;;  %v1884_v22 = vsel %vm1883_vm6, %v8592_v1, %v1882_v37  ;;  %v2597_v58 = vpack.c.bf16 %v8991_v21, %v8961_v17  ;;  %v6565_v1 = vld [vmem:[%s6688_s16 + $0x1a8] sm:$0xff] }
 0x1d6   : > { %v9002_v25 = vmul.f32 %v6563_v61, %v2391_v32  ;;  %v2458_v30 = vmul.f32 %v6564_v59, %v1880_v54  ;;  %v1889_v45 = vmul.f32 %v8654_v9, %v8483_v53  ;;  %v1887_v7 = vsel %vm1885_vm7, %v1886_v34, %v1884_v22  ;;  %v2606_v9 = vld [vmem:[%s10233_s4] sm:$0x3]  ;;  %v6566_v61 = vld [vmem:[%s6688_s16 + $0x1b0] sm:$0xff] }
 0x1d7   : > { %5910 = vmatmul.mubr.msk.bf16.gmra.mrb[164].mxu1 %vm638_vm0, %v2559_v36  ;;  %vm1890_vm8 = vcmp.eq.f32.partialorder %v8483_v53, inf  ;;  %vm1892_vm13 = vcmp.eq.f32.partialorder %v8483_v53, 0.0  ;;  %v2459_v47 = vmul.f32 %v6565_v1, %v1887_v7  ;;  %v2609_v49 = vshrl.u32 %v2608_v35, 7  ;;  %v6567_v35 = vld [vmem:[%s6688_s16 + $0x1b8] sm:$0xff] }
 0x1d8   : > { %v2596_v27 = vpack.c.bf16 %v9002_v25, %v8968_v16  ;;  %3142 = vmatprep.mubr.bf16.mxu1 %v10343_v19  ;;  %v1891_v24 = vsel %vm1890_vm8, %v8483_v53, %v1889_v45  ;;  %v1893_v36 = vand.u32 2147483648, %v8483_v53  ;;  %v1896_v6 = vmul.f32 %v8692_v51, %v8573_v0 }
 0x1d9   : > { %vm1897_vm1 = vcmp.eq.f32.partialorder %v8573_v0, inf  ;;  %vm1899_vm9 = vcmp.eq.f32.partialorder %v8573_v0, 0.0  ;;  %v1900_v3 = vand.u32 2147483648, %v8573_v0  ;;  %v2560_v2 = vpack.c.bf16 %v2459_v47, %v2458_v30 }
 0x1da   : > { %v2610_v37 = vsub.s32 0, %v2609_v49  ;;  %v2614_v26 = vsub.s32 1, %v2609_v49  ;;  %v1894_v23 = vsel %vm1892_vm13, %v1893_v36, %v1891_v24  ;;  %v9028_v32 = vpop.eup %6474  ;;  %v1898_v53 = vsel %vm1897_vm1, %v8573_v0, %v1896_v6 }
 0x1db   : > { %v2460_v54 = vmul.f32 %v6566_v61, %v1894_v23  ;;  %v1903_v51 = vmul.f32 %v8867_v28, %v8767_v55  ;;  %vm1904_vm10 = vcmp.eq.f32.partialorder %v8767_v55, inf  ;;  %v1901_v30 = vsel %vm1899_vm9, %v1900_v3, %v1898_v53  ;;  %v6568_v3 = vld [vmem:[%s6688_s16 + $0x1c0] sm:$0xff]  ;;  %v6569_v23 = vld [vmem:[%s6688_s16 + $0x1c8] sm:$0xff] }
 0x1dc   : > { %v9035_v22 = vpop.eup %6476  ;;  %v9037_v34 = vrot.slane %v2606_v9, %v2610_v37  ;;  %v9039_v59 = vrot.slane %v2606_v9, %v2614_v26  ;;  %vm1906_vm11 = vcmp.eq.f32.partialorder %v8767_v55, 0.0  ;;  %v2461_v45 = vmul.f32 %v6567_v35, %v1901_v30 }
 0x1dd   : > { %v1905_v0 = vsel %vm1904_vm10, %v8767_v55, %v1903_v51  ;;  %v1907_v7 = vand.u32 2147483648, %v8767_v55  ;;  %v1910_v28 = vmul.f32 %v8922_v43, %v8838_v13  ;;  %vm1911_vm12 = vcmp.eq.f32.partialorder %v8838_v13, inf }
 0x1de   : > { %vm1913_vm14 = vcmp.eq.f32.partialorder %v8838_v13, 0.0  ;;  %v1914_v1 = vand.u32 2147483648, %v8838_v13  ;;  %v1917_v47 = vmul.f32 %v8859_v60, %v8763_v33  ;;  %v2561_v55 = vpack.c.bf16 %v2461_v45, %v2460_v54 }
 0x1df   : > { %5911 = vmatmul.mubr.msk.bf16.gmra.mrb[168].mxu1 %vm638_vm0, %v2560_v2  ;;  %v2884_v49 = vpop.f32.mrb[64].mxu1  ;;  %v1908_v24 = vsel %vm1906_vm11, %v1907_v7, %v1905_v0  ;;  %v1912_v36 = vsel %vm1911_vm12, %v8838_v13, %v1910_v28  ;;  %vm1918_vm15 = vcmp.eq.f32.partialorder %v8763_v33, inf  ;;  %vm1920_vm2 = vcmp.eq.f32.partialorder %v8763_v33, 0.0 }
 0x1e0   : > { %3152 = vmatprep.mubr.bf16.mxu1 %v10343_v19  ;;  %v2885_v43 = vadd.f32 %v2884_v49, %v9037_v34  ;;  %v2886_v9 = vpop.f32.mrb[65].mxu1  ;;  %v1915_v6 = vsel %vm1913_vm14, %v1914_v1, %v1912_v36  ;;  %v9058_v2 = vmul.f32 %v6568_v3, %v1908_v24  ;;  %v1919_v37 = vsel %vm1918_vm15, %v8763_v33, %v1917_v47 }
 0x1e1   : > { %v2887_v60 = vadd.f32 %v2886_v9, %v9039_v59  ;;  %v2888_v26 = vpop.f32.mrb[66].mxu1  ;;  %v9063_v53 = vmul.f32 %v6569_v23, %v1915_v6  ;;  %v1921_v13 = vand.u32 2147483648, %v8763_v33  ;;  %v1924_v30 = vmul.f32 %v8904_v62, %v8822_v14  ;;  %v6570_v6 = vld [vmem:[%s6688_s16 + $0x1d0] sm:$0xff] }
 0x1e2   : > { %vm3523_vm5 = vcmp.ge.f32.partialorder %v2885_v43, 0.0  ;;  %v3779_v61 = vmul.f32 0.01, %v2885_v43  ;;  %v2889_v54 = vadd.f32 %v2888_v26, %v9037_v34  ;;  %v2890_v51 = vpop.f32.mrb[67].mxu1  ;;  %vm1925_vm7 = vcmp.eq.f32.partialorder %v8822_v14, inf }
 0x1e3   : > { %vm3524_vm3 = vcmp.ge.f32.partialorder %v2887_v60, 0.0  ;;  %v3780_v35 = vmul.f32 0.01, %v2887_v60  ;;  %v2891_v45 = vadd.f32 %v2890_v51, %v9039_v59  ;;  %v2562_v0 = vpack.c.bf16 %v9063_v53, %v9058_v2  ;;  %v6571_v53 = vld [vmem:[%s6688_s16 + $0x1d8] sm:$0xff] }
 0x1e4   : > { %v4035_v7 = vsel %vm3523_vm5, %v2885_v43, %v3779_v61  ;;  %vm3525_vm4 = vcmp.ge.f32.partialorder %v2889_v54, 0.0  ;;  %v3781_v28 = vmul.f32 0.01, %v2889_v54  ;;  %v1922_v33 = vsel %vm1920_vm2, %v1921_v13, %v1919_v37 }
 0x1e5   : > { %vm3526_vm6 = vcmp.ge.f32.partialorder %v2891_v45, 0.0  ;;  %v3782_v1 = vmul.f32 0.01, %v2891_v45  ;;  %v4036_v47 = vsel %vm3524_vm3, %v2887_v60, %v3780_v35  ;;  %v1926_v62 = vsel %vm1925_vm7, %v8822_v14, %v1924_v30 }
 0x1e6   : > { %v4037_v49 = vsel %vm3525_vm4, %v2889_v54, %v3781_v28  ;;  %vm1927_vm8 = vcmp.eq.f32.partialorder %v8822_v14, 0.0  ;;  %v1928_v24 = vand.u32 2147483648, %v8822_v14  ;;  %v9080_v3 = vmul.f32 %v6570_v6, %v1922_v33 }
 0x1e7   : > { %5912 = vmatmul.mubr.msk.bf16.gmra.mrb[172].mxu1 %vm638_vm0, %v2561_v55  ;;  %v4291_v36 = vpack.c.bf16 %v4037_v49, %v4035_v7  ;;  %v2894_v43 = vpop.f32.mrb[68].mxu1  ;;  %v4038_v9 = vsel %vm3526_vm6, %v2891_v45, %v3782_v1  ;;  %v1931_v2 = vmul.f32 %v8999_v44, %v8915_v39  ;;  %vm1932_vm13 = vcmp.eq.f32.partialorder %v8915_v39, inf }
 0x1e8   : > { %3162 = vmatprep.mubr.bf16.mxu1 %v10343_v19  ;;  %v2895_v55 = vadd.f32 %v2894_v43, %v9037_v34  ;;  %v2896_v37 = vpop.f32.mrb[69].mxu1  ;;  %v4292_v60 = vpack.c.bf16 %v4038_v9, %v4036_v47  ;;  %v1929_v26 = vsel %vm1927_vm8, %v1928_v24, %v1926_v62  ;;  %vm1934_vm1 = vcmp.eq.f32.partialorder %v8915_v39, 0.0 }
 0x1e9   : > { %v2897_v14 = vadd.f32 %v2896_v37, %v9039_v59  ;;  %v2898_v23 = vpop.f32.mrb[70].mxu1  ;;  %v9088_v13 = vmul.f32 %v6571_v53, %v1929_v26  ;;  %v1933_v61 = vsel %vm1932_vm13, %v8915_v39, %v1931_v2  ;;  %v1935_v30 = vand.u32 2147483648, %v8915_v39 }
 0x1ea   : > { %vm3527_vm9 = vcmp.ge.f32.partialorder %v2895_v55, 0.0  ;;  %v3783_v54 = vmul.f32 0.01, %v2895_v55  ;;  %v2899_v44 = vadd.f32 %v2898_v23, %v9037_v34  ;;  %v2900_v51 = vpop.f32.mrb[71].mxu1  ;;  %4589 = vmatprep.mubr.bf16.mxu0 %v4292_v60  ;;  %v1938_v62 = vmul.f32 %v9035_v22, %v8949_v41  ;;  %v6573_v23 = vld [vmem:[%s6688_s16 + $0x1e8] sm:$0xff] }
 0x1eb   : > { %vm3528_vm10 = vcmp.ge.f32.partialorder %v2897_v14, 0.0  ;;  %v3784_v35 = vmul.f32 0.01, %v2897_v14  ;;  %v2901_v45 = vadd.f32 %v2900_v51, %v9039_v59  ;;  %4590 = vmatmul.mubr.bf16.vlgmr.msra.gmra.mrb[64].mxu0 %v4291_v36  ;;  %v2563_v7 = vpack.c.bf16 %v9088_v13, %v9080_v3  ;;  %v6572_v3 = vld [vmem:[%s6688_s16 + $0x1e0] sm:$0xff] }
 0x1ec   : > { %vm3529_vm11 = vcmp.ge.f32.partialorder %v2899_v44, 0.0  ;;  %v3785_v28 = vmul.f32 0.01, %v2899_v44  ;;  %v4039_v33 = vsel %vm3527_vm9, %v2895_v55, %v3783_v54  ;;  %v1936_v1 = vsel %vm1934_vm1, %v1935_v30, %v1933_v61 }
 0x1ed   : > { %vm3530_vm12 = vcmp.ge.f32.partialorder %v2901_v45, 0.0  ;;  %v3786_v47 = vmul.f32 0.01, %v2901_v45  ;;  %v4040_v49 = vsel %vm3528_vm10, %v2897_v14, %v3784_v35  ;;  %vm1939_vm14 = vcmp.eq.f32.partialorder %v8949_v41, inf }
 0x1ee   : > { %v4041_v39 = vsel %vm3529_vm11, %v2899_v44, %v3785_v28  ;;  %vm1941_vm15 = vcmp.eq.f32.partialorder %v8949_v41, 0.0  ;;  %v1942_v24 = vand.u32 2147483648, %v8949_v41  ;;  %v1940_v6 = vsel %vm1939_vm14, %v8949_v41, %v1938_v62 }
 0x1ef   : > { %5913 = vmatmul.mubr.msk.bf16.gmra.mrb[176].mxu1 %vm638_vm0, %v2562_v0  ;;  %v2904_v36 = vpop.f32.mrb[72].mxu1  ;;  %v4042_v43 = vsel %vm3530_vm12, %v2901_v45, %v3786_v47  ;;  %v4293_v9 = vpack.c.bf16 %v4041_v39, %v4039_v33  ;;  %v9106_v2 = vmul.f32 %v6572_v3, %v1936_v1  ;;  %v1945_v60 = vmul.f32 %v8988_v5, %v8911_v29  ;;  %v10488_v3 = vld [vmem:[#allocation4_spill] sm:$0xff] }
 0x1f0   : > { %3172 = vmatprep.mubr.bf16.mxu1 %v10343_v19  ;;  %v2905_v22 = vadd.f32 %v2904_v36, %v9037_v34  ;;  %v2906_v0 = vpop.f32.mrb[73].mxu1  ;;  %v4294_v55 = vpack.c.bf16 %v4042_v43, %v4040_v49  ;;  %v1943_v37 = vsel %vm1941_vm15, %v1942_v24, %v1940_v6  ;;  %vm1946_vm2 = vcmp.eq.f32.partialorder %v8911_v29, inf }
 0x1f1   : > { %v2907_v26 = vadd.f32 %v2906_v0, %v9039_v59  ;;  %v2908_v14 = vpop.f32.mrb[74].mxu1  ;;  %v9113_v53 = vmul.f32 %v6573_v23, %v1943_v37  ;;  %vm1948_vm5 = vcmp.eq.f32.partialorder %v8911_v29, 0.0  ;;  %v1947_v54 = vsel %vm1946_vm2, %v8911_v29, %v1945_v60 }
 0x1f2   : > { %vm3531_vm3 = vcmp.ge.f32.partialorder %v2905_v22, 0.0  ;;  %v3787_v41 = vmul.f32 0.01, %v2905_v22  ;;  %v2909_v13 = vadd.f32 %v2908_v14, %v9037_v34  ;;  %v2910_v61 = vpop.f32.mrb[75].mxu1  ;;  %4597 = vmatprep.mubr.bf16.mxu0 %v4294_v55  ;;  %v1949_v45 = vand.u32 2147483648, %v8911_v29  ;;  %v6574_v29 = vld [vmem:[%s6688_s16 + $0x1f0] sm:$0xff] }
 0x1f3   : > { %vm3532_vm4 = vcmp.ge.f32.partialorder %v2907_v26, 0.0  ;;  %v3788_v5 = vmul.f32 0.01, %v2907_v26  ;;  %v2911_v44 = vadd.f32 %v2910_v61, %v9039_v59  ;;  %4598 = vmatmul.mubr.bf16.gmra.mrb[68].mxu0 %v4293_v9  ;;  %v2564_v51 = vpack.c.bf16 %v9113_v53, %v9106_v2  ;;  %v10489_v2 = vld [vmem:[#allocation9_spill] sm:$0xff] }
 0x1f4   : > { %vm3533_vm6 = vcmp.ge.f32.partialorder %v2909_v13, 0.0  ;;  %v3789_v30 = vmul.f32 0.01, %v2909_v13  ;;  %v4043_v35 = vsel %vm3531_vm3, %v2905_v22, %v3787_v41  ;;  %v1952_v1 = vmul.f32 %v9028_v32, %v8945_v46  ;;  %v6575_v14 = vld [vmem:[%s6688_s16 + $0x1f8] sm:$0xff] }
 0x1f5   : > { %vm3534_vm7 = vcmp.ge.f32.partialorder %v2911_v44, 0.0  ;;  %v3790_v28 = vmul.f32 0.01, %v2911_v44  ;;  %v4044_v33 = vsel %vm3532_vm4, %v2907_v26, %v3788_v5  ;;  %v1950_v49 = vsel %vm1948_vm5, %v1949_v45, %v1947_v54 }
 0x1f6   : > { %v4045_v47 = vsel %vm3533_vm6, %v2909_v13, %v3789_v30  ;;  %vm1953_vm8 = vcmp.eq.f32.partialorder %v8945_v46, inf  ;;  %vm1955_vm13 = vcmp.eq.f32.partialorder %v8945_v46, 0.0  ;;  %v1956_v43 = vand.u32 2147483648, %v8945_v46 }
 0x1f7   : > { %5914 = vmatmul.mubr.msk.bf16.gmra.mrb[180].mxu1 %vm638_vm0, %v2563_v7  ;;  %v2914_v62 = vpop.f32.mrb[76].mxu1  ;;  %v4046_v39 = vsel %vm3534_vm7, %v2911_v44, %v3790_v28  ;;  %v4295_v24 = vpack.c.bf16 %v4045_v47, %v4043_v35  ;;  %v1954_v36 = vsel %vm1953_vm8, %v8945_v46, %v1952_v1  ;;  %v9135_v6 = vmul.f32 %v6574_v29, %v1950_v49  ;;  %v10490_v28 = vld [vmem:[#allocation6_spill] sm:$0xff] }
 0x1f8   : > { %3182 = vmatprep.mubr.bf16.mxu1 %v10343_v19  ;;  %v2915_v32 = vadd.f32 %v2914_v62, %v9037_v34  ;;  %v2916_v7 = vpop.f32.mrb[77].mxu1  ;;  %v4296_v9 = vpack.c.bf16 %v4046_v39, %v4044_v33  ;;  %v1959_v22 = vmul.f32 %v10489_v2, %v10488_v3  ;;  %v1957_v37 = vsel %vm1955_vm13, %v1956_v43, %v1954_v36  ;;  %v10491_v33 = vld [vmem:[#allocation17_spill] sm:$0xff] }
 0x1f9   : > { %v2917_v0 = vadd.f32 %v2916_v7, %v9039_v59  ;;  %v2918_v55 = vpop.f32.mrb[78].mxu1  ;;  %vm1960_vm1 = vcmp.eq.f32.partialorder %v10488_v3, inf  ;;  %vm1962_vm9 = vcmp.eq.f32.partialorder %v10488_v3, 0.0  ;;  %v2469_v23 = vmul.f32 %v6575_v14, %v1957_v37  ;;  %v6576_v7 = vld [vmem:[%s6688_s16 + $0x200] sm:$0xff] }
 0x1fa   : > { %vm3535_vm10 = vcmp.ge.f32.partialorder %v2915_v32, 0.0  ;;  %v3791_v46 = vmul.f32 0.01, %v2915_v32  ;;  %v2919_v60 = vadd.f32 %v2918_v55, %v9037_v34  ;;  %v2920_v26 = vpop.f32.mrb[79].mxu1  ;;  %4605 = vmatprep.mubr.bf16.mxu0 %v4296_v9  ;;  %v1961_v13 = vsel %vm1960_vm1, %v10488_v3, %v1959_v22  ;;  %v10492_v22 = vld [vmem:[#allocation3_spill] sm:$0xff] }
 0x1fb   : > { %vm3536_vm11 = vcmp.ge.f32.partialorder %v2917_v0, 0.0  ;;  %v3792_v53 = vmul.f32 0.01, %v2917_v0  ;;  %v2921_v41 = vadd.f32 %v2920_v26, %v9039_v59  ;;  %4606 = vmatmul.mubr.bf16.gmra.mrb[72].mxu0 %v4295_v24  ;;  %v2565_v5 = vpack.c.bf16 %v2469_v23, %v9135_v6 }
 0x1fc   : > { %vm3537_vm12 = vcmp.ge.f32.partialorder %v2919_v60, 0.0  ;;  %v3793_v61 = vmul.f32 0.01, %v2919_v60  ;;  %v4047_v54 = vsel %vm3535_vm10, %v2915_v32, %v3791_v46  ;;  %v1963_v35 = vand.u32 2147483648, %v10488_v3 }
 0x1fd   : > { %vm3538_vm14 = vcmp.ge.f32.partialorder %v2921_v41, 0.0  ;;  %v3794_v44 = vmul.f32 0.01, %v2921_v41  ;;  %v4048_v30 = vsel %vm3536_vm11, %v2917_v0, %v3792_v53  ;;  %v1966_v1 = vmul.f32 %v10491_v33, %v10490_v28  ;;  %v10493_v0 = vld [vmem:[#allocation8_spill] sm:$0xff] }
 0x1fe   : > { %v4049_v45 = vsel %vm3537_vm12, %v2919_v60, %v3793_v61  ;;  %vm1967_vm15 = vcmp.eq.f32.partialorder %v10490_v28, inf  ;;  %vm1969_vm2 = vcmp.eq.f32.partialorder %v10490_v28, 0.0  ;;  %v1964_v39 = vsel %vm1962_vm9, %v1963_v35, %v1961_v13  ;;  %v6577_v60 = vld [vmem:[%s6688_s16 + $0x208] sm:$0xff] }
 0x1ff   : > { %5915 = vmatmul.mubr.msk.bf16.gmra.mrb[184].mxu1 %vm638_vm0, %v2564_v51  ;;  %v4050_v49 = vsel %vm3538_vm14, %v2921_v41, %v3794_v44  ;;  %v4297_v62 = vpack.c.bf16 %v4049_v45, %v4047_v54  ;;  %v1970_v24 = vand.u32 2147483648, %v10490_v28  ;;  %v1968_v32 = vsel %vm1967_vm15, %v10490_v28, %v1966_v1  ;;  %v10494_v45 = vld [vmem:[#allocation5_spill] sm:$0xff]  ;;  %v10495_v28 = vld [vmem:[#allocation10_spill] sm:$0xff] }
 0x200   : > { %v2924_v47 = vpop.f32.mrb[80].mxu1  ;;  %3192 = vmatprep.mubr.bf16.mxu1 %v10343_v19  ;;  %v4298_v43 = vpack.c.bf16 %v4050_v49, %v4048_v30  ;;  %v9160_v9 = vmul.f32 %v6576_v7, %v1964_v39  ;;  %v1973_v3 = vmul.f32 %v10493_v0, %v10492_v22  ;;  %vm1974_vm5 = vcmp.eq.f32.partialorder %v10492_v22, inf }
 0x201   : > { %v2925_v51 = vadd.f32 %v2924_v47, %v9037_v34  ;;  %v2926_v36 = vpop.f32.mrb[81].mxu1  ;;  %v1971_v2 = vsel %vm1969_vm2, %v1970_v24, %v1968_v32  ;;  %vm1976_vm8 = vcmp.eq.f32.partialorder %v10492_v22, 0.0  ;;  %v1977_v35 = vand.u32 2147483648, %v10492_v22 }
 0x202   : > { %v2927_v29 = vadd.f32 %v2926_v36, %v9039_v59  ;;  %v2928_v6 = vpop.f32.mrb[82].mxu1  ;;  %4613 = vmatprep.mubr.bf16.mxu0 %v4298_v43  ;;  %v2471_v26 = vmul.f32 %v6577_v60, %v1971_v2  ;;  %v1975_v53 = vsel %vm1974_vm5, %v10492_v22, %v1973_v3  ;;  %v1980_v33 = vmul.f32 %v10495_v28, %v10494_v45  ;;  %v10497_v2 = vld [vmem:[#allocation26_spill] sm:$0xff] }
 0x203   : > { %vm3539_vm3 = vcmp.ge.f32.partialorder %v2925_v51, 0.0  ;;  %v3795_v55 = vmul.f32 0.01, %v2925_v51  ;;  %v2929_v37 = vadd.f32 %v2928_v6, %v9037_v34  ;;  %v2930_v46 = vpop.f32.mrb[83].mxu1  ;;  %4614 = vmatmul.mubr.bf16.gmra.mrb[76].mxu0 %v4297_v62  ;;  %vm1981_vm13 = vcmp.eq.f32.partialorder %v10494_v45, inf  ;;  %v10496_v6 = vld [vmem:[#allocation11_spill] sm:$0xff] }
 0x204   : > { %vm3540_vm4 = vcmp.ge.f32.partialorder %v2927_v29, 0.0  ;;  %v3796_v14 = vmul.f32 0.01, %v2927_v29  ;;  %v2931_v23 = vadd.f32 %v2930_v46, %v9039_v59  ;;  %v2566_v61 = vpack.c.bf16 %v2471_v26, %v9160_v9  ;;  %v6578_v9 = vld [vmem:[%s6688_s16 + $0x210] sm:$0xff] }
 0x205   : > { %vm3541_vm6 = vcmp.ge.f32.partialorder %v2929_v37, 0.0  ;;  %v3797_v41 = vmul.f32 0.01, %v2929_v37  ;;  %v4051_v13 = vsel %vm3539_vm3, %v2925_v51, %v3795_v55  ;;  %vm1983_vm1 = vcmp.eq.f32.partialorder %v10494_v45, 0.0 }
 0x206   : > { %vm3542_vm7 = vcmp.ge.f32.partialorder %v2931_v23, 0.0  ;;  %v3798_v54 = vmul.f32 0.01, %v2931_v23  ;;  %v4052_v44 = vsel %vm3540_vm4, %v2927_v29, %v3796_v14  ;;  %v1984_v62 = vand.u32 2147483648, %v10494_v45 }
 0x207   : > { %5916 = vmatmul.mubr.msk.bf16.gmra.mrb[188].mxu1 %vm638_vm0, %v2565_v5  ;;  %v4053_v30 = vsel %vm3541_vm6, %v2929_v37, %v3797_v41  ;;  %v1978_v51 = vsel %vm1976_vm8, %v1977_v35, %v1975_v53  ;;  %v1982_v36 = vsel %vm1981_vm13, %v10494_v45, %v1980_v33  ;;  %v1987_v22 = vmul.f32 %v10497_v2, %v10496_v6  ;;  %v6579_v37 = vld [vmem:[%s6688_s16 + $0x218] sm:$0xff] }
 0x208   : > { %v2934_v1 = vpop.f32.mrb[84].mxu1  ;;  %v4054_v47 = vsel %vm3542_vm7, %v2931_v23, %v3798_v54  ;;  %3202 = vmatprep.mubr.bf16.mxu1 %v10343_v19  ;;  %v4299_v49 = vpack.c.bf16 %v4053_v30, %v4051_v13  ;;  %v1985_v7 = vsel %vm1983_vm1, %v1984_v62, %v1982_v36  ;;  %v9184_v29 = vmul.f32 %v6578_v9, %v1978_v51  ;;  %v10498_v35 = vld [vmem:[#allocation13_spill] sm:$0xff]  ;;  %v10501_v9 = vld [vmem:[#allocation22_spill] sm:$0xff] }
 0x209   : > { %v2935_v5 = vadd.f32 %v2934_v1, %v9037_v34  ;;  %v2936_v39 = vpop.f32.mrb[85].mxu1  ;;  %v4300_v24 = vpack.c.bf16 %v4054_v47, %v4052_v44  ;;  %v2473_v46 = vmul.f32 %v6579_v37, %v1985_v7  ;;  %vm1988_vm11 = vcmp.eq.f32.partialorder %v10496_v6, inf  ;;  %v10499_v45 = vld [vmem:[#allocation29_spill] sm:$0xff]  ;;  %v10500_v7 = vld [vmem:[#allocation7_spill] sm:$0xff] }
 0x20a   : > { %v2937_v43 = vadd.f32 %v2936_v39, %v9039_v59  ;;  %v2938_v32 = vpop.f32.mrb[86].mxu1  ;;  %v1989_v54 = vsel %vm1988_vm11, %v10496_v6, %v1987_v22  ;;  %vm1990_vm15 = vcmp.eq.f32.partialorder %v10496_v6, 0.0  ;;  %v1991_v30 = vand.u32 2147483648, %v10496_v6 }
 0x20b   : > { %vm3543_vm9 = vcmp.ge.f32.partialorder %v2935_v5, 0.0  ;;  %v3799_v0 = vmul.f32 0.01, %v2935_v5  ;;  %v2939_v3 = vadd.f32 %v2938_v32, %v9037_v34  ;;  %v2940_v55 = vpop.f32.mrb[87].mxu1  ;;  %4621 = vmatprep.mubr.bf16.mxu0 %v4300_v24  ;;  %v2567_v53 = vpack.c.bf16 %v2473_v46, %v9184_v29 }
 0x20c   : > { %vm3544_vm10 = vcmp.ge.f32.partialorder %v2937_v43, 0.0  ;;  %v3800_v60 = vmul.f32 0.01, %v2937_v43  ;;  %v2941_v26 = vadd.f32 %v2940_v55, %v9039_v59  ;;  %4622 = vmatmul.mubr.bf16.gmra.mrb[80].mxu0 %v4299_v49  ;;  %v1994_v28 = vmul.f32 %v10499_v45, %v10498_v35 }
 0x20d   : > { %vm3545_vm12 = vcmp.ge.f32.partialorder %v2939_v3, 0.0  ;;  %v3801_v14 = vmul.f32 0.01, %v2939_v3  ;;  %v4055_v23 = vsel %vm3543_vm9, %v2935_v5, %v3799_v0  ;;  %vm1995_vm2 = vcmp.eq.f32.partialorder %v10498_v35, inf }
 0x20e   : > { %vm3546_vm14 = vcmp.ge.f32.partialorder %v2941_v26, 0.0  ;;  %v3802_v41 = vmul.f32 0.01, %v2941_v26  ;;  %v4056_v13 = vsel %vm3544_vm10, %v2937_v43, %v3800_v60  ;;  %vm1997_vm5 = vcmp.eq.f32.partialorder %v10498_v35, 0.0  ;;  %v6580_v43 = vld [vmem:[%s6688_s16 + $0x220] sm:$0xff]  ;;  %v6581_v60 = vld [vmem:[%s6688_s16 + $0x228] sm:$0xff] }
 0x20f   : > { %5917 = vmatmul.mubr.msk.bf16.gmra.mrb[192].mxu1 %vm638_vm0, %v2566_v61  ;;  %v4057_v44 = vsel %vm3545_vm12, %v2939_v3, %v3801_v14  ;;  %v1992_v5 = vsel %vm1990_vm15, %v1991_v30, %v1989_v54  ;;  %v1996_v39 = vsel %vm1995_vm2, %v10498_v35, %v1994_v28  ;;  %v1998_v36 = vand.u32 2147483648, %v10498_v35  ;;  %v10502_v28 = vld [vmem:[#allocation12_spill] sm:$0xff] }
 0x210   : > { %v4058_v1 = vsel %vm3546_vm14, %v2941_v26, %v3802_v41  ;;  %3212 = vmatprep.mubr.bf16.mxu1 %v10343_v19  ;;  %v4301_v47 = vpack.c.bf16 %v4057_v44, %v4055_v23  ;;  %v9207_v32 = vmul.f32 %v6580_v43, %v1992_v5  ;;  %v2001_v29 = vmul.f32 %v10501_v9, %v10500_v7  ;;  %v10504_v9 = vld [vmem:[#allocation16_spill] sm:$0xff] }
 0x211   : > { %v4302_v62 = vpack.c.bf16 %v4058_v1, %v4056_v13  ;;  %vm2002_vm4 = vcmp.eq.f32.partialorder %v10500_v7, inf  ;;  %v1999_v55 = vsel %vm1997_vm5, %v1998_v36, %v1996_v39  ;;  %vm2004_vm13 = vcmp.eq.f32.partialorder %v10500_v7, 0.0 }
 0x212   : > { %v2944_v33 = vpop.f32.mrb[88].mxu1  ;;  %v2475_v26 = vmul.f32 %v6581_v60, %v1999_v55  ;;  %v2003_v41 = vsel %vm2002_vm4, %v10500_v7, %v2001_v29  ;;  %v2005_v44 = vand.u32 2147483648, %v10500_v7  ;;  %vm2009_vm1 = vcmp.eq.f32.partialorder %v10502_v28, inf  ;;  %v10505_v29 = vld [vmem:[#allocation31_spill] sm:$0xff] }
 0x213   : > { %v2945_v61 = vadd.f32 %v2944_v33, %v9037_v34  ;;  %v2946_v49 = vpop.f32.mrb[89].mxu1  ;;  %4629 = vmatprep.mubr.bf16.mxu0 %v4302_v62  ;;  %v10503_v33 = vld [vmem:[#allocation28_spill] sm:$0xff]  ;;  %vm2011_vm9 = vcmp.eq.f32.partialorder %v10502_v28, 0.0  ;;  %vm2016_vm15 = vcmp.eq.f32.partialorder %v10504_v9, inf  ;;  %vm2018_vm2 = vcmp.eq.f32.partialorder %v10504_v9, 0.0 }
 0x214   : > { %v2947_v24 = vadd.f32 %v2946_v49, %v9039_v59  ;;  %v2948_v51 = vpop.f32.mrb[90].mxu1  ;;  %4630 = vmatmul.mubr.bf16.gmra.mrb[84].mxu0 %v4301_v47  ;;  %v2568_v54 = vpack.c.bf16 %v2475_v26, %v9207_v32  ;;  %v2008_v1 = vmul.f32 %v10503_v33, %v10502_v28  ;;  %v2006_v49 = vsel %vm2004_vm13, %v2005_v44, %v2003_v41 }
 0x215   : > { %vm3547_vm3 = vcmp.ge.f32.partialorder %v2945_v61, 0.0  ;;  %v3803_v6 = vmul.f32 0.01, %v2945_v61  ;;  %v2949_v2 = vadd.f32 %v2948_v51, %v9037_v34  ;;  %v2950_v22 = vpop.f32.mrb[91].mxu1  ;;  %v6582_v51 = vld [vmem:[%s6688_s16 + $0x230] sm:$0xff] }
 0x216   : > { %vm3548_vm6 = vcmp.ge.f32.partialorder %v2947_v24, 0.0  ;;  %v3804_v0 = vmul.f32 0.01, %v2947_v24  ;;  %v2951_v3 = vadd.f32 %v2950_v22, %v9039_v59  ;;  %v2010_v39 = vsel %vm2009_vm1, %v10502_v28, %v2008_v1 }
 0x217   : > { %vm3549_vm7 = vcmp.ge.f32.partialorder %v2949_v2, 0.0  ;;  %v3805_v37 = vmul.f32 0.01, %v2949_v2  ;;  %v4059_v46 = vsel %vm3547_vm3, %v2945_v61, %v3803_v6  ;;  %5918 = vmatmul.mubr.msk.bf16.gmra.mrb[196].mxu1 %vm638_vm0, %v2567_v53  ;;  %v9232_v36 = vmul.f32 %v6582_v51, %v2006_v49 }
 0x218   : > { %vm3550_vm8 = vcmp.ge.f32.partialorder %v2951_v3, 0.0  ;;  %v3806_v14 = vmul.f32 0.01, %v2951_v3  ;;  %v4060_v23 = vsel %vm3548_vm6, %v2947_v24, %v3804_v0  ;;  %3222 = vmatprep.mubr.bf16.mxu1 %v10343_v19  ;;  %v2012_v24 = vand.u32 2147483648, %v10502_v28  ;;  %v10507_v28 = vld [vmem:[#allocation36_spill] sm:$0xff] }
 0x219   : > { %v4061_v13 = vsel %vm3549_vm7, %v2949_v2, %v3805_v37  ;;  %v2015_v6 = vmul.f32 %v10505_v29, %v10504_v9  ;;  %v6583_v37 = vld [vmem:[%s6688_s16 + $0x238] sm:$0xff] }
 0x21a   : > { %v2954_v30 = vpop.f32.mrb[92].mxu1  ;;  %v4062_v35 = vsel %vm3550_vm8, %v2951_v3, %v3806_v14  ;;  %v4303_v45 = vpack.c.bf16 %v4061_v13, %v4059_v46  ;;  %v2013_v0 = vsel %vm2011_vm9, %v2012_v24, %v2010_v39 }
 0x21b   : > { %v2955_v53 = vadd.f32 %v2954_v30, %v9037_v34  ;;  %v2956_v47 = vpop.f32.mrb[93].mxu1  ;;  %v4304_v61 = vpack.c.bf16 %v4062_v35, %v4060_v23  ;;  %v2477_v46 = vmul.f32 %v6583_v37, %v2013_v0  ;;  %v2017_v41 = vsel %vm2016_vm15, %v10504_v9, %v2015_v6  ;;  %v10509_v37 = vld [vmem:[#allocation30_spill] sm:$0xff] }
 0x21c   : > { %v2957_v62 = vadd.f32 %v2956_v47, %v9039_v59  ;;  %v2958_v5 = vpop.f32.mrb[94].mxu1  ;;  %v2019_v35 = vand.u32 2147483648, %v10504_v9 }
 0x21d   : > { %vm3551_vm10 = vcmp.ge.f32.partialorder %v2955_v53, 0.0  ;;  %v3807_v43 = vmul.f32 0.01, %v2955_v53  ;;  %v2959_v32 = vadd.f32 %v2958_v5, %v9037_v34  ;;  %v2960_v7 = vpop.f32.mrb[95].mxu1  ;;  %4637 = vmatprep.mubr.bf16.mxu0 %v4304_v61  ;;  %v2569_v23 = vpack.c.bf16 %v2477_v46, %v9232_v36  ;;  %v6584_v36 = vld [vmem:[%s6688_s16 + $0x240] sm:$0xff] }
 0x21e   : > { %vm3552_vm11 = vcmp.ge.f32.partialorder %v2957_v62, 0.0  ;;  %v3808_v2 = vmul.f32 0.01, %v2957_v62  ;;  %v2961_v22 = vadd.f32 %v2960_v7, %v9039_v59  ;;  %4638 = vmatmul.mubr.bf16.gmra.mrb[88].mxu0 %v4303_v45  ;;  %v10506_v45 = vld [vmem:[#allocation19_spill] sm:$0xff]  ;;  %v2020_v49 = vsel %vm2018_vm2, %v2019_v35, %v2017_v41 }
 0x21f   : > { %vm3553_vm12 = vcmp.ge.f32.partialorder %v2959_v32, 0.0  ;;  %v3809_v3 = vmul.f32 0.01, %v2959_v32  ;;  %v4063_v55 = vsel %vm3551_vm10, %v2955_v53, %v3807_v43  ;;  %5919 = vmatmul.mubr.msk.bf16.gmra.mrb[200].mxu1 %vm638_vm0, %v2568_v54  ;;  %v2022_v33 = vmul.f32 %v10507_v28, %v10506_v45 }
 0x220   : > { %vm3554_vm14 = vcmp.ge.f32.partialorder %v2961_v22, 0.0  ;;  %v3810_v60 = vmul.f32 0.01, %v2961_v22  ;;  %v4064_v26 = vsel %vm3552_vm11, %v2957_v62, %v3808_v2  ;;  %3232 = vmatprep.mubr.bf16.mxu1 %v10343_v19  ;;  %vm2023_vm5 = vcmp.eq.f32.partialorder %v10506_v45, inf  ;;  %v6585_v2 = vld [vmem:[%s6688_s16 + $0x248] sm:$0xff] }
 0x221   : > { %v4065_v14 = vsel %vm3553_vm12, %v2959_v32, %v3809_v3  ;;  %vm2025_vm3 = vcmp.eq.f32.partialorder %v10506_v45, 0.0  ;;  %v2024_v62 = vsel %vm2023_vm5, %v10506_v45, %v2022_v33  ;;  %v2026_v5 = vand.u32 2147483648, %v10506_v45  ;;  %v10511_v33 = vld [vmem:[#allocation32_spill] sm:$0xff] }
 0x222   : > { %v2964_v13 = vpop.f32.mrb[96].mxu1  ;;  %v4066_v44 = vsel %vm3554_vm14, %v2961_v22, %v3810_v60  ;;  %v4305_v30 = vpack.c.bf16 %v4065_v14, %v4063_v55  ;;  %v2478_v43 = vmul.f32 %v6584_v36, %v2020_v49  ;;  %v10508_v55 = vld [vmem:[#allocation14_spill] sm:$0xff] }
 0x223   : > { %v2965_v54 = vadd.f32 %v2964_v13, %v9037_v34  ;;  %v2966_v1 = vpop.f32.mrb[97].mxu1  ;;  %v4306_v53 = vpack.c.bf16 %v4066_v44, %v4064_v26  ;;  %v2027_v9 = vsel %vm2025_vm3, %v2026_v5, %v2024_v62  ;;  %v2029_v46 = vmul.f32 %v10509_v37, %v10508_v55 }
 0x224   : > { %v2967_v47 = vadd.f32 %v2966_v1, %v9039_v59  ;;  %v2968_v61 = vpop.f32.mrb[98].mxu1  ;;  %v2479_v22 = vmul.f32 %v6585_v2, %v2027_v9  ;;  %vm2030_vm13 = vcmp.eq.f32.partialorder %v10508_v55, inf  ;;  %vm2032_vm1 = vcmp.eq.f32.partialorder %v10508_v55, 0.0  ;;  %v6587_v2 = vld [vmem:[%s6688_s16 + $0x258] sm:$0xff] }
 0x225   : > { %vm3555_vm4 = vcmp.ge.f32.partialorder %v2965_v54, 0.0  ;;  %v3811_v39 = vmul.f32 0.01, %v2965_v54  ;;  %v2969_v24 = vadd.f32 %v2968_v61, %v9037_v34  ;;  %v2970_v51 = vpop.f32.mrb[99].mxu1  ;;  %4645 = vmatprep.mubr.bf16.mxu0 %v4306_v53  ;;  %v2031_v44 = vsel %vm2030_vm13, %v10508_v55, %v2029_v46 }
 0x226   : > { %vm3556_vm6 = vcmp.ge.f32.partialorder %v2967_v47, 0.0  ;;  %v3812_v32 = vmul.f32 0.01, %v2967_v47  ;;  %v2971_v7 = vadd.f32 %v2970_v51, %v9039_v59  ;;  %4646 = vmatmul.mubr.bf16.gmra.mrb[92].mxu0 %v4305_v30  ;;  %v2570_v26 = vpack.c.bf16 %v2479_v22, %v2478_v43 }
 0x227   : > { %vm3557_vm7 = vcmp.ge.f32.partialorder %v2969_v24, 0.0  ;;  %v3813_v29 = vmul.f32 0.01, %v2969_v24  ;;  %v4067_v6 = vsel %vm3555_vm4, %v2965_v54, %v3811_v39  ;;  %5920 = vmatmul.mubr.msk.bf16.gmra.mrb[204].mxu1 %vm638_vm0, %v2569_v23  ;;  %v2033_v30 = vand.u32 2147483648, %v10508_v55  ;;  %v10510_v23 = vld [vmem:[#allocation18_spill] sm:$0xff] }
 0x228   : > { %vm3558_vm8 = vcmp.ge.f32.partialorder %v2971_v7, 0.0  ;;  %v3814_v0 = vmul.f32 0.01, %v2971_v7  ;;  %v4068_v3 = vsel %vm3556_vm6, %v2967_v47, %v3812_v32  ;;  %3242 = vmatprep.mubr.bf16.mxu1 %v10343_v19  ;;  %v2036_v54 = vmul.f32 %v10511_v33, %v10510_v23  ;;  %v10513_v55 = vld [vmem:[#allocation42_spill] sm:$0xff] }
 0x229   : > { %v4069_v60 = vsel %vm3557_vm7, %v2969_v24, %v3813_v29  ;;  %vm2037_vm9 = vcmp.eq.f32.partialorder %v10510_v23, inf  ;;  %v2034_v47 = vsel %vm2032_vm1, %v2033_v30, %v2031_v44  ;;  %vm2039_vm10 = vcmp.eq.f32.partialorder %v10510_v23, 0.0 }
 0x22a   : > { %v2974_v14 = vpop.f32.mrb[100].mxu1  ;;  %v4070_v41 = vsel %vm3558_vm8, %v2971_v7, %v3814_v0  ;;  %v4307_v13 = vpack.c.bf16 %v4069_v60, %v4067_v6  ;;  %v2040_v61 = vand.u32 2147483648, %v10510_v23  ;;  %v2038_v39 = vsel %vm2037_vm9, %v10510_v23, %v2036_v54  ;;  %v6586_v7 = vld [vmem:[%s6688_s16 + $0x250] sm:$0xff] }
 0x22b   : > { %v2975_v35 = vadd.f32 %v2974_v14, %v9037_v34  ;;  %v2976_v45 = vpop.f32.mrb[101].mxu1  ;;  %v4308_v28 = vpack.c.bf16 %v4070_v41, %v4068_v3  ;;  %v2480_v9 = vmul.f32 %v6586_v7, %v2034_v47  ;;  %v10512_v3 = vld [vmem:[#allocation24_spill] sm:$0xff] }
 0x22c   : > { %v2977_v1 = vadd.f32 %v2976_v45, %v9039_v59  ;;  %v2978_v53 = vpop.f32.mrb[102].mxu1  ;;  %v2041_v36 = vsel %vm2039_vm10, %v2040_v61, %v2038_v39  ;;  %v2043_v37 = vmul.f32 %v10513_v55, %v10512_v3  ;;  %vm2044_vm2 = vcmp.eq.f32.partialorder %v10512_v3, inf  ;;  %v10514_v45 = vld [vmem:[#allocation27_spill] sm:$0xff] }
 0x22d   : > { %vm3559_vm11 = vcmp.ge.f32.partialorder %v2975_v35, 0.0  ;;  %v3815_v49 = vmul.f32 0.01, %v2975_v35  ;;  %v2979_v62 = vadd.f32 %v2978_v53, %v9037_v34  ;;  %v2980_v5 = vpop.f32.mrb[103].mxu1  ;;  %4653 = vmatprep.mubr.bf16.mxu0 %v4308_v28  ;;  %v2481_v22 = vmul.f32 %v6587_v2, %v2041_v36  ;;  %v10515_v28 = vld [vmem:[#allocation46_spill] sm:$0xff] }
 0x22e   : > { %vm3560_vm12 = vcmp.ge.f32.partialorder %v2977_v1, 0.0  ;;  %v3816_v24 = vmul.f32 0.01, %v2977_v1  ;;  %v2981_v51 = vadd.f32 %v2980_v5, %v9039_v59  ;;  %4654 = vmatmul.mubr.bf16.gmra.mrb[96].mxu0 %v4307_v13  ;;  %vm2046_vm5 = vcmp.eq.f32.partialorder %v10512_v3, 0.0  ;;  %v6588_v36 = vld [vmem:[%s6688_s16 + $0x260] sm:$0xff] }
 0x22f   : > { %vm3561_vm14 = vcmp.ge.f32.partialorder %v2979_v62, 0.0  ;;  %v3817_v43 = vmul.f32 0.01, %v2979_v62  ;;  %v4071_v32 = vsel %vm3559_vm11, %v2975_v35, %v3815_v49  ;;  %5921 = vmatmul.mubr.msk.bf16.gmra.mrb[208].mxu1 %vm638_vm0, %v2570_v26  ;;  %v2571_v41 = vpack.c.bf16 %v2481_v22, %v2480_v9  ;;  %v10516_v22 = vld [vmem:[#allocation23_spill] sm:$0xff] }
 0x230   : > { %vm3562_vm15 = vcmp.ge.f32.partialorder %v2981_v51, 0.0  ;;  %v3818_v29 = vmul.f32 0.01, %v2981_v51  ;;  %v4072_v6 = vsel %vm3560_vm12, %v2977_v1, %v3816_v24  ;;  %3252 = vmatprep.mubr.bf16.mxu1 %v10343_v19  ;;  %v2047_v13 = vand.u32 2147483648, %v10512_v3 }
 0x231   : > { %v4073_v0 = vsel %vm3561_vm14, %v2979_v62, %v3817_v43  ;;  %v2045_v35 = vsel %vm2044_vm2, %v10512_v3, %v2043_v37  ;;  %v2050_v23 = vmul.f32 %v10515_v28, %v10514_v45  ;;  %vm2051_vm3 = vcmp.eq.f32.partialorder %v10514_v45, inf  ;;  %v10518_v28 = vld [vmem:[#allocation25_spill] sm:$0xff] }
 0x232   : > { %v2984_v46 = vpop.f32.mrb[104].mxu1  ;;  %v4074_v60 = vsel %vm3562_vm15, %v2981_v51, %v3818_v29  ;;  %v4309_v14 = vpack.c.bf16 %v4073_v0, %v4071_v32  ;;  %v2048_v1 = vsel %vm2046_vm5, %v2047_v13, %v2045_v35  ;;  %vm2053_vm4 = vcmp.eq.f32.partialorder %v10514_v45, 0.0  ;;  %v10517_v0 = vld [vmem:[#allocation39_spill] sm:$0xff] }
 0x233   : > { %v2985_v44 = vadd.f32 %v2984_v46, %v9037_v34  ;;  %v2986_v30 = vpop.f32.mrb[105].mxu1  ;;  %v4310_v26 = vpack.c.bf16 %v4074_v60, %v4072_v6  ;;  %v2052_v49 = vsel %vm2051_vm3, %v10514_v45, %v2050_v23  ;;  %v2054_v39 = vand.u32 2147483648, %v10514_v45  ;;  %v6589_v6 = vld [vmem:[%s6688_s16 + $0x268] sm:$0xff]  ;;  %v10519_v23 = vld [vmem:[#allocation45_spill] sm:$0xff] }
 0x234   : > { %v2987_v33 = vadd.f32 %v2986_v30, %v9039_v59  ;;  %v2988_v54 = vpop.f32.mrb[106].mxu1  ;;  %v2482_v43 = vmul.f32 %v6588_v36, %v2048_v1  ;;  %v2057_v3 = vmul.f32 %v10517_v0, %v10516_v22  ;;  %vm2058_vm1 = vcmp.eq.f32.partialorder %v10516_v22, inf  ;;  %v6590_v36 = vld [vmem:[%s6688_s16 + $0x270] sm:$0xff] }
 0x235   : > { %vm3563_vm6 = vcmp.ge.f32.partialorder %v2985_v44, 0.0  ;;  %v3819_v53 = vmul.f32 0.01, %v2985_v44  ;;  %v2989_v47 = vadd.f32 %v2988_v54, %v9037_v34  ;;  %v2990_v61 = vpop.f32.mrb[107].mxu1  ;;  %4661 = vmatprep.mubr.bf16.mxu0 %v4310_v26  ;;  %v2055_v9 = vsel %vm2053_vm4, %v2054_v39, %v2052_v49 }
 0x236   : > { %vm3564_vm7 = vcmp.ge.f32.partialorder %v2987_v33, 0.0  ;;  %v3820_v62 = vmul.f32 0.01, %v2987_v33  ;;  %v2991_v5 = vadd.f32 %v2990_v61, %v9039_v59  ;;  %4662 = vmatmul.mubr.bf16.gmra.mrb[100].mxu0 %v4309_v14  ;;  %v2483_v2 = vmul.f32 %v6589_v6, %v2055_v9  ;;  %v10520_v9 = vld [vmem:[#allocation34_spill] sm:$0xff] }
 0x237   : > { %vm3565_vm8 = vcmp.ge.f32.partialorder %v2989_v47, 0.0  ;;  %v3821_v24 = vmul.f32 0.01, %v2989_v47  ;;  %v4075_v51 = vsel %vm3563_vm6, %v2985_v44, %v3819_v53  ;;  %5922 = vmatmul.mubr.msk.bf16.gmra.mrb[212].mxu1 %vm638_vm0, %v2571_v41  ;;  %vm2060_vm9 = vcmp.eq.f32.partialorder %v10516_v22, 0.0 }
 0x238   : > { %vm3566_vm13 = vcmp.ge.f32.partialorder %v2991_v5, 0.0  ;;  %v3822_v32 = vmul.f32 0.01, %v2991_v5  ;;  %v4076_v7 = vsel %vm3564_vm7, %v2987_v33, %v3820_v62  ;;  %3262 = vmatprep.mubr.bf16.mxu1 %v10343_v19  ;;  %v2061_v60 = vand.u32 2147483648, %v10516_v22 }
 0x239   : > { %v4077_v29 = vsel %vm3565_vm8, %v2989_v47, %v3821_v24  ;;  %v2572_v44 = vpack.c.bf16 %v2483_v2, %v2482_v43  ;;  %v2059_v30 = vsel %vm2058_vm1, %v10516_v22, %v2057_v3  ;;  %v2064_v33 = vmul.f32 %v10519_v23, %v10518_v28  ;;  %v6591_v3 = vld [vmem:[%s6688_s16 + $0x278] sm:$0xff] }
 0x23a   : > { %v2994_v55 = vpop.f32.mrb[108].mxu1  ;;  %v4078_v37 = vsel %vm3566_vm13, %v2991_v5, %v3822_v32  ;;  %v4311_v46 = vpack.c.bf16 %v4077_v29, %v4075_v51  ;;  %v2062_v45 = vsel %vm2060_vm9, %v2061_v60, %v2059_v30  ;;  %vm2065_vm10 = vcmp.eq.f32.partialorder %v10518_v28, inf  ;;  %v10521_v29 = vld [vmem:[#allocation48_spill] sm:$0xff] }
 0x23b   : > { %v2995_v14 = vadd.f32 %v2994_v55, %v9037_v34  ;;  %v2996_v41 = vpop.f32.mrb[109].mxu1  ;;  %v4312_v13 = vpack.c.bf16 %v4078_v37, %v4076_v7  ;;  %vm2067_vm12 = vcmp.eq.f32.partialorder %v10518_v28, 0.0  ;;  %v2066_v49 = vsel %vm2065_vm10, %v10518_v28, %v2064_v33 }
 0x23c   : > { %v2997_v26 = vadd.f32 %v2996_v41, %v9039_v59  ;;  %v2998_v35 = vpop.f32.mrb[110].mxu1  ;;  %v2068_v39 = vand.u32 2147483648, %v10518_v28  ;;  %v2484_v43 = vmul.f32 %v6590_v36, %v2062_v45  ;;  %v2071_v6 = vmul.f32 %v10521_v29, %v10520_v9 }
 0x23d   : > { %vm3567_vm11 = vcmp.ge.f32.partialorder %v2995_v14, 0.0  ;;  %v3823_v54 = vmul.f32 0.01, %v2995_v14  ;;  %v2999_v1 = vadd.f32 %v2998_v35, %v9037_v34  ;;  %v3000_v53 = vpop.f32.mrb[111].mxu1  ;;  %4669 = vmatprep.mubr.bf16.mxu0 %v4312_v13  ;;  %vm2072_vm5 = vcmp.eq.f32.partialorder %v10520_v9, inf  ;;  %v10523_v35 = vld [vmem:[#allocation55_spill] sm:$0xff] }
 0x23e   : > { %vm3568_vm14 = vcmp.ge.f32.partialorder %v2997_v26, 0.0  ;;  %v3824_v47 = vmul.f32 0.01, %v2997_v26  ;;  %v3001_v61 = vadd.f32 %v3000_v53, %v9039_v59  ;;  %4670 = vmatmul.mubr.bf16.gmra.mrb[104].mxu0 %v4311_v46  ;;  %v2069_v7 = vsel %vm2067_vm12, %v2068_v39, %v2066_v49 }
 0x23f   : > { %vm3569_vm15 = vcmp.ge.f32.partialorder %v2999_v1, 0.0  ;;  %v3825_v62 = vmul.f32 0.01, %v2999_v1  ;;  %v4079_v5 = vsel %vm3567_vm11, %v2995_v14, %v3823_v54  ;;  %5923 = vmatmul.mubr.msk.bf16.gmra.mrb[216].mxu1 %vm638_vm0, %v2572_v44  ;;  %v2485_v55 = vmul.f32 %v6591_v3, %v2069_v7 }
 0x240   : > { %vm3570_vm2 = vcmp.ge.f32.partialorder %v3001_v61, 0.0  ;;  %v3826_v24 = vmul.f32 0.01, %v3001_v61  ;;  %v4080_v51 = vsel %vm3568_vm14, %v2997_v26, %v3824_v47  ;;  %3272 = vmatprep.mubr.bf16.mxu1 %v10343_v19  ;;  %vm2074_vm3 = vcmp.eq.f32.partialorder %v10520_v9, 0.0  ;;  %v10522_v26 = vld [vmem:[#allocation37_spill] sm:$0xff] }
 0x241   : > { %v4081_v32 = vsel %vm3569_vm15, %v2999_v1, %v3825_v62  ;;  %v2073_v14 = vsel %vm2072_vm5, %v10520_v9, %v2071_v6  ;;  %v2075_v41 = vand.u32 2147483648, %v10520_v9  ;;  %v2573_v30 = vpack.c.bf16 %v2485_v55, %v2484_v43  ;;  %v10524_v43 = vld [vmem:[#allocation33_spill] sm:$0xff]  ;;  %v6593_v55 = vld [vmem:[%s6688_s16 + $0x288] sm:$0xff] }
 0x242   : > { %v3004_v2 = vpop.f32.mrb[112].mxu1  ;;  %v4082_v22 = vsel %vm3570_vm2, %v3001_v61, %v3826_v24  ;;  %v4313_v0 = vpack.c.bf16 %v4081_v32, %v4079_v5  ;;  %v2078_v45 = vmul.f32 %v10523_v35, %v10522_v26  ;;  %vm2079_vm4 = vcmp.eq.f32.partialorder %v10522_v26, inf  ;;  %v10525_v32 = vld [vmem:[#allocation47_spill] sm:$0xff] }
 0x243   : > { %v3005_v37 = vadd.f32 %v3004_v2, %v9037_v34  ;;  %v3006_v46 = vpop.f32.mrb[113].mxu1  ;;  %v4314_v60 = vpack.c.bf16 %v4082_v22, %v4080_v51  ;;  %v2076_v54 = vsel %vm2074_vm3, %v2075_v41, %v2073_v14  ;;  %vm2081_vm13 = vcmp.eq.f32.partialorder %v10522_v26, 0.0  ;;  %v6592_v51 = vld [vmem:[%s6688_s16 + $0x280] sm:$0xff] }
 0x244   : > { %v3007_v13 = vadd.f32 %v3006_v46, %v9039_v59  ;;  %v3008_v44 = vpop.f32.mrb[114].mxu1  ;;  %v2080_v47 = vsel %vm2079_vm4, %v10522_v26, %v2078_v45  ;;  %v2082_v39 = vand.u32 2147483648, %v10522_v26  ;;  %v2486_v36 = vmul.f32 %v6592_v51, %v2076_v54  ;;  %v10528_v51 = vld [vmem:[#allocation41_spill] sm:$0xff] }
 0x245   : > { %vm3571_vm6 = vcmp.ge.f32.partialorder %v3005_v37, 0.0  ;;  %v3827_v28 = vmul.f32 0.01, %v3005_v37  ;;  %v3009_v23 = vadd.f32 %v3008_v44, %v9037_v34  ;;  %v3010_v33 = vpop.f32.mrb[115].mxu1  ;;  %4677 = vmatprep.mubr.bf16.mxu0 %v4314_v60  ;;  %v2085_v7 = vmul.f32 %v10525_v32, %v10524_v43  ;;  %v10527_v44 = vld [vmem:[#allocation50_spill] sm:$0xff] }
 0x246   : > { %vm3572_vm7 = vcmp.ge.f32.partialorder %v3007_v13, 0.0  ;;  %v3828_v1 = vmul.f32 0.01, %v3007_v13  ;;  %v3011_v53 = vadd.f32 %v3010_v33, %v9039_v59  ;;  %4678 = vmatmul.mubr.bf16.gmra.mrb[108].mxu0 %v4313_v0  ;;  %vm2086_vm9 = vcmp.eq.f32.partialorder %v10524_v43, inf }
 0x247   : > { %vm3573_vm8 = vcmp.ge.f32.partialorder %v3009_v23, 0.0  ;;  %v3829_v61 = vmul.f32 0.01, %v3009_v23  ;;  %v4083_v49 = vsel %vm3571_vm6, %v3005_v37, %v3827_v28  ;;  %5924 = vmatmul.mubr.msk.bf16.gmra.mrb[220].mxu1 %vm638_vm0, %v2573_v30  ;;  %v2083_v2 = vsel %vm2081_vm13, %v2082_v39, %v2080_v47  ;;  %v6594_v39 = vld [vmem:[%s6688_s16 + $0x290] sm:$0xff] }
 0x248   : > { %vm3574_vm1 = vcmp.ge.f32.partialorder %v3011_v53, 0.0  ;;  %v3830_v62 = vmul.f32 0.01, %v3011_v53  ;;  %v4084_v5 = vsel %vm3572_vm7, %v3007_v13, %v3828_v1  ;;  %3282 = vmatprep.mubr.bf16.mxu1 %v10343_v19  ;;  %vm2088_vm10 = vcmp.eq.f32.partialorder %v10524_v43, 0.0  ;;  %v10526_v13 = vld [vmem:[#allocation35_spill] sm:$0xff] }
 0x249   : > { %v4085_v24 = vsel %vm3573_vm8, %v3009_v23, %v3829_v61  ;;  %v2487_v37 = vmul.f32 %v6593_v55, %v2083_v2  ;;  %v2087_v46 = vsel %vm2086_vm9, %v10524_v43, %v2085_v7  ;;  %v2089_v41 = vand.u32 2147483648, %v10524_v43 }
 0x24a   : > { %v3014_v9 = vpop.f32.mrb[116].mxu1  ;;  %v4086_v29 = vsel %vm3574_vm1, %v3011_v53, %v3830_v62  ;;  %v4315_v6 = vpack.c.bf16 %v4085_v24, %v4083_v49  ;;  %v2092_v30 = vmul.f32 %v10527_v44, %v10526_v13  ;;  %vm2093_vm11 = vcmp.eq.f32.partialorder %v10526_v13, inf }
 0x24b   : > { %v3015_v22 = vadd.f32 %v3014_v9, %v9037_v34  ;;  %v3016_v0 = vpop.f32.mrb[117].mxu1  ;;  %v4316_v3 = vpack.c.bf16 %v4086_v29, %v4084_v5  ;;  %v2574_v28 = vpack.c.bf16 %v2487_v37, %v2486_v36  ;;  %v2090_v54 = vsel %vm2088_vm10, %v2089_v41, %v2087_v46  ;;  %v10529_v36 = vld [vmem:[#allocation60_spill] sm:$0xff]  ;;  %v6595_v37 = vld [vmem:[%s6688_s16 + $0x298] sm:$0xff] }
 0x24c   : > { %v3017_v60 = vadd.f32 %v3016_v0, %v9039_v59  ;;  %v3018_v14 = vpop.f32.mrb[118].mxu1  ;;  %v2094_v47 = vsel %vm2093_vm11, %v10526_v13, %v2092_v30  ;;  %vm2095_vm5 = vcmp.eq.f32.partialorder %v10526_v13, 0.0  ;;  %v2096_v5 = vand.u32 2147483648, %v10526_v13  ;;  %v10531_v41 = vld [vmem:[#allocation66_spill] sm:$0xff] }
 0x24d   : > { %vm3575_vm12 = vcmp.ge.f32.partialorder %v3015_v22, 0.0  ;;  %v3831_v26 = vmul.f32 0.01, %v3015_v22  ;;  %v3019_v35 = vadd.f32 %v3018_v14, %v9037_v34  ;;  %v3020_v45 = vpop.f32.mrb[119].mxu1  ;;  %4685 = vmatprep.mubr.bf16.mxu0 %v4316_v3  ;;  %v2488_v24 = vmul.f32 %v6594_v39, %v2090_v54  ;;  %v10530_v14 = vld [vmem:[#allocation44_spill] sm:$0xff] }
 0x24e   : > { %vm3576_vm14 = vcmp.ge.f32.partialorder %v3017_v60, 0.0  ;;  %v3832_v23 = vmul.f32 0.01, %v3017_v60  ;;  %v3021_v33 = vadd.f32 %v3020_v45, %v9039_v59  ;;  %4686 = vmatmul.mubr.bf16.gmra.mrb[112].mxu0 %v4315_v6  ;;  %v2099_v43 = vmul.f32 %v10529_v36, %v10528_v51  ;;  %v10532_v36 = vld [vmem:[#allocation40_spill] sm:$0xff] }
 0x24f   : > { %vm3577_vm15 = vcmp.ge.f32.partialorder %v3019_v35, 0.0  ;;  %v3833_v1 = vmul.f32 0.01, %v3019_v35  ;;  %v4087_v53 = vsel %vm3575_vm12, %v3015_v22, %v3831_v26  ;;  %5925 = vmatmul.mubr.msk.bf16.gmra.mrb[224].mxu1 %vm638_vm0, %v2574_v28  ;;  %vm2100_vm3 = vcmp.eq.f32.partialorder %v10528_v51, inf }
 0x250   : > { %vm3578_vm2 = vcmp.ge.f32.partialorder %v3021_v33, 0.0  ;;  %v3834_v61 = vmul.f32 0.01, %v3021_v33  ;;  %v4088_v49 = vsel %vm3576_vm14, %v3017_v60, %v3832_v23  ;;  %3292 = vmatprep.mubr.bf16.mxu1 %v10343_v19  ;;  %vm2102_vm4 = vcmp.eq.f32.partialorder %v10528_v51, 0.0 }
 0x251   : > { %v4089_v62 = vsel %vm3577_vm15, %v3019_v35, %v3833_v1  ;;  %v2097_v22 = vsel %vm2095_vm5, %v2096_v5, %v2094_v47  ;;  %v2101_v0 = vsel %vm2100_vm3, %v10528_v51, %v2099_v43  ;;  %v2103_v60 = vand.u32 2147483648, %v10528_v51  ;;  %v10533_v43 = vld [vmem:[#allocation58_spill] sm:$0xff] }
 0x252   : > { %v3024_v32 = vpop.f32.mrb[120].mxu1  ;;  %v4090_v7 = vsel %vm3578_vm2, %v3021_v33, %v3834_v61  ;;  %v4317_v9 = vpack.c.bf16 %v4089_v62, %v4087_v53  ;;  %v2489_v46 = vmul.f32 %v6595_v37, %v2097_v22  ;;  %v2106_v44 = vmul.f32 %v10531_v41, %v10530_v14  ;;  %v6596_v62 = vld [vmem:[%s6688_s16 + $0x2a0] sm:$0xff] }
 0x253   : > { %v3025_v29 = vadd.f32 %v3024_v32, %v9037_v34  ;;  %v3026_v6 = vpop.f32.mrb[121].mxu1  ;;  %v4318_v2 = vpack.c.bf16 %v4090_v7, %v4088_v49  ;;  %vm2107_vm7 = vcmp.eq.f32.partialorder %v10530_v14, inf  ;;  %v2104_v54 = vsel %vm2102_vm4, %v2103_v60, %v2101_v0  ;;  %v6597_v0 = vld [vmem:[%s6688_s16 + $0x2a8] sm:$0xff] }
 0x254   : > { %v3027_v3 = vadd.f32 %v3026_v6, %v9039_v59  ;;  %v3028_v55 = vpop.f32.mrb[122].mxu1  ;;  %v2575_v28 = vpack.c.bf16 %v2489_v46, %v2488_v24  ;;  %v2108_v47 = vsel %vm2107_vm7, %v10530_v14, %v2106_v44  ;;  %vm2109_vm9 = vcmp.eq.f32.partialorder %v10530_v14, 0.0  ;;  %v10534_v41 = vld [vmem:[#allocation43_spill] sm:$0xff]  ;;  %v10535_v44 = vld [vmem:[#allocation64_spill] sm:$0xff] }
 0x255   : > { %vm3579_vm6 = vcmp.ge.f32.partialorder %v3025_v29, 0.0  ;;  %v3835_v30 = vmul.f32 0.01, %v3025_v29  ;;  %v3029_v26 = vadd.f32 %v3028_v55, %v9037_v34  ;;  %v3030_v35 = vpop.f32.mrb[123].mxu1  ;;  %4693 = vmatprep.mubr.bf16.mxu0 %v4318_v2  ;;  %v2110_v49 = vand.u32 2147483648, %v10530_v14 }
 0x256   : > { %vm3580_vm8 = vcmp.ge.f32.partialorder %v3027_v3, 0.0  ;;  %v3836_v13 = vmul.f32 0.01, %v3027_v3  ;;  %v3031_v45 = vadd.f32 %v3030_v35, %v9039_v59  ;;  %4694 = vmatmul.mubr.bf16.gmra.mrb[116].mxu0 %v4317_v9  ;;  %v2490_v5 = vmul.f32 %v6596_v62, %v2104_v54 }
 0x257   : > { %vm3581_vm13 = vcmp.ge.f32.partialorder %v3029_v26, 0.0  ;;  %v3837_v23 = vmul.f32 0.01, %v3029_v26  ;;  %v4091_v33 = vsel %vm3579_vm6, %v3025_v29, %v3835_v30  ;;  %5926 = vmatmul.mubr.msk.bf16.gmra.mrb[228].mxu1 %vm638_vm0, %v2575_v28  ;;  %v2113_v32 = vmul.f32 %v10533_v43, %v10532_v36 }
 0x258   : > { %vm3582_vm1 = vcmp.ge.f32.partialorder %v3031_v45, 0.0  ;;  %v3838_v1 = vmul.f32 0.01, %v3031_v45  ;;  %v4092_v53 = vsel %vm3580_vm8, %v3027_v3, %v3836_v13  ;;  %3302 = vmatprep.mubr.bf16.mxu1 %v10343_v19  ;;  %vm2114_vm10 = vcmp.eq.f32.partialorder %v10532_v36, inf }
 0x259   : > { %v4093_v61 = vsel %vm3581_vm13, %v3029_v26, %v3837_v23  ;;  %v2111_v6 = vsel %vm2109_vm9, %v2110_v49, %v2108_v47  ;;  %vm2116_vm11 = vcmp.eq.f32.partialorder %v10532_v36, 0.0  ;;  %v2115_v55 = vsel %vm2114_vm10, %v10532_v36, %v2113_v32 }
 0x25a   : > { %v3034_v39 = vpop.f32.mrb[124].mxu1  ;;  %v4094_v24 = vsel %vm3582_vm1, %v3031_v45, %v3838_v1  ;;  %v4319_v51 = vpack.c.bf16 %v4093_v61, %v4091_v33  ;;  %v2491_v3 = vmul.f32 %v6597_v0, %v2111_v6  ;;  %v2117_v37 = vand.u32 2147483648, %v10532_v36 }
 0x25b   : > { %v3035_v7 = vadd.f32 %v3034_v39, %v9037_v34  ;;  %v3036_v9 = vpop.f32.mrb[125].mxu1  ;;  %v4320_v29 = vpack.c.bf16 %v4094_v24, %v4092_v53  ;;  %v2120_v30 = vmul.f32 %v10535_v44, %v10534_v41  ;;  %vm2121_vm5 = vcmp.eq.f32.partialorder %v10534_v41, inf  ;;  %v10536_v24 = vld [vmem:[#allocation51_spill] sm:$0xff] }
 0x25c   : > { %v3037_v2 = vadd.f32 %v3036_v9, %v9039_v59  ;;  %v3038_v22 = vpop.f32.mrb[126].mxu1  ;;  %v2576_v13 = vpack.c.bf16 %v2491_v3, %v2490_v5  ;;  %v2118_v23 = vsel %vm2116_vm11, %v2117_v37, %v2115_v55  ;;  %vm2123_vm3 = vcmp.eq.f32.partialorder %v10534_v41, 0.0  ;;  %v6598_v5 = vld [vmem:[%s6688_s16 + $0x2b0] sm:$0xff] }
 0x25d   : > { %vm3583_vm12 = vcmp.ge.f32.partialorder %v3035_v7, 0.0  ;;  %v3839_v46 = vmul.f32 0.01, %v3035_v7  ;;  %v3039_v60 = vadd.f32 %v3038_v22, %v9037_v34  ;;  %v3040_v14 = vpop.f32.mrb[127].mxu1  ;;  %4701 = vmatprep.mubr.bf16.mxu0 %v4320_v29  ;;  %v2122_v53 = vsel %vm2121_vm5, %v10534_v41, %v2120_v30 }
 0x25e   : > { %vm3584_vm14 = vcmp.ge.f32.partialorder %v3037_v2, 0.0  ;;  %v3840_v26 = vmul.f32 0.01, %v3037_v2  ;;  %v3041_v35 = vadd.f32 %v3040_v14, %v9039_v59  ;;  %4702 = vmatmul.mubr.bf16.gmra.mrb[120].mxu0 %v4319_v51  ;;  %v2124_v47 = vand.u32 2147483648, %v10534_v41  ;;  %v10537_v51 = vld [vmem:[#allocation68_spill] sm:$0xff] }
 0x25f   : > { %vm3585_vm15 = vcmp.ge.f32.partialorder %v3039_v60, 0.0  ;;  %v3841_v45 = vmul.f32 0.01, %v3039_v60  ;;  %v4095_v28 = vsel %vm3583_vm12, %v3035_v7, %v3839_v46  ;;  %5927 = vmatmul.mubr.msk.bf16.gmra.mrb[232].mxu1 %vm638_vm0, %v2576_v13  ;;  %v2492_v39 = vmul.f32 %v6598_v5, %v2118_v23 }
 0x260   : > { %vm3586_vm2 = vcmp.ge.f32.partialorder %v3041_v35, 0.0  ;;  %v3842_v33 = vmul.f32 0.01, %v3041_v35  ;;  %v4096_v54 = vsel %vm3584_vm14, %v3037_v2, %v3840_v26  ;;  %3312 = vmatprep.mubr.bf16.mxu1 %v10343_v19  ;;  %v2127_v36 = vmul.f32 %v10537_v51, %v10536_v24  ;;  %v6599_v2 = vld [vmem:[%s6688_s16 + $0x2b8] sm:$0xff] }
 0x261   : > { %v4097_v1 = vsel %vm3585_vm15, %v3039_v60, %v3841_v45  ;;  %v2125_v9 = vsel %vm2123_vm3, %v2124_v47, %v2122_v53  ;;  %vm2128_vm4 = vcmp.eq.f32.partialorder %v10536_v24, inf  ;;  %vm2130_vm6 = vcmp.eq.f32.partialorder %v10536_v24, 0.0  ;;  %v10538_v45 = vld [vmem:[#allocation53_spill] sm:$0xff] }
 0x262   : > { %v3044_v61 = vpop.f32.mrb[128].mxu1  ;;  %v4098_v49 = vsel %vm3586_vm2, %v3041_v35, %v3842_v33  ;;  %v4321_v62 = vpack.c.bf16 %v4097_v1, %v4095_v28  ;;  %v2493_v22 = vmul.f32 %v6599_v2, %v2125_v9  ;;  %v2129_v0 = vsel %vm2128_vm4, %v10536_v24, %v2127_v36  ;;  %v10539_v28 = vld [vmem:[#allocation73_spill] sm:$0xff] }
 0x263   : > { %v3045_v43 = vadd.f32 %v3044_v61, %v9037_v34  ;;  %v3046_v32 = vpop.f32.mrb[129].mxu1  ;;  %v4322_v7 = vpack.c.bf16 %v4098_v49, %v4096_v54  ;;  %v2131_v46 = vand.u32 2147483648, %v10536_v24  ;;  %v2134_v23 = vmul.f32 %v10539_v28, %v10538_v45  ;;  %v6600_v49 = vld [vmem:[%s6688_s16 + $0x2c0] sm:$0xff]  ;;  %v10540_v36 = vld [vmem:[#allocation49_spill] sm:$0xff] }
 0x264   : > { %v3047_v29 = vadd.f32 %v3046_v32, %v9039_v59  ;;  %v3048_v6 = vpop.f32.mrb[130].mxu1  ;;  %v2577_v41 = vpack.c.bf16 %v2493_v22, %v2492_v39  ;;  %vm2135_vm9 = vcmp.eq.f32.partialorder %v10538_v45, inf  ;;  %vm2137_vm10 = vcmp.eq.f32.partialorder %v10538_v45, 0.0 }
 0x265   : > { %vm3587_vm7 = vcmp.ge.f32.partialorder %v3045_v43, 0.0  ;;  %v3843_v3 = vmul.f32 0.01, %v3045_v43  ;;  %v3049_v55 = vadd.f32 %v3048_v6, %v9037_v34  ;;  %v3050_v37 = vpop.f32.mrb[131].mxu1  ;;  %4709 = vmatprep.mubr.bf16.mxu0 %v4322_v7  ;;  %v2132_v26 = vsel %vm2130_vm6, %v2131_v46, %v2129_v0 }
 0x266   : > { %vm3588_vm8 = vcmp.ge.f32.partialorder %v3047_v29, 0.0  ;;  %v3844_v60 = vmul.f32 0.01, %v3047_v29  ;;  %v3051_v14 = vadd.f32 %v3050_v37, %v9039_v59  ;;  %4710 = vmatmul.mubr.bf16.gmra.mrb[124].mxu0 %v4321_v62  ;;  %v2138_v54 = vand.u32 2147483648, %v10538_v45 }
 0x267   : > { %vm3589_vm13 = vcmp.ge.f32.partialorder %v3049_v55, 0.0  ;;  %v3845_v44 = vmul.f32 0.01, %v3049_v55  ;;  %v4099_v30 = vsel %vm3587_vm7, %v3045_v43, %v3843_v3  ;;  %5928 = vmatmul.mubr.msk.bf16.gmra.mrb[236].mxu1 %vm638_vm0, %v2577_v41  ;;  %v2136_v61 = vsel %vm2135_vm9, %v10538_v45, %v2134_v23  ;;  %v10541_v43 = vld [vmem:[#allocation67_spill] sm:$0xff] }
 0x268   : > { %vm3590_vm1 = vcmp.ge.f32.partialorder %v3051_v14, 0.0  ;;  %v3846_v35 = vmul.f32 0.01, %v3051_v14  ;;  %v4100_v13 = vsel %vm3588_vm8, %v3047_v29, %v3844_v60  ;;  %3322 = vmatprep.mubr.bf16.mxu1 %v10343_v19  ;;  %v2494_v62 = vmul.f32 %v6600_v49, %v2132_v26  ;;  %v6601_v29 = vld [vmem:[%s6688_s16 + $0x2c8] sm:$0xff] }
 0x269   : > { %v4101_v33 = vsel %vm3589_vm13, %v3049_v55, %v3845_v44  ;;  %v2139_v51 = vsel %vm2137_vm10, %v2138_v54, %v2136_v61  ;;  %v2141_v32 = vmul.f32 %v10541_v43, %v10540_v36  ;;  %vm2142_vm11 = vcmp.eq.f32.partialorder %v10540_v36, inf  ;;  %v10542_v26 = vld [vmem:[#allocation52_spill] sm:$0xff] }
 0x26a   : > { %v3054_v1 = vpop.f32.mrb[132].mxu1  ;;  %v4102_v53 = vsel %vm3590_vm1, %v3051_v14, %v3846_v35  ;;  %v4323_v47 = vpack.c.bf16 %v4101_v33, %v4099_v30  ;;  %v2495_v6 = vmul.f32 %v6601_v29, %v2139_v51  ;;  %vm2144_vm12 = vcmp.eq.f32.partialorder %v10540_v36, 0.0  ;;  %v10543_v35 = vld [vmem:[#allocation70_spill] sm:$0xff] }
 0x26b   : > { %v3055_v5 = vadd.f32 %v3054_v1, %v9037_v34  ;;  %v3056_v39 = vpop.f32.mrb[133].mxu1  ;;  %v4324_v24 = vpack.c.bf16 %v4102_v53, %v4100_v13  ;;  %v2143_v3 = vsel %vm2142_vm11, %v10540_v36, %v2141_v32  ;;  %v2145_v41 = vand.u32 2147483648, %v10540_v36 }
 0x26c   : > { %v3057_v7 = vadd.f32 %v3056_v39, %v9039_v59  ;;  %v3058_v9 = vpop.f32.mrb[134].mxu1  ;;  %v2578_v46 = vpack.c.bf16 %v2495_v6, %v2494_v62  ;;  %v2148_v13 = vmul.f32 %v10543_v35, %v10542_v26  ;;  %vm2149_vm3 = vcmp.eq.f32.partialorder %v10542_v26, inf  ;;  %v6602_v62 = vld [vmem:[%s6688_s16 + $0x2d0] sm:$0xff]  ;;  %v10544_v39 = vld [vmem:[#allocation62_spill] sm:$0xff] }
 0x26d   : > { %vm3591_vm14 = vcmp.ge.f32.partialorder %v3055_v5, 0.0  ;;  %v3847_v2 = vmul.f32 0.01, %v3055_v5  ;;  %v3059_v22 = vadd.f32 %v3058_v9, %v9037_v34  ;;  %v3060_v0 = vpop.f32.mrb[135].mxu1  ;;  %4717 = vmatprep.mubr.bf16.mxu0 %v4324_v24  ;;  %v2146_v28 = vsel %vm2144_vm12, %v2145_v41, %v2143_v3  ;;  %v10545_v24 = vld [vmem:[#allocation78_spill] sm:$0xff] }
 0x26e   : > { %vm3592_vm15 = vcmp.ge.f32.partialorder %v3057_v7, 0.0  ;;  %v3848_v55 = vmul.f32 0.01, %v3057_v7  ;;  %v3061_v37 = vadd.f32 %v3060_v0, %v9039_v59  ;;  %4718 = vmatmul.mubr.bf16.gmra.mrb[128].mxu0 %v4323_v47  ;;  %vm2151_vm4 = vcmp.eq.f32.partialorder %v10542_v26, 0.0  ;;  %v6603_v6 = vld [vmem:[%s6688_s16 + $0x2d8] sm:$0xff] }
 0x26f   : > { %vm3593_vm2 = vcmp.ge.f32.partialorder %v3059_v22, 0.0  ;;  %v3849_v60 = vmul.f32 0.01, %v3059_v22  ;;  %v4103_v14 = vsel %vm3591_vm14, %v3055_v5, %v3847_v2  ;;  %5929 = vmatmul.mubr.msk.bf16.gmra.mrb[240].mxu1 %vm638_vm0, %v2578_v46  ;;  %v2150_v1 = vsel %vm2149_vm3, %v10542_v26, %v2148_v13 }
 0x270   : > { %vm3594_vm5 = vcmp.ge.f32.partialorder %v3061_v37, 0.0  ;;  %v3850_v44 = vmul.f32 0.01, %v3061_v37  ;;  %v4104_v30 = vsel %vm3592_vm15, %v3057_v7, %v3848_v55  ;;  %3332 = vmatprep.mubr.bf16.mxu1 %v10343_v19  ;;  %v2152_v53 = vand.u32 2147483648, %v10542_v26  ;;  %v10547_v26 = vld [vmem:[#allocation86_spill] sm:$0xff] }
 0x271   : > { %v4105_v45 = vsel %vm3593_vm2, %v3059_v22, %v3849_v60  ;;  %v2496_v5 = vmul.f32 %v6602_v62, %v2146_v28  ;;  %v2155_v51 = vmul.f32 %v10545_v24, %v10544_v39  ;;  %vm2156_vm6 = vcmp.eq.f32.partialorder %v10544_v39, inf }
 0x272   : > { %v3064_v23 = vpop.f32.mrb[136].mxu1  ;;  %v4106_v33 = vsel %vm3594_vm5, %v3061_v37, %v3850_v44  ;;  %v4325_v54 = vpack.c.bf16 %v4105_v45, %v4103_v14  ;;  %v2153_v32 = vsel %vm2151_vm4, %v2152_v53, %v2150_v1  ;;  %vm2158_vm7 = vcmp.eq.f32.partialorder %v10544_v39, 0.0 }
 0x273   : > { %v3065_v47 = vadd.f32 %v3064_v23, %v9037_v34  ;;  %v3066_v61 = vpop.f32.mrb[137].mxu1  ;;  %v4326_v49 = vpack.c.bf16 %v4106_v33, %v4104_v30  ;;  %v2497_v2 = vmul.f32 %v6603_v6, %v2153_v32  ;;  %v2157_v3 = vsel %vm2156_vm6, %v10544_v39, %v2155_v51  ;;  %v10546_v30 = vld [vmem:[#allocation65_spill] sm:$0xff] }
 0x274   : > { %v3067_v36 = vadd.f32 %v3066_v61, %v9039_v59  ;;  %v3068_v43 = vpop.f32.mrb[138].mxu1  ;;  %v2159_v41 = vand.u32 2147483648, %v10544_v39  ;;  %v2162_v35 = vmul.f32 %v10547_v26, %v10546_v30  ;;  %vm2163_vm10 = vcmp.eq.f32.partialorder %v10546_v30, inf  ;;  %v6604_v61 = vld [vmem:[%s6688_s16 + $0x2e0] sm:$0xff]  ;;  %v10548_v51 = vld [vmem:[#allocation61_spill] sm:$0xff] }
 0x275   : > { %vm3595_vm8 = vcmp.ge.f32.partialorder %v3065_v47, 0.0  ;;  %v3851_v7 = vmul.f32 0.01, %v3065_v47  ;;  %v3069_v9 = vadd.f32 %v3068_v43, %v9037_v34  ;;  %v3070_v29 = vpop.f32.mrb[139].mxu1  ;;  %4725 = vmatprep.mubr.bf16.mxu0 %v4326_v49  ;;  %v2579_v37 = vpack.c.bf16 %v2497_v2, %v2496_v5 }
 0x276   : > { %vm3596_vm13 = vcmp.ge.f32.partialorder %v3067_v36, 0.0  ;;  %v3852_v22 = vmul.f32 0.01, %v3067_v36  ;;  %v3071_v0 = vadd.f32 %v3070_v29, %v9039_v59  ;;  %4726 = vmatmul.mubr.bf16.gmra.mrb[132].mxu0 %v4325_v54  ;;  %vm2165_vm11 = vcmp.eq.f32.partialorder %v10546_v30, 0.0 }
 0x277   : > { %vm3597_vm1 = vcmp.ge.f32.partialorder %v3069_v9, 0.0  ;;  %v3853_v55 = vmul.f32 0.01, %v3069_v9  ;;  %v4107_v46 = vsel %vm3595_vm8, %v3065_v47, %v3851_v7  ;;  %5930 = vmatmul.mubr.msk.bf16.gmra.mrb[244].mxu1 %vm638_vm0, %v2579_v37  ;;  %v2160_v23 = vsel %vm2158_vm7, %v2159_v41, %v2157_v3  ;;  %v10550_v41 = vld [vmem:[#allocation63_spill] sm:$0xff] }
 0x278   : > { %vm3598_vm9 = vcmp.ge.f32.partialorder %v3071_v0, 0.0  ;;  %v3854_v60 = vmul.f32 0.01, %v3071_v0  ;;  %v4108_v14 = vsel %vm3596_vm13, %v3067_v36, %v3852_v22  ;;  %3342 = vmatprep.mubr.bf16.mxu1 %v10343_v19  ;;  %v2166_v33 = vand.u32 2147483648, %v10546_v30  ;;  %v10549_v36 = vld [vmem:[#allocation21_spill] sm:$0xff] }
 0x279   : > { %v4109_v44 = vsel %vm3597_vm1, %v3069_v9, %v3853_v55  ;;  %v2164_v47 = vsel %vm2163_vm10, %v10546_v30, %v2162_v35  ;;  %v2498_v49 = vmul.f32 %v6604_v61, %v2160_v23  ;;  %v2169_v43 = vmul.f32 %v10549_v36, %v10548_v51  ;;  %v6605_v9 = vld [vmem:[%s6688_s16 + $0x2e8] sm:$0xff]  ;;  %v6607_v36 = vld [vmem:[%s6688_s16 + $0x2f8] sm:$0xff] }
 0x27a   : > { %v3074_v13 = vpop.f32.mrb[140].mxu1  ;;  %v4110_v45 = vsel %vm3598_vm9, %v3071_v0, %v3854_v60  ;;  %v4327_v28 = vpack.c.bf16 %v4109_v44, %v4107_v46  ;;  %v2167_v24 = vsel %vm2165_vm11, %v2166_v33, %v2164_v47  ;;  %vm2170_vm12 = vcmp.eq.f32.partialorder %v10548_v51, inf  ;;  %v10551_v44 = vld [vmem:[#allocation81_spill] sm:$0xff] }
 0x27b   : > { %v3075_v54 = vadd.f32 %v3074_v13, %v9037_v34  ;;  %v3076_v1 = vpop.f32.mrb[141].mxu1  ;;  %v4328_v53 = vpack.c.bf16 %v4110_v45, %v4108_v14  ;;  %v2499_v29 = vmul.f32 %v6605_v9, %v2167_v24  ;;  %v2171_v22 = vsel %vm2170_vm12, %v10548_v51, %v2169_v43 }
 0x27c   : > { %v3077_v62 = vadd.f32 %v3076_v1, %v9039_v59  ;;  %v3078_v5 = vpop.f32.mrb[142].mxu1  ;;  %vm2172_vm3 = vcmp.eq.f32.partialorder %v10548_v51, 0.0  ;;  %v2173_v14 = vand.u32 2147483648, %v10548_v51  ;;  %v2176_v30 = vmul.f32 %v10551_v44, %v10550_v41 }
 0x27d   : > { %vm3599_vm14 = vcmp.ge.f32.partialorder %v3075_v54, 0.0  ;;  %v3855_v39 = vmul.f32 0.01, %v3075_v54  ;;  %v3079_v32 = vadd.f32 %v3078_v5, %v9037_v34  ;;  %v3080_v7 = vpop.f32.mrb[143].mxu1  ;;  %4733 = vmatprep.mubr.bf16.mxu0 %v4328_v53  ;;  %v2580_v3 = vpack.c.bf16 %v2499_v29, %v2498_v49  ;;  %v6606_v49 = vld [vmem:[%s6688_s16 + $0x2f0] sm:$0xff] }
 0x27e   : > { %vm3600_vm15 = vcmp.ge.f32.partialorder %v3077_v62, 0.0  ;;  %v3856_v6 = vmul.f32 0.01, %v3077_v62  ;;  %v3081_v2 = vadd.f32 %v3080_v7, %v9039_v59  ;;  %4734 = vmatmul.mubr.bf16.gmra.mrb[136].mxu0 %v4327_v28  ;;  %vm2177_vm4 = vcmp.eq.f32.partialorder %v10550_v41, inf }
 0x27f   : > { %vm3601_vm2 = vcmp.ge.f32.partialorder %v3079_v32, 0.0  ;;  %v3857_v0 = vmul.f32 0.01, %v3079_v32  ;;  %v4111_v55 = vsel %vm3599_vm14, %v3075_v54, %v3855_v39  ;;  %5931 = vmatmul.mubr.msk.bf16.gmra.mrb[248].mxu1 %vm638_vm0, %v2580_v3  ;;  %vm2179_vm6 = vcmp.eq.f32.partialorder %v10550_v41, 0.0 }
 0x280   : > { %vm3602_vm5 = vcmp.ge.f32.partialorder %v3081_v2, 0.0  ;;  %v3858_v37 = vmul.f32 0.01, %v3081_v2  ;;  %v4112_v46 = vsel %vm3600_vm15, %v3077_v62, %v3856_v6  ;;  %3352 = vmatprep.mubr.bf16.mxu1 %v10343_v19  ;;  %v2180_v45 = vand.u32 2147483648, %v10550_v41 }
 0x281   : > { %v4113_v60 = vsel %vm3601_vm2, %v3079_v32, %v3857_v0  ;;  %v2174_v54 = vsel %vm2172_vm3, %v2173_v14, %v2171_v22  ;;  %v2178_v1 = vsel %vm2177_vm4, %v10550_v41, %v2176_v30 }
 0x282   : > { %v3084_v26 = vpop.f32.mrb[144].mxu1  ;;  %v4114_v35 = vsel %vm3602_vm5, %v3081_v2, %v3858_v37  ;;  %v4329_v13 = vpack.c.bf16 %v4113_v60, %v4111_v55  ;;  %v2181_v61 = vsel %vm2179_vm6, %v2180_v45, %v2178_v1  ;;  %v2500_v62 = vmul.f32 %v6606_v49, %v2174_v54 }
 0x283   : > { %v3085_v28 = vadd.f32 %v3084_v26, %v9037_v34  ;;  %v3086_v23 = vpop.f32.mrb[145].mxu1  ;;  %v4330_v33 = vpack.c.bf16 %v4114_v35, %v4112_v46  ;;  %v2501_v43 = vmul.f32 %v6607_v36, %v2181_v61 }
 0x284   : > { %v3087_v53 = vadd.f32 %v3086_v23, %v9039_v59  ;;  %v3088_v47 = vpop.f32.mrb[146].mxu1  ;;  %v10552_v23 = vld [vmem:[#allocation97_spill] sm:$0xff] }
 0x285   : > { %v3859_v5 = vmul.f32 0.01, %v3085_v28  ;;  %v3089_v24 = vadd.f32 %v3088_v47, %v9037_v34  ;;  %v3090_v51 = vpop.f32.mrb[147].mxu1  ;;  %4741 = vmatprep.mubr.bf16.mxu0 %v4330_v33  ;;  %vm3603_vm7 = vcmp.ge.f32.partialorder %v3085_v28, 0.0  ;;  %v2581_v9 = vpack.c.bf16 %v2501_v43, %v2500_v62  ;;  %v10553_v33 = vld [vmem:[#allocation95_spill] sm:$0xff] }
 0x286   : > { %v3860_v39 = vmul.f32 0.01, %v3087_v53  ;;  %v3091_v32 = vadd.f32 %v3090_v51, %v9039_v59  ;;  %4742 = vmatmul.mubr.bf16.gmra.mrb[140].mxu0 %v4329_v13  ;;  %vm3604_vm8 = vcmp.ge.f32.partialorder %v3087_v53, 0.0  ;;  %v10554_v54 = vpack.c.bf16 %v10552_v23, %v10553_v33 }
 0x287   : > { %vm3605_vm13 = vcmp.ge.f32.partialorder %v3089_v24, 0.0  ;;  %v3861_v7 = vmul.f32 0.01, %v3089_v24  ;;  %5932 = vmatmul.mubr.msk.bf16.gmra.mrb[252].mxu1 %vm638_vm0, %v2581_v9  ;;  %v4115_v6 = vsel %vm3603_vm7, %v3085_v28, %v3859_v5 }
 0x288   : > { %vm3606_vm1 = vcmp.ge.f32.partialorder %v3091_v32, 0.0  ;;  %v3862_v29 = vmul.f32 0.01, %v3091_v32  ;;  %v4116_v0 = vsel %vm3604_vm8, %v3087_v53, %v3860_v39  ;;  %3362 = vmatprep.mubr.bf16.mxu1 %v10343_v19 }
 0x289   : > { %v4117_v2 = vsel %vm3605_vm13, %v3089_v24, %v3861_v7 }
 0x28a   : > { %v3094_v22 = vpop.f32.mrb[148].mxu1  ;;  %v4118_v3 = vsel %vm3606_vm1, %v3091_v32, %v3862_v29  ;;  %v4331_v55 = vpack.c.bf16 %v4117_v2, %v4115_v6 }
 0x28b   : > { %v3095_v37 = vadd.f32 %v3094_v22, %v9037_v34  ;;  %v3096_v46 = vpop.f32.mrb[149].mxu1  ;;  %v4332_v60 = vpack.c.bf16 %v4118_v3, %v4116_v0  ;;  %v10555_v22 = vld [vmem:[#allocation96_spill] sm:$0xff]  ;;  %v10556_v0 = vld [vmem:[#allocation94_spill] sm:$0xff] }
 0x28c   : > { %v3097_v14 = vadd.f32 %v3096_v46, %v9039_v59  ;;  %v3098_v41 = vpop.f32.mrb[150].mxu1  ;;  %v10557_v3 = vpack.c.bf16 %v10555_v22, %v10556_v0  ;;  %v10559_v22 = vpack.c.bf16 %v8265_v10, %v8252_v38 }
 0x28d   : > { %v3863_v44 = vmul.f32 0.01, %v3095_v37  ;;  %v3099_v30 = vadd.f32 %v3098_v41, %v9037_v34  ;;  %v3100_v26 = vpop.f32.mrb[151].mxu1  ;;  %4749 = vmatprep.mubr.bf16.mxu0 %v4332_v60  ;;  %vm3607_vm9 = vcmp.ge.f32.partialorder %v3095_v37, 0.0 }
 0x28e   : > { %v3864_v35 = vmul.f32 0.01, %v3097_v14  ;;  %v3101_v13 = vadd.f32 %v3100_v26, %v9039_v59  ;;  %4750 = vmatmul.mubr.bf16.gmra.mrb[144].mxu0 %v4331_v55  ;;  %vm3608_vm10 = vcmp.ge.f32.partialorder %v3097_v14, 0.0 }
 0x28f   : > { %vm3609_vm11 = vcmp.ge.f32.partialorder %v3099_v30, 0.0  ;;  %v3865_v45 = vmul.f32 0.01, %v3099_v30  ;;  %5933 = vmatmul.mubr.msk.bf16.gmra.mrb[0].mxu1 %vm638_vm0, %v10554_v54  ;;  %v4119_v1 = vsel %vm3607_vm9, %v3095_v37, %v3863_v44 }
 0x290   : > { %vm3610_vm12 = vcmp.ge.f32.partialorder %v3101_v13, 0.0  ;;  %v3866_v28 = vmul.f32 0.01, %v3101_v13  ;;  %v4120_v61 = vsel %vm3608_vm10, %v3097_v14, %v3864_v35  ;;  %3372 = vmatprep.mubr.bf16.mxu1 %v10343_v19 }
 0x291   : > { %v4121_v53 = vsel %vm3609_vm11, %v3099_v30, %v3865_v45 }
 0x292   : > { %v3104_v47 = vpop.f32.mrb[152].mxu1  ;;  %v4122_v49 = vsel %vm3610_vm12, %v3101_v13, %v3866_v28  ;;  %v4333_v62 = vpack.c.bf16 %v4121_v53, %v4119_v1 }
 0x293   : > { %v3105_v5 = vadd.f32 %v3104_v47, %v9037_v34  ;;  %v3106_v24 = vpop.f32.mrb[153].mxu1  ;;  %v4334_v51 = vpack.c.bf16 %v4122_v49, %v4120_v61  ;;  %v10558_v47 = vpack.c.bf16 %v8304_v57, %v8274_v31 }
 0x294   : > { %v3107_v36 = vadd.f32 %v3106_v24, %v9039_v59  ;;  %v3108_v43 = vpop.f32.mrb[154].mxu1 }
 0x295   : > { %v3867_v39 = vmul.f32 0.01, %v3105_v5  ;;  %v3109_v32 = vadd.f32 %v3108_v43, %v9037_v34  ;;  %v3110_v7 = vpop.f32.mrb[155].mxu1  ;;  %4757 = vmatprep.mubr.bf16.mxu0 %v4334_v51  ;;  %vm3611_vm14 = vcmp.ge.f32.partialorder %v3105_v5, 0.0 }
 0x296   : > { %v3868_v9 = vmul.f32 0.01, %v3107_v36  ;;  %v3111_v29 = vadd.f32 %v3110_v7, %v9039_v59  ;;  %4758 = vmatmul.mubr.bf16.gmra.mrb[148].mxu0 %v4333_v62  ;;  %vm3612_vm15 = vcmp.ge.f32.partialorder %v3107_v36, 0.0 }
 0x297   : > { %vm3613_vm2 = vcmp.ge.f32.partialorder %v3109_v32, 0.0  ;;  %v3869_v6 = vmul.f32 0.01, %v3109_v32  ;;  %5934 = vmatmul.mubr.msk.bf16.gmra.mrb[4].mxu1 %vm638_vm0, %v10557_v3  ;;  %v4123_v55 = vsel %vm3611_vm14, %v3105_v5, %v3867_v39 }
 0x298   : > { %vm3614_vm5 = vcmp.ge.f32.partialorder %v3111_v29, 0.0  ;;  %v3870_v2 = vmul.f32 0.01, %v3111_v29  ;;  %v4124_v60 = vsel %vm3612_vm15, %v3107_v36, %v3868_v9  ;;  %3382 = vmatprep.mubr.bf16.mxu1 %v10343_v19 }
 0x299   : > { %v4125_v37 = vsel %vm3613_vm2, %v3109_v32, %v3869_v6 }
 0x29a   : > { %v3114_v46 = vpop.f32.mrb[156].mxu1  ;;  %v4126_v14 = vsel %vm3614_vm5, %v3111_v29, %v3870_v2  ;;  %v4335_v41 = vpack.c.bf16 %v4125_v37, %v4123_v55 }
 0x29b   : > { %v3115_v44 = vadd.f32 %v3114_v46, %v9037_v34  ;;  %v3116_v30 = vpop.f32.mrb[157].mxu1  ;;  %v4336_v26 = vpack.c.bf16 %v4126_v14, %v4124_v60 }
 0x29c   : > { %v3117_v35 = vadd.f32 %v3116_v30, %v9039_v59  ;;  %v3118_v13 = vpop.f32.mrb[158].mxu1 }
 0x29d   : > { %v3871_v45 = vmul.f32 0.01, %v3115_v44  ;;  %v3119_v28 = vadd.f32 %v3118_v13, %v9037_v34  ;;  %v3120_v23 = vpop.f32.mrb[159].mxu1  ;;  %4765 = vmatprep.mubr.bf16.mxu0 %v4336_v26  ;;  %vm3615_vm3 = vcmp.ge.f32.partialorder %v3115_v44, 0.0 }
 0x29e   : > { %v3872_v33 = vmul.f32 0.01, %v3117_v35  ;;  %v3121_v54 = vadd.f32 %v3120_v23, %v9039_v59  ;;  %4766 = vmatmul.mubr.bf16.gmra.mrb[152].mxu0 %v4335_v41  ;;  %vm3616_vm4 = vcmp.ge.f32.partialorder %v3117_v35, 0.0 }
 0x29f   : > { %vm3617_vm6 = vcmp.ge.f32.partialorder %v3119_v28, 0.0  ;;  %v3873_v1 = vmul.f32 0.01, %v3119_v28  ;;  %5935 = vmatmul.mubr.msk.bf16.gmra.mrb[8].mxu1 %vm638_vm0, %v10558_v47  ;;  %v4127_v61 = vsel %vm3615_vm3, %v3115_v44, %v3871_v45 }
 0x2a0   : > { %vm3618_vm7 = vcmp.ge.f32.partialorder %v3121_v54, 0.0  ;;  %v3874_v53 = vmul.f32 0.01, %v3121_v54  ;;  %v4128_v62 = vsel %vm3616_vm4, %v3117_v35, %v3872_v33  ;;  %3392 = vmatprep.mubr.bf16.mxu1 %v10343_v19  ;;  %v10560_v33 = vpack.c.bf16 %v8416_v52, %v8380_v42 }
 0x2a1   : > { %v4129_v49 = vsel %vm3617_vm6, %v3119_v28, %v3873_v1 }
 0x2a2   : > { %v4130_v5 = vsel %vm3618_vm7, %v3121_v54, %v3874_v53  ;;  %v4337_v24 = vpack.c.bf16 %v4129_v49, %v4127_v61  ;;  %v3124_v36 = vpop.f32.mrb[160].mxu1 }
 0x2a3   : > { %v4338_v51 = vpack.c.bf16 %v4130_v5, %v4128_v62  ;;  %v3125_v43 = vadd.f32 %v3124_v36, %v9037_v34  ;;  %v3126_v39 = vpop.f32.mrb[161].mxu1 }
 0x2a4   : > { %v3127_v32 = vadd.f32 %v3126_v39, %v9039_v59  ;;  %v3128_v7 = vpop.f32.mrb[162].mxu1 }
 0x2a5   : > { %4773 = vmatprep.mubr.bf16.mxu0 %v4338_v51  ;;  %v3875_v31 = vmul.f32 0.01, %v3125_v43  ;;  %v3129_v57 = vadd.f32 %v3128_v7, %v9037_v34  ;;  %v3130_v9 = vpop.f32.mrb[163].mxu1  ;;  %vm3619_vm8 = vcmp.ge.f32.partialorder %v3125_v43, 0.0 }
 0x2a6   : > { %4774 = vmatmul.mubr.bf16.gmra.mrb[156].mxu0 %v4337_v24  ;;  %v3876_v29 = vmul.f32 0.01, %v3127_v32  ;;  %v3131_v6 = vadd.f32 %v3130_v9, %v9039_v59  ;;  %vm3620_vm13 = vcmp.ge.f32.partialorder %v3127_v32, 0.0 }
 0x2a7   : > { %vm3621_vm1 = vcmp.ge.f32.partialorder %v3129_v57, 0.0  ;;  %v3877_v2 = vmul.f32 0.01, %v3129_v57  ;;  %5936 = vmatmul.mubr.msk.bf16.gmra.mrb[12].mxu1 %vm638_vm0, %v10559_v22  ;;  %v4131_v3 = vsel %vm3619_vm8, %v3125_v43, %v3875_v31 }
 0x2a8   : > { %vm3622_vm9 = vcmp.ge.f32.partialorder %v3131_v6, 0.0  ;;  %v3878_v0 = vmul.f32 0.01, %v3131_v6  ;;  %3402 = vmatprep.mubr.bf16.mxu1 %v10343_v19  ;;  %v4132_v46 = vsel %vm3620_vm13, %v3127_v32, %v3876_v29 }
 0x2a9   : > { %v4133_v55 = vsel %vm3621_vm1, %v3129_v57, %v3877_v2  ;;  %v10561_v57 = vpack.c.bf16 %v8407_v40, %v8377_v12  ;;  %vm5614_vm1 = vcmask 31744  }
 0x2aa   : > { %v3134_v37 = vpop.f32.mrb[164].mxu1  ;;  %v4134_v60 = vsel %vm3622_vm9, %v3131_v6, %v3878_v0  ;;  %v4339_v14 = vpack.c.bf16 %v4133_v55, %v4131_v3 }
 0x2ab   : > { %v3135_v41 = vadd.f32 %v3134_v37, %v9037_v34  ;;  %v3136_v44 = vpop.f32.mrb[165].mxu1  ;;  %v4340_v30 = vpack.c.bf16 %v4134_v60, %v4132_v46 }
 0x2ac   : > { %v3137_v26 = vadd.f32 %v3136_v44, %v9039_v59  ;;  %v3138_v35 = vpop.f32.mrb[166].mxu1  ;;  %v9565_v44 = vpop.permute.xlu0 %4458 }
 0x2ad   : > { %v3879_v38 = vmul.f32 0.01, %v3135_v41  ;;  %v3139_v10 = vadd.f32 %v3138_v35, %v9037_v34  ;;  %v3140_v13 = vpop.f32.mrb[167].mxu1  ;;  %4781 = vmatprep.mubr.bf16.mxu0 %v4340_v30  ;;  %vm3623_vm10 = vcmp.ge.f32.partialorder %v3135_v41, 0.0 }
 0x2ae   : > { %v3880_v45 = vmul.f32 0.01, %v3137_v26  ;;  %v3141_v28 = vadd.f32 %v3140_v13, %v9039_v59  ;;  %4782 = vmatmul.mubr.bf16.gmra.mrb[160].mxu0 %v4339_v14  ;;  %vm3624_vm11 = vcmp.ge.f32.partialorder %v3137_v26, 0.0 }
 0x2af   : > { %vm3625_vm12 = vcmp.ge.f32.partialorder %v3139_v10, 0.0  ;;  %v3881_v23 = vmul.f32 0.01, %v3139_v10  ;;  %5937 = vmatmul.mubr.msk.bf16.gmra.mrb[16].mxu1 %vm638_vm0, %v10560_v33  ;;  %v4135_v1 = vsel %vm3623_vm10, %v3135_v41, %v3879_v38  ;;  %v10562_v38 = vpack.c.bf16 %v8532_v4, %v8511_v56 }
 0x2b0   : > { %vm3626_vm14 = vcmp.ge.f32.partialorder %v3141_v28, 0.0  ;;  %v3882_v54 = vmul.f32 0.01, %v3141_v28  ;;  %3412 = vmatprep.mubr.bf16.mxu1 %v10343_v19  ;;  %v4136_v61 = vsel %vm3624_vm11, %v3137_v26, %v3880_v45 }
 0x2b1   : > { %v4137_v53 = vsel %vm3625_vm12, %v3139_v10, %v3881_v23 }
 0x2b2   : > { %v3144_v47 = vpop.f32.mrb[168].mxu1  ;;  %v4138_v49 = vsel %vm3626_vm14, %v3141_v28, %v3882_v54  ;;  %v4341_v62 = vpack.c.bf16 %v4137_v53, %v4135_v1 }
 0x2b3   : > { %v3145_v5 = vadd.f32 %v3144_v47, %v9037_v34  ;;  %v3146_v24 = vpop.f32.mrb[169].mxu1  ;;  %v4342_v51 = vpack.c.bf16 %v4138_v49, %v4136_v61 }
 0x2b4   : > { %v3147_v36 = vadd.f32 %v3146_v24, %v9039_v59  ;;  %v3148_v43 = vpop.f32.mrb[170].mxu1 }
 0x2b5   : > { %v3883_v42 = vmul.f32 0.01, %v3145_v5  ;;  %v3149_v52 = vadd.f32 %v3148_v43, %v9037_v34  ;;  %v3150_v39 = vpop.f32.mrb[171].mxu1  ;;  %4789 = vmatprep.mubr.bf16.mxu0 %v4342_v51  ;;  %vm3627_vm15 = vcmp.ge.f32.partialorder %v3145_v5, 0.0 }
 0x2b6   : > { %v3884_v32 = vmul.f32 0.01, %v3147_v36  ;;  %v3151_v7 = vadd.f32 %v3150_v39, %v9039_v59  ;;  %4790 = vmatmul.mubr.bf16.gmra.mrb[164].mxu0 %v4341_v62  ;;  %vm3628_vm2 = vcmp.ge.f32.partialorder %v3147_v36, 0.0 }
 0x2b7   : > { %vm3629_vm5 = vcmp.ge.f32.partialorder %v3149_v52, 0.0  ;;  %v3885_v31 = vmul.f32 0.01, %v3149_v52  ;;  %5938 = vmatmul.mubr.msk.bf16.gmra.mrb[20].mxu1 %vm638_vm0, %v10561_v57  ;;  %v4139_v29 = vsel %vm3627_vm15, %v3145_v5, %v3883_v42 }
 0x2b8   : > { %vm3630_vm3 = vcmp.ge.f32.partialorder %v3151_v7, 0.0  ;;  %v3886_v9 = vmul.f32 0.01, %v3151_v7  ;;  %3422 = vmatprep.mubr.bf16.mxu1 %v10343_v19  ;;  %v4140_v22 = vsel %vm3628_vm2, %v3147_v36, %v3884_v32 }
 0x2b9   : > { %v4141_v6 = vsel %vm3629_vm5, %v3149_v52, %v3885_v31 }
 0x2ba   : > { %v3154_v2 = vpop.f32.mrb[172].mxu1  ;;  %v4142_v0 = vsel %vm3630_vm3, %v3151_v7, %v3886_v9  ;;  %v4343_v3 = vpack.c.bf16 %v4141_v6, %v4139_v29 }
 0x2bb   : > { %v3155_v55 = vadd.f32 %v3154_v2, %v9037_v34  ;;  %v3156_v37 = vpop.f32.mrb[173].mxu1  ;;  %v4344_v46 = vpack.c.bf16 %v4142_v0, %v4140_v22  ;;  %v10563_v2 = vld [vmem:[#allocation56_spill] sm:$0xff]  ;;  %v10564_v22 = vld [vmem:[#allocation38_spill] sm:$0xff] }
 0x2bc   : > { %v3157_v60 = vadd.f32 %v3156_v37, %v9039_v59  ;;  %v3158_v14 = vpop.f32.mrb[174].mxu1  ;;  %v10565_v0 = vpack.c.bf16 %v10563_v2, %v10564_v22 }
 0x2bd   : > { %v3887_v12 = vmul.f32 0.01, %v3155_v55  ;;  %v3159_v40 = vadd.f32 %v3158_v14, %v9037_v34  ;;  %v3160_v41 = vpop.f32.mrb[175].mxu1  ;;  %4797 = vmatprep.mubr.bf16.mxu0 %v4344_v46  ;;  %vm3631_vm4 = vcmp.ge.f32.partialorder %v3155_v55, 0.0 }
 0x2be   : > { %vm3632_vm6 = vcmp.ge.f32.partialorder %v3157_v60, 0.0  ;;  %v3888_v30 = vmul.f32 0.01, %v3157_v60  ;;  %v3161_v26 = vadd.f32 %v3160_v41, %v9039_v59  ;;  %4798 = vmatmul.mubr.bf16.gmra.mrb[168].mxu0 %v4343_v3  ;;  %v4591_v10 = vpop.f32.mrb[64].mxu0 }
 0x2bf   : > { %vm3633_vm7 = vcmp.ge.f32.partialorder %v3159_v40, 0.0  ;;  %v3889_v35 = vmul.f32 0.01, %v3159_v40  ;;  %5939 = vmatmul.mubr.msk.bf16.gmra.mrb[24].mxu1 %vm638_vm0, %v10562_v38  ;;  %v4592_v45 = vadd.f32 %v4591_v10, %v9565_v44  ;;  %v4593_v28 = vpop.f32.mrb[65].mxu0  ;;  %v4143_v54 = vsel %vm3631_vm4, %v3155_v55, %v3887_v12 }
 0x2c0   : > { %vm3634_vm8 = vcmp.ge.f32.partialorder %v3161_v26, 0.0  ;;  %v3890_v13 = vmul.f32 0.01, %v3161_v26  ;;  %3432 = vmatprep.mubr.bf16.mxu1 %v10343_v19  ;;  %v4594_v23 = vpop.f32.mrb[66].mxu0  ;;  %v4144_v33 = vsel %vm3632_vm6, %v3157_v60, %v3888_v30 }
 0x2c1   : > { %v4145_v1 = vsel %vm3633_vm7, %v3159_v40, %v3889_v35  ;;  %vm5102_vm13 = vcmp.ge.f32.partialorder %v4592_v45, 0.0  ;;  %v5230_v53 = vmul.f32 0.01, %v4592_v45  ;;  %v4595_v56 = vadd.f32 %v4594_v23, %v9565_v44  ;;  %v4596_v4 = vpop.f32.mrb[67].mxu0 }
 0x2c2   : > { %v3164_v47 = vpop.f32.mrb[176].mxu1  ;;  %v4146_v61 = vsel %vm3634_vm8, %v3161_v26, %v3890_v13  ;;  %v4345_v24 = vpack.c.bf16 %v4145_v1, %v4143_v54 }
 0x2c3   : > { %v3165_v49 = vadd.f32 %v3164_v47, %v9037_v34  ;;  %v3166_v62 = vpop.f32.mrb[177].mxu1  ;;  %v4346_v5 = vpack.c.bf16 %v4146_v61, %v4144_v33  ;;  %v5358_v51 = vsel %vm5102_vm13, %v4592_v45, %v5230_v53  ;;  %vm5103_vm9 = vcmp.ge.f32.partialorder %v4595_v56, 0.0 }
 0x2c4   : > { %v3167_v36 = vadd.f32 %v3166_v62, %v9039_v59  ;;  %v5231_v43 = vmul.f32 0.01, %v4595_v56  ;;  %v3168_v42 = vpop.f32.mrb[178].mxu1  ;;  %v5486_v52 = vmul.f32 255.0, %v5358_v51  ;;  %v10566_v51 = vld [vmem:[#allocation54_spill] sm:$0xff] }
 0x2c5   : > { %vm3635_vm10 = vcmp.ge.f32.partialorder %v3165_v49, 0.0  ;;  %v3891_v39 = vmul.f32 0.01, %v3165_v49  ;;  %v3169_v32 = vadd.f32 %v3168_v42, %v9037_v34  ;;  %v3170_v7 = vpop.f32.mrb[179].mxu1  ;;  %4805 = vmatprep.mubr.bf16.mxu0 %v4346_v5 }
 0x2c6   : > { %vm3636_vm11 = vcmp.ge.f32.partialorder %v3167_v36, 0.0  ;;  %v3892_v31 = vmul.f32 0.01, %v3167_v36  ;;  %v5359_v57 = vsel %vm5103_vm9, %v4595_v56, %v5231_v43  ;;  %v3171_v9 = vadd.f32 %v3170_v7, %v9039_v59  ;;  %4806 = vmatmul.mubr.bf16.gmra.mrb[172].mxu0 %v4345_v24  ;;  %5615 = vst.msk [vmem:[%s9582_s13] sm:$0xff] %vm5614_vm1, %v5486_v52  ;;  %v4599_v3 = vpop.f32.mrb[68].mxu0 }
 0x2c7   : > { %v5487_v29 = vmul.f32 255.0, %v5359_v57  ;;  %vm3637_vm12 = vcmp.ge.f32.partialorder %v3169_v32, 0.0  ;;  %v3893_v6 = vmul.f32 0.01, %v3169_v32  ;;  %5940 = vmatmul.mubr.msk.bf16.gmra.mrb[28].mxu1 %vm638_vm0, %v10565_v0  ;;  %v4600_v37 = vadd.f32 %v4599_v3, %v9565_v44  ;;  %v4601_v46 = vpop.f32.mrb[69].mxu0 }
 0x2c8   : > { %vm3638_vm14 = vcmp.ge.f32.partialorder %v3171_v9, 0.0  ;;  %v3894_v55 = vmul.f32 0.01, %v3171_v9  ;;  %3442 = vmatprep.mubr.bf16.mxu1 %v10343_v19  ;;  %v4602_v60 = vpop.f32.mrb[70].mxu0  ;;  %v4148_v14 = vsel %vm3636_vm11, %v3167_v36, %v3892_v31  ;;  %v4147_v12 = vsel %vm3635_vm10, %v3165_v49, %v3891_v39  ;;  %v10567_v36 = vld [vmem:[#allocation71_spill] sm:$0xff] }
 0x2c9   : > { %5616 = vst.msk [vmem:[%s9582_s13 + $0x8] sm:$0xff] %vm5614_vm1, %v5487_v29  ;;  %v4149_v40 = vsel %vm3637_vm12, %v3169_v32, %v3893_v6  ;;  %vm5104_vm15 = vcmp.ge.f32.partialorder %v4600_v37, 0.0  ;;  %v5232_v41 = vmul.f32 0.01, %v4600_v37  ;;  %v4603_v26 = vadd.f32 %v4602_v60, %v9565_v44  ;;  %v4604_v35 = vpop.f32.mrb[71].mxu0 }
 0x2ca   : > { %v3174_v30 = vpop.f32.mrb[180].mxu1  ;;  %v4150_v38 = vsel %vm3638_vm14, %v3171_v9, %v3894_v55  ;;  %v4347_v28 = vpack.c.bf16 %v4149_v40, %v4147_v12  ;;  %v10568_v43 = vpack.c.bf16 %v10566_v51, %v10567_v36 }
 0x2cb   : > { %v3175_v10 = vadd.f32 %v3174_v30, %v9037_v34  ;;  %v3176_v13 = vpop.f32.mrb[181].mxu1  ;;  %v4348_v45 = vpack.c.bf16 %v4150_v38, %v4148_v14  ;;  %v5360_v23 = vsel %vm5104_vm15, %v4600_v37, %v5232_v41  ;;  %vm5105_vm2 = vcmp.ge.f32.partialorder %v4603_v26, 0.0 }
 0x2cc   : > { %v3177_v33 = vadd.f32 %v3176_v13, %v9039_v59  ;;  %v5233_v54 = vmul.f32 0.01, %v4603_v26  ;;  %v3178_v1 = vpop.f32.mrb[182].mxu1  ;;  %v5488_v53 = vmul.f32 255.0, %v5360_v23  ;;  %v10569_v23 = vld [vmem:[#allocation69_spill] sm:$0xff] }
 0x2cd   : > { %vm3639_vm5 = vcmp.ge.f32.partialorder %v3175_v10, 0.0  ;;  %v3895_v47 = vmul.f32 0.01, %v3175_v10  ;;  %v3179_v56 = vadd.f32 %v3178_v1, %v9037_v34  ;;  %v3180_v4 = vpop.f32.mrb[183].mxu1  ;;  %4813 = vmatprep.mubr.bf16.mxu0 %v4348_v45 }
 0x2ce   : > { %vm3640_vm3 = vcmp.ge.f32.partialorder %v3177_v33, 0.0  ;;  %v3896_v61 = vmul.f32 0.01, %v3177_v33  ;;  %v5361_v49 = vsel %vm5105_vm2, %v4603_v26, %v5233_v54  ;;  %v3181_v62 = vadd.f32 %v3180_v4, %v9039_v59  ;;  %4814 = vmatmul.mubr.bf16.gmra.mrb[176].mxu0 %v4347_v28  ;;  %5617 = vst.msk [vmem:[%s9582_s13 + $0x10] sm:$0xff] %vm5614_vm1, %v5488_v53  ;;  %v4607_v42 = vpop.f32.mrb[72].mxu0 }
 0x2cf   : > { %v5489_v5 = vmul.f32 255.0, %v5361_v49  ;;  %vm3641_vm4 = vcmp.ge.f32.partialorder %v3179_v56, 0.0  ;;  %v3897_v24 = vmul.f32 0.01, %v3179_v56  ;;  %5941 = vmatmul.mubr.msk.bf16.gmra.mrb[32].mxu1 %vm638_vm0, %v10568_v43  ;;  %v4608_v39 = vadd.f32 %v4607_v42, %v9565_v44  ;;  %v4609_v32 = vpop.f32.mrb[73].mxu0 }
 0x2d0   : > { %vm3642_vm6 = vcmp.ge.f32.partialorder %v3181_v62, 0.0  ;;  %v3898_v52 = vmul.f32 0.01, %v3181_v62  ;;  %3452 = vmatprep.mubr.bf16.mxu1 %v10343_v19  ;;  %v4610_v7 = vpop.f32.mrb[74].mxu0  ;;  %v4152_v31 = vsel %vm3640_vm3, %v3177_v33, %v3896_v61  ;;  %v4151_v57 = vsel %vm3639_vm5, %v3175_v10, %v3895_v47  ;;  %v10570_v33 = vld [vmem:[#allocation57_spill] sm:$0xff] }
 0x2d1   : > { %5618 = vst.msk [vmem:[%s9582_s13 + $0x18] sm:$0xff] %vm5614_vm1, %v5489_v5  ;;  %v4153_v9 = vsel %vm3641_vm4, %v3179_v56, %v3897_v24  ;;  %vm5106_vm7 = vcmp.ge.f32.partialorder %v4608_v39, 0.0  ;;  %v5234_v29 = vmul.f32 0.01, %v4608_v39  ;;  %v4611_v2 = vadd.f32 %v4610_v7, %v9565_v44  ;;  %v4612_v22 = vpop.f32.mrb[75].mxu0 }
 0x2d2   : > { %v3184_v6 = vpop.f32.mrb[184].mxu1  ;;  %v4154_v0 = vsel %vm3642_vm6, %v3181_v62, %v3898_v52  ;;  %v4349_v46 = vpack.c.bf16 %v4153_v9, %v4151_v57  ;;  %v10571_v54 = vpack.c.bf16 %v10569_v23, %v10570_v33 }
 0x2d3   : > { %v3185_v3 = vadd.f32 %v3184_v6, %v9037_v34  ;;  %v3186_v55 = vpop.f32.mrb[185].mxu1  ;;  %v4350_v37 = vpack.c.bf16 %v4154_v0, %v4152_v31  ;;  %v5362_v60 = vsel %vm5106_vm7, %v4608_v39, %v5234_v29  ;;  %vm5107_vm8 = vcmp.ge.f32.partialorder %v4611_v2, 0.0 }
 0x2d4   : > { %v3187_v14 = vadd.f32 %v3186_v55, %v9039_v59  ;;  %v5235_v12 = vmul.f32 0.01, %v4611_v2  ;;  %v3188_v40 = vpop.f32.mrb[186].mxu1  ;;  %v5490_v41 = vmul.f32 255.0, %v5362_v60  ;;  %v10572_v60 = vpack.c.bf16 %v8784_v8, %v8749_v11 }
 0x2d5   : > { %vm3643_vm13 = vcmp.ge.f32.partialorder %v3185_v3, 0.0  ;;  %v3899_v30 = vmul.f32 0.01, %v3185_v3  ;;  %v3189_v26 = vadd.f32 %v3188_v40, %v9037_v34  ;;  %v3190_v35 = vpop.f32.mrb[187].mxu1  ;;  %4821 = vmatprep.mubr.bf16.mxu0 %v4350_v37 }
 0x2d6   : > { %vm3644_vm9 = vcmp.ge.f32.partialorder %v3187_v14, 0.0  ;;  %v3900_v38 = vmul.f32 0.01, %v3187_v14  ;;  %v5363_v10 = vsel %vm5107_vm8, %v4611_v2, %v5235_v12  ;;  %v3191_v13 = vadd.f32 %v3190_v35, %v9039_v59  ;;  %4822 = vmatmul.mubr.bf16.gmra.mrb[180].mxu0 %v4349_v46  ;;  %5619 = vst.msk [vmem:[%s9582_s13 + $0x20] sm:$0xff] %vm5614_vm1, %v5490_v41  ;;  %v4615_v1 = vpop.f32.mrb[76].mxu0 }
 0x2d7   : > { %v5491_v45 = vmul.f32 255.0, %v5363_v10  ;;  %vm3645_vm10 = vcmp.ge.f32.partialorder %v3189_v26, 0.0  ;;  %v3901_v28 = vmul.f32 0.01, %v3189_v26  ;;  %5942 = vmatmul.mubr.msk.bf16.gmra.mrb[36].mxu1 %vm638_vm0, %v10571_v54  ;;  %v4616_v47 = vadd.f32 %v4615_v1, %v9565_v44  ;;  %v4617_v56 = vpop.f32.mrb[77].mxu0 }
 0x2d8   : > { %vm3646_vm11 = vcmp.ge.f32.partialorder %v3191_v13, 0.0  ;;  %v3902_v53 = vmul.f32 0.01, %v3191_v13  ;;  %3462 = vmatprep.mubr.bf16.mxu1 %v10343_v19  ;;  %v4618_v4 = vpop.f32.mrb[78].mxu0  ;;  %v4156_v61 = vsel %vm3644_vm9, %v3187_v14, %v3900_v38  ;;  %v4155_v49 = vsel %vm3643_vm13, %v3185_v3, %v3899_v30 }
 0x2d9   : > { %5620 = vst.msk [vmem:[%s9582_s13 + $0x28] sm:$0xff] %vm5614_vm1, %v5491_v45  ;;  %v4157_v62 = vsel %vm3645_vm10, %v3189_v26, %v3901_v28  ;;  %vm5108_vm12 = vcmp.ge.f32.partialorder %v4616_v47, 0.0  ;;  %v5236_v5 = vmul.f32 0.01, %v4616_v47  ;;  %v4619_v51 = vadd.f32 %v4618_v4, %v9565_v44  ;;  %v4620_v36 = vpop.f32.mrb[79].mxu0 }
 0x2da   : > { %v3194_v24 = vpop.f32.mrb[188].mxu1  ;;  %v4158_v43 = vsel %vm3646_vm11, %v3191_v13, %v3902_v53  ;;  %v4351_v32 = vpack.c.bf16 %v4157_v62, %v4155_v49 }
 0x2db   : > { %v3195_v42 = vadd.f32 %v3194_v24, %v9037_v34  ;;  %v3196_v52 = vpop.f32.mrb[189].mxu1  ;;  %v4352_v39 = vpack.c.bf16 %v4158_v43, %v4156_v61  ;;  %v5364_v7 = vsel %vm5108_vm12, %v4616_v47, %v5236_v5  ;;  %vm5109_vm14 = vcmp.ge.f32.partialorder %v4619_v51, 0.0 }
 0x2dc   : > { %v3197_v31 = vadd.f32 %v3196_v52, %v9039_v59  ;;  %v5237_v57 = vmul.f32 0.01, %v4619_v51  ;;  %v3198_v9 = vpop.f32.mrb[190].mxu1  ;;  %v5492_v29 = vmul.f32 255.0, %v5364_v7 }
 0x2dd   : > { %vm3647_vm15 = vcmp.ge.f32.partialorder %v3195_v42, 0.0  ;;  %v3903_v6 = vmul.f32 0.01, %v3195_v42  ;;  %v3199_v2 = vadd.f32 %v3198_v9, %v9037_v34  ;;  %v3200_v22 = vpop.f32.mrb[191].mxu1  ;;  %4829 = vmatprep.mubr.bf16.mxu0 %v4352_v39 }
 0x2de   : > { %vm3648_vm2 = vcmp.ge.f32.partialorder %v3197_v31, 0.0  ;;  %v3904_v0 = vmul.f32 0.01, %v3197_v31  ;;  %v5365_v3 = vsel %vm5109_vm14, %v4619_v51, %v5237_v57  ;;  %v3201_v55 = vadd.f32 %v3200_v22, %v9039_v59  ;;  %4830 = vmatmul.mubr.bf16.gmra.mrb[184].mxu0 %v4351_v32  ;;  %5621 = vst.msk [vmem:[%s9582_s13 + $0x30] sm:$0xff] %vm5614_vm1, %v5492_v29 }
 0x2df   : > { %v5493_v37 = vmul.f32 255.0, %v5365_v3  ;;  %vm3649_vm5 = vcmp.ge.f32.partialorder %v3199_v2, 0.0  ;;  %v3905_v46 = vmul.f32 0.01, %v3199_v2  ;;  %5943 = vmatmul.mubr.msk.bf16.gmra.mrb[40].mxu1 %vm638_vm0, %v10572_v60  ;;  %v4623_v14 = vpop.f32.mrb[80].mxu0  ;;  %v4159_v35 = vsel %vm3647_vm15, %v3195_v42, %v3903_v6 }
 0x2e0   : > { %vm3650_vm3 = vcmp.ge.f32.partialorder %v3201_v55, 0.0  ;;  %v3906_v12 = vmul.f32 0.01, %v3201_v55  ;;  %v4624_v40 = vadd.f32 %v4623_v14, %v9565_v44  ;;  %v4625_v41 = vpop.f32.mrb[81].mxu0  ;;  %3472 = vmatprep.mubr.bf16.mxu1 %v10343_v19  ;;  %v4160_v26 = vsel %vm3648_vm2, %v3197_v31, %v3904_v0 }
 0x2e1   : > { %5622 = vst.msk [vmem:[%s9582_s13 + $0x38] sm:$0xff] %vm5614_vm1, %v5493_v37  ;;  %v4626_v30 = vpop.f32.mrb[82].mxu0  ;;  %v4161_v38 = vsel %vm3649_vm5, %v3199_v2, %v3905_v46  ;;  %v10573_v42 = vpack.c.bf16 %v8757_v48, %v8735_v20 }
 0x2e2   : > { %vm5110_vm4 = vcmp.ge.f32.partialorder %v4624_v40, 0.0  ;;  %v5238_v11 = vmul.f32 0.01, %v4624_v40  ;;  %v3204_v8 = vpop.f32.mrb[192].mxu1  ;;  %v4627_v10 = vadd.f32 %v4626_v30, %v9565_v44  ;;  %v4628_v13 = vpop.f32.mrb[83].mxu0  ;;  %v4162_v45 = vsel %vm3650_vm3, %v3201_v55, %v3906_v12 }
 0x2e3   : > { %v3205_v28 = vadd.f32 %v3204_v8, %v9037_v34  ;;  %v3206_v23 = vpop.f32.mrb[193].mxu1  ;;  %v4354_v33 = vpack.c.bf16 %v4162_v45, %v4160_v26  ;;  %v4353_v54 = vpack.c.bf16 %v4161_v38, %v4159_v35  ;;  %v10574_v13 = vpack.c.bf16 %v8864_v50, %v8825_v18 }
 0x2e4   : > { %v5366_v1 = vsel %vm5110_vm4, %v4624_v40, %v5238_v11  ;;  %v3207_v53 = vadd.f32 %v3206_v23, %v9039_v59  ;;  %vm5111_vm6 = vcmp.ge.f32.partialorder %v4627_v10, 0.0  ;;  %v5239_v47 = vmul.f32 0.01, %v4627_v10  ;;  %v3208_v56 = vpop.f32.mrb[194].mxu1 }
 0x2e5   : > { %v5494_v4 = vmul.f32 255.0, %v5366_v1  ;;  %vm3651_vm7 = vcmp.ge.f32.partialorder %v3205_v28, 0.0  ;;  %v3907_v61 = vmul.f32 0.01, %v3205_v28  ;;  %v3209_v49 = vadd.f32 %v3208_v56, %v9037_v34  ;;  %v3210_v62 = vpop.f32.mrb[195].mxu1  ;;  %4837 = vmatprep.mubr.bf16.mxu0 %v4354_v33 }
 0x2e6   : > { %vm3652_vm8 = vcmp.ge.f32.partialorder %v3207_v53, 0.0  ;;  %v3908_v5 = vmul.f32 0.01, %v3207_v53  ;;  %v5367_v24 = vsel %vm5111_vm6, %v4627_v10, %v5239_v47  ;;  %v3211_v51 = vadd.f32 %v3210_v62, %v9039_v59  ;;  %4838 = vmatmul.mubr.bf16.gmra.mrb[188].mxu0 %v4353_v54 }
 0x2e7   : > { %5623 = vst.msk [vmem:[%s9582_s13 + $0x40] sm:$0xff] %vm5614_vm1, %v5494_v4  ;;  %v5495_v36 = vmul.f32 255.0, %v5367_v24  ;;  %vm3653_vm13 = vcmp.ge.f32.partialorder %v3209_v49, 0.0  ;;  %v3909_v43 = vmul.f32 0.01, %v3209_v49  ;;  %5944 = vmatmul.mubr.msk.bf16.gmra.mrb[44].mxu1 %vm638_vm0, %v10573_v42  ;;  %v4631_v52 = vpop.f32.mrb[84].mxu0  ;;  %v4163_v9 = vsel %vm3651_vm7, %v3205_v28, %v3907_v61 }
 0x2e8   : > { %vm3654_vm9 = vcmp.ge.f32.partialorder %v3211_v51, 0.0  ;;  %v3910_v39 = vmul.f32 0.01, %v3211_v51  ;;  %v4632_v32 = vadd.f32 %v4631_v52, %v9565_v44  ;;  %v4633_v7 = vpop.f32.mrb[85].mxu0  ;;  %3482 = vmatprep.mubr.bf16.mxu1 %v10343_v19  ;;  %v4164_v57 = vsel %vm3652_vm8, %v3207_v53, %v3908_v5 }
 0x2e9   : > { %5624 = vst.msk [vmem:[%s9582_s13 + $0x48] sm:$0xff] %vm5614_vm1, %v5495_v36  ;;  %v4634_v31 = vpop.f32.mrb[86].mxu0  ;;  %v4165_v29 = vsel %vm3653_vm13, %v3209_v49, %v3909_v43 }
 0x2ea   : > { %vm5112_vm10 = vcmp.ge.f32.partialorder %v4632_v32, 0.0  ;;  %v5240_v20 = vmul.f32 0.01, %v4632_v32  ;;  %v3214_v48 = vpop.f32.mrb[196].mxu1  ;;  %v4635_v6 = vadd.f32 %v4634_v31, %v9565_v44  ;;  %v4636_v2 = vpop.f32.mrb[87].mxu0  ;;  %v4166_v22 = vsel %vm3654_vm9, %v3211_v51, %v3910_v39 }
 0x2eb   : > { %v3215_v0 = vadd.f32 %v3214_v48, %v9037_v34  ;;  %v3216_v3 = vpop.f32.mrb[197].mxu1  ;;  %v4356_v55 = vpack.c.bf16 %v4166_v22, %v4164_v57  ;;  %v4355_v37 = vpack.c.bf16 %v4165_v29, %v4163_v9  ;;  %v10575_v48 = vpack.c.bf16 %v8845_v63, %v8814_v15 }
 0x2ec   : > { %v5368_v46 = vsel %vm5112_vm10, %v4632_v32, %v5240_v20  ;;  %v3217_v60 = vadd.f32 %v3216_v3, %v9039_v59  ;;  %vm5113_vm11 = vcmp.ge.f32.partialorder %v4635_v6, 0.0  ;;  %v5241_v14 = vmul.f32 0.01, %v4635_v6  ;;  %v3218_v12 = vpop.f32.mrb[198].mxu1 }
 0x2ed   : > { %v5496_v40 = vmul.f32 255.0, %v5368_v46  ;;  %vm3655_vm12 = vcmp.ge.f32.partialorder %v3215_v0, 0.0  ;;  %v3911_v41 = vmul.f32 0.01, %v3215_v0  ;;  %v3219_v30 = vadd.f32 %v3218_v12, %v9037_v34  ;;  %v3220_v26 = vpop.f32.mrb[199].mxu1  ;;  %4845 = vmatprep.mubr.bf16.mxu0 %v4356_v55 }
 0x2ee   : > { %vm3656_vm14 = vcmp.ge.f32.partialorder %v3217_v60, 0.0  ;;  %v3912_v35 = vmul.f32 0.01, %v3217_v60  ;;  %v5369_v38 = vsel %vm5113_vm11, %v4635_v6, %v5241_v14  ;;  %v3221_v11 = vadd.f32 %v3220_v26, %v9039_v59  ;;  %4846 = vmatmul.mubr.bf16.gmra.mrb[192].mxu0 %v4355_v37 }
 0x2ef   : > { %5625 = vst.msk [vmem:[%s9582_s13 + $0x50] sm:$0xff] %vm5614_vm1, %v5496_v40  ;;  %v5497_v8 = vmul.f32 255.0, %v5369_v38  ;;  %vm3657_vm15 = vcmp.ge.f32.partialorder %v3219_v30, 0.0  ;;  %v3913_v10 = vmul.f32 0.01, %v3219_v30  ;;  %5945 = vmatmul.mubr.msk.bf16.gmra.mrb[48].mxu1 %vm638_vm0, %v10574_v13  ;;  %v4167_v53 = vsel %vm3655_vm12, %v3215_v0, %v3911_v41 }
 0x2f0   : > { %vm3658_vm2 = vcmp.ge.f32.partialorder %v3221_v11, 0.0  ;;  %v3914_v28 = vmul.f32 0.01, %v3221_v11  ;;  %3492 = vmatprep.mubr.bf16.mxu1 %v10343_v19  ;;  %v4168_v1 = vsel %vm3656_vm14, %v3217_v60, %v3912_v35 }
 0x2f1   : > { %v4639_v45 = vpop.f32.mrb[88].mxu0  ;;  %5626 = vst.msk [vmem:[%s9582_s13 + $0x58] sm:$0xff] %vm5614_vm1, %v5497_v8  ;;  %v4169_v47 = vsel %vm3657_vm15, %v3219_v30, %v3913_v10 }
 0x2f2   : > { %v4640_v23 = vadd.f32 %v4639_v45, %v9565_v44  ;;  %v4641_v33 = vpop.f32.mrb[89].mxu0  ;;  %v3224_v50 = vpop.f32.mrb[200].mxu1  ;;  %v4170_v61 = vsel %vm3658_vm2, %v3221_v11, %v3914_v28  ;;  %v4357_v24 = vpack.c.bf16 %v4169_v47, %v4167_v53 }
 0x2f3   : > { %v4642_v54 = vpop.f32.mrb[90].mxu0  ;;  %v3225_v49 = vadd.f32 %v3224_v50, %v9037_v34  ;;  %v3226_v62 = vpop.f32.mrb[201].mxu1  ;;  %v4358_v5 = vpack.c.bf16 %v4170_v61, %v4168_v1 }
 0x2f4   : > { %vm5114_vm5 = vcmp.ge.f32.partialorder %v4640_v23, 0.0  ;;  %v5242_v18 = vmul.f32 0.01, %v4640_v23  ;;  %v4643_v56 = vadd.f32 %v4642_v54, %v9565_v44  ;;  %v4644_v4 = vpop.f32.mrb[91].mxu0  ;;  %v3227_v36 = vadd.f32 %v3226_v62, %v9039_v59  ;;  %v3228_v42 = vpop.f32.mrb[202].mxu1 }
 0x2f5   : > { %vm3659_vm4 = vcmp.ge.f32.partialorder %v3225_v49, 0.0  ;;  %v3915_v39 = vmul.f32 0.01, %v3225_v49  ;;  %v3229_v32 = vadd.f32 %v3228_v42, %v9037_v34  ;;  %v3230_v7 = vpop.f32.mrb[203].mxu1  ;;  %4853 = vmatprep.mubr.bf16.mxu0 %v4358_v5 }
 0x2f6   : > { %v5370_v51 = vsel %vm5114_vm5, %v4640_v23, %v5242_v18  ;;  %vm5115_vm3 = vcmp.ge.f32.partialorder %v4643_v56, 0.0  ;;  %v5243_v43 = vmul.f32 0.01, %v4643_v56  ;;  %vm3660_vm6 = vcmp.ge.f32.partialorder %v3227_v36, 0.0  ;;  %4854 = vmatmul.mubr.bf16.gmra.mrb[196].mxu0 %v4357_v24 }
 0x2f7   : > { %v5498_v52 = vmul.f32 255.0, %v5370_v51  ;;  %v3916_v31 = vmul.f32 0.01, %v3227_v36  ;;  %v3231_v9 = vadd.f32 %v3230_v7, %v9039_v59  ;;  %vm3661_vm7 = vcmp.ge.f32.partialorder %v3229_v32, 0.0  ;;  %5946 = vmatmul.mubr.msk.bf16.gmra.mrb[52].mxu1 %vm638_vm0, %v10575_v48 }
 0x2f8   : > { %v5371_v57 = vsel %vm5115_vm3, %v4643_v56, %v5243_v43  ;;  %v3917_v20 = vmul.f32 0.01, %v3229_v32  ;;  %3502 = vmatprep.mubr.bf16.mxu1 %v10343_v19  ;;  %v4171_v37 = vsel %vm3659_vm4, %v3225_v49, %v3915_v39 }
 0x2f9   : > { %5627 = vst.msk [vmem:[%s9582_s13 + $0x60] sm:$0xff] %vm5614_vm1, %v5498_v52  ;;  %v5499_v29 = vmul.f32 255.0, %v5371_v57  ;;  %v4647_v6 = vpop.f32.mrb[92].mxu0  ;;  %vm3662_vm8 = vcmp.ge.f32.partialorder %v3231_v9, 0.0  ;;  %v3918_v2 = vmul.f32 0.01, %v3231_v9  ;;  %v4172_v55 = vsel %vm3660_vm6, %v3227_v36, %v3916_v31 }
 0x2fa   : > { %v4648_v22 = vadd.f32 %v4647_v6, %v9565_v44  ;;  %v4649_v0 = vpop.f32.mrb[93].mxu0  ;;  %v4173_v46 = vsel %vm3661_vm7, %v3229_v32, %v3917_v20  ;;  %v3234_v63 = vpop.f32.mrb[204].mxu1 }
 0x2fb   : > { %5628 = vst.msk [vmem:[%s9582_s13 + $0x68] sm:$0xff] %vm5614_vm1, %v5499_v29  ;;  %v4650_v3 = vpop.f32.mrb[94].mxu0  ;;  %v4174_v12 = vsel %vm3662_vm8, %v3231_v9, %v3918_v2  ;;  %v3235_v40 = vadd.f32 %v3234_v63, %v9037_v34  ;;  %v3236_v41 = vpop.f32.mrb[205].mxu1  ;;  %v4359_v26 = vpack.c.bf16 %v4173_v46, %v4171_v37 }
 0x2fc   : > { %vm5116_vm13 = vcmp.ge.f32.partialorder %v4648_v22, 0.0  ;;  %v5244_v15 = vmul.f32 0.01, %v4648_v22  ;;  %v4651_v60 = vadd.f32 %v4650_v3, %v9565_v44  ;;  %v4652_v14 = vpop.f32.mrb[95].mxu0  ;;  %v4360_v30 = vpack.c.bf16 %v4174_v12, %v4172_v55  ;;  %v3238_v8 = vpop.f32.mrb[206].mxu1 }
 0x2fd   : > { %v3237_v38 = vadd.f32 %v3236_v41, %v9039_v59  ;;  %vm3663_vm10 = vcmp.ge.f32.partialorder %v3235_v40, 0.0  ;;  %v3919_v13 = vmul.f32 0.01, %v3235_v40  ;;  %v3239_v45 = vadd.f32 %v3238_v8, %v9037_v34  ;;  %v3240_v28 = vpop.f32.mrb[207].mxu1 }
 0x2fe   : > { %v5372_v35 = vsel %vm5116_vm13, %v4648_v22, %v5244_v15  ;;  %vm5117_vm9 = vcmp.ge.f32.partialorder %v4651_v60, 0.0  ;;  %v5245_v11 = vmul.f32 0.01, %v4651_v60  ;;  %4861 = vmatprep.mubr.bf16.mxu0 %v4360_v30  ;;  %v3241_v54 = vadd.f32 %v3240_v28, %v9039_v59 }
 0x2ff   : > { %v5500_v10 = vmul.f32 255.0, %v5372_v35  ;;  %vm3664_vm11 = vcmp.ge.f32.partialorder %v3237_v38, 0.0  ;;  %v3920_v23 = vmul.f32 0.01, %v3237_v38  ;;  %4862 = vmatmul.mubr.bf16.gmra.mrb[200].mxu0 %v4359_v26  ;;  %vm3665_vm12 = vcmp.ge.f32.partialorder %v3239_v45, 0.0  ;;  %5947 = vmatmul.mubr.msk.bf16.gmra.mrb[56].mxu1 %vm638_vm0, %v2596_v27 }
 0x300   : > { %v5373_v33 = vsel %vm5117_vm9, %v4651_v60, %v5245_v11  ;;  %v3921_v53 = vmul.f32 0.01, %v3239_v45  ;;  %vm3666_vm14 = vcmp.ge.f32.partialorder %v3241_v54, 0.0  ;;  %v3922_v18 = vmul.f32 0.01, %v3241_v54  ;;  %3512 = vmatprep.mubr.bf16.mxu1 %v10343_v19 }
 0x301   : > { %5629 = vst.msk [vmem:[%s9582_s13 + $0x70] sm:$0xff] %vm5614_vm1, %v5500_v10  ;;  %v5501_v1 = vmul.f32 255.0, %v5373_v33  ;;  %v4655_v47 = vpop.f32.mrb[96].mxu0  ;;  %v4176_v61 = vsel %vm3664_vm11, %v3237_v38, %v3920_v23  ;;  %v4175_v49 = vsel %vm3663_vm10, %v3235_v40, %v3919_v13 }
 0x302   : > { %v4656_v50 = vadd.f32 %v4655_v47, %v9565_v44  ;;  %v4657_v56 = vpop.f32.mrb[97].mxu0  ;;  %v4177_v62 = vsel %vm3665_vm12, %v3239_v45, %v3921_v53  ;;  %v3244_v25 = vpop.f32.mrb[208].mxu1  ;;  %v4178_v24 = vsel %vm3666_vm14, %v3241_v54, %v3922_v18 }
 0x303   : > { %5630 = vst.msk [vmem:[%s9582_s13 + $0x78] sm:$0xff] %vm5614_vm1, %v5501_v1  ;;  %v4658_v4 = vpop.f32.mrb[98].mxu0  ;;  %v3245_v51 = vadd.f32 %v3244_v25, %v9037_v34  ;;  %v3246_v36 = vpop.f32.mrb[209].mxu1  ;;  %v4362_v43 = vpack.c.bf16 %v4178_v24, %v4176_v61  ;;  %v4361_v19 = vpack.c.bf16 %v4177_v62, %v4175_v49 }
 0x304   : > { %vm5118_vm15 = vcmp.ge.f32.partialorder %v4656_v50, 0.0  ;;  %v5246_v16 = vmul.f32 0.01, %v4656_v50  ;;  %v4659_v27 = vadd.f32 %v4658_v4, %v9565_v44  ;;  %v4660_v5 = vpop.f32.mrb[99].mxu0  ;;  %v3247_v52 = vadd.f32 %v3246_v36, %v9039_v59  ;;  %v3248_v32 = vpop.f32.mrb[210].mxu1 }
 0x305   : > { %vm3667_vm5 = vcmp.ge.f32.partialorder %v3245_v51, 0.0  ;;  %v3923_v31 = vmul.f32 0.01, %v3245_v51  ;;  %v3249_v57 = vadd.f32 %v3248_v32, %v9037_v34  ;;  %v3250_v9 = vpop.f32.mrb[211].mxu1  ;;  %4869 = vmatprep.mubr.bf16.mxu0 %v4362_v43 }
 0x306   : > { %v5374_v42 = vsel %vm5118_vm15, %v4656_v50, %v5246_v16  ;;  %vm5119_vm2 = vcmp.ge.f32.partialorder %v4659_v27, 0.0  ;;  %v5247_v39 = vmul.f32 0.01, %v4659_v27  ;;  %vm3668_vm3 = vcmp.ge.f32.partialorder %v3247_v52, 0.0 }
 0x307   : > { %v5502_v7 = vmul.f32 255.0, %v5374_v42  ;;  %v3924_v29 = vmul.f32 0.01, %v3247_v52  ;;  %v3251_v48 = vadd.f32 %v3250_v9, %v9039_v59  ;;  %4870 = vmatmul.mubr.bf16.gmra.mrb[204].mxu0 %v4361_v19  ;;  %vm3669_vm4 = vcmp.ge.f32.partialorder %v3249_v57, 0.0  ;;  %5948 = vmatmul.mubr.msk.bf16.gmra.mrb[60].mxu1 %vm638_vm0, %v2597_v58 }
 0x308   : > { %v5375_v20 = vsel %vm5119_vm2, %v4659_v27, %v5247_v39  ;;  %v3925_v2 = vmul.f32 0.01, %v3249_v57  ;;  %v4179_v15 = vsel %vm3667_vm5, %v3245_v51, %v3923_v31 }
 0x309   : > { %5631 = vst.msk [vmem:[%s9582_s13 + $0x80] sm:$0xff] %vm5614_vm1, %v5502_v7  ;;  %v5503_v6 = vmul.f32 255.0, %v5375_v20  ;;  %v4663_v22 = vpop.f32.mrb[100].mxu0  ;;  %vm3670_vm6 = vcmp.ge.f32.partialorder %v3251_v48, 0.0  ;;  %v3926_v0 = vmul.f32 0.01, %v3251_v48  ;;  %v4180_v46 = vsel %vm3668_vm3, %v3247_v52, %v3924_v29 }
 0x30a   : > { %v4664_v3 = vadd.f32 %v4663_v22, %v9565_v44  ;;  %v4665_v55 = vpop.f32.mrb[101].mxu0  ;;  %v4181_v63 = vsel %vm3669_vm4, %v3249_v57, %v3925_v2  ;;  %v3254_v14 = vpop.f32.mrb[212].mxu1 }
 0x30b   : > { %5632 = vst.msk [vmem:[%s9582_s13 + $0x88] sm:$0xff] %vm5614_vm1, %v5503_v6  ;;  %v4666_v37 = vpop.f32.mrb[102].mxu0  ;;  %v4182_v58 = vsel %vm3670_vm6, %v3251_v48, %v3926_v0  ;;  %v3255_v12 = vadd.f32 %v3254_v14, %v9037_v34  ;;  %v3256_v40 = vpop.f32.mrb[213].mxu1  ;;  %v4363_v30 = vpack.c.bf16 %v4181_v63, %v4179_v15 }
 0x30c   : > { %vm5120_vm7 = vcmp.ge.f32.partialorder %v4664_v3, 0.0  ;;  %v5248_v60 = vmul.f32 0.01, %v4664_v3  ;;  %v4667_v17 = vadd.f32 %v4666_v37, %v9565_v44  ;;  %v4668_v21 = vpop.f32.mrb[103].mxu0  ;;  %v4364_v41 = vpack.c.bf16 %v4182_v58, %v4180_v46  ;;  %v3258_v11 = vpop.f32.mrb[214].mxu1 }
 0x30d   : > { %v3257_v35 = vadd.f32 %v3256_v40, %v9039_v59  ;;  %vm3671_vm8 = vcmp.ge.f32.partialorder %v3255_v12, 0.0  ;;  %v3927_v10 = vmul.f32 0.01, %v3255_v12  ;;  %v3259_v13 = vadd.f32 %v3258_v11, %v9037_v34  ;;  %v3260_v45 = vpop.f32.mrb[215].mxu1 }
 0x30e   : > { %v5376_v26 = vsel %vm5120_vm7, %v4664_v3, %v5248_v60  ;;  %vm5121_vm0 = vcmp.ge.f32.partialorder %v4667_v17, 0.0  ;;  %v5249_v38 = vmul.f32 0.01, %v4667_v17  ;;  %4877 = vmatprep.mubr.bf16.mxu0 %v4364_v41  ;;  %v3261_v33 = vadd.f32 %v3260_v45, %v9039_v59 }
 0x30f   : > { %v5504_v8 = vmul.f32 255.0, %v5376_v26  ;;  %vm3672_vm13 = vcmp.ge.f32.partialorder %v3257_v35, 0.0  ;;  %v3928_v28 = vmul.f32 0.01, %v3257_v35  ;;  %4878 = vmatmul.mubr.bf16.gmra.mrb[208].mxu0 %v4363_v30  ;;  %vm3673_vm9 = vcmp.ge.f32.partialorder %v3259_v13, 0.0 }
 0x310   : > { %v5377_v23 = vsel %vm5121_vm0, %v4667_v17, %v5249_v38  ;;  %v3929_v1 = vmul.f32 0.01, %v3259_v13  ;;  %vm3674_vm10 = vcmp.ge.f32.partialorder %v3261_v33, 0.0  ;;  %v3930_v47 = vmul.f32 0.01, %v3261_v33 }
 0x311   : > { %5633 = vst.msk [vmem:[%s9582_s13 + $0x90] sm:$0xff] %vm5614_vm1, %v5504_v8  ;;  %v5505_v54 = vmul.f32 255.0, %v5377_v23  ;;  %v4671_v53 = vpop.f32.mrb[104].mxu0  ;;  %v4184_v4 = vsel %vm3672_vm13, %v3257_v35, %v3928_v28  ;;  %v4183_v61 = vsel %vm3671_vm8, %v3255_v12, %v3927_v10 }
 0x312   : > { %v4672_v18 = vadd.f32 %v4671_v53, %v9565_v44  ;;  %v4673_v50 = vpop.f32.mrb[105].mxu0  ;;  %v4185_v49 = vsel %vm3673_vm9, %v3259_v13, %v3929_v1  ;;  %v3264_v16 = vpop.f32.mrb[216].mxu1  ;;  %v4186_v5 = vsel %vm3674_vm10, %v3261_v33, %v3930_v47 }
 0x313   : > { %5634 = vst.msk [vmem:[%s9582_s13 + $0x98] sm:$0xff] %vm5614_vm1, %v5505_v54  ;;  %v4674_v56 = vpop.f32.mrb[106].mxu0  ;;  %v3265_v24 = vadd.f32 %v3264_v16, %v9037_v34  ;;  %v3266_v51 = vpop.f32.mrb[217].mxu1  ;;  %v4366_v36 = vpack.c.bf16 %v4186_v5, %v4184_v4  ;;  %v4365_v43 = vpack.c.bf16 %v4185_v49, %v4183_v61 }
 0x314   : > { %vm5122_vm11 = vcmp.ge.f32.partialorder %v4672_v18, 0.0  ;;  %v5250_v62 = vmul.f32 0.01, %v4672_v18  ;;  %v4675_v25 = vadd.f32 %v4674_v56, %v9565_v44  ;;  %v4676_v27 = vpop.f32.mrb[107].mxu0  ;;  %v3267_v42 = vadd.f32 %v3266_v51, %v9039_v59  ;;  %v3268_v39 = vpop.f32.mrb[218].mxu1 }
 0x315   : > { %vm3675_vm14 = vcmp.ge.f32.partialorder %v3265_v24, 0.0  ;;  %v3931_v7 = vmul.f32 0.01, %v3265_v24  ;;  %v3269_v31 = vadd.f32 %v3268_v39, %v9037_v34  ;;  %v3270_v57 = vpop.f32.mrb[219].mxu1  ;;  %4885 = vmatprep.mubr.bf16.mxu0 %v4366_v36 }
 0x316   : > { %v5378_v19 = vsel %vm5122_vm11, %v4672_v18, %v5250_v62  ;;  %vm5123_vm12 = vcmp.ge.f32.partialorder %v4675_v25, 0.0  ;;  %v5251_v52 = vmul.f32 0.01, %v4675_v25  ;;  %vm3676_vm15 = vcmp.ge.f32.partialorder %v3267_v42, 0.0 }
 0x317   : > { %v5506_v32 = vmul.f32 255.0, %v5378_v19  ;;  %v3932_v9 = vmul.f32 0.01, %v3267_v42  ;;  %v3271_v20 = vadd.f32 %v3270_v57, %v9039_v59  ;;  %4886 = vmatmul.mubr.bf16.gmra.mrb[212].mxu0 %v4365_v43  ;;  %vm3677_vm2 = vcmp.ge.f32.partialorder %v3269_v31, 0.0 }
 0x318   : > { %v5379_v29 = vsel %vm5123_vm12, %v4675_v25, %v5251_v52  ;;  %v3933_v6 = vmul.f32 0.01, %v3269_v31  ;;  %v4187_v46 = vsel %vm3675_vm14, %v3265_v24, %v3931_v7 }
 0x319   : > { %5635 = vst.msk [vmem:[%s9582_s13 + $0xa0] sm:$0xff] %vm5614_vm1, %v5506_v32  ;;  %v5507_v48 = vmul.f32 255.0, %v5379_v29  ;;  %v4679_v2 = vpop.f32.mrb[108].mxu0  ;;  %vm3678_vm5 = vcmp.ge.f32.partialorder %v3271_v20, 0.0  ;;  %v3934_v22 = vmul.f32 0.01, %v3271_v20  ;;  %v4188_v37 = vsel %vm3676_vm15, %v3267_v42, %v3932_v9 }
 0x31a   : > { %v4680_v0 = vadd.f32 %v4679_v2, %v9565_v44  ;;  %v4681_v3 = vpop.f32.mrb[109].mxu0  ;;  %v4189_v15 = vsel %vm3677_vm2, %v3269_v31, %v3933_v6  ;;  %v3274_v60 = vpop.f32.mrb[220].mxu1 }
 0x31b   : > { %5636 = vst.msk [vmem:[%s9582_s13 + $0xa8] sm:$0xff] %vm5614_vm1, %v5507_v48  ;;  %v4682_v55 = vpop.f32.mrb[110].mxu0  ;;  %v4190_v21 = vsel %vm3678_vm5, %v3271_v20, %v3934_v22  ;;  %v3275_v58 = vadd.f32 %v3274_v60, %v9037_v34  ;;  %v3276_v12 = vpop.f32.mrb[221].mxu1  ;;  %v4367_v41 = vpack.c.bf16 %v4189_v15, %v4187_v46 }
 0x31c   : > { %vm5124_vm3 = vcmp.ge.f32.partialorder %v4680_v0, 0.0  ;;  %v5252_v63 = vmul.f32 0.01, %v4680_v0  ;;  %v4683_v14 = vadd.f32 %v4682_v55, %v9565_v44  ;;  %v4684_v17 = vpop.f32.mrb[111].mxu0  ;;  %v4368_v40 = vpack.c.bf16 %v4190_v21, %v4188_v37  ;;  %v3278_v38 = vpop.f32.mrb[222].mxu1 }
 0x31d   : > { %v3277_v26 = vadd.f32 %v3276_v12, %v9039_v59  ;;  %vm3679_vm6 = vcmp.ge.f32.partialorder %v3275_v58, 0.0  ;;  %v3935_v8 = vmul.f32 0.01, %v3275_v58  ;;  %v3279_v10 = vadd.f32 %v3278_v38, %v9037_v34  ;;  %v3280_v13 = vpop.f32.mrb[223].mxu1 }
 0x31e   : > { %v5380_v30 = vsel %vm5124_vm3, %v4680_v0, %v5252_v63  ;;  %vm5125_vm4 = vcmp.ge.f32.partialorder %v4683_v14, 0.0  ;;  %v5253_v35 = vmul.f32 0.01, %v4683_v14  ;;  %4893 = vmatprep.mubr.bf16.mxu0 %v4368_v40  ;;  %v3281_v23 = vadd.f32 %v3280_v13, %v9039_v59 }
 0x31f   : > { %v5508_v11 = vmul.f32 255.0, %v5380_v30  ;;  %vm3680_vm7 = vcmp.ge.f32.partialorder %v3277_v26, 0.0  ;;  %v3936_v45 = vmul.f32 0.01, %v3277_v26  ;;  %4894 = vmatmul.mubr.bf16.gmra.mrb[216].mxu0 %v4367_v41  ;;  %vm3681_vm0 = vcmp.ge.f32.partialorder %v3279_v10, 0.0 }
 0x320   : > { %v5381_v28 = vsel %vm5125_vm4, %v4683_v14, %v5253_v35  ;;  %v3937_v54 = vmul.f32 0.01, %v3279_v10  ;;  %vm3682_vm8 = vcmp.ge.f32.partialorder %v3281_v23, 0.0  ;;  %v3938_v53 = vmul.f32 0.01, %v3281_v23 }
 0x321   : > { %5637 = vst.msk [vmem:[%s9582_s13 + $0xb0] sm:$0xff] %vm5614_vm1, %v5508_v11  ;;  %v5509_v33 = vmul.f32 255.0, %v5381_v28  ;;  %v4687_v1 = vpop.f32.mrb[112].mxu0  ;;  %v4192_v56 = vsel %vm3680_vm7, %v3277_v26, %v3936_v45  ;;  %v4191_v4 = vsel %vm3679_vm6, %v3275_v58, %v3935_v8 }
 0x322   : > { %v4688_v47 = vadd.f32 %v4687_v1, %v9565_v44  ;;  %v4689_v18 = vpop.f32.mrb[113].mxu0  ;;  %v4193_v61 = vsel %vm3681_vm0, %v3279_v10, %v3937_v54  ;;  %v3284_v62 = vpop.f32.mrb[224].mxu1  ;;  %v4194_v27 = vsel %vm3682_vm8, %v3281_v23, %v3938_v53 }
 0x323   : > { %5638 = vst.msk [vmem:[%s9582_s13 + $0xb8] sm:$0xff] %vm5614_vm1, %v5509_v33  ;;  %v4690_v50 = vpop.f32.mrb[114].mxu0  ;;  %v3285_v5 = vadd.f32 %v3284_v62, %v9037_v34  ;;  %v3286_v24 = vpop.f32.mrb[225].mxu1  ;;  %v4370_v51 = vpack.c.bf16 %v4194_v27, %v4192_v56  ;;  %v4369_v36 = vpack.c.bf16 %v4193_v61, %v4191_v4 }
 0x324   : > { %vm5126_vm13 = vcmp.ge.f32.partialorder %v4688_v47, 0.0  ;;  %v5254_v49 = vmul.f32 0.01, %v4688_v47  ;;  %v4691_v16 = vadd.f32 %v4690_v50, %v9565_v44  ;;  %v4692_v25 = vpop.f32.mrb[115].mxu0  ;;  %v3287_v19 = vadd.f32 %v3286_v24, %v9039_v59  ;;  %v3288_v52 = vpop.f32.mrb[226].mxu1 }
 0x325   : > { %vm3683_vm10 = vcmp.ge.f32.partialorder %v3285_v5, 0.0  ;;  %v3939_v32 = vmul.f32 0.01, %v3285_v5  ;;  %v3289_v7 = vadd.f32 %v3288_v52, %v9037_v34  ;;  %v3290_v31 = vpop.f32.mrb[227].mxu1  ;;  %4901 = vmatprep.mubr.bf16.mxu0 %v4370_v51 }
 0x326   : > { %v5382_v43 = vsel %vm5126_vm13, %v4688_v47, %v5254_v49  ;;  %vm5127_vm9 = vcmp.ge.f32.partialorder %v4691_v16, 0.0  ;;  %v5255_v42 = vmul.f32 0.01, %v4691_v16  ;;  %vm3684_vm11 = vcmp.ge.f32.partialorder %v3287_v19, 0.0 }
 0x327   : > { %v5510_v39 = vmul.f32 255.0, %v5382_v43  ;;  %v3940_v57 = vmul.f32 0.01, %v3287_v19  ;;  %v3291_v29 = vadd.f32 %v3290_v31, %v9039_v59  ;;  %4902 = vmatmul.mubr.bf16.gmra.mrb[220].mxu0 %v4369_v36  ;;  %vm3685_vm12 = vcmp.ge.f32.partialorder %v3289_v7, 0.0 }
 0x328   : > { %v5383_v9 = vsel %vm5127_vm9, %v4691_v16, %v5255_v42  ;;  %v3941_v48 = vmul.f32 0.01, %v3289_v7  ;;  %v4195_v37 = vsel %vm3683_vm10, %v3285_v5, %v3939_v32 }
 0x329   : > { %5639 = vst.msk [vmem:[%s9582_s13 + $0xc0] sm:$0xff] %vm5614_vm1, %v5510_v39  ;;  %v5511_v20 = vmul.f32 255.0, %v5383_v9  ;;  %v4695_v6 = vpop.f32.mrb[116].mxu0  ;;  %vm3686_vm14 = vcmp.ge.f32.partialorder %v3291_v29, 0.0  ;;  %v3942_v2 = vmul.f32 0.01, %v3291_v29  ;;  %v4196_v55 = vsel %vm3684_vm11, %v3287_v19, %v3940_v57 }
 0x32a   : > { %v4696_v22 = vadd.f32 %v4695_v6, %v9565_v44  ;;  %v4697_v0 = vpop.f32.mrb[117].mxu0  ;;  %v4197_v46 = vsel %vm3685_vm12, %v3289_v7, %v3941_v48  ;;  %v3294_v63 = vpop.f32.mrb[228].mxu1 }
 0x32b   : > { %5640 = vst.msk [vmem:[%s9582_s13 + $0xc8] sm:$0xff] %vm5614_vm1, %v5511_v20  ;;  %v4698_v3 = vpop.f32.mrb[118].mxu0  ;;  %v4198_v17 = vsel %vm3686_vm14, %v3291_v29, %v3942_v2  ;;  %v3295_v21 = vadd.f32 %v3294_v63, %v9037_v34  ;;  %v3296_v58 = vpop.f32.mrb[229].mxu1  ;;  %v4371_v40 = vpack.c.bf16 %v4197_v46, %v4195_v37 }
 0x32c   : > { %vm5128_vm15 = vcmp.ge.f32.partialorder %v4696_v22, 0.0  ;;  %v5256_v15 = vmul.f32 0.01, %v4696_v22  ;;  %v4699_v60 = vadd.f32 %v4698_v3, %v9565_v44  ;;  %v4700_v14 = vpop.f32.mrb[119].mxu0  ;;  %v4372_v12 = vpack.c.bf16 %v4198_v17, %v4196_v55  ;;  %v3298_v35 = vpop.f32.mrb[230].mxu1 }
 0x32d   : > { %v3297_v30 = vadd.f32 %v3296_v58, %v9039_v59  ;;  %vm3687_vm5 = vcmp.ge.f32.partialorder %v3295_v21, 0.0  ;;  %v3943_v11 = vmul.f32 0.01, %v3295_v21  ;;  %v3299_v8 = vadd.f32 %v3298_v35, %v9037_v34  ;;  %v3300_v10 = vpop.f32.mrb[231].mxu1 }
 0x32e   : > { %v5384_v41 = vsel %vm5128_vm15, %v4696_v22, %v5256_v15  ;;  %vm5129_vm2 = vcmp.ge.f32.partialorder %v4699_v60, 0.0  ;;  %v5257_v26 = vmul.f32 0.01, %v4699_v60  ;;  %4909 = vmatprep.mubr.bf16.mxu0 %v4372_v12  ;;  %v3301_v28 = vadd.f32 %v3300_v10, %v9039_v59 }
 0x32f   : > { %v5512_v38 = vmul.f32 255.0, %v5384_v41  ;;  %vm3688_vm3 = vcmp.ge.f32.partialorder %v3297_v30, 0.0  ;;  %v3944_v13 = vmul.f32 0.01, %v3297_v30  ;;  %4910 = vmatmul.mubr.bf16.gmra.mrb[224].mxu0 %v4371_v40  ;;  %vm3689_vm4 = vcmp.ge.f32.partialorder %v3299_v8, 0.0 }
 0x330   : > { %v5385_v45 = vsel %vm5129_vm2, %v4699_v60, %v5257_v26  ;;  %v3945_v33 = vmul.f32 0.01, %v3299_v8  ;;  %vm3690_vm6 = vcmp.ge.f32.partialorder %v3301_v28, 0.0  ;;  %v3946_v1 = vmul.f32 0.01, %v3301_v28 }
 0x331   : > { %5641 = vst.msk [vmem:[%s9582_s13 + $0xd0] sm:$0xff] %vm5614_vm1, %v5512_v38  ;;  %v5513_v23 = vmul.f32 255.0, %v5385_v45  ;;  %v4703_v54 = vpop.f32.mrb[120].mxu0  ;;  %v4200_v50 = vsel %vm3688_vm3, %v3297_v30, %v3944_v13  ;;  %v4199_v56 = vsel %vm3687_vm5, %v3295_v21, %v3943_v11 }
 0x332   : > { %v4704_v53 = vadd.f32 %v4703_v54, %v9565_v44  ;;  %v4705_v47 = vpop.f32.mrb[121].mxu0  ;;  %v4201_v4 = vsel %vm3689_vm4, %v3299_v8, %v3945_v33  ;;  %v3304_v49 = vpop.f32.mrb[232].mxu1  ;;  %v4202_v25 = vsel %vm3690_vm6, %v3301_v28, %v3946_v1 }
 0x333   : > { %5642 = vst.msk [vmem:[%s9582_s13 + $0xd8] sm:$0xff] %vm5614_vm1, %v5513_v23  ;;  %v4706_v18 = vpop.f32.mrb[122].mxu0  ;;  %v3305_v27 = vadd.f32 %v3304_v49, %v9037_v34  ;;  %v3306_v5 = vpop.f32.mrb[233].mxu1  ;;  %v4374_v24 = vpack.c.bf16 %v4202_v25, %v4200_v50  ;;  %v4373_v51 = vpack.c.bf16 %v4201_v4, %v4199_v56 }
 0x334   : > { %vm5130_vm7 = vcmp.ge.f32.partialorder %v4704_v53, 0.0  ;;  %v5258_v61 = vmul.f32 0.01, %v4704_v53  ;;  %v4707_v62 = vadd.f32 %v4706_v18, %v9565_v44  ;;  %v4708_v16 = vpop.f32.mrb[123].mxu0  ;;  %v3307_v43 = vadd.f32 %v3306_v5, %v9039_v59  ;;  %v3308_v42 = vpop.f32.mrb[234].mxu1 }
 0x335   : > { %vm3691_vm8 = vcmp.ge.f32.partialorder %v3305_v27, 0.0  ;;  %v3947_v39 = vmul.f32 0.01, %v3305_v27  ;;  %v3309_v32 = vadd.f32 %v3308_v42, %v9037_v34  ;;  %v3310_v7 = vpop.f32.mrb[235].mxu1  ;;  %4917 = vmatprep.mubr.bf16.mxu0 %v4374_v24 }
 0x336   : > { %v5386_v36 = vsel %vm5130_vm7, %v4704_v53, %v5258_v61  ;;  %vm5131_vm0 = vcmp.ge.f32.partialorder %v4707_v62, 0.0  ;;  %v5259_v19 = vmul.f32 0.01, %v4707_v62  ;;  %vm3692_vm13 = vcmp.ge.f32.partialorder %v3307_v43, 0.0 }
 0x337   : > { %v5514_v52 = vmul.f32 255.0, %v5386_v36  ;;  %v3948_v31 = vmul.f32 0.01, %v3307_v43  ;;  %v3311_v9 = vadd.f32 %v3310_v7, %v9039_v59  ;;  %4918 = vmatmul.mubr.bf16.gmra.mrb[228].mxu0 %v4373_v51  ;;  %vm3693_vm9 = vcmp.ge.f32.partialorder %v3309_v32, 0.0 }
 0x338   : > { %v5387_v57 = vsel %vm5131_vm0, %v4707_v62, %v5259_v19  ;;  %v3949_v20 = vmul.f32 0.01, %v3309_v32  ;;  %v4203_v55 = vsel %vm3691_vm8, %v3305_v27, %v3947_v39 }
 0x339   : > { %5643 = vst.msk [vmem:[%s9582_s13 + $0xe0] sm:$0xff] %vm5614_vm1, %v5514_v52  ;;  %v5515_v29 = vmul.f32 255.0, %v5387_v57  ;;  %v4711_v48 = vpop.f32.mrb[124].mxu0  ;;  %vm3694_vm10 = vcmp.ge.f32.partialorder %v3311_v9, 0.0  ;;  %v3950_v6 = vmul.f32 0.01, %v3311_v9  ;;  %v4204_v3 = vsel %vm3692_vm13, %v3307_v43, %v3948_v31 }
 0x33a   : > { %v4712_v2 = vadd.f32 %v4711_v48, %v9565_v44  ;;  %v4713_v22 = vpop.f32.mrb[125].mxu0  ;;  %v4205_v37 = vsel %vm3693_vm9, %v3309_v32, %v3949_v20  ;;  %v3314_v15 = vpop.f32.mrb[236].mxu1 }
 0x33b   : > { %5644 = vst.msk [vmem:[%s9582_s13 + $0xe8] sm:$0xff] %vm5614_vm1, %v5515_v29  ;;  %v4714_v0 = vpop.f32.mrb[126].mxu0  ;;  %v4206_v14 = vsel %vm3694_vm10, %v3311_v9, %v3950_v6  ;;  %v3315_v17 = vadd.f32 %v3314_v15, %v9037_v34  ;;  %v3316_v21 = vpop.f32.mrb[237].mxu1  ;;  %v4375_v12 = vpack.c.bf16 %v4205_v37, %v4203_v55 }
 0x33c   : > { %vm5132_vm11 = vcmp.ge.f32.partialorder %v4712_v2, 0.0  ;;  %v5260_v46 = vmul.f32 0.01, %v4712_v2  ;;  %v4715_v63 = vadd.f32 %v4714_v0, %v9565_v44  ;;  %v4716_v60 = vpop.f32.mrb[127].mxu0  ;;  %v4376_v58 = vpack.c.bf16 %v4206_v14, %v4204_v3  ;;  %v3318_v26 = vpop.f32.mrb[238].mxu1 }
 0x33d   : > { %v3317_v41 = vadd.f32 %v3316_v21, %v9039_v59  ;;  %vm3695_vm14 = vcmp.ge.f32.partialorder %v3315_v17, 0.0  ;;  %v3951_v38 = vmul.f32 0.01, %v3315_v17  ;;  %v3319_v11 = vadd.f32 %v3318_v26, %v9037_v34  ;;  %v3320_v8 = vpop.f32.mrb[239].mxu1 }
 0x33e   : > { %v5388_v40 = vsel %vm5132_vm11, %v4712_v2, %v5260_v46  ;;  %vm5133_vm12 = vcmp.ge.f32.partialorder %v4715_v63, 0.0  ;;  %v5261_v30 = vmul.f32 0.01, %v4715_v63  ;;  %4925 = vmatprep.mubr.bf16.mxu0 %v4376_v58  ;;  %v3321_v45 = vadd.f32 %v3320_v8, %v9039_v59 }
 0x33f   : > { %v5516_v35 = vmul.f32 255.0, %v5388_v40  ;;  %vm3696_vm15 = vcmp.ge.f32.partialorder %v3317_v41, 0.0  ;;  %v3952_v10 = vmul.f32 0.01, %v3317_v41  ;;  %4926 = vmatmul.mubr.bf16.gmra.mrb[232].mxu0 %v4375_v12  ;;  %vm3697_vm2 = vcmp.ge.f32.partialorder %v3319_v11, 0.0 }
 0x340   : > { %v5389_v13 = vsel %vm5133_vm12, %v4715_v63, %v5261_v30  ;;  %v3953_v23 = vmul.f32 0.01, %v3319_v11  ;;  %vm3698_vm5 = vcmp.ge.f32.partialorder %v3321_v45, 0.0  ;;  %v3954_v54 = vmul.f32 0.01, %v3321_v45 }
 0x341   : > { %5645 = vst.msk [vmem:[%s9582_s13 + $0xf0] sm:$0xff] %vm5614_vm1, %v5516_v35  ;;  %v5517_v28 = vmul.f32 255.0, %v5389_v13  ;;  %v4719_v33 = vpop.f32.mrb[128].mxu0  ;;  %v4208_v18 = vsel %vm3696_vm15, %v3317_v41, %v3952_v10  ;;  %v4207_v50 = vsel %vm3695_vm14, %v3315_v17, %v3951_v38 }
 0x342   : > { %v4720_v1 = vadd.f32 %v4719_v33, %v9565_v44  ;;  %v4721_v53 = vpop.f32.mrb[129].mxu0  ;;  %v4209_v56 = vsel %vm3697_vm2, %v3319_v11, %v3953_v23  ;;  %v3324_v61 = vpop.f32.mrb[240].mxu1  ;;  %v4210_v16 = vsel %vm3698_vm5, %v3321_v45, %v3954_v54 }
 0x343   : > { %5646 = vst.msk [vmem:[%s9582_s13 + $0xf8] sm:$0xff] %vm5614_vm1, %v5517_v28  ;;  %v4722_v47 = vpop.f32.mrb[130].mxu0  ;;  %v3325_v25 = vadd.f32 %v3324_v61, %v9037_v34  ;;  %v3326_v27 = vpop.f32.mrb[241].mxu1  ;;  %v4378_v5 = vpack.c.bf16 %v4210_v16, %v4208_v18  ;;  %v4377_v24 = vpack.c.bf16 %v4209_v56, %v4207_v50 }
 0x344   : > { %vm5134_vm3 = vcmp.ge.f32.partialorder %v4720_v1, 0.0  ;;  %v5262_v4 = vmul.f32 0.01, %v4720_v1  ;;  %v4723_v49 = vadd.f32 %v4722_v47, %v9565_v44  ;;  %v4724_v62 = vpop.f32.mrb[131].mxu0  ;;  %v3327_v36 = vadd.f32 %v3326_v27, %v9039_v59  ;;  %v3328_v19 = vpop.f32.mrb[242].mxu1 }
 0x345   : > { %vm3699_vm6 = vcmp.ge.f32.partialorder %v3325_v25, 0.0  ;;  %v3955_v52 = vmul.f32 0.01, %v3325_v25  ;;  %v3329_v39 = vadd.f32 %v3328_v19, %v9037_v34  ;;  %v3330_v32 = vpop.f32.mrb[243].mxu1  ;;  %4933 = vmatprep.mubr.bf16.mxu0 %v4378_v5 }
 0x346   : > { %v5390_v51 = vsel %vm5134_vm3, %v4720_v1, %v5262_v4  ;;  %vm5135_vm4 = vcmp.ge.f32.partialorder %v4723_v49, 0.0  ;;  %v5263_v43 = vmul.f32 0.01, %v4723_v49  ;;  %vm3700_vm7 = vcmp.ge.f32.partialorder %v3327_v36, 0.0 }
 0x347   : > { %v5518_v42 = vmul.f32 255.0, %v5390_v51  ;;  %v3956_v7 = vmul.f32 0.01, %v3327_v36  ;;  %v3331_v57 = vadd.f32 %v3330_v32, %v9039_v59  ;;  %4934 = vmatmul.mubr.bf16.gmra.mrb[236].mxu0 %v4377_v24  ;;  %vm3701_vm0 = vcmp.ge.f32.partialorder %v3329_v39, 0.0 }
 0x348   : > { %v5391_v31 = vsel %vm5135_vm4, %v4723_v49, %v5263_v43  ;;  %v3957_v29 = vmul.f32 0.01, %v3329_v39  ;;  %v4211_v3 = vsel %vm3699_vm6, %v3325_v25, %v3955_v52 }
 0x349   : > { %5647 = vst.msk [vmem:[%s9582_s13 + $0x100] sm:$0xff] %vm5614_vm1, %v5518_v42  ;;  %v5519_v9 = vmul.f32 255.0, %v5391_v31  ;;  %v4727_v20 = vpop.f32.mrb[132].mxu0  ;;  %vm3702_vm8 = vcmp.ge.f32.partialorder %v3331_v57, 0.0  ;;  %v3958_v48 = vmul.f32 0.01, %v3331_v57  ;;  %v4212_v0 = vsel %vm3700_vm7, %v3327_v36, %v3956_v7 }
 0x34a   : > { %v4728_v6 = vadd.f32 %v4727_v20, %v9565_v44  ;;  %v4729_v2 = vpop.f32.mrb[133].mxu0  ;;  %v4213_v55 = vsel %vm3701_vm0, %v3329_v39, %v3957_v29  ;;  %v3334_v46 = vpop.f32.mrb[244].mxu1 }
 0x34b   : > { %5648 = vst.msk [vmem:[%s9582_s13 + $0x108] sm:$0xff] %vm5614_vm1, %v5519_v9  ;;  %v4730_v22 = vpop.f32.mrb[134].mxu0  ;;  %v4214_v60 = vsel %vm3702_vm8, %v3331_v57, %v3958_v48  ;;  %v3335_v14 = vadd.f32 %v3334_v46, %v9037_v34  ;;  %v3336_v17 = vpop.f32.mrb[245].mxu1  ;;  %v4379_v58 = vpack.c.bf16 %v4213_v55, %v4211_v3 }
 0x34c   : > { %vm5136_vm13 = vcmp.ge.f32.partialorder %v4728_v6, 0.0  ;;  %v5264_v37 = vmul.f32 0.01, %v4728_v6  ;;  %v4731_v15 = vadd.f32 %v4730_v22, %v9565_v44  ;;  %v4732_v63 = vpop.f32.mrb[135].mxu0  ;;  %v4380_v21 = vpack.c.bf16 %v4214_v60, %v4212_v0  ;;  %v3338_v30 = vpop.f32.mrb[246].mxu1 }
 0x34d   : > { %v3337_v40 = vadd.f32 %v3336_v17, %v9039_v59  ;;  %vm3703_vm10 = vcmp.ge.f32.partialorder %v3335_v14, 0.0  ;;  %v3959_v35 = vmul.f32 0.01, %v3335_v14  ;;  %v3339_v38 = vadd.f32 %v3338_v30, %v9037_v34  ;;  %v3340_v11 = vpop.f32.mrb[247].mxu1 }
 0x34e   : > { %v5392_v12 = vsel %vm5136_vm13, %v4728_v6, %v5264_v37  ;;  %vm5137_vm9 = vcmp.ge.f32.partialorder %v4731_v15, 0.0  ;;  %v5265_v41 = vmul.f32 0.01, %v4731_v15  ;;  %4941 = vmatprep.mubr.bf16.mxu0 %v4380_v21  ;;  %v3341_v13 = vadd.f32 %v3340_v11, %v9039_v59 }
 0x34f   : > { %v5520_v26 = vmul.f32 255.0, %v5392_v12  ;;  %vm3704_vm11 = vcmp.ge.f32.partialorder %v3337_v40, 0.0  ;;  %v3960_v8 = vmul.f32 0.01, %v3337_v40  ;;  %4942 = vmatmul.mubr.bf16.gmra.mrb[240].mxu0 %v4379_v58  ;;  %vm3705_vm12 = vcmp.ge.f32.partialorder %v3339_v38, 0.0 }
 0x350   : > { %v5393_v10 = vsel %vm5137_vm9, %v4731_v15, %v5265_v41  ;;  %v3961_v28 = vmul.f32 0.01, %v3339_v38  ;;  %vm3706_vm14 = vcmp.ge.f32.partialorder %v3341_v13, 0.0  ;;  %v3962_v33 = vmul.f32 0.01, %v3341_v13 }
 0x351   : > { %5649 = vst.msk [vmem:[%s9582_s13 + $0x110] sm:$0xff] %vm5614_vm1, %v5520_v26  ;;  %v5521_v45 = vmul.f32 255.0, %v5393_v10  ;;  %v4735_v23 = vpop.f32.mrb[136].mxu0  ;;  %v4216_v47 = vsel %vm3704_vm11, %v3337_v40, %v3960_v8  ;;  %v4215_v18 = vsel %vm3703_vm10, %v3335_v14, %v3959_v35 }
 0x352   : > { %v4736_v54 = vadd.f32 %v4735_v23, %v9565_v44  ;;  %v4737_v1 = vpop.f32.mrb[137].mxu0  ;;  %v4217_v50 = vsel %vm3705_vm12, %v3339_v38, %v3961_v28  ;;  %v3344_v4 = vpop.f32.mrb[248].mxu1  ;;  %v4218_v62 = vsel %vm3706_vm14, %v3341_v13, %v3962_v33 }
 0x353   : > { %5650 = vst.msk [vmem:[%s9582_s13 + $0x118] sm:$0xff] %vm5614_vm1, %v5521_v45  ;;  %v4738_v53 = vpop.f32.mrb[138].mxu0  ;;  %v3345_v16 = vadd.f32 %v3344_v4, %v9037_v34  ;;  %v3346_v25 = vpop.f32.mrb[249].mxu1  ;;  %v4382_v27 = vpack.c.bf16 %v4218_v62, %v4216_v47  ;;  %v4381_v5 = vpack.c.bf16 %v4217_v50, %v4215_v18 }
 0x354   : > { %vm5138_vm15 = vcmp.ge.f32.partialorder %v4736_v54, 0.0  ;;  %v5266_v56 = vmul.f32 0.01, %v4736_v54  ;;  %v4739_v61 = vadd.f32 %v4738_v53, %v9565_v44  ;;  %v4740_v49 = vpop.f32.mrb[139].mxu0  ;;  %v3347_v51 = vadd.f32 %v3346_v25, %v9039_v59  ;;  %v3348_v43 = vpop.f32.mrb[250].mxu1 }
 0x355   : > { %vm3707_vm5 = vcmp.ge.f32.partialorder %v3345_v16, 0.0  ;;  %v3963_v42 = vmul.f32 0.01, %v3345_v16  ;;  %v3349_v52 = vadd.f32 %v3348_v43, %v9037_v34  ;;  %v3350_v39 = vpop.f32.mrb[251].mxu1  ;;  %4949 = vmatprep.mubr.bf16.mxu0 %v4382_v27 }
 0x356   : > { %v5394_v24 = vsel %vm5138_vm15, %v4736_v54, %v5266_v56  ;;  %vm5139_vm2 = vcmp.ge.f32.partialorder %v4739_v61, 0.0  ;;  %v5267_v36 = vmul.f32 0.01, %v4739_v61  ;;  %vm3708_vm3 = vcmp.ge.f32.partialorder %v3347_v51, 0.0 }
 0x357   : > { %v5522_v19 = vmul.f32 255.0, %v5394_v24  ;;  %v3964_v32 = vmul.f32 0.01, %v3347_v51  ;;  %v3351_v31 = vadd.f32 %v3350_v39, %v9039_v59  ;;  %4950 = vmatmul.mubr.bf16.gmra.mrb[244].mxu0 %v4381_v5  ;;  %vm3709_vm4 = vcmp.ge.f32.partialorder %v3349_v52, 0.0 }
 0x358   : > { %v5395_v7 = vsel %vm5139_vm2, %v4739_v61, %v5267_v36  ;;  %v3965_v9 = vmul.f32 0.01, %v3349_v52  ;;  %v4219_v0 = vsel %vm3707_vm5, %v3345_v16, %v3963_v42 }
 0x359   : > { %5651 = vst.msk [vmem:[%s9582_s13 + $0x120] sm:$0xff] %vm5614_vm1, %v5522_v19  ;;  %v5523_v57 = vmul.f32 255.0, %v5395_v7  ;;  %v4743_v29 = vpop.f32.mrb[140].mxu0  ;;  %vm3710_vm6 = vcmp.ge.f32.partialorder %v3351_v31, 0.0  ;;  %v3966_v20 = vmul.f32 0.01, %v3351_v31  ;;  %v4220_v22 = vsel %vm3708_vm3, %v3347_v51, %v3964_v32 }
 0x35a   : > { %v4744_v48 = vadd.f32 %v4743_v29, %v9565_v44  ;;  %v4745_v6 = vpop.f32.mrb[141].mxu0  ;;  %v4221_v3 = vsel %vm3709_vm4, %v3349_v52, %v3965_v9  ;;  %v3354_v37 = vpop.f32.mrb[252].mxu1 }
 0x35b   : > { %5652 = vst.msk [vmem:[%s9582_s13 + $0x128] sm:$0xff] %vm5614_vm1, %v5523_v57  ;;  %v4746_v2 = vpop.f32.mrb[142].mxu0  ;;  %v4222_v63 = vsel %vm3710_vm6, %v3351_v31, %v3966_v20  ;;  %v3355_v60 = vadd.f32 %v3354_v37, %v9037_v34  ;;  %v3356_v14 = vpop.f32.mrb[253].mxu1  ;;  %v4383_v21 = vpack.c.bf16 %v4221_v3, %v4219_v0 }
 0x35c   : > { %vm5140_vm7 = vcmp.ge.f32.partialorder %v4744_v48, 0.0  ;;  %v5268_v55 = vmul.f32 0.01, %v4744_v48  ;;  %v4747_v46 = vadd.f32 %v4746_v2, %v9565_v44  ;;  %v4748_v15 = vpop.f32.mrb[143].mxu0  ;;  %v4384_v17 = vpack.c.bf16 %v4222_v63, %v4220_v22  ;;  %v3358_v41 = vpop.f32.mrb[254].mxu1 }
 0x35d   : > { %v3357_v12 = vadd.f32 %v3356_v14, %v9039_v59  ;;  %vm3711_vm8 = vcmp.ge.f32.partialorder %v3355_v60, 0.0  ;;  %v3967_v26 = vmul.f32 0.01, %v3355_v60  ;;  %v3359_v35 = vadd.f32 %v3358_v41, %v9037_v34  ;;  %v3360_v38 = vpop.f32.mrb[255].mxu1 }
 0x35e   : > { %v5396_v58 = vsel %vm5140_vm7, %v4744_v48, %v5268_v55  ;;  %vm5141_vm0 = vcmp.ge.f32.partialorder %v4747_v46, 0.0  ;;  %v5269_v40 = vmul.f32 0.01, %v4747_v46  ;;  %4957 = vmatprep.mubr.bf16.mxu0 %v4384_v17  ;;  %v3361_v10 = vadd.f32 %v3360_v38, %v9039_v59 }
 0x35f   : > { %v5524_v30 = vmul.f32 255.0, %v5396_v58  ;;  %vm3712_vm13 = vcmp.ge.f32.partialorder %v3357_v12, 0.0  ;;  %v3968_v11 = vmul.f32 0.01, %v3357_v12  ;;  %4958 = vmatmul.mubr.bf16.gmra.mrb[248].mxu0 %v4383_v21  ;;  %vm3713_vm9 = vcmp.ge.f32.partialorder %v3359_v35, 0.0 }
 0x360   : > { %v5397_v8 = vsel %vm5141_vm0, %v4747_v46, %v5269_v40  ;;  %v3969_v45 = vmul.f32 0.01, %v3359_v35  ;;  %vm3714_vm10 = vcmp.ge.f32.partialorder %v3361_v10, 0.0  ;;  %v3970_v23 = vmul.f32 0.01, %v3361_v10 }
 0x361   : > { %5653 = vst.msk [vmem:[%s9582_s13 + $0x130] sm:$0xff] %vm5614_vm1, %v5524_v30  ;;  %v5525_v13 = vmul.f32 255.0, %v5397_v8  ;;  %v4751_v28 = vpop.f32.mrb[144].mxu0  ;;  %v4224_v53 = vsel %vm3712_vm13, %v3357_v12, %v3968_v11  ;;  %v4223_v47 = vsel %vm3711_vm8, %v3355_v60, %v3967_v26 }
 0x362   : > { %v4752_v33 = vadd.f32 %v4751_v28, %v9565_v44  ;;  %v4753_v54 = vpop.f32.mrb[145].mxu0  ;;  %v4225_v18 = vsel %vm3713_vm9, %v3359_v35, %v3969_v45  ;;  %v3364_v56 = vpop.f32.mrb[0].mxu1  ;;  %v4226_v49 = vsel %vm3714_vm10, %v3361_v10, %v3970_v23 }
 0x363   : > { %5654 = vst.msk [vmem:[%s9582_s13 + $0x138] sm:$0xff] %vm5614_vm1, %v5525_v13  ;;  %v4754_v1 = vpop.f32.mrb[146].mxu0  ;;  %v3365_v62 = vadd.f32 %v3364_v56, %v9037_v34  ;;  %v3366_v16 = vpop.f32.mrb[1].mxu1  ;;  %v4386_v25 = vpack.c.bf16 %v4226_v49, %v4224_v53  ;;  %v4385_v27 = vpack.c.bf16 %v4225_v18, %v4223_v47 }
 0x364   : > { %vm5142_vm11 = vcmp.ge.f32.partialorder %v4752_v33, 0.0  ;;  %v5270_v50 = vmul.f32 0.01, %v4752_v33  ;;  %v4755_v4 = vadd.f32 %v4754_v1, %v9565_v44  ;;  %v4756_v61 = vpop.f32.mrb[147].mxu0  ;;  %v3367_v24 = vadd.f32 %v3366_v16, %v9039_v59  ;;  %v3368_v36 = vpop.f32.mrb[2].mxu1 }
 0x365   : > { %v3971_v19 = vmul.f32 0.01, %v3365_v62  ;;  %v3369_v42 = vadd.f32 %v3368_v36, %v9037_v34  ;;  %v3370_v52 = vpop.f32.mrb[3].mxu1  ;;  %4965 = vmatprep.mubr.bf16.mxu0 %v4386_v25  ;;  %vm3715_vm14 = vcmp.ge.f32.partialorder %v3365_v62, 0.0 }
 0x366   : > { %v5398_v5 = vsel %vm5142_vm11, %v4752_v33, %v5270_v50  ;;  %vm5143_vm12 = vcmp.ge.f32.partialorder %v4755_v4, 0.0  ;;  %v5271_v51 = vmul.f32 0.01, %v4755_v4  ;;  %v3371_v32 = vadd.f32 %v3370_v52, %v9039_v59 }
 0x367   : > { %v5526_v43 = vmul.f32 255.0, %v5398_v5  ;;  %4966 = vmatmul.mubr.bf16.gmra.mrb[252].mxu0 %v4385_v27  ;;  %vm3717_vm15 = vcmp.ge.f32.partialorder %v3369_v42, 0.0  ;;  %v3973_v31 = vmul.f32 0.01, %v3369_v42  ;;  %v3972_v9 = vmul.f32 0.01, %v3367_v24 }
 0x368   : > { %v5399_v39 = vsel %vm5143_vm12, %v4755_v4, %v5271_v51  ;;  %v4227_v48 = vsel %vm3715_vm14, %v3365_v62, %v3971_v19  ;;  %vm3718_vm2 = vcmp.ge.f32.partialorder %v3371_v32, 0.0  ;;  %v3974_v2 = vmul.f32 0.01, %v3371_v32 }
 0x369   : > { %5655 = vst.msk [vmem:[%s9582_s13 + $0x140] sm:$0xff] %vm5614_vm1, %v5526_v43  ;;  %v5527_v7 = vmul.f32 255.0, %v5399_v39  ;;  %v4759_v57 = vpop.f32.mrb[148].mxu0  ;;  %v4229_v6 = vsel %vm3717_vm15, %v3369_v42, %v3973_v31  ;;  %vm3716_vm3 = vcmp.ge.f32.partialorder %v3367_v24, 0.0 }
 0x36a   : > { %v4760_v29 = vadd.f32 %v4759_v57, %v9565_v44  ;;  %v4761_v20 = vpop.f32.mrb[149].mxu0  ;;  %v4387_v0 = vpack.c.bf16 %v4229_v6, %v4227_v48  ;;  %v3374_v55 = vpop.f32.mrb[4].mxu1  ;;  %v4230_v41 = vsel %vm3718_vm2, %v3371_v32, %v3974_v2  ;;  %v4228_v35 = vsel %vm3716_vm3, %v3367_v24, %v3972_v9 }
 0x36b   : > { %5656 = vst.msk [vmem:[%s9582_s13 + $0x148] sm:$0xff] %vm5614_vm1, %v5527_v7  ;;  %v4762_v22 = vpop.f32.mrb[150].mxu0  ;;  %v3375_v15 = vadd.f32 %v3374_v55, %v9037_v34  ;;  %v3376_v63 = vpop.f32.mrb[5].mxu1  ;;  %v4388_v13 = vpack.c.bf16 %v4230_v41, %v4228_v35 }
 0x36c   : > { %vm5144_vm5 = vcmp.ge.f32.partialorder %v4760_v29, 0.0  ;;  %v5272_v3 = vmul.f32 0.01, %v4760_v29  ;;  %v4763_v37 = vadd.f32 %v4762_v22, %v9565_v44  ;;  %v4764_v46 = vpop.f32.mrb[151].mxu0  ;;  %v3378_v17 = vpop.f32.mrb[6].mxu1  ;;  %v3377_v38 = vadd.f32 %v3376_v63, %v9039_v59 }
 0x36d   : > { %v3975_v58 = vmul.f32 0.01, %v3375_v15  ;;  %v3379_v12 = vadd.f32 %v3378_v17, %v9037_v34  ;;  %v3380_v40 = vpop.f32.mrb[7].mxu1  ;;  %vm3719_vm6 = vcmp.ge.f32.partialorder %v3375_v15, 0.0  ;;  %4973 = vmatprep.mubr.bf16.mxu0 %v4388_v13 }
 0x36e   : > { %v5400_v60 = vsel %vm5144_vm5, %v4760_v29, %v5272_v3  ;;  %vm5145_vm4 = vcmp.ge.f32.partialorder %v4763_v37, 0.0  ;;  %v5273_v14 = vmul.f32 0.01, %v4763_v37  ;;  %v3381_v26 = vadd.f32 %v3380_v40, %v9039_v59 }
 0x36f   : > { %v5528_v21 = vmul.f32 255.0, %v5400_v60  ;;  %vm3721_vm7 = vcmp.ge.f32.partialorder %v3379_v12, 0.0  ;;  %v3977_v8 = vmul.f32 0.01, %v3379_v12  ;;  %v4231_v23 = vsel %vm3719_vm6, %v3375_v15, %v3975_v58  ;;  %4974 = vmatmul.mubr.bf16.gmra.mrb[0].mxu0 %v4387_v0 }
 0x370   : > { %v5401_v30 = vsel %vm5145_vm4, %v4763_v37, %v5273_v14  ;;  %vm3722_vm0 = vcmp.ge.f32.partialorder %v3381_v26, 0.0  ;;  %v3978_v54 = vmul.f32 0.01, %v3381_v26  ;;  %vm3720_vm13 = vcmp.ge.f32.partialorder %v3377_v38, 0.0 }
 0x371   : > { %5657 = vst.msk [vmem:[%s9582_s13 + $0x150] sm:$0xff] %vm5614_vm1, %v5528_v21  ;;  %v5529_v11 = vmul.f32 255.0, %v5401_v30  ;;  %v4767_v10 = vpop.f32.mrb[152].mxu0  ;;  %v4233_v33 = vsel %vm3721_vm7, %v3379_v12, %v3977_v8  ;;  %v3976_v4 = vmul.f32 0.01, %v3377_v38 }
 0x372   : > { %v4768_v45 = vadd.f32 %v4767_v10, %v9565_v44  ;;  %v4769_v28 = vpop.f32.mrb[153].mxu0  ;;  %v4389_v53 = vpack.c.bf16 %v4233_v33, %v4231_v23  ;;  %v3384_v18 = vpop.f32.mrb[8].mxu1  ;;  %v4234_v43 = vsel %vm3722_vm0, %v3381_v26, %v3978_v54 }
 0x373   : > { %5658 = vst.msk [vmem:[%s9582_s13 + $0x158] sm:$0xff] %vm5614_vm1, %v5529_v11  ;;  %v4770_v1 = vpop.f32.mrb[154].mxu0  ;;  %v3385_v61 = vadd.f32 %v3384_v18, %v9037_v34  ;;  %v3386_v49 = vpop.f32.mrb[9].mxu1  ;;  %v4232_v7 = vsel %vm3720_vm13, %v3377_v38, %v3976_v4 }
 0x374   : > { %vm5146_vm8 = vcmp.ge.f32.partialorder %v4768_v45, 0.0  ;;  %v5274_v47 = vmul.f32 0.01, %v4768_v45  ;;  %v4771_v50 = vadd.f32 %v4770_v1, %v9565_v44  ;;  %v4772_v56 = vpop.f32.mrb[155].mxu0  ;;  %v3387_v16 = vadd.f32 %v3386_v49, %v9039_v59  ;;  %v3388_v27 = vpop.f32.mrb[10].mxu1 }
 0x375   : > { %v3979_v24 = vmul.f32 0.01, %v3385_v61  ;;  %v3389_v51 = vadd.f32 %v3388_v27, %v9037_v34  ;;  %v3390_v36 = vpop.f32.mrb[11].mxu1  ;;  %vm3723_vm10 = vcmp.ge.f32.partialorder %v3385_v61, 0.0  ;;  %v4390_v57 = vpack.c.bf16 %v4234_v43, %v4232_v7 }
 0x376   : > { %v5402_v62 = vsel %vm5146_vm8, %v4768_v45, %v5274_v47  ;;  %vm5147_vm9 = vcmp.ge.f32.partialorder %v4771_v50, 0.0  ;;  %v5275_v25 = vmul.f32 0.01, %v4771_v50  ;;  %v3980_v19 = vmul.f32 0.01, %v3387_v16 }
 0x377   : > { %v5530_v5 = vmul.f32 255.0, %v5402_v62  ;;  %v3391_v52 = vadd.f32 %v3390_v36, %v9039_v59  ;;  %vm3725_vm11 = vcmp.ge.f32.partialorder %v3389_v51, 0.0  ;;  %v3981_v32 = vmul.f32 0.01, %v3389_v51  ;;  %4981 = vmatprep.mubr.bf16.mxu0 %v4390_v57 }
 0x378   : > { %v5403_v42 = vsel %vm5147_vm9, %v4771_v50, %v5275_v25  ;;  %vm3724_vm12 = vcmp.ge.f32.partialorder %v3387_v16, 0.0  ;;  %v4235_v20 = vsel %vm3723_vm10, %v3385_v61, %v3979_v24  ;;  %4982 = vmatmul.mubr.bf16.gmra.mrb[4].mxu0 %v4389_v53 }
 0x379   : > { %5659 = vst.msk [vmem:[%s9582_s13 + $0x160] sm:$0xff] %vm5614_vm1, %v5530_v5  ;;  %v5531_v39 = vmul.f32 255.0, %v5403_v42  ;;  %v4775_v31 = vpop.f32.mrb[156].mxu0  ;;  %v4237_v48 = vsel %vm3725_vm11, %v3389_v51, %v3981_v32  ;;  %vm3726_vm14 = vcmp.ge.f32.partialorder %v3391_v52, 0.0  ;;  %v3982_v6 = vmul.f32 0.01, %v3391_v52 }
 0x37a   : > { %v4776_v9 = vadd.f32 %v4775_v31, %v9565_v44  ;;  %v4777_v29 = vpop.f32.mrb[157].mxu0  ;;  %v4391_v22 = vpack.c.bf16 %v4237_v48, %v4235_v20  ;;  %v3394_v3 = vpop.f32.mrb[12].mxu1  ;;  %v4236_v63 = vsel %vm3724_vm12, %v3387_v16, %v3980_v19 }
 0x37b   : > { %5660 = vst.msk [vmem:[%s9582_s13 + $0x168] sm:$0xff] %vm5614_vm1, %v5531_v39  ;;  %v4778_v2 = vpop.f32.mrb[158].mxu0  ;;  %v3395_v46 = vadd.f32 %v3394_v3, %v9037_v34  ;;  %v3396_v15 = vpop.f32.mrb[13].mxu1  ;;  %v4238_v30 = vsel %vm3726_vm14, %v3391_v52, %v3982_v6 }
 0x37c   : > { %vm5148_vm15 = vcmp.ge.f32.partialorder %v4776_v9, 0.0  ;;  %v5276_v0 = vmul.f32 0.01, %v4776_v9  ;;  %v4779_v55 = vadd.f32 %v4778_v2, %v9565_v44  ;;  %v4780_v37 = vpop.f32.mrb[159].mxu0  ;;  %v3397_v14 = vadd.f32 %v3396_v15, %v9039_v59  ;;  %v3398_v21 = vpop.f32.mrb[14].mxu1 }
 0x37d   : > { %v3983_v12 = vmul.f32 0.01, %v3395_v46  ;;  %v3399_v40 = vadd.f32 %v3398_v21, %v9037_v34  ;;  %v3400_v41 = vpop.f32.mrb[15].mxu1  ;;  %vm3727_vm5 = vcmp.ge.f32.partialorder %v3395_v46, 0.0  ;;  %v4392_v13 = vpack.c.bf16 %v4238_v30, %v4236_v63 }
 0x37e   : > { %v5404_v60 = vsel %vm5148_vm15, %v4776_v9, %v5276_v0  ;;  %vm5149_vm2 = vcmp.ge.f32.partialorder %v4779_v55, 0.0  ;;  %v5277_v17 = vmul.f32 0.01, %v4779_v55  ;;  %v3984_v26 = vmul.f32 0.01, %v3397_v14 }
 0x37f   : > { %v5532_v58 = vmul.f32 255.0, %v5404_v60  ;;  %v3401_v38 = vadd.f32 %v3400_v41, %v9039_v59  ;;  %vm3728_vm3 = vcmp.ge.f32.partialorder %v3397_v14, 0.0  ;;  %vm3729_vm4 = vcmp.ge.f32.partialorder %v3399_v40, 0.0  ;;  %4989 = vmatprep.mubr.bf16.mxu0 %v4392_v13 }
 0x380   : > { %v5405_v35 = vsel %vm5149_vm2, %v4779_v55, %v5277_v17  ;;  %v3985_v8 = vmul.f32 0.01, %v3399_v40  ;;  %v4239_v45 = vsel %vm3727_vm5, %v3395_v46, %v3983_v12  ;;  %v4240_v47 = vsel %vm3728_vm3, %v3397_v14, %v3984_v26  ;;  %4990 = vmatmul.mubr.bf16.gmra.mrb[8].mxu0 %v4391_v22 }
 0x381   : > { %5661 = vst.msk [vmem:[%s9582_s13 + $0x170] sm:$0xff] %vm5614_vm1, %v5532_v58  ;;  %v5533_v11 = vmul.f32 255.0, %v5405_v35  ;;  %vm3730_vm6 = vcmp.ge.f32.partialorder %v3401_v38, 0.0  ;;  %v3986_v10 = vmul.f32 0.01, %v3401_v38  ;;  %v4783_v23 = vpop.f32.mrb[160].mxu0 }
 0x382   : > { %v4241_v28 = vsel %vm3729_vm4, %v3399_v40, %v3985_v8  ;;  %v4784_v54 = vadd.f32 %v4783_v23, %v9565_v44  ;;  %v3404_v1 = vpop.f32.mrb[16].mxu1  ;;  %v4785_v53 = vpop.f32.mrb[161].mxu0 }
 0x383   : > { %5662 = vst.msk [vmem:[%s9582_s13 + $0x178] sm:$0xff] %vm5614_vm1, %v5533_v11  ;;  %v4393_v33 = vpack.c.bf16 %v4241_v28, %v4239_v45  ;;  %v4242_v18 = vsel %vm3730_vm6, %v3401_v38, %v3986_v10  ;;  %v3405_v50 = vadd.f32 %v3404_v1, %v9037_v34  ;;  %v3406_v56 = vpop.f32.mrb[17].mxu1  ;;  %v4786_v4 = vpop.f32.mrb[162].mxu0 }
 0x384   : > { %v4394_v61 = vpack.c.bf16 %v4242_v18, %v4240_v47  ;;  %vm5150_vm7 = vcmp.ge.f32.partialorder %v4784_v54, 0.0  ;;  %v5278_v49 = vmul.f32 0.01, %v4784_v54  ;;  %v4787_v62 = vadd.f32 %v4786_v4, %v9565_v44  ;;  %v3408_v16 = vpop.f32.mrb[18].mxu1  ;;  %v4788_v25 = vpop.f32.mrb[163].mxu0 }
 0x385   : > { %v3987_v27 = vmul.f32 0.01, %v3405_v50  ;;  %v3407_v5 = vadd.f32 %v3406_v56, %v9039_v59  ;;  %v3409_v24 = vadd.f32 %v3408_v16, %v9037_v34  ;;  %v3410_v51 = vpop.f32.mrb[19].mxu1  ;;  %vm3731_vm0 = vcmp.ge.f32.partialorder %v3405_v50, 0.0 }
 0x386   : > { %4997 = vmatprep.mubr.bf16.mxu0 %v4394_v61  ;;  %v5406_v36 = vsel %vm5150_vm7, %v4784_v54, %v5278_v49  ;;  %vm5151_vm8 = vcmp.ge.f32.partialorder %v4787_v62, 0.0  ;;  %v5279_v19 = vmul.f32 0.01, %v4787_v62  ;;  %v3411_v52 = vadd.f32 %v3410_v51, %v9039_v59 }
 0x387   : > { %v5534_v43 = vmul.f32 255.0, %v5406_v36  ;;  %vm3733_vm13 = vcmp.ge.f32.partialorder %v3409_v24, 0.0  ;;  %v3989_v42 = vmul.f32 0.01, %v3409_v24  ;;  %v4243_v39 = vsel %vm3731_vm0, %v3405_v50, %v3987_v27 }
 0x388   : > { %v3988_v32 = vmul.f32 0.01, %v3407_v5  ;;  %v5407_v7 = vsel %vm5151_vm8, %v4787_v62, %v5279_v19  ;;  %vm3734_vm9 = vcmp.ge.f32.partialorder %v3411_v52, 0.0  ;;  %v3990_v29 = vmul.f32 0.01, %v3411_v52  ;;  %4998 = vmatmul.mubr.bf16.gmra.mrb[12].mxu0 %v4393_v33 }
 0x389   : > { %5663 = vst.msk [vmem:[%s9582_s13 + $0x180] sm:$0xff] %vm5614_vm1, %v5534_v43  ;;  %v4791_v31 = vpop.f32.mrb[164].mxu0  ;;  %v5535_v57 = vmul.f32 255.0, %v5407_v7  ;;  %v4245_v9 = vsel %vm3733_vm13, %v3409_v24, %v3989_v42  ;;  %vm3732_vm10 = vcmp.ge.f32.partialorder %v3407_v5, 0.0 }
 0x38a   : > { %v3414_v20 = vpop.f32.mrb[20].mxu1  ;;  %v4793_v48 = vpop.f32.mrb[165].mxu0  ;;  %v4395_v6 = vpack.c.bf16 %v4245_v9, %v4243_v39  ;;  %v4792_v2 = vadd.f32 %v4791_v31, %v9565_v44  ;;  %v4246_v63 = vsel %vm3734_vm9, %v3411_v52, %v3990_v29  ;;  %v4244_v21 = vsel %vm3732_vm10, %v3407_v5, %v3988_v32 }
 0x38b   : > { %v3415_v22 = vadd.f32 %v3414_v20, %v9037_v34  ;;  %v3416_v0 = vpop.f32.mrb[21].mxu1  ;;  %v4794_v3 = vpop.f32.mrb[166].mxu0  ;;  %5664 = vst.msk [vmem:[%s9582_s13 + $0x188] sm:$0xff] %vm5614_vm1, %v5535_v57  ;;  %v4396_v30 = vpack.c.bf16 %v4246_v63, %v4244_v21 }
 0x38c   : > { %v3417_v55 = vadd.f32 %v3416_v0, %v9039_v59  ;;  %v4795_v37 = vadd.f32 %v4794_v3, %v9565_v44  ;;  %v3418_v46 = vpop.f32.mrb[22].mxu1  ;;  %v4796_v15 = vpop.f32.mrb[167].mxu0  ;;  %vm5152_vm11 = vcmp.ge.f32.partialorder %v4792_v2, 0.0  ;;  %v5280_v60 = vmul.f32 0.01, %v4792_v2 }
 0x38d   : > { %v3991_v14 = vmul.f32 0.01, %v3415_v22  ;;  %v3419_v40 = vadd.f32 %v3418_v46, %v9037_v34  ;;  %v3420_v41 = vpop.f32.mrb[23].mxu1  ;;  %vm3735_vm14 = vcmp.ge.f32.partialorder %v3415_v22, 0.0  ;;  %5005 = vmatprep.mubr.bf16.mxu0 %v4396_v30 }
 0x38e   : > { %vm5153_vm12 = vcmp.ge.f32.partialorder %v4795_v37, 0.0  ;;  %v5281_v17 = vmul.f32 0.01, %v4795_v37  ;;  %v5408_v58 = vsel %vm5152_vm11, %v4792_v2, %v5280_v60  ;;  %v3992_v12 = vmul.f32 0.01, %v3417_v55 }
 0x38f   : > { %v5536_v26 = vmul.f32 255.0, %v5408_v58  ;;  %vm3736_vm15 = vcmp.ge.f32.partialorder %v3417_v55, 0.0  ;;  %vm3737_vm2 = vcmp.ge.f32.partialorder %v3419_v40, 0.0  ;;  %v3993_v11 = vmul.f32 0.01, %v3419_v40 }
 0x390   : > { %v5409_v35 = vsel %vm5153_vm12, %v4795_v37, %v5281_v17  ;;  %v3421_v8 = vadd.f32 %v3420_v41, %v9039_v59  ;;  %v4247_v23 = vsel %vm3735_vm14, %v3415_v22, %v3991_v14  ;;  %5006 = vmatmul.mubr.bf16.gmra.mrb[16].mxu0 %v4395_v6  ;;  %v4248_v47 = vsel %vm3736_vm15, %v3417_v55, %v3992_v12 }
 0x391   : > { %v5537_v38 = vmul.f32 255.0, %v5409_v35  ;;  %v4799_v10 = vpop.f32.mrb[168].mxu0  ;;  %5665 = vst.msk [vmem:[%s9582_s13 + $0x190] sm:$0xff] %vm5614_vm1, %v5536_v26  ;;  %v4249_v33 = vsel %vm3737_vm2, %v3419_v40, %v3993_v11 }
 0x392   : > { %v4800_v13 = vadd.f32 %v4799_v10, %v9565_v44  ;;  %v3424_v45 = vpop.f32.mrb[24].mxu1  ;;  %v4801_v28 = vpop.f32.mrb[169].mxu0  ;;  %v4397_v18 = vpack.c.bf16 %v4249_v33, %v4247_v23  ;;  %v3994_v49 = vmul.f32 0.01, %v3421_v8  ;;  %vm3738_vm3 = vcmp.ge.f32.partialorder %v3421_v8, 0.0 }
 0x393   : > { %5666 = vst.msk [vmem:[%s9582_s13 + $0x198] sm:$0xff] %vm5614_vm1, %v5537_v38  ;;  %v3425_v54 = vadd.f32 %v3424_v45, %v9037_v34  ;;  %v3426_v1 = vpop.f32.mrb[25].mxu1  ;;  %v4802_v53 = vpop.f32.mrb[170].mxu0 }
 0x394   : > { %vm5154_vm5 = vcmp.ge.f32.partialorder %v4800_v13, 0.0  ;;  %v5282_v50 = vmul.f32 0.01, %v4800_v13  ;;  %v3427_v56 = vadd.f32 %v3426_v1, %v9039_v59  ;;  %v3428_v4 = vpop.f32.mrb[26].mxu1  ;;  %v4804_v61 = vpop.f32.mrb[171].mxu0  ;;  %v4803_v16 = vadd.f32 %v4802_v53, %v9565_v44 }
 0x395   : > { %v3995_v62 = vmul.f32 0.01, %v3425_v54  ;;  %v3429_v25 = vadd.f32 %v3428_v4, %v9037_v34  ;;  %v3430_v27 = vpop.f32.mrb[27].mxu1  ;;  %vm3739_vm4 = vcmp.ge.f32.partialorder %v3425_v54, 0.0  ;;  %v4250_v32 = vsel %vm3738_vm3, %v3421_v8, %v3994_v49 }
 0x396   : > { %v5410_v5 = vsel %vm5154_vm5, %v4800_v13, %v5282_v50  ;;  %v3431_v24 = vadd.f32 %v3430_v27, %v9039_v59  ;;  %v3996_v36 = vmul.f32 0.01, %v3427_v56  ;;  %vm5155_vm6 = vcmp.ge.f32.partialorder %v4803_v16, 0.0 }
 0x397   : > { %v5538_v51 = vmul.f32 255.0, %v5410_v5  ;;  %v5283_v43 = vmul.f32 0.01, %v4803_v16  ;;  %vm3741_vm7 = vcmp.ge.f32.partialorder %v3429_v25, 0.0  ;;  %v3997_v19 = vmul.f32 0.01, %v3429_v25 }
 0x398   : > { %vm3742_vm0 = vcmp.ge.f32.partialorder %v3431_v24, 0.0  ;;  %v3998_v42 = vmul.f32 0.01, %v3431_v24  ;;  %v9942_v52 = vsel %vm3739_vm4, %v3425_v54, %v3995_v62  ;;  %vm3740_vm8 = vcmp.ge.f32.partialorder %v3427_v56, 0.0 }
 0x399   : > { %5667 = vst.msk [vmem:[%s9582_s13 + $0x1a0] sm:$0xff] %vm5614_vm1, %v5538_v51  ;;  %v5411_v39 = vsel %vm5155_vm6, %v4803_v16, %v5283_v43  ;;  %v4807_v7 = vpop.f32.mrb[172].mxu0  ;;  %v4253_v57 = vsel %vm3741_vm7, %v3429_v25, %v3997_v19  ;;  %v4398_v9 = vpack.c.bf16 %v4250_v32, %v4248_v47  ;;  %v4252_v63 = vsel %vm3740_vm8, %v3427_v56, %v3996_v36 }
 0x39a   : > { %v5539_v31 = vmul.f32 255.0, %v5411_v39  ;;  %v4808_v29 = vadd.f32 %v4807_v7, %v9565_v44  ;;  %v3434_v20 = vpop.f32.mrb[28].mxu1  ;;  %v4809_v48 = vpop.f32.mrb[173].mxu0  ;;  %v4399_v6 = vpack.c.bf16 %v4253_v57, %v9942_v52  ;;  %v4254_v3 = vsel %vm3742_vm0, %v3431_v24, %v3998_v42 }
 0x39b   : > { %v3435_v2 = vadd.f32 %v3434_v20, %v9037_v34  ;;  %v3436_v22 = vpop.f32.mrb[29].mxu1  ;;  %v4810_v0 = vpop.f32.mrb[174].mxu0  ;;  %5013 = vmatprep.mubr.bf16.mxu0 %v4398_v9  ;;  %v4400_v58 = vpack.c.bf16 %v4254_v3, %v4252_v63 }
 0x39c   : > { %5668 = vst.msk [vmem:[%s9582_s13 + $0x1a8] sm:$0xff] %vm5614_vm1, %v5539_v31  ;;  %vm5156_vm13 = vcmp.ge.f32.partialorder %v4808_v29, 0.0  ;;  %v5284_v55 = vmul.f32 0.01, %v4808_v29  ;;  %v4811_v37 = vadd.f32 %v4810_v0, %v9565_v44  ;;  %v3438_v46 = vpop.f32.mrb[30].mxu1  ;;  %v4812_v15 = vpop.f32.mrb[175].mxu0  ;;  %5014 = vmatmul.mubr.bf16.gmra.mrb[20].mxu0 %v4397_v18  ;;  %v3437_v14 = vadd.f32 %v3436_v22, %v9039_v59 }
 0x39d   : > { %v3999_v60 = vmul.f32 0.01, %v3435_v2  ;;  %v3439_v17 = vadd.f32 %v3438_v46, %v9037_v34  ;;  %v3440_v21 = vpop.f32.mrb[31].mxu1  ;;  %vm3743_vm9 = vcmp.ge.f32.partialorder %v3435_v2, 0.0  ;;  %5021 = vmatprep.mubr.bf16.mxu0 %v4400_v58 }
 0x39e   : > { %v5412_v12 = vsel %vm5156_vm13, %v4808_v29, %v5284_v55  ;;  %vm5157_vm10 = vcmp.ge.f32.partialorder %v4811_v37, 0.0  ;;  %v5285_v41 = vmul.f32 0.01, %v4811_v37  ;;  %v3441_v26 = vadd.f32 %v3440_v21, %v9039_v59 }
 0x39f   : > { %v5540_v40 = vmul.f32 255.0, %v5412_v12  ;;  %vm3745_vm11 = vcmp.ge.f32.partialorder %v3439_v17, 0.0  ;;  %v4001_v30 = vmul.f32 0.01, %v3439_v17  ;;  %v4255_v35 = vsel %vm3743_vm9, %v3435_v2, %v3999_v60 }
 0x3a0   : > { %v4000_v38 = vmul.f32 0.01, %v3437_v14  ;;  %v5413_v11 = vsel %vm5157_vm10, %v4811_v37, %v5285_v41  ;;  %vm3746_vm12 = vcmp.ge.f32.partialorder %v3441_v26, 0.0  ;;  %v4002_v45 = vmul.f32 0.01, %v3441_v26 }
 0x3a1   : > { %5669 = vst.msk [vmem:[%s9582_s13 + $0x1b0] sm:$0xff] %vm5614_vm1, %v5540_v40  ;;  %v4815_v8 = vpop.f32.mrb[176].mxu0  ;;  %v5541_v10 = vmul.f32 255.0, %v5413_v11  ;;  %v4257_v13 = vsel %vm3745_vm11, %v3439_v17, %v4001_v30  ;;  %vm3744_vm14 = vcmp.ge.f32.partialorder %v3437_v14, 0.0 }
 0x3a2   : > { %v3444_v28 = vpop.f32.mrb[32].mxu1  ;;  %v4817_v23 = vpop.f32.mrb[177].mxu0  ;;  %v4401_v33 = vpack.c.bf16 %v4257_v13, %v4255_v35  ;;  %v4816_v54 = vadd.f32 %v4815_v8, %v9565_v44  ;;  %v4258_v61 = vsel %vm3746_vm12, %v3441_v26, %v4002_v45  ;;  %v4256_v25 = vsel %vm3744_vm14, %v3437_v14, %v4000_v38 }
 0x3a3   : > { %v3445_v1 = vadd.f32 %v3444_v28, %v9037_v34  ;;  %v3446_v53 = vpop.f32.mrb[33].mxu1  ;;  %v4818_v47 = vpop.f32.mrb[178].mxu0  ;;  %5670 = vst.msk [vmem:[%s9582_s13 + $0x1b8] sm:$0xff] %vm5614_vm1, %v5541_v10  ;;  %v4402_v36 = vpack.c.bf16 %v4258_v61, %v4256_v25 }
 0x3a4   : > { %v3447_v18 = vadd.f32 %v3446_v53, %v9039_v59  ;;  %v4819_v50 = vadd.f32 %v4818_v47, %v9565_v44  ;;  %v3448_v56 = vpop.f32.mrb[34].mxu1  ;;  %v4820_v4 = vpop.f32.mrb[179].mxu0  ;;  %5022 = vmatmul.mubr.bf16.gmra.mrb[24].mxu0 %v4399_v6  ;;  %vm5158_vm15 = vcmp.ge.f32.partialorder %v4816_v54, 0.0  ;;  %v5286_v49 = vmul.f32 0.01, %v4816_v54 }
 0x3a5   : > { %v4003_v62 = vmul.f32 0.01, %v3445_v1  ;;  %v3449_v24 = vadd.f32 %v3448_v56, %v9037_v34  ;;  %v3450_v51 = vpop.f32.mrb[35].mxu1  ;;  %vm3747_vm5 = vcmp.ge.f32.partialorder %v3445_v1, 0.0  ;;  %5029 = vmatprep.mubr.bf16.mxu0 %v4402_v36 }
 0x3a6   : > { %vm5159_vm2 = vcmp.ge.f32.partialorder %v4819_v50, 0.0  ;;  %v5287_v16 = vmul.f32 0.01, %v4819_v50  ;;  %v5414_v27 = vsel %vm5158_vm15, %v4816_v54, %v5286_v49  ;;  %v4004_v5 = vmul.f32 0.01, %v3447_v18 }
 0x3a7   : > { %v5542_v43 = vmul.f32 255.0, %v5414_v27  ;;  %vm3748_vm3 = vcmp.ge.f32.partialorder %v3447_v18, 0.0  ;;  %vm3749_vm4 = vcmp.ge.f32.partialorder %v3449_v24, 0.0  ;;  %v4005_v52 = vmul.f32 0.01, %v3449_v24 }
 0x3a8   : > { %v5415_v19 = vsel %vm5159_vm2, %v4819_v50, %v5287_v16  ;;  %v3451_v39 = vadd.f32 %v3450_v51, %v9039_v59  ;;  %v4259_v9 = vsel %vm3747_vm5, %v3445_v1, %v4003_v62  ;;  %v4260_v2 = vsel %vm3748_vm3, %v3447_v18, %v4004_v5 }
 0x3a9   : > { %v5543_v42 = vmul.f32 255.0, %v5415_v19  ;;  %v4823_v32 = vpop.f32.mrb[180].mxu0  ;;  %5671 = vst.msk [vmem:[%s9582_s13 + $0x1c0] sm:$0xff] %vm5614_vm1, %v5542_v43  ;;  %v4261_v29 = vsel %vm3749_vm4, %v3449_v24, %v4005_v52 }
 0x3aa   : > { %v4824_v7 = vadd.f32 %v4823_v32, %v9565_v44  ;;  %v3454_v31 = vpop.f32.mrb[36].mxu1  ;;  %v4825_v57 = vpop.f32.mrb[181].mxu0  ;;  %v4403_v22 = vpack.c.bf16 %v4261_v29, %v4259_v9  ;;  %v4006_v46 = vmul.f32 0.01, %v3451_v39  ;;  %vm3750_vm7 = vcmp.ge.f32.partialorder %v3451_v39, 0.0 }
 0x3ab   : > { %5672 = vst.msk [vmem:[%s9582_s13 + $0x1c8] sm:$0xff] %vm5614_vm1, %v5543_v42  ;;  %v3455_v20 = vadd.f32 %v3454_v31, %v9037_v34  ;;  %v3456_v48 = vpop.f32.mrb[37].mxu1  ;;  %v4826_v6 = vpop.f32.mrb[182].mxu0 }
 0x3ac   : > { %vm5160_vm6 = vcmp.ge.f32.partialorder %v4824_v7, 0.0  ;;  %v5288_v0 = vmul.f32 0.01, %v4824_v7  ;;  %v3457_v3 = vadd.f32 %v3456_v48, %v9039_v59  ;;  %v3458_v55 = vpop.f32.mrb[38].mxu1  ;;  %v4828_v37 = vpop.f32.mrb[183].mxu0  ;;  %5030 = vmatmul.mubr.bf16.gmra.mrb[28].mxu0 %v4401_v33  ;;  %v4827_v63 = vadd.f32 %v4826_v6, %v9565_v44 }
 0x3ad   : > { %v4007_v15 = vmul.f32 0.01, %v3455_v20  ;;  %v3459_v60 = vadd.f32 %v3458_v55, %v9037_v34  ;;  %v3460_v14 = vpop.f32.mrb[39].mxu1  ;;  %vm3751_vm0 = vcmp.ge.f32.partialorder %v3455_v20, 0.0  ;;  %v4262_v38 = vsel %vm3750_vm7, %v3451_v39, %v4006_v46 }
 0x3ae   : > { %v5416_v17 = vsel %vm5160_vm6, %v4824_v7, %v5288_v0  ;;  %v3461_v21 = vadd.f32 %v3460_v14, %v9039_v59  ;;  %v4008_v12 = vmul.f32 0.01, %v3457_v3  ;;  %vm5161_vm8 = vcmp.ge.f32.partialorder %v4827_v63, 0.0 }
 0x3af   : > { %v5544_v58 = vmul.f32 255.0, %v5416_v17  ;;  %v5289_v40 = vmul.f32 0.01, %v4827_v63  ;;  %vm3753_vm13 = vcmp.ge.f32.partialorder %v3459_v60, 0.0  ;;  %v4009_v41 = vmul.f32 0.01, %v3459_v60 }
 0x3b0   : > { %vm3754_vm9 = vcmp.ge.f32.partialorder %v3461_v21, 0.0  ;;  %v4010_v30 = vmul.f32 0.01, %v3461_v21  ;;  %v9980_v26 = vsel %vm3751_vm0, %v3455_v20, %v4007_v15  ;;  %vm3752_vm10 = vcmp.ge.f32.partialorder %v3457_v3, 0.0 }
 0x3b1   : > { %5673 = vst.msk [vmem:[%s9582_s13 + $0x1d0] sm:$0xff] %vm5614_vm1, %v5544_v58  ;;  %v5417_v35 = vsel %vm5161_vm8, %v4827_v63, %v5289_v40  ;;  %v4831_v11 = vpop.f32.mrb[184].mxu0  ;;  %v4265_v10 = vsel %vm3753_vm13, %v3459_v60, %v4009_v41  ;;  %v4404_v13 = vpack.c.bf16 %v4262_v38, %v4260_v2  ;;  %v4264_v61 = vsel %vm3752_vm10, %v3457_v3, %v4008_v12 }
 0x3b2   : > { %v5545_v8 = vmul.f32 255.0, %v5417_v35  ;;  %v4832_v45 = vadd.f32 %v4831_v11, %v9565_v44  ;;  %v3464_v28 = vpop.f32.mrb[40].mxu1  ;;  %v4833_v23 = vpop.f32.mrb[185].mxu0  ;;  %v4405_v33 = vpack.c.bf16 %v4265_v10, %v9980_v26  ;;  %v4266_v47 = vsel %vm3754_vm9, %v3461_v21, %v4010_v30 }
 0x3b3   : > { %v3465_v54 = vadd.f32 %v3464_v28, %v9037_v34  ;;  %v3466_v1 = vpop.f32.mrb[41].mxu1  ;;  %v4834_v53 = vpop.f32.mrb[186].mxu0  ;;  %5037 = vmatprep.mubr.bf16.mxu0 %v4404_v13  ;;  %v4406_v27 = vpack.c.bf16 %v4266_v47, %v4264_v61 }
 0x3b4   : > { %5674 = vst.msk [vmem:[%s9582_s13 + $0x1d8] sm:$0xff] %vm5614_vm1, %v5545_v8  ;;  %vm5162_vm11 = vcmp.ge.f32.partialorder %v4832_v45, 0.0  ;;  %v5290_v18 = vmul.f32 0.01, %v4832_v45  ;;  %v4835_v50 = vadd.f32 %v4834_v53, %v9565_v44  ;;  %v3468_v56 = vpop.f32.mrb[42].mxu1  ;;  %v4836_v4 = vpop.f32.mrb[187].mxu0  ;;  %5038 = vmatmul.mubr.bf16.gmra.mrb[32].mxu0 %v4403_v22  ;;  %v3467_v62 = vadd.f32 %v3466_v1, %v9039_v59 }
 0x3b5   : > { %v4011_v49 = vmul.f32 0.01, %v3465_v54  ;;  %v3469_v16 = vadd.f32 %v3468_v56, %v9037_v34  ;;  %v3470_v25 = vpop.f32.mrb[43].mxu1  ;;  %vm3755_vm12 = vcmp.ge.f32.partialorder %v3465_v54, 0.0  ;;  %5045 = vmatprep.mubr.bf16.mxu0 %v4406_v27 }
 0x3b6   : > { %v5418_v5 = vsel %vm5162_vm11, %v4832_v45, %v5290_v18  ;;  %vm5163_vm14 = vcmp.ge.f32.partialorder %v4835_v50, 0.0  ;;  %v5291_v51 = vmul.f32 0.01, %v4835_v50  ;;  %v3471_v43 = vadd.f32 %v3470_v25, %v9039_v59 }
 0x3b7   : > { %v5546_v24 = vmul.f32 255.0, %v5418_v5  ;;  %vm3757_vm15 = vcmp.ge.f32.partialorder %v3469_v16, 0.0  ;;  %v4013_v36 = vmul.f32 0.01, %v3469_v16  ;;  %v4267_v19 = vsel %vm3755_vm12, %v3465_v54, %v4011_v49 }
 0x3b8   : > { %v4012_v42 = vmul.f32 0.01, %v3467_v62  ;;  %v5419_v52 = vsel %vm5163_vm14, %v4835_v50, %v5291_v51  ;;  %vm3758_vm2 = vcmp.ge.f32.partialorder %v3471_v43, 0.0  ;;  %v4014_v31 = vmul.f32 0.01, %v3471_v43 }
 0x3b9   : > { %5675 = vst.msk [vmem:[%s9582_s13 + $0x1e0] sm:$0xff] %vm5614_vm1, %v5546_v24  ;;  %v4839_v39 = vpop.f32.mrb[188].mxu0  ;;  %v5547_v32 = vmul.f32 255.0, %v5419_v52  ;;  %v4269_v7 = vsel %vm3757_vm15, %v3469_v16, %v4013_v36  ;;  %vm3756_vm5 = vcmp.ge.f32.partialorder %v3467_v62, 0.0 }
 0x3ba   : > { %v3474_v57 = vpop.f32.mrb[44].mxu1  ;;  %v4841_v9 = vpop.f32.mrb[189].mxu0  ;;  %v4407_v29 = vpack.c.bf16 %v4269_v7, %v4267_v19  ;;  %v4840_v20 = vadd.f32 %v4839_v39, %v9565_v44  ;;  %v4270_v37 = vsel %vm3758_vm2, %v3471_v43, %v4014_v31  ;;  %v4268_v60 = vsel %vm3756_vm5, %v3467_v62, %v4012_v42 }
 0x3bb   : > { %v3475_v48 = vadd.f32 %v3474_v57, %v9037_v34  ;;  %v3476_v6 = vpop.f32.mrb[45].mxu1  ;;  %v4842_v2 = vpop.f32.mrb[190].mxu0  ;;  %5676 = vst.msk [vmem:[%s9582_s13 + $0x1e8] sm:$0xff] %vm5614_vm1, %v5547_v32  ;;  %v4408_v12 = vpack.c.bf16 %v4270_v37, %v4268_v60 }
 0x3bc   : > { %v3477_v22 = vadd.f32 %v3476_v6, %v9039_v59  ;;  %v4843_v0 = vadd.f32 %v4842_v2, %v9565_v44  ;;  %v3478_v3 = vpop.f32.mrb[46].mxu1  ;;  %v4844_v55 = vpop.f32.mrb[191].mxu0  ;;  %5046 = vmatmul.mubr.bf16.gmra.mrb[36].mxu0 %v4405_v33  ;;  %vm5164_vm3 = vcmp.ge.f32.partialorder %v4840_v20, 0.0  ;;  %v5292_v46 = vmul.f32 0.01, %v4840_v20 }
 0x3bd   : > { %v4015_v15 = vmul.f32 0.01, %v3475_v48  ;;  %v3479_v21 = vadd.f32 %v3478_v3, %v9037_v34  ;;  %v3480_v58 = vpop.f32.mrb[47].mxu1  ;;  %vm3759_vm6 = vcmp.ge.f32.partialorder %v3475_v48, 0.0  ;;  %5053 = vmatprep.mubr.bf16.mxu0 %v4408_v12 }
 0x3be   : > { %vm5165_vm4 = vcmp.ge.f32.partialorder %v4843_v0, 0.0  ;;  %v5293_v63 = vmul.f32 0.01, %v4843_v0  ;;  %v5420_v14 = vsel %vm5164_vm3, %v4840_v20, %v5292_v46  ;;  %v4016_v17 = vmul.f32 0.01, %v3477_v22 }
 0x3bf   : > { %v5548_v40 = vmul.f32 255.0, %v5420_v14  ;;  %vm3760_vm7 = vcmp.ge.f32.partialorder %v3477_v22, 0.0  ;;  %vm3761_vm0 = vcmp.ge.f32.partialorder %v3479_v21, 0.0  ;;  %v4017_v26 = vmul.f32 0.01, %v3479_v21 }
 0x3c0   : > { %v5421_v41 = vsel %vm5165_vm4, %v4843_v0, %v5293_v63  ;;  %v3481_v35 = vadd.f32 %v3480_v58, %v9039_v59  ;;  %v4271_v13 = vsel %vm3759_vm6, %v3475_v48, %v4015_v15  ;;  %v4272_v54 = vsel %vm3760_vm7, %v3477_v22, %v4016_v17 }
 0x3c1   : > { %v5549_v30 = vmul.f32 255.0, %v5421_v41  ;;  %v4847_v38 = vpop.f32.mrb[192].mxu0  ;;  %5677 = vst.msk [vmem:[%s9582_s13 + $0x1f0] sm:$0xff] %vm5614_vm1, %v5548_v40  ;;  %v4273_v45 = vsel %vm3761_vm0, %v3479_v21, %v4017_v26 }
 0x3c2   : > { %v4848_v11 = vadd.f32 %v4847_v38, %v9565_v44  ;;  %v3484_v8 = vpop.f32.mrb[48].mxu1  ;;  %v4849_v10 = vpop.f32.mrb[193].mxu0  ;;  %v4409_v1 = vpack.c.bf16 %v4273_v45, %v4271_v13  ;;  %v4018_v56 = vmul.f32 0.01, %v3481_v35  ;;  %vm3762_vm13 = vcmp.ge.f32.partialorder %v3481_v35, 0.0 }
 0x3c3   : > { %5678 = vst.msk [vmem:[%s9582_s13 + $0x1f8] sm:$0xff] %vm5614_vm1, %v5549_v30  ;;  %v3485_v28 = vadd.f32 %v3484_v8, %v9037_v34  ;;  %v3486_v23 = vpop.f32.mrb[49].mxu1  ;;  %v4850_v33 = vpop.f32.mrb[194].mxu0 }
 0x3c4   : > { %vm5166_vm8 = vcmp.ge.f32.partialorder %v4848_v11, 0.0  ;;  %v5294_v53 = vmul.f32 0.01, %v4848_v11  ;;  %v3487_v47 = vadd.f32 %v3486_v23, %v9039_v59  ;;  %v3488_v18 = vpop.f32.mrb[50].mxu1  ;;  %v4852_v50 = vpop.f32.mrb[195].mxu0  ;;  %5054 = vmatmul.mubr.bf16.gmra.mrb[40].mxu0 %v4407_v29  ;;  %v4851_v61 = vadd.f32 %v4850_v33, %v9565_v44 }
 0x3c5   : > { %v4019_v4 = vmul.f32 0.01, %v3485_v28  ;;  %v3489_v49 = vadd.f32 %v3488_v18, %v9037_v34  ;;  %v3490_v62 = vpop.f32.mrb[51].mxu1  ;;  %vm3763_vm9 = vcmp.ge.f32.partialorder %v3485_v28, 0.0  ;;  %v4274_v42 = vsel %vm3762_vm13, %v3481_v35, %v4018_v56 }
 0x3c6   : > { %v5422_v16 = vsel %vm5166_vm8, %v4848_v11, %v5294_v53  ;;  %v3491_v25 = vadd.f32 %v3490_v62, %v9039_v59  ;;  %v4020_v5 = vmul.f32 0.01, %v3487_v47  ;;  %vm5167_vm10 = vcmp.ge.f32.partialorder %v4851_v61, 0.0 }
 0x3c7   : > { %v5550_v27 = vmul.f32 255.0, %v5422_v16  ;;  %v5295_v24 = vmul.f32 0.01, %v4851_v61  ;;  %vm3765_vm11 = vcmp.ge.f32.partialorder %v3489_v49, 0.0  ;;  %v4021_v51 = vmul.f32 0.01, %v3489_v49 }
 0x3c8   : > { %vm3766_vm12 = vcmp.ge.f32.partialorder %v3491_v25, 0.0  ;;  %v4022_v36 = vmul.f32 0.01, %v3491_v25  ;;  %v4275_v43 = vsel %vm3763_vm9, %v3485_v28, %v4019_v4  ;;  %vm3764_vm14 = vcmp.ge.f32.partialorder %v3487_v47, 0.0 }
 0x3c9   : > { %5679 = vst.msk [vmem:[%s9582_s13 + $0x200] sm:$0xff] %vm5614_vm1, %v5550_v27  ;;  %v5423_v19 = vsel %vm5167_vm10, %v4851_v61, %v5295_v24  ;;  %v4855_v52 = vpop.f32.mrb[196].mxu0  ;;  %v4277_v32 = vsel %vm3765_vm11, %v3489_v49, %v4021_v51  ;;  %v4410_v7 = vpack.c.bf16 %v4274_v42, %v4272_v54  ;;  %v4276_v37 = vsel %vm3764_vm14, %v3487_v47, %v4020_v5 }
 0x3ca   : > { %v5551_v39 = vmul.f32 255.0, %v5423_v19  ;;  %v4856_v31 = vadd.f32 %v4855_v52, %v9565_v44  ;;  %v3494_v57 = vpop.f32.mrb[52].mxu1  ;;  %v4857_v9 = vpop.f32.mrb[197].mxu0  ;;  %v4411_v29 = vpack.c.bf16 %v4277_v32, %v4275_v43  ;;  %v4278_v2 = vsel %vm3766_vm12, %v3491_v25, %v4022_v36 }
 0x3cb   : > { %v3495_v20 = vadd.f32 %v3494_v57, %v9037_v34  ;;  %v3496_v48 = vpop.f32.mrb[53].mxu1  ;;  %v4858_v6 = vpop.f32.mrb[198].mxu0  ;;  %5061 = vmatprep.mubr.bf16.mxu0 %v4410_v7  ;;  %v4412_v14 = vpack.c.bf16 %v4278_v2, %v4276_v37 }
 0x3cc   : > { %5680 = vst.msk [vmem:[%s9582_s13 + $0x208] sm:$0xff] %vm5614_vm1, %v5551_v39  ;;  %vm5168_vm15 = vcmp.ge.f32.partialorder %v4856_v31, 0.0  ;;  %v5296_v22 = vmul.f32 0.01, %v4856_v31  ;;  %v4859_v0 = vadd.f32 %v4858_v6, %v9565_v44  ;;  %v3498_v3 = vpop.f32.mrb[54].mxu1  ;;  %v4860_v55 = vpop.f32.mrb[199].mxu0  ;;  %5062 = vmatmul.mubr.bf16.gmra.mrb[44].mxu0 %v4409_v1  ;;  %v3497_v15 = vadd.f32 %v3496_v48, %v9039_v59 }
 0x3cd   : > { %v4023_v46 = vmul.f32 0.01, %v3495_v20  ;;  %v3499_v63 = vadd.f32 %v3498_v3, %v9037_v34  ;;  %v3500_v60 = vpop.f32.mrb[55].mxu1  ;;  %vm3767_vm2 = vcmp.ge.f32.partialorder %v3495_v20, 0.0  ;;  %5069 = vmatprep.mubr.bf16.mxu0 %v4412_v14 }
 0x3ce   : > { %v5424_v17 = vsel %vm5168_vm15, %v4856_v31, %v5296_v22  ;;  %vm5169_vm5 = vcmp.ge.f32.partialorder %v4859_v0, 0.0  ;;  %v5297_v58 = vmul.f32 0.01, %v4859_v0  ;;  %v3501_v40 = vadd.f32 %v3500_v60, %v9039_v59 }
 0x3cf   : > { %v5552_v21 = vmul.f32 255.0, %v5424_v17  ;;  %vm3769_vm3 = vcmp.ge.f32.partialorder %v3499_v63, 0.0  ;;  %v4025_v12 = vmul.f32 0.01, %v3499_v63  ;;  %v4279_v41 = vsel %vm3767_vm2, %v3495_v20, %v4023_v46 }
 0x3d0   : > { %v4024_v30 = vmul.f32 0.01, %v3497_v15  ;;  %v5425_v26 = vsel %vm5169_vm5, %v4859_v0, %v5297_v58  ;;  %vm3770_vm4 = vcmp.ge.f32.partialorder %v3501_v40, 0.0  ;;  %v4026_v8 = vmul.f32 0.01, %v3501_v40 }
 0x3d1   : > { %5681 = vst.msk [vmem:[%s9582_s13 + $0x210] sm:$0xff] %vm5614_vm1, %v5552_v21  ;;  %v5553_v38 = vmul.f32 255.0, %v5425_v26  ;;  %v4281_v11 = vsel %vm3769_vm3, %v3499_v63, %v4025_v12  ;;  %vm3768_vm6 = vcmp.ge.f32.partialorder %v3497_v15, 0.0 }
 0x3d2   : > { %v4863_v35 = vpop.f32.mrb[200].mxu0  ;;  %v3504_v10 = vpop.f32.mrb[56].mxu1  ;;  %v4413_v45 = vpack.c.bf16 %v4281_v11, %v4279_v41  ;;  %v4282_v18 = vsel %vm3770_vm4, %v3501_v40, %v4026_v8  ;;  %v4280_v61 = vsel %vm3768_vm6, %v3497_v15, %v4024_v30 }
 0x3d3   : > { %v4865_v13 = vpop.f32.mrb[201].mxu0  ;;  %v4864_v28 = vadd.f32 %v4863_v35, %v9565_v44  ;;  %v3505_v23 = vadd.f32 %v3504_v10, %v9037_v34  ;;  %v3506_v33 = vpop.f32.mrb[57].mxu1  ;;  %5682 = vst.msk [vmem:[%s9582_s13 + $0x218] sm:$0xff] %vm5614_vm1, %v5553_v38  ;;  %v4414_v27 = vpack.c.bf16 %v4282_v18, %v4280_v61 }
 0x3d4   : > { %v4866_v54 = vpop.f32.mrb[202].mxu0  ;;  %v3508_v53 = vpop.f32.mrb[58].mxu1  ;;  %5070 = vmatmul.mubr.bf16.gmra.mrb[48].mxu0 %v4411_v29  ;;  %v3507_v56 = vadd.f32 %v3506_v33, %v9039_v59 }
 0x3d5   : > { %v4867_v1 = vadd.f32 %v4866_v54, %v9565_v44  ;;  %v4868_v47 = vpop.f32.mrb[203].mxu0  ;;  %vm5170_vm7 = vcmp.ge.f32.partialorder %v4864_v28, 0.0  ;;  %v5298_v50 = vmul.f32 0.01, %v4864_v28  ;;  %v4027_v62 = vmul.f32 0.01, %v3505_v23  ;;  %5077 = vmatprep.mubr.bf16.mxu0 %v4414_v27 }
 0x3d6   : > { %v3509_v16 = vadd.f32 %v3508_v53, %v9037_v34  ;;  %v3510_v25 = vpop.f32.mrb[59].mxu1  ;;  %vm3771_vm8 = vcmp.ge.f32.partialorder %v3505_v23, 0.0  ;;  %vm3772_vm9 = vcmp.ge.f32.partialorder %v3507_v56, 0.0  ;;  %v4028_v42 = vmul.f32 0.01, %v3507_v56 }
 0x3d7   : > { %vm5171_vm0 = vcmp.ge.f32.partialorder %v4867_v1, 0.0  ;;  %v5299_v4 = vmul.f32 0.01, %v4867_v1  ;;  %v5426_v49 = vsel %vm5170_vm7, %v4864_v28, %v5298_v50  ;;  %v3511_v51 = vadd.f32 %v3510_v25, %v9039_v59 }
 0x3d8   : > { %v5554_v5 = vmul.f32 255.0, %v5426_v49  ;;  %vm3773_vm13 = vcmp.ge.f32.partialorder %v3509_v16, 0.0  ;;  %v4029_v43 = vmul.f32 0.01, %v3509_v16  ;;  %v4283_v7 = vsel %vm3771_vm8, %v3505_v23, %v4027_v62 }
 0x3d9   : > { %v5427_v24 = vsel %vm5171_vm0, %v4867_v1, %v5299_v4  ;;  %vm3774_vm10 = vcmp.ge.f32.partialorder %v3511_v51, 0.0  ;;  %v4030_v0 = vmul.f32 0.01, %v3511_v51 }
 0x3da   : > { %v5555_v36 = vmul.f32 255.0, %v5427_v24  ;;  %v4871_v19 = vpop.f32.mrb[204].mxu0  ;;  %5683 = vst.msk [vmem:[%s9582_s13 + $0x220] sm:$0xff] %vm5614_vm1, %v5554_v5  ;;  %v3514_v39 = vpop.f32.mrb[60].mxu1  ;;  %v4285_v31 = vsel %vm3773_vm13, %v3509_v16, %v4029_v43 }
 0x3db   : > { %v4872_v52 = vadd.f32 %v4871_v19, %v9565_v44  ;;  %v4873_v32 = vpop.f32.mrb[205].mxu0  ;;  %v3515_v57 = vadd.f32 %v3514_v39, %v9037_v34  ;;  %v3516_v9 = vpop.f32.mrb[61].mxu1  ;;  %v4415_v20 = vpack.c.bf16 %v4285_v31, %v4283_v7  ;;  %v4286_v41 = vsel %vm3774_vm10, %v3511_v51, %v4030_v0 }
 0x3dc   : > { %5684 = vst.msk [vmem:[%s9582_s13 + $0x228] sm:$0xff] %vm5614_vm1, %v5555_v36  ;;  %v4874_v29 = vpop.f32.mrb[206].mxu0  ;;  %v3517_v6 = vadd.f32 %v3516_v9, %v9039_v59  ;;  %v3518_v2 = vpop.f32.mrb[62].mxu1  ;;  %5078 = vmatmul.mubr.bf16.gmra.mrb[52].mxu0 %v4413_v45 }
 0x3dd   : > { %vm5172_vm11 = vcmp.ge.f32.partialorder %v4872_v52, 0.0  ;;  %v5300_v48 = vmul.f32 0.01, %v4872_v52  ;;  %v4876_v22 = vpop.f32.mrb[207].mxu0  ;;  %v4031_v3 = vmul.f32 0.01, %v3515_v57  ;;  %v4875_v55 = vadd.f32 %v4874_v29, %v9565_v44 }
 0x3de   : > { %v3519_v37 = vadd.f32 %v3518_v2, %v9037_v34  ;;  %v3520_v46 = vpop.f32.mrb[63].mxu1  ;;  %vm3775_vm12 = vcmp.ge.f32.partialorder %v3515_v57, 0.0  ;;  %vm3776_vm14 = vcmp.ge.f32.partialorder %v3517_v6, 0.0  ;;  %v4032_v14 = vmul.f32 0.01, %v3517_v6 }
 0x3df   : > { %v5428_v15 = vsel %vm5172_vm11, %v4872_v52, %v5300_v48  ;;  %v3521_v63 = vadd.f32 %v3520_v46, %v9039_v59  ;;  %vm5173_vm15 = vcmp.ge.f32.partialorder %v4875_v55, 0.0  ;;  %v5301_v17 = vmul.f32 0.01, %v4875_v55 }
 0x3e0   : > { %v5556_v60 = vmul.f32 255.0, %v5428_v15  ;;  %vm3777_vm2 = vcmp.ge.f32.partialorder %v3519_v37, 0.0  ;;  %v4033_v21 = vmul.f32 0.01, %v3519_v37  ;;  %v4287_v12 = vsel %vm3775_vm12, %v3515_v57, %v4031_v3 }
 0x3e1   : > { %vm3778_vm5 = vcmp.ge.f32.partialorder %v3521_v63, 0.0  ;;  %v4034_v58 = vmul.f32 0.01, %v3521_v63  ;;  %v5429_v40 = vsel %vm5173_vm15, %v4875_v55, %v5301_v17  ;;  %v4284_v34 = vsel %vm3772_vm9, %v3507_v56, %v4028_v42 }
 0x3e2   : > { %5685 = vst.msk [vmem:[%s9582_s13 + $0x230] sm:$0xff] %vm5614_vm1, %v5556_v60  ;;  %v4879_v30 = vpop.f32.mrb[208].mxu0  ;;  %v5557_v26 = vmul.f32 255.0, %v5429_v40  ;;  %v4289_v59 = vsel %vm3777_vm2, %v3519_v37, %v4033_v21  ;;  %v4416_v35 = vpack.c.bf16 %v4286_v41, %v4284_v34  ;;  %v4288_v13 = vsel %vm3776_vm14, %v3517_v6, %v4032_v14 }
 0x3e3   : > { %v4880_v38 = vadd.f32 %v4879_v30, %v9565_v44  ;;  %v4881_v11 = vpop.f32.mrb[209].mxu0  ;;  %v4417_v8 = vpack.c.bf16 %v4289_v59, %v4287_v12  ;;  %v4290_v45 = vsel %vm3778_vm5, %v3521_v63, %v4034_v58 }
 0x3e4   : > { %v4882_v10 = vpop.f32.mrb[210].mxu0  ;;  %5686 = vst.msk [vmem:[%s9582_s13 + $0x238] sm:$0xff] %vm5614_vm1, %v5557_v26  ;;  %5085 = vmatprep.mubr.bf16.mxu0 %v4416_v35  ;;  %v4418_v54 = vpack.c.bf16 %v4290_v45, %v4288_v13 }
 0x3e5   : > { %vm5174_vm3 = vcmp.ge.f32.partialorder %v4880_v38, 0.0  ;;  %v5302_v28 = vmul.f32 0.01, %v4880_v38  ;;  %v4883_v23 = vadd.f32 %v4882_v10, %v9565_v44  ;;  %v4884_v33 = vpop.f32.mrb[211].mxu0  ;;  %5086 = vmatmul.mubr.bf16.gmra.mrb[56].mxu0 %v4415_v20 }
 0x3e6   : > { %5093 = vmatprep.mubr.bf16.mxu0 %v4418_v54 }
 0x3e7   : > { %v5430_v1 = vsel %vm5174_vm3, %v4880_v38, %v5302_v28  ;;  %vm5175_vm4 = vcmp.ge.f32.partialorder %v4883_v23, 0.0  ;;  %v5303_v53 = vmul.f32 0.01, %v4883_v23 }
 0x3e8   : > { %v5558_v47 = vmul.f32 255.0, %v5430_v1 }
 0x3e9   : > { %v5431_v18 = vsel %vm5175_vm4, %v4883_v23, %v5303_v53 }
 0x3ea   : > { %5687 = vst.msk [vmem:[%s9582_s13 + $0x240] sm:$0xff] %vm5614_vm1, %v5558_v47  ;;  %v5559_v50 = vmul.f32 255.0, %v5431_v18  ;;  %v4887_v56 = vpop.f32.mrb[212].mxu0 }
 0x3eb   : > { %v4888_v4 = vadd.f32 %v4887_v56, %v9565_v44  ;;  %v4889_v61 = vpop.f32.mrb[213].mxu0 }
 0x3ec   : > { %5688 = vst.msk [vmem:[%s9582_s13 + $0x248] sm:$0xff] %vm5614_vm1, %v5559_v50  ;;  %v4890_v49 = vpop.f32.mrb[214].mxu0 }
 0x3ed   : > { %vm5176_vm6 = vcmp.ge.f32.partialorder %v4888_v4, 0.0  ;;  %v5304_v62 = vmul.f32 0.01, %v4888_v4  ;;  %v4891_v16 = vadd.f32 %v4890_v49, %v9565_v44  ;;  %v4892_v25 = vpop.f32.mrb[215].mxu0  ;;  %5094 = vmatmul.mubr.bf16.gmra.mrb[60].mxu0 %v4417_v8 }
 0x3ef   : > { %v5432_v27 = vsel %vm5176_vm6, %v4888_v4, %v5304_v62  ;;  %vm5177_vm7 = vcmp.ge.f32.partialorder %v4891_v16, 0.0  ;;  %v5305_v5 = vmul.f32 0.01, %v4891_v16 }
 0x3f0   : > { %v5560_v24 = vmul.f32 255.0, %v5432_v27 }
 0x3f1   : > { %v5433_v51 = vsel %vm5177_vm7, %v4891_v16, %v5305_v5 }
 0x3f2   : > { %5689 = vst.msk [vmem:[%s9582_s13 + $0x250] sm:$0xff] %vm5614_vm1, %v5560_v24  ;;  %v5561_v36 = vmul.f32 255.0, %v5433_v51  ;;  %v4895_v43 = vpop.f32.mrb[216].mxu0 }
 0x3f3   : > { %v4896_v19 = vadd.f32 %v4895_v43, %v9565_v44  ;;  %v4897_v42 = vpop.f32.mrb[217].mxu0 }
 0x3f4   : > { %5690 = vst.msk [vmem:[%s9582_s13 + $0x258] sm:$0xff] %vm5614_vm1, %v5561_v36  ;;  %v4898_v52 = vpop.f32.mrb[218].mxu0 }
 0x3f5   : > { %vm5178_vm0 = vcmp.ge.f32.partialorder %v4896_v19, 0.0  ;;  %v5306_v39 = vmul.f32 0.01, %v4896_v19  ;;  %v4899_v32 = vadd.f32 %v4898_v52, %v9565_v44  ;;  %v4900_v7 = vpop.f32.mrb[219].mxu0 }
 0x3f7   : > { %v5434_v31 = vsel %vm5178_vm0, %v4896_v19, %v5306_v39  ;;  %vm5179_vm8 = vcmp.ge.f32.partialorder %v4899_v32, 0.0  ;;  %v5307_v57 = vmul.f32 0.01, %v4899_v32 }
 0x3f8   : > { %v5562_v9 = vmul.f32 255.0, %v5434_v31 }
 0x3f9   : > { %v5435_v29 = vsel %vm5179_vm8, %v4899_v32, %v5307_v57 }
 0x3fa   : > { %5691 = vst.msk [vmem:[%s9582_s13 + $0x260] sm:$0xff] %vm5614_vm1, %v5562_v9  ;;  %v5563_v20 = vmul.f32 255.0, %v5435_v29  ;;  %v4903_v48 = vpop.f32.mrb[220].mxu0 }
 0x3fb   : > { %v4904_v6 = vadd.f32 %v4903_v48, %v9565_v44  ;;  %v4905_v2 = vpop.f32.mrb[221].mxu0 }
 0x3fc   : > { %5692 = vst.msk [vmem:[%s9582_s13 + $0x268] sm:$0xff] %vm5614_vm1, %v5563_v20  ;;  %v4906_v22 = vpop.f32.mrb[222].mxu0 }
 0x3fd   : > { %vm5180_vm13 = vcmp.ge.f32.partialorder %v4904_v6, 0.0  ;;  %v5308_v0 = vmul.f32 0.01, %v4904_v6  ;;  %v4907_v3 = vadd.f32 %v4906_v22, %v9565_v44  ;;  %v4908_v55 = vpop.f32.mrb[223].mxu0 }
 0x3ff   : > { %v5436_v37 = vsel %vm5180_vm13, %v4904_v6, %v5308_v0  ;;  %vm5181_vm9 = vcmp.ge.f32.partialorder %v4907_v3, 0.0  ;;  %v5309_v46 = vmul.f32 0.01, %v4907_v3 }
 0x400   : > { %v5564_v15 = vmul.f32 255.0, %v5436_v37 }
 0x401   : > { %v5437_v63 = vsel %vm5181_vm9, %v4907_v3, %v5309_v46 }
 0x402   : > { %5693 = vst.msk [vmem:[%s9582_s13 + $0x270] sm:$0xff] %vm5614_vm1, %v5564_v15  ;;  %v5565_v60 = vmul.f32 255.0, %v5437_v63  ;;  %v4911_v14 = vpop.f32.mrb[224].mxu0 }
 0x403   : > { %v4912_v17 = vadd.f32 %v4911_v14, %v9565_v44  ;;  %v4913_v21 = vpop.f32.mrb[225].mxu0 }
 0x404   : > { %5694 = vst.msk [vmem:[%s9582_s13 + $0x278] sm:$0xff] %vm5614_vm1, %v5565_v60  ;;  %v4914_v58 = vpop.f32.mrb[226].mxu0 }
 0x405   : > { %vm5182_vm10 = vcmp.ge.f32.partialorder %v4912_v17, 0.0  ;;  %v5310_v12 = vmul.f32 0.01, %v4912_v17  ;;  %v4915_v40 = vadd.f32 %v4914_v58, %v9565_v44  ;;  %v4916_v34 = vpop.f32.mrb[227].mxu0 }
 0x407   : > { %v5438_v41 = vsel %vm5182_vm10, %v4912_v17, %v5310_v12  ;;  %vm5183_vm11 = vcmp.ge.f32.partialorder %v4915_v40, 0.0  ;;  %v5311_v30 = vmul.f32 0.01, %v4915_v40 }
 0x408   : > { %v5566_v26 = vmul.f32 255.0, %v5438_v41 }
 0x409   : > { %v5439_v59 = vsel %vm5183_vm11, %v4915_v40, %v5311_v30 }
 0x40a   : > { %5695 = vst.msk [vmem:[%s9582_s13 + $0x280] sm:$0xff] %vm5614_vm1, %v5566_v26  ;;  %v5567_v35 = vmul.f32 255.0, %v5439_v59  ;;  %v4919_v38 = vpop.f32.mrb[228].mxu0 }
 0x40b   : > { %v4920_v11 = vadd.f32 %v4919_v38, %v9565_v44  ;;  %v4921_v8 = vpop.f32.mrb[229].mxu0 }
 0x40c   : > { %5696 = vst.msk [vmem:[%s9582_s13 + $0x288] sm:$0xff] %vm5614_vm1, %v5567_v35  ;;  %v4922_v10 = vpop.f32.mrb[230].mxu0 }
 0x40d   : > { %vm5184_vm12 = vcmp.ge.f32.partialorder %v4920_v11, 0.0  ;;  %v5312_v13 = vmul.f32 0.01, %v4920_v11  ;;  %v4923_v45 = vadd.f32 %v4922_v10, %v9565_v44  ;;  %v4924_v28 = vpop.f32.mrb[231].mxu0 }
 0x40f   : > { %v5440_v23 = vsel %vm5184_vm12, %v4920_v11, %v5312_v13  ;;  %vm5185_vm14 = vcmp.ge.f32.partialorder %v4923_v45, 0.0  ;;  %v5313_v33 = vmul.f32 0.01, %v4923_v45 }
 0x410   : > { %v5568_v54 = vmul.f32 255.0, %v5440_v23 }
 0x411   : > { %v5441_v1 = vsel %vm5185_vm14, %v4923_v45, %v5313_v33 }
 0x412   : > { %5697 = vst.msk [vmem:[%s9582_s13 + $0x290] sm:$0xff] %vm5614_vm1, %v5568_v54  ;;  %v5569_v53 = vmul.f32 255.0, %v5441_v1  ;;  %v4927_v47 = vpop.f32.mrb[232].mxu0 }
 0x413   : > { %v4928_v18 = vadd.f32 %v4927_v47, %v9565_v44  ;;  %v4929_v50 = vpop.f32.mrb[233].mxu0 }
 0x414   : > { %5698 = vst.msk [vmem:[%s9582_s13 + $0x298] sm:$0xff] %vm5614_vm1, %v5569_v53  ;;  %v4930_v56 = vpop.f32.mrb[234].mxu0 }
 0x415   : > { %vm5186_vm15 = vcmp.ge.f32.partialorder %v4928_v18, 0.0  ;;  %v5314_v4 = vmul.f32 0.01, %v4928_v18  ;;  %v4931_v61 = vadd.f32 %v4930_v56, %v9565_v44  ;;  %v4932_v49 = vpop.f32.mrb[235].mxu0 }
 0x417   : > { %v5442_v62 = vsel %vm5186_vm15, %v4928_v18, %v5314_v4  ;;  %vm5187_vm2 = vcmp.ge.f32.partialorder %v4931_v61, 0.0  ;;  %v5315_v16 = vmul.f32 0.01, %v4931_v61 }
 0x418   : > { %v5570_v25 = vmul.f32 255.0, %v5442_v62 }
 0x419   : > { %v5443_v27 = vsel %vm5187_vm2, %v4931_v61, %v5315_v16 }
 0x41a   : > { %5699 = vst.msk [vmem:[%s9582_s13 + $0x2a0] sm:$0xff] %vm5614_vm1, %v5570_v25  ;;  %v5571_v5 = vmul.f32 255.0, %v5443_v27  ;;  %v4935_v24 = vpop.f32.mrb[236].mxu0 }
 0x41b   : > { %v4936_v51 = vadd.f32 %v4935_v24, %v9565_v44  ;;  %v4937_v36 = vpop.f32.mrb[237].mxu0 }
 0x41c   : > { %5700 = vst.msk [vmem:[%s9582_s13 + $0x2a8] sm:$0xff] %vm5614_vm1, %v5571_v5  ;;  %v4938_v43 = vpop.f32.mrb[238].mxu0 }
 0x41d   : > { %vm5188_vm5 = vcmp.ge.f32.partialorder %v4936_v51, 0.0  ;;  %v5316_v19 = vmul.f32 0.01, %v4936_v51  ;;  %v4939_v42 = vadd.f32 %v4938_v43, %v9565_v44  ;;  %v4940_v52 = vpop.f32.mrb[239].mxu0 }
 0x41f   : > { %v5444_v39 = vsel %vm5188_vm5, %v4936_v51, %v5316_v19  ;;  %vm5189_vm3 = vcmp.ge.f32.partialorder %v4939_v42, 0.0  ;;  %v5317_v32 = vmul.f32 0.01, %v4939_v42 }
 0x420   : > { %v5572_v7 = vmul.f32 255.0, %v5444_v39 }
 0x421   : > { %v5445_v31 = vsel %vm5189_vm3, %v4939_v42, %v5317_v32 }
 0x422   : > { %5701 = vst.msk [vmem:[%s9582_s13 + $0x2b0] sm:$0xff] %vm5614_vm1, %v5572_v7  ;;  %v5573_v57 = vmul.f32 255.0, %v5445_v31  ;;  %v4943_v9 = vpop.f32.mrb[240].mxu0 }
 0x423   : > { %v4944_v29 = vadd.f32 %v4943_v9, %v9565_v44  ;;  %v4945_v20 = vpop.f32.mrb[241].mxu0 }
 0x424   : > { %5702 = vst.msk [vmem:[%s9582_s13 + $0x2b8] sm:$0xff] %vm5614_vm1, %v5573_v57  ;;  %v4946_v48 = vpop.f32.mrb[242].mxu0 }
 0x425   : > { %vm5190_vm4 = vcmp.ge.f32.partialorder %v4944_v29, 0.0  ;;  %v5318_v6 = vmul.f32 0.01, %v4944_v29  ;;  %v4947_v2 = vadd.f32 %v4946_v48, %v9565_v44  ;;  %v4948_v22 = vpop.f32.mrb[243].mxu0 }
 0x427   : > { %v5446_v0 = vsel %vm5190_vm4, %v4944_v29, %v5318_v6  ;;  %vm5191_vm6 = vcmp.ge.f32.partialorder %v4947_v2, 0.0  ;;  %v5319_v3 = vmul.f32 0.01, %v4947_v2 }
 0x428   : > { %v5574_v55 = vmul.f32 255.0, %v5446_v0 }
 0x429   : > { %v5447_v37 = vsel %vm5191_vm6, %v4947_v2, %v5319_v3 }
 0x42a   : > { %5703 = vst.msk [vmem:[%s9582_s13 + $0x2c0] sm:$0xff] %vm5614_vm1, %v5574_v55  ;;  %v5575_v46 = vmul.f32 255.0, %v5447_v37  ;;  %v4951_v15 = vpop.f32.mrb[244].mxu0 }
 0x42b   : > { %v4952_v63 = vadd.f32 %v4951_v15, %v9565_v44  ;;  %v4953_v60 = vpop.f32.mrb[245].mxu0 }
 0x42c   : > { %5704 = vst.msk [vmem:[%s9582_s13 + $0x2c8] sm:$0xff] %vm5614_vm1, %v5575_v46  ;;  %v4954_v14 = vpop.f32.mrb[246].mxu0 }
 0x42d   : > { %vm5192_vm7 = vcmp.ge.f32.partialorder %v4952_v63, 0.0  ;;  %v5320_v17 = vmul.f32 0.01, %v4952_v63  ;;  %v4955_v21 = vadd.f32 %v4954_v14, %v9565_v44  ;;  %v4956_v58 = vpop.f32.mrb[247].mxu0 }
 0x42f   : > { %v5448_v12 = vsel %vm5192_vm7, %v4952_v63, %v5320_v17  ;;  %vm5193_vm0 = vcmp.ge.f32.partialorder %v4955_v21, 0.0  ;;  %v5321_v40 = vmul.f32 0.01, %v4955_v21 }
 0x430   : > { %v5576_v34 = vmul.f32 255.0, %v5448_v12 }
 0x431   : > { %v5449_v41 = vsel %vm5193_vm0, %v4955_v21, %v5321_v40 }
 0x432   : > { %5705 = vst.msk [vmem:[%s9582_s13 + $0x2d0] sm:$0xff] %vm5614_vm1, %v5576_v34  ;;  %v5577_v30 = vmul.f32 255.0, %v5449_v41  ;;  %v4959_v26 = vpop.f32.mrb[248].mxu0 }
 0x433   : > { %v4960_v59 = vadd.f32 %v4959_v26, %v9565_v44  ;;  %v4961_v35 = vpop.f32.mrb[249].mxu0 }
 0x434   : > { %5706 = vst.msk [vmem:[%s9582_s13 + $0x2d8] sm:$0xff] %vm5614_vm1, %v5577_v30  ;;  %v4962_v38 = vpop.f32.mrb[250].mxu0 }
 0x435   : > { %vm5194_vm8 = vcmp.ge.f32.partialorder %v4960_v59, 0.0  ;;  %v5322_v11 = vmul.f32 0.01, %v4960_v59  ;;  %v4963_v8 = vadd.f32 %v4962_v38, %v9565_v44  ;;  %v4964_v10 = vpop.f32.mrb[251].mxu0 }
 0x437   : > { %v5450_v13 = vsel %vm5194_vm8, %v4960_v59, %v5322_v11  ;;  %vm5195_vm13 = vcmp.ge.f32.partialorder %v4963_v8, 0.0  ;;  %v5323_v45 = vmul.f32 0.01, %v4963_v8 }
 0x438   : > { %v5578_v28 = vmul.f32 255.0, %v5450_v13 }
 0x439   : > { %v5451_v23 = vsel %vm5195_vm13, %v4963_v8, %v5323_v45 }
 0x43a   : > { %5707 = vst.msk [vmem:[%s9582_s13 + $0x2e0] sm:$0xff] %vm5614_vm1, %v5578_v28  ;;  %v5579_v33 = vmul.f32 255.0, %v5451_v23  ;;  %v4967_v54 = vpop.f32.mrb[252].mxu0 }
 0x43b   : > { %v4968_v1 = vadd.f32 %v4967_v54, %v9565_v44  ;;  %v4969_v53 = vpop.f32.mrb[253].mxu0 }
 0x43c   : > { %5708 = vst.msk [vmem:[%s9582_s13 + $0x2e8] sm:$0xff] %vm5614_vm1, %v5579_v33  ;;  %v4970_v47 = vpop.f32.mrb[254].mxu0 }
 0x43d   : > { %vm5196_vm9 = vcmp.ge.f32.partialorder %v4968_v1, 0.0  ;;  %v5324_v18 = vmul.f32 0.01, %v4968_v1  ;;  %v4971_v50 = vadd.f32 %v4970_v47, %v9565_v44  ;;  %v4972_v56 = vpop.f32.mrb[255].mxu0 }
 0x43f   : > { %v5452_v4 = vsel %vm5196_vm9, %v4968_v1, %v5324_v18  ;;  %vm5197_vm10 = vcmp.ge.f32.partialorder %v4971_v50, 0.0  ;;  %v5325_v61 = vmul.f32 0.01, %v4971_v50 }
 0x440   : > { %v5580_v49 = vmul.f32 255.0, %v5452_v4 }
 0x441   : > { %v5453_v62 = vsel %vm5197_vm10, %v4971_v50, %v5325_v61 }
 0x442   : > { %5709 = vst.msk [vmem:[%s9582_s13 + $0x2f0] sm:$0xff] %vm5614_vm1, %v5580_v49  ;;  %v5581_v16 = vmul.f32 255.0, %v5453_v62  ;;  %v4975_v25 = vpop.f32.mrb[0].mxu0 }
 0x443   : > { %v4976_v27 = vadd.f32 %v4975_v25, %v9565_v44  ;;  %v4977_v5 = vpop.f32.mrb[1].mxu0 }
 0x444   : > { %5710 = vst.msk [vmem:[%s9582_s13 + $0x2f8] sm:$0xff] %vm5614_vm1, %v5581_v16  ;;  %v4978_v24 = vpop.f32.mrb[2].mxu0 }
 0x445   : > { %vm5198_vm11 = vcmp.ge.f32.partialorder %v4976_v27, 0.0  ;;  %v5326_v51 = vmul.f32 0.01, %v4976_v27  ;;  %v4979_v36 = vadd.f32 %v4978_v24, %v9565_v44  ;;  %v4980_v43 = vpop.f32.mrb[3].mxu0 }
 0x447   : > { %v5454_v19 = vsel %vm5198_vm11, %v4976_v27, %v5326_v51  ;;  %vm5199_vm12 = vcmp.ge.f32.partialorder %v4979_v36, 0.0  ;;  %v5327_v42 = vmul.f32 0.01, %v4979_v36 }
 0x448   : > { %v5582_v52 = vmul.f32 255.0, %v5454_v19 }
 0x449   : > { %v5455_v39 = vsel %vm5199_vm12, %v4979_v36, %v5327_v42 }
 0x44a   : > { %5711 = vst.msk [vmem:[%s9582_s13 + $0x300] sm:$0xff] %vm5614_vm1, %v5582_v52  ;;  %v5583_v32 = vmul.f32 255.0, %v5455_v39 }
 0x44b   : > { %v4983_v7 = vpop.f32.mrb[4].mxu0 }
 0x44c   : > { %v4984_v31 = vadd.f32 %v4983_v7, %v9565_v44  ;;  %v4985_v57 = vpop.f32.mrb[5].mxu0  ;;  %5712 = vst.msk [vmem:[%s9582_s13 + $0x308] sm:$0xff] %vm5614_vm1, %v5583_v32 }
 0x44d   : > { %v4986_v9 = vpop.f32.mrb[6].mxu0 }
 0x44e   : > { %vm5200_vm14 = vcmp.ge.f32.partialorder %v4984_v31, 0.0  ;;  %v5328_v29 = vmul.f32 0.01, %v4984_v31  ;;  %v4987_v20 = vadd.f32 %v4986_v9, %v9565_v44  ;;  %v4988_v48 = vpop.f32.mrb[7].mxu0 }
 0x450   : > { %v5456_v6 = vsel %vm5200_vm14, %v4984_v31, %v5328_v29  ;;  %vm5201_vm15 = vcmp.ge.f32.partialorder %v4987_v20, 0.0  ;;  %v5329_v2 = vmul.f32 0.01, %v4987_v20 }
 0x451   : > { %v5584_v22 = vmul.f32 255.0, %v5456_v6 }
 0x452   : > { %v5457_v0 = vsel %vm5201_vm15, %v4987_v20, %v5329_v2 }
 0x453   : > { %5713 = vst.msk [vmem:[%s9582_s13 + $0x310] sm:$0xff] %vm5614_vm1, %v5584_v22  ;;  %v5585_v3 = vmul.f32 255.0, %v5457_v0  ;;  %v4991_v55 = vpop.f32.mrb[8].mxu0 }
 0x454   : > { %v4992_v37 = vadd.f32 %v4991_v55, %v9565_v44  ;;  %v4993_v46 = vpop.f32.mrb[9].mxu0 }
 0x455   : > { %5714 = vst.msk [vmem:[%s9582_s13 + $0x318] sm:$0xff] %vm5614_vm1, %v5585_v3  ;;  %v4994_v15 = vpop.f32.mrb[10].mxu0 }
 0x456   : > { %vm5202_vm2 = vcmp.ge.f32.partialorder %v4992_v37, 0.0  ;;  %v5330_v63 = vmul.f32 0.01, %v4992_v37  ;;  %v4995_v60 = vadd.f32 %v4994_v15, %v9565_v44  ;;  %v4996_v14 = vpop.f32.mrb[11].mxu0 }
 0x458   : > { %v5458_v17 = vsel %vm5202_vm2, %v4992_v37, %v5330_v63  ;;  %vm5203_vm5 = vcmp.ge.f32.partialorder %v4995_v60, 0.0  ;;  %v5331_v21 = vmul.f32 0.01, %v4995_v60 }
 0x459   : > { %v5586_v58 = vmul.f32 255.0, %v5458_v17 }
 0x45a   : > { %v5459_v12 = vsel %vm5203_vm5, %v4995_v60, %v5331_v21 }
 0x45b   : > { %5715 = vst.msk [vmem:[%s9582_s13 + $0x320] sm:$0xff] %vm5614_vm1, %v5586_v58  ;;  %v5587_v40 = vmul.f32 255.0, %v5459_v12  ;;  %v4999_v34 = vpop.f32.mrb[12].mxu0 }
 0x45c   : > { %v5000_v41 = vadd.f32 %v4999_v34, %v9565_v44  ;;  %v5001_v30 = vpop.f32.mrb[13].mxu0 }
 0x45d   : > { %5716 = vst.msk [vmem:[%s9582_s13 + $0x328] sm:$0xff] %vm5614_vm1, %v5587_v40  ;;  %v5002_v26 = vpop.f32.mrb[14].mxu0 }
 0x45e   : > { %vm5204_vm3 = vcmp.ge.f32.partialorder %v5000_v41, 0.0  ;;  %v5332_v59 = vmul.f32 0.01, %v5000_v41  ;;  %v5003_v35 = vadd.f32 %v5002_v26, %v9565_v44  ;;  %v5004_v38 = vpop.f32.mrb[15].mxu0 }
 0x460   : > { %v5460_v11 = vsel %vm5204_vm3, %v5000_v41, %v5332_v59  ;;  %vm5205_vm4 = vcmp.ge.f32.partialorder %v5003_v35, 0.0  ;;  %v5333_v8 = vmul.f32 0.01, %v5003_v35 }
 0x461   : > { %v5588_v10 = vmul.f32 255.0, %v5460_v11 }
 0x462   : > { %v5461_v13 = vsel %vm5205_vm4, %v5003_v35, %v5333_v8 }
 0x463   : > { %5717 = vst.msk [vmem:[%s9582_s13 + $0x330] sm:$0xff] %vm5614_vm1, %v5588_v10  ;;  %v5589_v45 = vmul.f32 255.0, %v5461_v13  ;;  %v5007_v28 = vpop.f32.mrb[16].mxu0 }
 0x464   : > { %v5008_v23 = vadd.f32 %v5007_v28, %v9565_v44  ;;  %v5009_v33 = vpop.f32.mrb[17].mxu0 }
 0x465   : > { %5718 = vst.msk [vmem:[%s9582_s13 + $0x338] sm:$0xff] %vm5614_vm1, %v5589_v45  ;;  %v5010_v54 = vpop.f32.mrb[18].mxu0 }
 0x466   : > { %vm5206_vm6 = vcmp.ge.f32.partialorder %v5008_v23, 0.0  ;;  %v5334_v1 = vmul.f32 0.01, %v5008_v23  ;;  %v5011_v53 = vadd.f32 %v5010_v54, %v9565_v44  ;;  %v5012_v47 = vpop.f32.mrb[19].mxu0 }
 0x468   : > { %v5462_v18 = vsel %vm5206_vm6, %v5008_v23, %v5334_v1  ;;  %vm5207_vm7 = vcmp.ge.f32.partialorder %v5011_v53, 0.0  ;;  %v5335_v50 = vmul.f32 0.01, %v5011_v53 }
 0x469   : > { %v5590_v56 = vmul.f32 255.0, %v5462_v18 }
 0x46a   : > { %v5463_v4 = vsel %vm5207_vm7, %v5011_v53, %v5335_v50 }
 0x46b   : > { %5719 = vst.msk [vmem:[%s9582_s13 + $0x340] sm:$0xff] %vm5614_vm1, %v5590_v56  ;;  %v5591_v61 = vmul.f32 255.0, %v5463_v4 }
 0x46d   : > { %5720 = vst.msk [vmem:[%s9582_s13 + $0x348] sm:$0xff] %vm5614_vm1, %v5591_v61 }
 0x46f   : > { %v5015_v49 = vpop.f32.mrb[20].mxu0 }
 0x470   : > { %v5016_v62 = vadd.f32 %v5015_v49, %v9565_v44  ;;  %v5017_v16 = vpop.f32.mrb[21].mxu0 }
 0x471   : > { %v5018_v25 = vpop.f32.mrb[22].mxu0 }
 0x472   : > { %vm5208_vm0 = vcmp.ge.f32.partialorder %v5016_v62, 0.0  ;;  %v5336_v27 = vmul.f32 0.01, %v5016_v62  ;;  %v5019_v5 = vadd.f32 %v5018_v25, %v9565_v44  ;;  %v5020_v24 = vpop.f32.mrb[23].mxu0 }
 0x474   : > { %v5464_v51 = vsel %vm5208_vm0, %v5016_v62, %v5336_v27  ;;  %vm5209_vm8 = vcmp.ge.f32.partialorder %v5019_v5, 0.0  ;;  %v5337_v36 = vmul.f32 0.01, %v5019_v5 }
 0x475   : > { %v5592_v43 = vmul.f32 255.0, %v5464_v51 }
 0x476   : > { %v5465_v19 = vsel %vm5209_vm8, %v5019_v5, %v5337_v36 }
 0x477   : > { %5721 = vst.msk [vmem:[%s9582_s13 + $0x350] sm:$0xff] %vm5614_vm1, %v5592_v43  ;;  %v5593_v42 = vmul.f32 255.0, %v5465_v19  ;;  %v5023_v52 = vpop.f32.mrb[24].mxu0 }
 0x478   : > { %v5024_v39 = vadd.f32 %v5023_v52, %v9565_v44  ;;  %v5025_v32 = vpop.f32.mrb[25].mxu0 }
 0x479   : > { %5722 = vst.msk [vmem:[%s9582_s13 + $0x358] sm:$0xff] %vm5614_vm1, %v5593_v42  ;;  %v5026_v7 = vpop.f32.mrb[26].mxu0 }
 0x47a   : > { %vm5210_vm13 = vcmp.ge.f32.partialorder %v5024_v39, 0.0  ;;  %v5338_v31 = vmul.f32 0.01, %v5024_v39  ;;  %v5027_v57 = vadd.f32 %v5026_v7, %v9565_v44  ;;  %v5028_v9 = vpop.f32.mrb[27].mxu0 }
 0x47c   : > { %v5466_v29 = vsel %vm5210_vm13, %v5024_v39, %v5338_v31  ;;  %vm5211_vm9 = vcmp.ge.f32.partialorder %v5027_v57, 0.0  ;;  %v5339_v20 = vmul.f32 0.01, %v5027_v57 }
 0x47d   : > { %v5594_v48 = vmul.f32 255.0, %v5466_v29 }
 0x47e   : > { %v5467_v6 = vsel %vm5211_vm9, %v5027_v57, %v5339_v20 }
 0x47f   : > { %5723 = vst.msk [vmem:[%s9582_s13 + $0x360] sm:$0xff] %vm5614_vm1, %v5594_v48  ;;  %v5595_v2 = vmul.f32 255.0, %v5467_v6  ;;  %v5031_v22 = vpop.f32.mrb[28].mxu0 }
 0x480   : > { %v5032_v0 = vadd.f32 %v5031_v22, %v9565_v44  ;;  %v5033_v3 = vpop.f32.mrb[29].mxu0 }
 0x481   : > { %5724 = vst.msk [vmem:[%s9582_s13 + $0x368] sm:$0xff] %vm5614_vm1, %v5595_v2  ;;  %v5034_v55 = vpop.f32.mrb[30].mxu0 }
 0x482   : > { %vm5212_vm10 = vcmp.ge.f32.partialorder %v5032_v0, 0.0  ;;  %v5340_v37 = vmul.f32 0.01, %v5032_v0  ;;  %v5035_v46 = vadd.f32 %v5034_v55, %v9565_v44  ;;  %v5036_v15 = vpop.f32.mrb[31].mxu0 }
 0x484   : > { %v5468_v63 = vsel %vm5212_vm10, %v5032_v0, %v5340_v37  ;;  %vm5213_vm11 = vcmp.ge.f32.partialorder %v5035_v46, 0.0  ;;  %v5341_v60 = vmul.f32 0.01, %v5035_v46 }
 0x485   : > { %v5596_v14 = vmul.f32 255.0, %v5468_v63 }
 0x486   : > { %v5469_v17 = vsel %vm5213_vm11, %v5035_v46, %v5341_v60 }
 0x487   : > { %5725 = vst.msk [vmem:[%s9582_s13 + $0x370] sm:$0xff] %vm5614_vm1, %v5596_v14  ;;  %v5597_v21 = vmul.f32 255.0, %v5469_v17  ;;  %v5039_v58 = vpop.f32.mrb[32].mxu0 }
 0x488   : > { %v5040_v12 = vadd.f32 %v5039_v58, %v9565_v44  ;;  %v5041_v40 = vpop.f32.mrb[33].mxu0 }
 0x489   : > { %5726 = vst.msk [vmem:[%s9582_s13 + $0x378] sm:$0xff] %vm5614_vm1, %v5597_v21  ;;  %v5042_v34 = vpop.f32.mrb[34].mxu0 }
 0x48a   : > { %vm5214_vm12 = vcmp.ge.f32.partialorder %v5040_v12, 0.0  ;;  %v5342_v41 = vmul.f32 0.01, %v5040_v12  ;;  %v5043_v30 = vadd.f32 %v5042_v34, %v9565_v44  ;;  %v5044_v26 = vpop.f32.mrb[35].mxu0 }
 0x48c   : > { %v5470_v59 = vsel %vm5214_vm12, %v5040_v12, %v5342_v41  ;;  %vm5215_vm14 = vcmp.ge.f32.partialorder %v5043_v30, 0.0  ;;  %v5343_v35 = vmul.f32 0.01, %v5043_v30 }
 0x48d   : > { %v5598_v38 = vmul.f32 255.0, %v5470_v59 }
 0x48e   : > { %v5471_v11 = vsel %vm5215_vm14, %v5043_v30, %v5343_v35 }
 0x48f   : > { %5727 = vst.msk [vmem:[%s9582_s13 + $0x380] sm:$0xff] %vm5614_vm1, %v5598_v38  ;;  %v5599_v8 = vmul.f32 255.0, %v5471_v11  ;;  %v5047_v10 = vpop.f32.mrb[36].mxu0 }
 0x490   : > { %v5048_v13 = vadd.f32 %v5047_v10, %v9565_v44  ;;  %v5049_v45 = vpop.f32.mrb[37].mxu0 }
 0x491   : > { %5728 = vst.msk [vmem:[%s9582_s13 + $0x388] sm:$0xff] %vm5614_vm1, %v5599_v8  ;;  %v5050_v28 = vpop.f32.mrb[38].mxu0 }
 0x492   : > { %vm5216_vm15 = vcmp.ge.f32.partialorder %v5048_v13, 0.0  ;;  %v5344_v23 = vmul.f32 0.01, %v5048_v13  ;;  %v5051_v33 = vadd.f32 %v5050_v28, %v9565_v44  ;;  %v5052_v54 = vpop.f32.mrb[39].mxu0 }
 0x494   : > { %v5472_v1 = vsel %vm5216_vm15, %v5048_v13, %v5344_v23  ;;  %vm5217_vm2 = vcmp.ge.f32.partialorder %v5051_v33, 0.0  ;;  %v5345_v53 = vmul.f32 0.01, %v5051_v33 }
 0x495   : > { %v5600_v47 = vmul.f32 255.0, %v5472_v1 }
 0x496   : > { %v5473_v18 = vsel %vm5217_vm2, %v5051_v33, %v5345_v53 }
 0x497   : > { %5729 = vst.msk [vmem:[%s9582_s13 + $0x390] sm:$0xff] %vm5614_vm1, %v5600_v47  ;;  %v5601_v50 = vmul.f32 255.0, %v5473_v18  ;;  %v5055_v56 = vpop.f32.mrb[40].mxu0 }
 0x498   : > { %v5056_v4 = vadd.f32 %v5055_v56, %v9565_v44  ;;  %v5057_v61 = vpop.f32.mrb[41].mxu0 }
 0x499   : > { %5730 = vst.msk [vmem:[%s9582_s13 + $0x398] sm:$0xff] %vm5614_vm1, %v5601_v50  ;;  %v5058_v49 = vpop.f32.mrb[42].mxu0 }
 0x49a   : > { %vm5218_vm5 = vcmp.ge.f32.partialorder %v5056_v4, 0.0  ;;  %v5346_v62 = vmul.f32 0.01, %v5056_v4  ;;  %v5059_v16 = vadd.f32 %v5058_v49, %v9565_v44  ;;  %v5060_v25 = vpop.f32.mrb[43].mxu0 }
 0x49c   : > { %v5474_v27 = vsel %vm5218_vm5, %v5056_v4, %v5346_v62  ;;  %vm5219_vm3 = vcmp.ge.f32.partialorder %v5059_v16, 0.0  ;;  %v5347_v5 = vmul.f32 0.01, %v5059_v16 }
 0x49d   : > { %v5602_v24 = vmul.f32 255.0, %v5474_v27 }
 0x49e   : > { %v5475_v51 = vsel %vm5219_vm3, %v5059_v16, %v5347_v5 }
 0x49f   : > { %5731 = vst.msk [vmem:[%s9582_s13 + $0x3a0] sm:$0xff] %vm5614_vm1, %v5602_v24  ;;  %v5603_v36 = vmul.f32 255.0, %v5475_v51  ;;  %v5063_v43 = vpop.f32.mrb[44].mxu0 }
 0x4a0   : > { %v5064_v19 = vadd.f32 %v5063_v43, %v9565_v44  ;;  %v5065_v42 = vpop.f32.mrb[45].mxu0 }
 0x4a1   : > { %5732 = vst.msk [vmem:[%s9582_s13 + $0x3a8] sm:$0xff] %vm5614_vm1, %v5603_v36  ;;  %v5066_v52 = vpop.f32.mrb[46].mxu0 }
 0x4a2   : > { %vm5220_vm4 = vcmp.ge.f32.partialorder %v5064_v19, 0.0  ;;  %v5348_v39 = vmul.f32 0.01, %v5064_v19  ;;  %v5067_v32 = vadd.f32 %v5066_v52, %v9565_v44  ;;  %v5068_v7 = vpop.f32.mrb[47].mxu0 }
 0x4a4   : > { %v5476_v31 = vsel %vm5220_vm4, %v5064_v19, %v5348_v39  ;;  %vm5221_vm6 = vcmp.ge.f32.partialorder %v5067_v32, 0.0  ;;  %v5349_v57 = vmul.f32 0.01, %v5067_v32 }
 0x4a5   : > { %v5604_v9 = vmul.f32 255.0, %v5476_v31 }
 0x4a6   : > { %v5477_v29 = vsel %vm5221_vm6, %v5067_v32, %v5349_v57 }
 0x4a7   : > { %5733 = vst.msk [vmem:[%s9582_s13 + $0x3b0] sm:$0xff] %vm5614_vm1, %v5604_v9  ;;  %v5605_v20 = vmul.f32 255.0, %v5477_v29  ;;  %v5071_v48 = vpop.f32.mrb[48].mxu0 }
 0x4a8   : > { %v5072_v6 = vadd.f32 %v5071_v48, %v9565_v44  ;;  %v5073_v2 = vpop.f32.mrb[49].mxu0 }
 0x4a9   : > { %5734 = vst.msk [vmem:[%s9582_s13 + $0x3b8] sm:$0xff] %vm5614_vm1, %v5605_v20  ;;  %v5074_v22 = vpop.f32.mrb[50].mxu0 }
 0x4aa   : > { %vm5222_vm7 = vcmp.ge.f32.partialorder %v5072_v6, 0.0  ;;  %v5350_v0 = vmul.f32 0.01, %v5072_v6  ;;  %v5075_v3 = vadd.f32 %v5074_v22, %v9565_v44  ;;  %v5076_v55 = vpop.f32.mrb[51].mxu0 }
 0x4ac   : > { %v5478_v37 = vsel %vm5222_vm7, %v5072_v6, %v5350_v0  ;;  %vm5223_vm0 = vcmp.ge.f32.partialorder %v5075_v3, 0.0  ;;  %v5351_v46 = vmul.f32 0.01, %v5075_v3 }
 0x4ad   : > { %v5606_v15 = vmul.f32 255.0, %v5478_v37 }
 0x4ae   : > { %v5479_v63 = vsel %vm5223_vm0, %v5075_v3, %v5351_v46 }
 0x4af   : > { %5735 = vst.msk [vmem:[%s9582_s13 + $0x3c0] sm:$0xff] %vm5614_vm1, %v5606_v15  ;;  %v5607_v60 = vmul.f32 255.0, %v5479_v63  ;;  %v5079_v14 = vpop.f32.mrb[52].mxu0 }
 0x4b0   : > { %v5080_v17 = vadd.f32 %v5079_v14, %v9565_v44  ;;  %v5081_v21 = vpop.f32.mrb[53].mxu0 }
 0x4b1   : > { %5736 = vst.msk [vmem:[%s9582_s13 + $0x3c8] sm:$0xff] %vm5614_vm1, %v5607_v60  ;;  %v5082_v58 = vpop.f32.mrb[54].mxu0 }
 0x4b2   : > { %vm5224_vm8 = vcmp.ge.f32.partialorder %v5080_v17, 0.0  ;;  %v5352_v12 = vmul.f32 0.01, %v5080_v17  ;;  %v5083_v40 = vadd.f32 %v5082_v58, %v9565_v44  ;;  %v5084_v34 = vpop.f32.mrb[55].mxu0 }
 0x4b4   : > { %v5480_v41 = vsel %vm5224_vm8, %v5080_v17, %v5352_v12  ;;  %vm5225_vm13 = vcmp.ge.f32.partialorder %v5083_v40, 0.0  ;;  %v5353_v30 = vmul.f32 0.01, %v5083_v40 }
 0x4b5   : > { %v5608_v26 = vmul.f32 255.0, %v5480_v41 }
 0x4b6   : > { %v5481_v59 = vsel %vm5225_vm13, %v5083_v40, %v5353_v30 }
 0x4b7   : > { %5737 = vst.msk [vmem:[%s9582_s13 + $0x3d0] sm:$0xff] %vm5614_vm1, %v5608_v26  ;;  %v5609_v35 = vmul.f32 255.0, %v5481_v59 }
 0x4b8   : > { %v5087_v38 = vpop.f32.mrb[56].mxu0 }
 0x4b9   : > { %v5088_v11 = vadd.f32 %v5087_v38, %v9565_v44  ;;  %v5089_v8 = vpop.f32.mrb[57].mxu0  ;;  %5738 = vst.msk [vmem:[%s9582_s13 + $0x3d8] sm:$0xff] %vm5614_vm1, %v5609_v35 }
 0x4ba   : > { %v5090_v10 = vpop.f32.mrb[58].mxu0 }
 0x4bb   : > { %vm5226_vm9 = vcmp.ge.f32.partialorder %v5088_v11, 0.0  ;;  %v5354_v13 = vmul.f32 0.01, %v5088_v11  ;;  %v5091_v45 = vadd.f32 %v5090_v10, %v9565_v44  ;;  %v5092_v28 = vpop.f32.mrb[59].mxu0 }
 0x4bd   : > { %v5482_v23 = vsel %vm5226_vm9, %v5088_v11, %v5354_v13  ;;  %vm5227_vm10 = vcmp.ge.f32.partialorder %v5091_v45, 0.0  ;;  %v5355_v33 = vmul.f32 0.01, %v5091_v45 }
 0x4be   : > { %v5610_v54 = vmul.f32 255.0, %v5482_v23 }
 0x4bf   : > { %v5483_v1 = vsel %vm5227_vm10, %v5091_v45, %v5355_v33 }
 0x4c0   : > { %5739 = vst.msk [vmem:[%s9582_s13 + $0x3e0] sm:$0xff] %vm5614_vm1, %v5610_v54  ;;  %v5611_v53 = vmul.f32 255.0, %v5483_v1  ;;  %v5095_v47 = vpop.f32.mrb[60].mxu0 }
 0x4c1   : > { %v5096_v18 = vadd.f32 %v5095_v47, %v9565_v44  ;;  %v5097_v50 = vpop.f32.mrb[61].mxu0 }
 0x4c2   : > { %5740 = vst.msk [vmem:[%s9582_s13 + $0x3e8] sm:$0xff] %vm5614_vm1, %v5611_v53  ;;  %v5098_v56 = vpop.f32.mrb[62].mxu0 }
 0x4c3   : > { %vm5228_vm11 = vcmp.ge.f32.partialorder %v5096_v18, 0.0  ;;  %v5356_v4 = vmul.f32 0.01, %v5096_v18  ;;  %v5099_v61 = vadd.f32 %v5098_v56, %v9565_v44  ;;  %v5100_v49 = vpop.f32.mrb[63].mxu0 }
 0x4c5   : > { %v5484_v62 = vsel %vm5228_vm11, %v5096_v18, %v5356_v4  ;;  %vm5229_vm12 = vcmp.ge.f32.partialorder %v5099_v61, 0.0  ;;  %v5357_v16 = vmul.f32 0.01, %v5099_v61 }
 0x4c6   : > { %v5612_v25 = vmul.f32 255.0, %v5484_v62 }
 0x4c7   : > { %v5485_v27 = vsel %vm5229_vm12, %v5099_v61, %v5357_v16 }
 0x4c8   : > { %5741 = vst.msk [vmem:[%s9582_s13 + $0x3f0] sm:$0xff] %vm5614_vm1, %v5612_v25  ;;  %v5613_v5 = vmul.f32 255.0, %v5485_v27 }
 0x4ca   : > { %5742 = vst.msk [vmem:[%s9582_s13 + $0x3f8] sm:$0xff] %vm5614_vm1, %v5613_v5 }
 0x4cb PF: > { %s19_s26 = sadd.s32 1, %s6614_s26  }
 0x4cc   : > { %p16_p4 = scmp.ge.s32.totalorder %s19_s26, 4  }
 0x4ce   :  { %18 = sbr.rel (!%p16_p4) target bundleno = 3 (0x3), region = 78 }

</bundles_post_ra>
